<compile_context>
chip_gen: v5e
topology: v5e:2x2
jax: 0.10.0
libtpu: 0.0.40
codegen_flags: <defaults>
</compile_context>

<pallas_src>
import functools

import jax
import jax.numpy as jnp
from jax.experimental import pallas as pl
from jax.experimental.pallas import tpu as pltpu

_LANES = 128
_VMEM_LIMIT = 32 * 1024 * 1024  # > v5e's 16 MiB scoped default; well under v7x's 64 MiB


def _round_up(x, m):
    return (x + m - 1) // m * m


def _pick_tile(dim, unit, cap):
    """Largest multiple of `unit` that divides `dim` and is <= cap (dim % unit == 0)."""
    best = unit
    t = unit
    while t <= min(cap, dim):
        if dim % t == 0:
            best = t
        t += unit
    return best


# ----------------------------------------------------------------------------
# Conv GEMM kernel with fused BatchNorm partial statistics in the epilogue.
#   C = A @ B   (A, B in bf16, f32 accumulator)
#   extra outputs: per-M-tile column sum and sum-of-squares of C (f32).
# ----------------------------------------------------------------------------
def _matmul_stats_kernel(a_ref, b_ref, o_ref, ps_ref, pq_ref, acc_ref):
    k = pl.program_id(2)

    @pl.when(k == 0)
    def _():
        acc_ref[...] = jnp.zeros_like(acc_ref)

    acc_ref[...] += jnp.dot(a_ref[...], b_ref[...],
                            preferred_element_type=jnp.float32)

    @pl.when(k == pl.num_programs(2) - 1)
    def _():
        y = acc_ref[...]
        o_ref[...] = y.astype(o_ref.dtype)
        ps_ref[...] = jnp.sum(y, axis=0, keepdims=True).reshape(ps_ref.shape)
        pq_ref[...] = jnp.sum(y * y, axis=0, keepdims=True).reshape(pq_ref.shape)


def pallas_conv_gemm(a, w):
    """a: [M, K0] bf16 patches, w: [Kp, Np] bf16 (Kp >= K0, zero padded rows).
    Returns (y [Mp, Np] bf16, psum [T, 1, Np] f32, psumsq [T, 1, Np] f32)."""
    M, K0 = a.shape
    Kp, Np = w.shape
    Mp = _round_up(M, 8)
    tm = _pick_tile(Mp, 8, 256)
    # If the M axis collapses to one program, split Cout finer so the second
    # TensorCore (v7x megacore) still gets work.
    tn_cap = _LANES if Mp // tm < 2 else 512
    tn = _pick_tile(Np, _LANES, tn_cap)
    tk = _pick_tile(Kp, _LANES, 512)
    if Mp != M or Kp != K0:
        a = jnp.pad(a, ((0, Mp - M), (0, Kp - K0)))
    T = Mp // tm
    grid = (T, Np // tn, Kp // tk)
    # NOTE: pl.Buffered(3) on the k-stream specs could further hide DMA latency on v6e.
    return pl.pallas_call(
        _matmul_stats_kernel,
        out_shape=(jax.ShapeDtypeStruct((Mp, Np), jnp.bfloat16),
                   jax.ShapeDtypeStruct((T, 1, Np), jnp.float32),
                   jax.ShapeDtypeStruct((T, 1, Np), jnp.float32)),
        grid_spec=pltpu.PrefetchScalarGridSpec(
            num_scalar_prefetch=0,
            grid=grid,
            in_specs=[
                pl.BlockSpec((tm, tk), lambda i, j, k: (i, k)),
                pl.BlockSpec((tk, tn), lambda i, j, k: (k, j)),
            ],
            out_specs=(
                pl.BlockSpec((tm, tn), lambda i, j, k: (i, j)),
                pl.BlockSpec((1, 1, tn), lambda i, j, k: (i, 0, j)),
                pl.BlockSpec((1, 1, tn), lambda i, j, k: (i, 0, j)),
            ),
            scratch_shapes=[pltpu.VMEM((tm, tn), jnp.float32)]),
        compiler_params=pltpu.CompilerParams(
            dimension_semantics=("parallel", "parallel", "arbitrary"),
            vmem_limit_bytes=_VMEM_LIMIT),
    )(a, w)


# ----------------------------------------------------------------------------
# Plain GEMM + bias (used for the final FC layer; no 128-row batch padding).
# ----------------------------------------------------------------------------
def _matmul_bias_kernel(a_ref, b_ref, bias_ref, o_ref, acc_ref):
    k = pl.program_id(2)

    @pl.when(k == 0)
    def _():
        acc_ref[...] = jnp.zeros_like(acc_ref)

    acc_ref[...] += jnp.dot(a_ref[...], b_ref[...],
                            preferred_element_type=jnp.float32)

    @pl.when(k == pl.num_programs(2) - 1)
    def _():
        o_ref[...] = acc_ref[...] + bias_ref[...]


def pallas_matmul_bias(a, w, bias):
    """a: [M, K], w: [Kp, Np] bf16, bias: [1, Np] f32.  Returns [Mp, Np] f32."""
    M, K0 = a.shape
    Kp, Np = w.shape
    Mp = _round_up(M, 8)
    tm = _pick_tile(Mp, 8, 256)
    tn = _pick_tile(Np, _LANES, 512)
    tk = _pick_tile(Kp, _LANES, 512)
    a = a.astype(jnp.bfloat16)
    if Mp != M or Kp != K0:
        a = jnp.pad(a, ((0, Mp - M), (0, Kp - K0)))
    grid = (Mp // tm, Np // tn, Kp // tk)
    return pl.pallas_call(
        _matmul_bias_kernel,
        out_shape=jax.ShapeDtypeStruct((Mp, Np), jnp.float32),
        grid_spec=pltpu.PrefetchScalarGridSpec(
            num_scalar_prefetch=0,
            grid=grid,
            in_specs=[
                pl.BlockSpec((tm, tk), lambda i, j, k: (i, k)),
                pl.BlockSpec((tk, tn), lambda i, j, k: (k, j)),
                pl.BlockSpec((1, tn), lambda i, j, k: (0, j)),
            ],
            out_specs=pl.BlockSpec((tm, tn), lambda i, j, k: (i, j)),
            scratch_shapes=[pltpu.VMEM((tm, tn), jnp.float32)]),
        compiler_params=pltpu.CompilerParams(
            dimension_semantics=("parallel", "parallel", "arbitrary"),
            vmem_limit_bytes=_VMEM_LIMIT),
    )(a, w, bias)


# ----------------------------------------------------------------------------
# BatchNorm finalize: partial sums -> per-channel scale/shift (tiny kernel).
# ----------------------------------------------------------------------------
def _bn_finalize_kernel(ps_ref, pq_ref, g_ref, b_ref, sc_ref, sh_ref, *, count, eps):
    s = jnp.sum(ps_ref[...], axis=0)          # (1, Np)
    q = jnp.sum(pq_ref[...], axis=0)
    inv_n = 1.0 / count
    mean = s * inv_n
    var = q * inv_n - mean * mean             # biased variance (train-mode BN)
    inv = jax.lax.rsqrt(var + eps)
    scale = g_ref[...] * inv
    sc_ref[...] = scale
    sh_ref[...] = b_ref[...] - mean * scale


def pallas_bn_finalize(ps, pq, gamma, beta, count, eps=1e-5):
    Np = ps.shape[-1]
    kernel = functools.partial(_bn_finalize_kernel, count=float(count), eps=eps)
    return pl.pallas_call(
        kernel,
        out_shape=(jax.ShapeDtypeStruct((1, Np), jnp.float32),
                   jax.ShapeDtypeStruct((1, Np), jnp.float32)),
    )(ps, pq, gamma, beta)


# ----------------------------------------------------------------------------
# Tiled normalize + optional residual + optional ReLU (reads y exactly once).
# ----------------------------------------------------------------------------
def _bn_apply_kernel(y_ref, sc_ref, sh_ref, *rest, has_res, relu):
    if has_res:
        r_ref, o_ref = rest
    else:
        (o_ref,) = rest
    y = y_ref[...].astype(jnp.float32) * sc_ref[...] + sh_ref[...]
    if has_res:
        y = y + r_ref[...].astype(jnp.float32)
    if relu:
        y = jnp.maximum(y, 0.0)
    o_ref[...] = y.astype(o_ref.dtype)


def pallas_bn_apply(y, scale, shift, residual=None, relu=True, m_true=None):
    Mp, Cp = y.shape
    m_true = Mp if m_true is None else m_true
    has_res = residual is not None
    if has_res and residual.shape[0] != Mp:
        residual = jnp.pad(residual, ((0, Mp - residual.shape[0]), (0, 0)))
    tr = _pick_tile(Mp, 8, 512) if Mp % 8 == 0 else Mp
    grid = (Mp // tr,)
    kernel = functools.partial(_bn_apply_kernel, has_res=has_res, relu=relu)
    in_specs = [pl.BlockSpec((tr, Cp), lambda i: (i, 0)),
                pl.BlockSpec((1, Cp), lambda i: (0, 0)),
                pl.BlockSpec((1, Cp), lambda i: (0, 0))]
    args = [y, scale, shift]
    if has_res:
        in_specs.append(pl.BlockSpec((tr, Cp), lambda i: (i, 0)))
        args.append(residual)
    out = pl.pallas_call(
        kernel,
        out_shape=jax.ShapeDtypeStruct((Mp, Cp), jnp.bfloat16),
        grid_spec=pltpu.PrefetchScalarGridSpec(
            num_scalar_prefetch=0,
            grid=grid,
            in_specs=in_specs,
            out_specs=pl.BlockSpec((tr, Cp), lambda i: (i, 0))),
        compiler_params=pltpu.CompilerParams(
            dimension_semantics=("parallel",),
            vmem_limit_bytes=_VMEM_LIMIT),
    )(*args)
    return out if m_true == Mp else out[:m_true]


# ----------------------------------------------------------------------------
# Global average pool (AdaptiveAvgPool2d((1,1))): tiled accumulation over H*W.
# ----------------------------------------------------------------------------
def _avgpool_kernel(x_ref, o_ref, acc_ref, *, inv_hw):
    s = pl.program_id(0)

    @pl.when(s == 0)
    def _():
        acc_ref[...] = jnp.zeros_like(acc_ref)

    acc_ref[...] += jnp.sum(x_ref[...].astype(jnp.float32), axis=1)

    @pl.when(s == pl.num_programs(0) - 1)
    def _():
        o_ref[...] = acc_ref[...] * inv_hw


def pallas_global_avg_pool(x_nhwc):
    N, H, W, C = x_nhwc.shape
    HW = H * W
    x3 = x_nhwc.reshape(N, HW, C)
    ts = _pick_tile(HW, 8, 512) if HW % 8 == 0 else HW
    kernel = functools.partial(_avgpool_kernel, inv_hw=1.0 / HW)
    return pl.pallas_call(
        kernel,
        out_shape=jax.ShapeDtypeStruct((N, C), jnp.float32),
        grid_spec=pltpu.PrefetchScalarGridSpec(
            num_scalar_prefetch=0,
            grid=(HW // ts,),
            in_specs=[pl.BlockSpec((N, ts, C), lambda s: (0, s, 0))],
            out_specs=pl.BlockSpec((N, C), lambda s: (0, 0)),
            scratch_shapes=[pltpu.VMEM((N, C), jnp.float32)]),
        compiler_params=pltpu.CompilerParams(
            dimension_semantics=("arbitrary",),
            vmem_limit_bytes=_VMEM_LIMIT),
    )(x3)


# ----------------------------------------------------------------------------
# im2col glue (layout plumbing in bf16; compute stays in Pallas).
# ----------------------------------------------------------------------------
def _im2col(x, kh, kw, stride, pad):
    # TODO(synk): fold kh*kw taps into the GEMM K grid axis (implicit im2col) to
    # avoid materializing the 9x-inflated patch matrix in HBM.
    N, H, W, C = x.shape
    if pad:
        x = jnp.pad(x, ((0, 0), (pad, pad), (pad, pad), (0, 0)))
    Ho = (H + 2 * pad - kh) // stride + 1
    Wo = (W + 2 * pad - kw) // stride + 1
    if kh == 1 and kw == 1:
        patches = x[:, :stride * Ho:stride, :stride * Wo:stride, :]
    else:
        cols = [x[:, i:i + stride * Ho:stride, j:j + stride * Wo:stride, :]
                for i in range(kh) for j in range(kw)]
        patches = jnp.concatenate(cols, axis=-1)
    return patches.reshape(N * Ho * Wo, kh * kw * C), Ho, Wo


def conv_bn_act(x, w_gemm, gamma, beta, *, kh, kw, stride, pad, relu, residual=None):
    """x: NHWC bf16 (channel-padded).  w_gemm: [Kp, Coutp] bf16 pre-padded at init.
    Returns NHWC bf16 with Coutp (=round_up(Cout,128)) channels; pad channels stay 0."""
    N = x.shape[0]
    coutp = w_gemm.shape[1]
    patches, Ho, Wo = _im2col(x, kh, kw, stride, pad)
    M = N * Ho * Wo
    y, ps, pq = pallas_conv_gemm(patches, w_gemm)
    scale, shift = pallas_bn_finalize(ps, pq, gamma, beta, count=M)
    res2 = residual.reshape(M, coutp) if residual is not None else None
    out = pallas_bn_apply(y, scale, shift, residual=res2, relu=relu, m_true=M)
    return out.reshape(N, Ho, Wo, coutp)


# ----------------------------------------------------------------------------
# Parameter init (deterministic, synthetic) — weights pre-padded and bf16.
# ----------------------------------------------------------------------------
def _conv_gemm_weight(key, kh, kw, cin_store, cin_real, cout):
    cout_p = _round_up(cout, _LANES)
    w = 0.05 * jax.random.normal(key, (kh, kw, cin_real, cout), jnp.float32)
    w_full = jnp.zeros((kh, kw, cin_store, cout_p), jnp.float32)
    w_full = w_full.at[:, :, :cin_real, :cout].set(w)
    k = kh * kw * cin_store
    kp = _round_up(k, _LANES)
    w_gemm = jnp.pad(w_full.reshape(k, cout_p), ((0, kp - k), (0, 0)))
    return w_gemm.astype(jnp.bfloat16)


def _bn_params(cout):
    cout_p = _round_up(cout, _LANES)
    gamma = jnp.zeros((1, cout_p), jnp.float32).at[:, :cout].set(1.0)  # pad gamma = 0
    beta = jnp.zeros((1, cout_p), jnp.float32)
    return gamma, beta


def init_resnet_params(key, num_blocks=(1, 1, 1, 1), num_classes=10):
    keys = iter(jax.random.split(key, 128))
    g1, b1 = _bn_params(64)
    params = {
        'conv1': _conv_gemm_weight(next(keys), 3, 3, 3, 3, 64),
        'bn1_g': g1, 'bn1_b': b1,
        'num_classes': num_classes,
    }
    in_c = 64
    layers = []
    plan = [(64, num_blocks[0], 1), (128, num_blocks[1], 2),
            (256, num_blocks[2], 2), (512, num_blocks[3], 2)]
    for out_c, nb, stride in plan:
        blocks = []
        strides = [stride] + [1] * (nb - 1)
        for s in strides:
            in_store = _round_up(in_c, _LANES)
            g1_, b1_ = _bn_params(out_c)
            g2_, b2_ = _bn_params(out_c)
            blk = {
                'stride': s,
                'conv1': _conv_gemm_weight(next(keys), 3, 3, in_store, in_c, out_c),
                'bn1_g': g1_, 'bn1_b': b1_,
                'conv2': _conv_gemm_weight(next(keys), 3, 3,
                                           _round_up(out_c, _LANES), out_c, out_c),
                'bn2_g': g2_, 'bn2_b': b2_,
            }
            if s != 1 or in_c != out_c:
                gs, bs = _bn_params(out_c)
                blk['conv_s'] = _conv_gemm_weight(next(keys), 1, 1, in_store, in_c, out_c)
                blk['bns_g'], blk['bns_b'] = gs, bs
            blocks.append(blk)
            in_c = out_c
        layers.append(blocks)
    params['layers'] = layers
    fcw = 0.05 * jax.random.normal(next(keys), (512, num_classes), jnp.float32)
    np_ = _round_up(num_classes, _LANES)
    params['fc_w'] = jnp.pad(fcw, ((0, 0), (0, np_ - num_classes))).astype(jnp.bfloat16)
    params['fc_b'] = jnp.zeros((1, np_), jnp.float32)
    return params


# ----------------------------------------------------------------------------
# Forward pass
# ----------------------------------------------------------------------------
def basic_block_forward(x, blk):
    s = blk['stride']
    out = conv_bn_act(x, blk['conv1'], blk['bn1_g'], blk['bn1_b'],
                      kh=3, kw=3, stride=s, pad=1, relu=True)
    if 'conv_s' in blk:
        sc = conv_bn_act(x, blk['conv_s'], blk['bns_g'], blk['bns_b'],
                         kh=1, kw=1, stride=s, pad=0, relu=False)
    else:
        sc = x
    # second conv: BN + residual add + ReLU applied in one tiled Pallas pass
    out = conv_bn_act(out, blk['conv2'], blk['bn2_g'], blk['bn2_b'],
                      kh=3, kw=3, stride=1, pad=1, relu=True, residual=sc)
    return out


def resnet_forward(params, x_nchw):
    n = x_nchw.shape[0]
    nc = params['num_classes']
    x = jnp.transpose(x_nchw, (0, 2, 3, 1)).astype(jnp.bfloat16)  # NCHW -> NHWC bf16
    x = conv_bn_act(x, params['conv1'], params['bn1_g'], params['bn1_b'],
                    kh=3, kw=3, stride=1, pad=1, relu=True)
    for layer in params['layers']:
        for blk in layer:
            x = basic_block_forward(x, blk)
    pooled = pallas_global_avg_pool(x)                            # [N, 512] f32
    logits = pallas_matmul_bias(pooled, params['fc_w'], params['fc_b'])
    return logits[:n, :nc]                                        # [N, num_classes] f32


if __name__ == "__main__":
    key = jax.random.PRNGKey(0)
    pkey, xkey = jax.random.split(key)
    params = init_resnet_params(pkey, num_blocks=(1, 1, 1, 1), num_classes=10)
    x = jax.random.normal(xkey, (2, 3, 16, 16), jnp.float32)  # NCHW like PyTorch
    fwd = jax.jit(functools.partial(resnet_forward, params))  # params static via closure
    out = fwd(x)
    jax.block_until_ready(out)
    assert out.shape == (2, 10) and out.dtype == jnp.float32
    print("KERNEL_OK")
</pallas_src>

<mosaic_0001>
module attributes {stable_mosaic.version = 11 : i64} {
  func.func @_matmul_stats_kernel(%arg0: i32, %arg1: i32, %arg2: i32, %arg3: memref<256x128xbf16, #tpu.memory_space<vmem>>, %arg4: memref<128x128xbf16, #tpu.memory_space<vmem>>, %arg5: memref<256x128xbf16, #tpu.memory_space<vmem>>, %arg6: memref<1x1x128xf32, #tpu.memory_space<vmem>>, %arg7: memref<1x1x128xf32, #tpu.memory_space<vmem>>, %arg8: memref<256x128xf32, #tpu.memory_space<vmem>>) attributes {dimension_semantics = [#tpu.dimension_semantics<parallel>, #tpu.dimension_semantics<parallel>, #tpu.dimension_semantics<arbitrary>], iteration_bounds = array<i64: 2, 1, 1>, scalar_prefetch = 0 : i64, scratch_operands = 1 : i64, tpu.core_type = #tpu.core_type<tc>, window_params = [{transform_indices = @transform_0, window_bounds = array<i64: 256, 128>}, {transform_indices = @transform_1, window_bounds = array<i64: 128, 128>}, {transform_indices = @transform_2, window_bounds = array<i64: 256, 128>}, {transform_indices = @transform_3, window_bounds = array<i64: 1, 1, 128>}, {transform_indices = @transform_4, window_bounds = array<i64: 1, 1, 128>}]} {
    %c0_i32 = arith.constant 0 : i32
    %0 = arith.cmpi eq, %arg2, %c0_i32 : i32
    %1 = arith.extui %0 : i1 to i32
    %c0_i32_0 = arith.constant 0 : i32
    %2 = arith.cmpi ne, %1, %c0_i32_0 : i32
    scf.if %2 {
      %cst_10 = arith.constant 0.000000e+00 : f32
      %12 = vector.broadcast %cst_10 : f32 to vector<256x128xf32>
      %c0_11 = arith.constant 0 : index
      %c0_12 = arith.constant 0 : index
      %13 = vector.load %arg8[%c0_11, %c0_12] : memref<256x128xf32, #tpu.memory_space<vmem>>, vector<256x128xf32>
      tpu.vector_store %arg8[%c0_11, %c0_12], %12 {strides = array<i32>} : memref<256x128xf32, #tpu.memory_space<vmem>>, vector<256x128xf32>,
    } else {
    }
    %c0 = arith.constant 0 : index
    %c0_1 = arith.constant 0 : index
    %3 = vector.load %arg8[%c0, %c0_1] : memref<256x128xf32, #tpu.memory_space<vmem>>, vector<256x128xf32>
    %c0_2 = arith.constant 0 : index
    %c0_3 = arith.constant 0 : index
    %4 = vector.load %arg3[%c0_2, %c0_3] : memref<256x128xbf16, #tpu.memory_space<vmem>>, vector<256x128xbf16>
    %c0_4 = arith.constant 0 : index
    %c0_5 = arith.constant 0 : index
    %5 = vector.load %arg4[%c0_4, %c0_5] : memref<128x128xbf16, #tpu.memory_space<vmem>>, vector<128x128xbf16>
    %cst = arith.constant dense<0.000000e+00> : vector<256x128xf32>
    %6 = tpu.matmul %4, %5, %cst {dimension_numbers = #tpu.dot_dimension_numbers<[1], [0], [0], [1], [0, 0, 1, 1], [], []>} : vector<256x128xbf16>, vector<128x128xbf16>, vector<256x128xf32> -> vector<256x128xf32>
    %7 = arith.addf %3, %6 : vector<256x128xf32>
    %c0_6 = arith.constant 0 : index
    %c0_7 = arith.constant 0 : index
    %8 = vector.load %arg8[%c0_6, %c0_7] : memref<256x128xf32, #tpu.memory_space<vmem>>, vector<256x128xf32>
    tpu.vector_store %arg8[%c0_6, %c0_7], %7 {strides = array<i32>} : memref<256x128xf32, #tpu.memory_space<vmem>>, vector<256x128xf32>,
    %c0_i32_8 = arith.constant 0 : i32
    %9 = arith.cmpi eq, %arg2, %c0_i32_8 : i32
    %10 = arith.extui %9 : i1 to i32
    %c0_i32_9 = arith.constant 0 : i32
    %11 = arith.cmpi ne, %10, %c0_i32_9 : i32
    scf.if %11 {
      %c0_10 = arith.constant 0 : index
      %c0_11 = arith.constant 0 : index
      %12 = vector.load %arg8[%c0_10, %c0_11] : memref<256x128xf32, #tpu.memory_space<vmem>>, vector<256x128xf32>
      %13 = arith.truncf %12 : vector<256x128xf32> to vector<256x128xbf16>
      %c0_12 = arith.constant 0 : index
      %c0_13 = arith.constant 0 : index
      %14 = vector.load %arg5[%c0_12, %c0_13] : memref<256x128xbf16, #tpu.memory_space<vmem>>, vector<256x128xbf16>
      tpu.vector_store %arg5[%c0_12, %c0_13], %13 {strides = array<i32>} : memref<256x128xbf16, #tpu.memory_space<vmem>>, vector<256x128xbf16>,
      %cst_14 = arith.constant dense<0.000000e+00> : vector<128xf32>
      %15 = vector.multi_reduction <add>, %12, %cst_14 [0] : vector<256x128xf32> to vector<128xf32>
      %16 = vector.shape_cast %15 : vector<128xf32> to vector<1x128xf32>
      %17 = vector.shape_cast %16 : vector<1x128xf32> to vector<1x1x128xf32>
      %c0_15 = arith.constant 0 : index
      %c0_16 = arith.constant 0 : index
      %c0_17 = arith.constant 0 : index
      %18 = vector.load %arg6[%c0_15, %c0_16, %c0_17] : memref<1x1x128xf32, #tpu.memory_space<vmem>>, vector<1x1x128xf32>
      tpu.vector_store %arg6[%c0_15, %c0_16, %c0_17], %17 {strides = array<i32>} : memref<1x1x128xf32, #tpu.memory_space<vmem>>, vector<1x1x128xf32>,
      %19 = arith.mulf %12, %12 : vector<256x128xf32>
      %cst_18 = arith.constant dense<0.000000e+00> : vector<128xf32>
      %20 = vector.multi_reduction <add>, %19, %cst_18 [0] : vector<256x128xf32> to vector<128xf32>
      %21 = vector.shape_cast %20 : vector<128xf32> to vector<1x128xf32>
      %22 = vector.shape_cast %21 : vector<1x128xf32> to vector<1x1x128xf32>
      %c0_19 = arith.constant 0 : index
      %c0_20 = arith.constant 0 : index
      %c0_21 = arith.constant 0 : index
      %23 = vector.load %arg7[%c0_19, %c0_20, %c0_21] : memref<1x1x128xf32, #tpu.memory_space<vmem>>, vector<1x1x128xf32>
      tpu.vector_store %arg7[%c0_19, %c0_20, %c0_21], %22 {strides = array<i32>} : memref<1x1x128xf32, #tpu.memory_space<vmem>>, vector<1x1x128xf32>,
    } else {
    }
    return
  }
  func.func @transform_0(%arg0: i32, %arg1: i32, %arg2: i32) -> (i32, i32) {
    %c0_i32 = arith.constant 0 : i32
    return %arg0, %arg2 : i32, i32
  }
  func.func @transform_1(%arg0: i32, %arg1: i32, %arg2: i32) -> (i32, i32) {
    %c0_i32 = arith.constant 0 : i32
    return %arg2, %arg1 : i32, i32
  }
  func.func @transform_2(%arg0: i32, %arg1: i32, %arg2: i32) -> (i32, i32) {
    %c0_i32 = arith.constant 0 : i32
    return %arg0, %arg1 : i32, i32
  }
  func.func @transform_3(%arg0: i32, %arg1: i32, %arg2: i32) -> (i32, i32, i32) {
    %c0_i32 = arith.constant 0 : i32
    %c0_i32_0 = arith.constant 0 : i32
    return %arg0, %c0_i32, %arg1 : i32, i32, i32
  }
  func.func @transform_4(%arg0: i32, %arg1: i32, %arg2: i32) -> (i32, i32, i32) {
    %c0_i32 = arith.constant 0 : i32
    %c0_i32_0 = arith.constant 0 : i32
    return %arg0, %c0_i32, %arg1 : i32, i32, i32
  }
}

module attributes {stable_mosaic.version = 11 : i64} {
  func.func @_bn_apply_kernel(%arg0: i32, %arg1: memref<512x128xbf16, #tpu.memory_space<vmem>>, %arg2: memref<1x128xf32, #tpu.memory_space<vmem>>, %arg3: memref<1x128xf32, #tpu.memory_space<vmem>>, %arg4: memref<512x128xbf16, #tpu.memory_space<vmem>>) attributes {dimension_semantics = [#tpu.dimension_semantics<parallel>], iteration_bounds = array<i64: 1>, scalar_prefetch = 0 : i64, scratch_operands = 0 : i64, tpu.core_type = #tpu.core_type<tc>, window_params = [{transform_indices = @transform_0, window_bounds = array<i64: 512, 128>}, {pipeline_mode = #tpu.pipeline_mode<synchronous>, transform_indices = @transform_1, window_bounds = array<i64: 1, 128>}, {pipeline_mode = #tpu.pipeline_mode<synchronous>, transform_indices = @transform_2, window_bounds = array<i64: 1, 128>}, {transform_indices = @transform_3, window_bounds = array<i64: 512, 128>}]} {
    %c0 = arith.constant 0 : index
    %c0_0 = arith.constant 0 : index
    %0 = vector.load %arg1[%c0, %c0_0] : memref<512x128xbf16, #tpu.memory_space<vmem>>, vector<512x128xbf16>
    %1 = arith.extf %0 : vector<512x128xbf16> to vector<512x128xf32>
    %c0_1 = arith.constant 0 : index
    %c0_2 = arith.constant 0 : index
    %2 = vector.load %arg2[%c0_1, %c0_2] : memref<1x128xf32, #tpu.memory_space<vmem>>, vector<1x128xf32>
    %3 = vector.broadcast %2 : vector<1x128xf32> to vector<512x128xf32>
    %4 = arith.mulf %1, %3 : vector<512x128xf32>
    %c0_3 = arith.constant 0 : index
    %c0_4 = arith.constant 0 : index
    %5 = vector.load %arg3[%c0_3, %c0_4] : memref<1x128xf32, #tpu.memory_space<vmem>>, vector<1x128xf32>
    %6 = vector.broadcast %5 : vector<1x128xf32> to vector<512x128xf32>
    %7 = arith.addf %4, %6 : vector<512x128xf32>
    %cst = arith.constant 0.000000e+00 : f32
    %8 = vector.broadcast %cst : f32 to vector<512x128xf32>
    %9 = arith.maximumf %7, %8 : vector<512x128xf32>
    %10 = arith.truncf %9 : vector<512x128xf32> to vector<512x128xbf16>
    %c0_5 = arith.constant 0 : index
    %c0_6 = arith.constant 0 : index
    %11 = vector.load %arg4[%c0_5, %c0_6] : memref<512x128xbf16, #tpu.memory_space<vmem>>, vector<512x128xbf16>
    tpu.vector_store %arg4[%c0_5, %c0_6], %10 {strides = array<i32>} : memref<512x128xbf16, #tpu.memory_space<vmem>>, vector<512x128xbf16>,
    return
  }
  func.func @transform_0(%arg0: i32) -> (i32, i32) {
    %c0_i32 = arith.constant 0 : i32
    %c0_i32_0 = arith.constant 0 : i32
    return %arg0, %c0_i32 : i32, i32
  }
  func.func @transform_1(%arg0: i32) -> (i32, i32) {
    %c0_i32 = arith.constant 0 : i32
    %c0_i32_0 = arith.constant 0 : i32
    %c0_i32_1 = arith.constant 0 : i32
    return %c0_i32, %c0_i32_0 : i32, i32
  }
  func.func @transform_2(%arg0: i32) -> (i32, i32) {
    %c0_i32 = arith.constant 0 : i32
    %c0_i32_0 = arith.constant 0 : i32
    %c0_i32_1 = arith.constant 0 : i32
    return %c0_i32, %c0_i32_0 : i32, i32
  }
  func.func @transform_3(%arg0: i32) -> (i32, i32) {
    %c0_i32 = arith.constant 0 : i32
    %c0_i32_0 = arith.constant 0 : i32
    return %arg0, %c0_i32 : i32, i32
  }
}

module attributes {stable_mosaic.version = 11 : i64} {
  func.func @_bn_finalize_kernel(%arg0: memref<2x1x128xf32, #tpu.memory_space<vmem>>, %arg1: memref<2x1x128xf32, #tpu.memory_space<vmem>>, %arg2: memref<1x128xf32, #tpu.memory_space<vmem>>, %arg3: memref<1x128xf32, #tpu.memory_space<vmem>>, %arg4: memref<1x128xf32, #tpu.memory_space<vmem>>, %arg5: memref<1x128xf32, #tpu.memory_space<vmem>>) attributes {dimension_semantics = [], scalar_prefetch = 0 : i64, scratch_operands = 0 : i64, tpu.core_type = #tpu.core_type<tc>} {
    %c0 = arith.constant 0 : index
    %c0_0 = arith.constant 0 : index
    %c0_1 = arith.constant 0 : index
    %0 = vector.load %arg0[%c0, %c0_0, %c0_1] : memref<2x1x128xf32, #tpu.memory_space<vmem>>, vector<2x1x128xf32>
    %cst = arith.constant dense<0.000000e+00> : vector<1x128xf32>
    %1 = vector.multi_reduction <add>, %0, %cst [0] : vector<2x1x128xf32> to vector<1x128xf32>
    %c0_2 = arith.constant 0 : index
    %c0_3 = arith.constant 0 : index
    %c0_4 = arith.constant 0 : index
    %2 = vector.load %arg1[%c0_2, %c0_3, %c0_4] : memref<2x1x128xf32, #tpu.memory_space<vmem>>, vector<2x1x128xf32>
    %cst_5 = arith.constant dense<0.000000e+00> : vector<1x128xf32>
    %3 = vector.multi_reduction <add>, %2, %cst_5 [0] : vector<2x1x128xf32> to vector<1x128xf32>
    %cst_6 = arith.constant 0.001953125 : f32
    %4 = vector.broadcast %cst_6 : f32 to vector<1x128xf32>
    %5 = arith.mulf %1, %4 : vector<1x128xf32>
    %cst_7 = arith.constant 0.001953125 : f32
    %6 = vector.broadcast %cst_7 : f32 to vector<1x128xf32>
    %7 = arith.mulf %3, %6 : vector<1x128xf32>
    %8 = arith.mulf %5, %5 : vector<1x128xf32>
    %9 = arith.subf %7, %8 : vector<1x128xf32>
    %cst_8 = arith.constant 9.99999974E-6 : f32
    %10 = vector.broadcast %cst_8 : f32 to vector<1x128xf32>
    %11 = arith.addf %9, %10 : vector<1x128xf32>
    %12 = math.rsqrt %11 : vector<1x128xf32>
    %c0_9 = arith.constant 0 : index
    %c0_10 = arith.constant 0 : index
    %13 = vector.load %arg2[%c0_9, %c0_10] : memref<1x128xf32, #tpu.memory_space<vmem>>, vector<1x128xf32>
    %14 = arith.mulf %13, %12 : vector<1x128xf32>
    %c0_11 = arith.constant 0 : index
    %c0_12 = arith.constant 0 : index
    %15 = vector.load %arg4[%c0_11, %c0_12] : memref<1x128xf32, #tpu.memory_space<vmem>>, vector<1x128xf32>
    tpu.vector_store %arg4[%c0_11, %c0_12], %14 {strides = array<i32>} : memref<1x128xf32, #tpu.memory_space<vmem>>, vector<1x128xf32>,
    %c0_13 = arith.constant 0 : index
    %c0_14 = arith.constant 0 : index
    %16 = vector.load %arg3[%c0_13, %c0_14] : memref<1x128xf32, #tpu.memory_space<vmem>>, vector<1x128xf32>
    %17 = arith.mulf %5, %14 : vector<1x128xf32>
    %18 = arith.subf %16, %17 : vector<1x128xf32>
    %c0_15 = arith.constant 0 : index
    %c0_16 = arith.constant 0 : index
    %19 = vector.load %arg5[%c0_15, %c0_16] : memref<1x128xf32, #tpu.memory_space<vmem>>, vector<1x128xf32>
    tpu.vector_store %arg5[%c0_15, %c0_16], %18 {strides = array<i32>} : memref<1x128xf32, #tpu.memory_space<vmem>>, vector<1x128xf32>,
    return
  }
}

module attributes {stable_mosaic.version = 11 : i64} {
  func.func @_matmul_stats_kernel(%arg0: i32, %arg1: i32, %arg2: i32, %arg3: memref<256x384xbf16, #tpu.memory_space<vmem>>, %arg4: memref<384x128xbf16, #tpu.memory_space<vmem>>, %arg5: memref<256x128xbf16, #tpu.memory_space<vmem>>, %arg6: memref<1x1x128xf32, #tpu.memory_space<vmem>>, %arg7: memref<1x1x128xf32, #tpu.memory_space<vmem>>, %arg8: memref<256x128xf32, #tpu.memory_space<vmem>>) attributes {dimension_semantics = [#tpu.dimension_semantics<parallel>, #tpu.dimension_semantics<parallel>, #tpu.dimension_semantics<arbitrary>], iteration_bounds = array<i64: 2, 1, 3>, scalar_prefetch = 0 : i64, scratch_operands = 1 : i64, tpu.core_type = #tpu.core_type<tc>, window_params = [{transform_indices = @transform_0, window_bounds = array<i64: 256, 384>}, {transform_indices = @transform_1, window_bounds = array<i64: 384, 128>}, {transform_indices = @transform_2, window_bounds = array<i64: 256, 128>}, {transform_indices = @transform_3, window_bounds = array<i64: 1, 1, 128>}, {transform_indices = @transform_4, window_bounds = array<i64: 1, 1, 128>}]} {
    %c0_i32 = arith.constant 0 : i32
    %0 = arith.cmpi eq, %arg2, %c0_i32 : i32
    %1 = arith.extui %0 : i1 to i32
    %c0_i32_0 = arith.constant 0 : i32
    %2 = arith.cmpi ne, %1, %c0_i32_0 : i32
    scf.if %2 {
      %cst_9 = arith.constant 0.000000e+00 : f32
      %12 = vector.broadcast %cst_9 : f32 to vector<256x128xf32>
      %c0_10 = arith.constant 0 : index
      %c0_11 = arith.constant 0 : index
      %13 = vector.load %arg8[%c0_10, %c0_11] : memref<256x128xf32, #tpu.memory_space<vmem>>, vector<256x128xf32>
      tpu.vector_store %arg8[%c0_10, %c0_11], %12 {strides = array<i32>} : memref<256x128xf32, #tpu.memory_space<vmem>>, vector<256x128xf32>,
    } else {
    }
    %c0 = arith.constant 0 : index
    %c0_1 = arith.constant 0 : index
    %3 = vector.load %arg8[%c0, %c0_1] : memref<256x128xf32, #tpu.memory_space<vmem>>, vector<256x128xf32>
    %c0_2 = arith.constant 0 : index
    %c0_3 = arith.constant 0 : index
    %4 = vector.load %arg3[%c0_2, %c0_3] : memref<256x384xbf16, #tpu.memory_space<vmem>>, vector<256x384xbf16>
    %c0_4 = arith.constant 0 : index
    %c0_5 = arith.constant 0 : index
    %5 = vector.load %arg4[%c0_4, %c0_5] : memref<384x128xbf16, #tpu.memory_space<vmem>>, vector<384x128xbf16>
    %cst = arith.constant dense<0.000000e+00> : vector<256x128xf32>
    %6 = tpu.matmul %4, %5, %cst {dimension_numbers = #tpu.dot_dimension_numbers<[1], [0], [0], [1], [0, 0, 1, 1], [], []>} : vector<256x384xbf16>, vector<384x128xbf16>, vector<256x128xf32> -> vector<256x128xf32>
    %7 = arith.addf %3, %6 : vector<256x128xf32>
    %c0_6 = arith.constant 0 : index
    %c0_7 = arith.constant 0 : index
    %8 = vector.load %arg8[%c0_6, %c0_7] : memref<256x128xf32, #tpu.memory_space<vmem>>, vector<256x128xf32>
    tpu.vector_store %arg8[%c0_6, %c0_7], %7 {strides = array<i32>} : memref<256x128xf32, #tpu.memory_space<vmem>>, vector<256x128xf32>,
    %c2_i32 = arith.constant 2 : i32
    %9 = arith.cmpi eq, %arg2, %c2_i32 : i32
    %10 = arith.extui %9 : i1 to i32
    %c0_i32_8 = arith.constant 0 : i32
    %11 = arith.cmpi ne, %10, %c0_i32_8 : i32
    scf.if %11 {
      %c0_9 = arith.constant 0 : index
      %c0_10 = arith.constant 0 : index
      %12 = vector.load %arg8[%c0_9, %c0_10] : memref<256x128xf32, #tpu.memory_space<vmem>>, vector<256x128xf32>
      %13 = arith.truncf %12 : vector<256x128xf32> to vector<256x128xbf16>
      %c0_11 = arith.constant 0 : index
      %c0_12 = arith.constant 0 : index
      %14 = vector.load %arg5[%c0_11, %c0_12] : memref<256x128xbf16, #tpu.memory_space<vmem>>, vector<256x128xbf16>
      tpu.vector_store %arg5[%c0_11, %c0_12], %13 {strides = array<i32>} : memref<256x128xbf16, #tpu.memory_space<vmem>>, vector<256x128xbf16>,
      %cst_13 = arith.constant dense<0.000000e+00> : vector<128xf32>
      %15 = vector.multi_reduction <add>, %12, %cst_13 [0] : vector<256x128xf32> to vector<128xf32>
      %16 = vector.shape_cast %15 : vector<128xf32> to vector<1x128xf32>
      %17 = vector.shape_cast %16 : vector<1x128xf32> to vector<1x1x128xf32>
      %c0_14 = arith.constant 0 : index
      %c0_15 = arith.constant 0 : index
      %c0_16 = arith.constant 0 : index
      %18 = vector.load %arg6[%c0_14, %c0_15, %c0_16] : memref<1x1x128xf32, #tpu.memory_space<vmem>>, vector<1x1x128xf32>
      tpu.vector_store %arg6[%c0_14, %c0_15, %c0_16], %17 {strides = array<i32>} : memref<1x1x128xf32, #tpu.memory_space<vmem>>, vector<1x1x128xf32>,
      %19 = arith.mulf %12, %12 : vector<256x128xf32>
      %cst_17 = arith.constant dense<0.000000e+00> : vector<128xf32>
      %20 = vector.multi_reduction <add>, %19, %cst_17 [0] : vector<256x128xf32> to vector<128xf32>
      %21 = vector.shape_cast %20 : vector<128xf32> to vector<1x128xf32>
      %22 = vector.shape_cast %21 : vector<1x128xf32> to vector<1x1x128xf32>
      %c0_18 = arith.constant 0 : index
      %c0_19 = arith.constant 0 : index
      %c0_20 = arith.constant 0 : index
      %23 = vector.load %arg7[%c0_18, %c0_19, %c0_20] : memref<1x1x128xf32, #tpu.memory_space<vmem>>, vector<1x1x128xf32>
      tpu.vector_store %arg7[%c0_18, %c0_19, %c0_20], %22 {strides = array<i32>} : memref<1x1x128xf32, #tpu.memory_space<vmem>>, vector<1x1x128xf32>,
    } else {
    }
    return
  }
  func.func @transform_0(%arg0: i32, %arg1: i32, %arg2: i32) -> (i32, i32) {
    %c0_i32 = arith.constant 0 : i32
    return %arg0, %arg2 : i32, i32
  }
  func.func @transform_1(%arg0: i32, %arg1: i32, %arg2: i32) -> (i32, i32) {
    %c0_i32 = arith.constant 0 : i32
    return %arg2, %arg1 : i32, i32
  }
  func.func @transform_2(%arg0: i32, %arg1: i32, %arg2: i32) -> (i32, i32) {
    %c0_i32 = arith.constant 0 : i32
    return %arg0, %arg1 : i32, i32
  }
  func.func @transform_3(%arg0: i32, %arg1: i32, %arg2: i32) -> (i32, i32, i32) {
    %c0_i32 = arith.constant 0 : i32
    %c0_i32_0 = arith.constant 0 : i32
    return %arg0, %c0_i32, %arg1 : i32, i32, i32
  }
  func.func @transform_4(%arg0: i32, %arg1: i32, %arg2: i32) -> (i32, i32, i32) {
    %c0_i32 = arith.constant 0 : i32
    %c0_i32_0 = arith.constant 0 : i32
    return %arg0, %c0_i32, %arg1 : i32, i32, i32
  }
}

module attributes {stable_mosaic.version = 11 : i64} {
  func.func @_bn_finalize_kernel(%arg0: memref<2x1x128xf32, #tpu.memory_space<vmem>>, %arg1: memref<2x1x128xf32, #tpu.memory_space<vmem>>, %arg2: memref<1x128xf32, #tpu.memory_space<vmem>>, %arg3: memref<1x128xf32, #tpu.memory_space<vmem>>, %arg4: memref<1x128xf32, #tpu.memory_space<vmem>>, %arg5: memref<1x128xf32, #tpu.memory_space<vmem>>) attributes {dimension_semantics = [], scalar_prefetch = 0 : i64, scratch_operands = 0 : i64, tpu.core_type = #tpu.core_type<tc>} {
    %c0 = arith.constant 0 : index
    %c0_0 = arith.constant 0 : index
    %c0_1 = arith.constant 0 : index
    %0 = vector.load %arg0[%c0, %c0_0, %c0_1] : memref<2x1x128xf32, #tpu.memory_space<vmem>>, vector<2x1x128xf32>
    %cst = arith.constant dense<0.000000e+00> : vector<1x128xf32>
    %1 = vector.multi_reduction <add>, %0, %cst [0] : vector<2x1x128xf32> to vector<1x128xf32>
    %c0_2 = arith.constant 0 : index
    %c0_3 = arith.constant 0 : index
    %c0_4 = arith.constant 0 : index
    %2 = vector.load %arg1[%c0_2, %c0_3, %c0_4] : memref<2x1x128xf32, #tpu.memory_space<vmem>>, vector<2x1x128xf32>
    %cst_5 = arith.constant dense<0.000000e+00> : vector<1x128xf32>
    %3 = vector.multi_reduction <add>, %2, %cst_5 [0] : vector<2x1x128xf32> to vector<1x128xf32>
    %cst_6 = arith.constant 0.001953125 : f32
    %4 = vector.broadcast %cst_6 : f32 to vector<1x128xf32>
    %5 = arith.mulf %1, %4 : vector<1x128xf32>
    %cst_7 = arith.constant 0.001953125 : f32
    %6 = vector.broadcast %cst_7 : f32 to vector<1x128xf32>
    %7 = arith.mulf %3, %6 : vector<1x128xf32>
    %8 = arith.mulf %5, %5 : vector<1x128xf32>
    %9 = arith.subf %7, %8 : vector<1x128xf32>
    %cst_8 = arith.constant 9.99999974E-6 : f32
    %10 = vector.broadcast %cst_8 : f32 to vector<1x128xf32>
    %11 = arith.addf %9, %10 : vector<1x128xf32>
    %12 = math.rsqrt %11 : vector<1x128xf32>
    %c0_9 = arith.constant 0 : index
    %c0_10 = arith.constant 0 : index
    %13 = vector.load %arg2[%c0_9, %c0_10] : memref<1x128xf32, #tpu.memory_space<vmem>>, vector<1x128xf32>
    %14 = arith.mulf %13, %12 : vector<1x128xf32>
    %c0_11 = arith.constant 0 : index
    %c0_12 = arith.constant 0 : index
    %15 = vector.load %arg4[%c0_11, %c0_12] : memref<1x128xf32, #tpu.memory_space<vmem>>, vector<1x128xf32>
    tpu.vector_store %arg4[%c0_11, %c0_12], %14 {strides = array<i32>} : memref<1x128xf32, #tpu.memory_space<vmem>>, vector<1x128xf32>,
    %c0_13 = arith.constant 0 : index
    %c0_14 = arith.constant 0 : index
    %16 = vector.load %arg3[%c0_13, %c0_14] : memref<1x128xf32, #tpu.memory_space<vmem>>, vector<1x128xf32>
    %17 = arith.mulf %5, %14 : vector<1x128xf32>
    %18 = arith.subf %16, %17 : vector<1x128xf32>
    %c0_15 = arith.constant 0 : index
    %c0_16 = arith.constant 0 : index
    %19 = vector.load %arg5[%c0_15, %c0_16] : memref<1x128xf32, #tpu.memory_space<vmem>>, vector<1x128xf32>
    tpu.vector_store %arg5[%c0_15, %c0_16], %18 {strides = array<i32>} : memref<1x128xf32, #tpu.memory_space<vmem>>, vector<1x128xf32>,
    return
  }
}

module attributes {stable_mosaic.version = 11 : i64} {
  func.func @_bn_apply_kernel(%arg0: i32, %arg1: memref<512x128xbf16, #tpu.memory_space<vmem>>, %arg2: memref<1x128xf32, #tpu.memory_space<vmem>>, %arg3: memref<1x128xf32, #tpu.memory_space<vmem>>, %arg4: memref<512x128xbf16, #tpu.memory_space<vmem>>, %arg5: memref<512x128xbf16, #tpu.memory_space<vmem>>) attributes {dimension_semantics = [#tpu.dimension_semantics<parallel>], iteration_bounds = array<i64: 1>, scalar_prefetch = 0 : i64, scratch_operands = 0 : i64, tpu.core_type = #tpu.core_type<tc>, window_params = [{transform_indices = @transform_0, window_bounds = array<i64: 512, 128>}, {pipeline_mode = #tpu.pipeline_mode<synchronous>, transform_indices = @transform_1, window_bounds = array<i64: 1, 128>}, {pipeline_mode = #tpu.pipeline_mode<synchronous>, transform_indices = @transform_2, window_bounds = array<i64: 1, 128>}, {transform_indices = @transform_3, window_bounds = array<i64: 512, 128>}, {transform_indices = @transform_4, window_bounds = array<i64: 512, 128>}]} {
    %c0 = arith.constant 0 : index
    %c0_0 = arith.constant 0 : index
    %0 = vector.load %arg1[%c0, %c0_0] : memref<512x128xbf16, #tpu.memory_space<vmem>>, vector<512x128xbf16>
    %1 = arith.extf %0 : vector<512x128xbf16> to vector<512x128xf32>
    %c0_1 = arith.constant 0 : index
    %c0_2 = arith.constant 0 : index
    %2 = vector.load %arg2[%c0_1, %c0_2] : memref<1x128xf32, #tpu.memory_space<vmem>>, vector<1x128xf32>
    %3 = vector.broadcast %2 : vector<1x128xf32> to vector<512x128xf32>
    %4 = arith.mulf %1, %3 : vector<512x128xf32>
    %c0_3 = arith.constant 0 : index
    %c0_4 = arith.constant 0 : index
    %5 = vector.load %arg3[%c0_3, %c0_4] : memref<1x128xf32, #tpu.memory_space<vmem>>, vector<1x128xf32>
    %6 = vector.broadcast %5 : vector<1x128xf32> to vector<512x128xf32>
    %7 = arith.addf %4, %6 : vector<512x128xf32>
    %c0_5 = arith.constant 0 : index
    %c0_6 = arith.constant 0 : index
    %8 = vector.load %arg4[%c0_5, %c0_6] : memref<512x128xbf16, #tpu.memory_space<vmem>>, vector<512x128xbf16>
    %9 = arith.extf %8 : vector<512x128xbf16> to vector<512x128xf32>
    %10 = arith.addf %7, %9 : vector<512x128xf32>
    %cst = arith.constant 0.000000e+00 : f32
    %11 = vector.broadcast %cst : f32 to vector<512x128xf32>
    %12 = arith.maximumf %10, %11 : vector<512x128xf32>
    %13 = arith.truncf %12 : vector<512x128xf32> to vector<512x128xbf16>
    %c0_7 = arith.constant 0 : index
    %c0_8 = arith.constant 0 : index
    %14 = vector.load %arg5[%c0_7, %c0_8] : memref<512x128xbf16, #tpu.memory_space<vmem>>, vector<512x128xbf16>
    tpu.vector_store %arg5[%c0_7, %c0_8], %13 {strides = array<i32>} : memref<512x128xbf16, #tpu.memory_space<vmem>>, vector<512x128xbf16>,
    return
  }
  func.func @transform_0(%arg0: i32) -> (i32, i32) {
    %c0_i32 = arith.constant 0 : i32
    %c0_i32_0 = arith.constant 0 : i32
    return %arg0, %c0_i32 : i32, i32
  }
  func.func @transform_1(%arg0: i32) -> (i32, i32) {
    %c0_i32 = arith.constant 0 : i32
    %c0_i32_0 = arith.constant 0 : i32
    %c0_i32_1 = arith.constant 0 : i32
    return %c0_i32, %c0_i32_0 : i32, i32
  }
  func.func @transform_2(%arg0: i32) -> (i32, i32) {
    %c0_i32 = arith.constant 0 : i32
    %c0_i32_0 = arith.constant 0 : i32
    %c0_i32_1 = arith.constant 0 : i32
    return %c0_i32, %c0_i32_0 : i32, i32
  }
  func.func @transform_3(%arg0: i32) -> (i32, i32) {
    %c0_i32 = arith.constant 0 : i32
    %c0_i32_0 = arith.constant 0 : i32
    return %arg0, %c0_i32 : i32, i32
  }
  func.func @transform_4(%arg0: i32) -> (i32, i32) {
    %c0_i32 = arith.constant 0 : i32
    %c0_i32_0 = arith.constant 0 : i32
    return %arg0, %c0_i32 : i32, i32
  }
}

module attributes {stable_mosaic.version = 11 : i64} {
  func.func @_matmul_stats_kernel(%arg0: i32, %arg1: i32, %arg2: i32, %arg3: memref<128x128xbf16, #tpu.memory_space<vmem>>, %arg4: memref<128x128xbf16, #tpu.memory_space<vmem>>, %arg5: memref<128x128xbf16, #tpu.memory_space<vmem>>, %arg6: memref<1x1x128xf32, #tpu.memory_space<vmem>>, %arg7: memref<1x1x128xf32, #tpu.memory_space<vmem>>, %arg8: memref<128x128xf32, #tpu.memory_space<vmem>>) attributes {dimension_semantics = [#tpu.dimension_semantics<parallel>, #tpu.dimension_semantics<parallel>, #tpu.dimension_semantics<arbitrary>], iteration_bounds = array<i64: 1, 1, 1>, scalar_prefetch = 0 : i64, scratch_operands = 1 : i64, tpu.core_type = #tpu.core_type<tc>, window_params = [{transform_indices = @transform_0, window_bounds = array<i64: 128, 128>}, {transform_indices = @transform_1, window_bounds = array<i64: 128, 128>}, {transform_indices = @transform_2, window_bounds = array<i64: 128, 128>}, {transform_indices = @transform_3, window_bounds = array<i64: 1, 1, 128>}, {transform_indices = @transform_4, window_bounds = array<i64: 1, 1, 128>}]} {
    %c0_i32 = arith.constant 0 : i32
    %0 = arith.cmpi eq, %arg2, %c0_i32 : i32
    %1 = arith.extui %0 : i1 to i32
    %c0_i32_0 = arith.constant 0 : i32
    %2 = arith.cmpi ne, %1, %c0_i32_0 : i32
    scf.if %2 {
      %cst_10 = arith.constant 0.000000e+00 : f32
      %12 = vector.broadcast %cst_10 : f32 to vector<128x128xf32>
      %c0_11 = arith.constant 0 : index
      %c0_12 = arith.constant 0 : index
      %13 = vector.load %arg8[%c0_11, %c0_12] : memref<128x128xf32, #tpu.memory_space<vmem>>, vector<128x128xf32>
      tpu.vector_store %arg8[%c0_11, %c0_12], %12 {strides = array<i32>} : memref<128x128xf32, #tpu.memory_space<vmem>>, vector<128x128xf32>,
    } else {
    }
    %c0 = arith.constant 0 : index
    %c0_1 = arith.constant 0 : index
    %3 = vector.load %arg8[%c0, %c0_1] : memref<128x128xf32, #tpu.memory_space<vmem>>, vector<128x128xf32>
    %c0_2 = arith.constant 0 : index
    %c0_3 = arith.constant 0 : index
    %4 = vector.load %arg3[%c0_2, %c0_3] : memref<128x128xbf16, #tpu.memory_space<vmem>>, vector<128x128xbf16>
    %c0_4 = arith.constant 0 : index
    %c0_5 = arith.constant 0 : index
    %5 = vector.load %arg4[%c0_4, %c0_5] : memref<128x128xbf16, #tpu.memory_space<vmem>>, vector<128x128xbf16>
    %cst = arith.constant dense<0.000000e+00> : vector<128x128xf32>
    %6 = tpu.matmul %4, %5, %cst {dimension_numbers = #tpu.dot_dimension_numbers<[1], [0], [0], [1], [0, 0, 1, 1], [], []>} : vector<128x128xbf16>, vector<128x128xbf16>, vector<128x128xf32> -> vector<128x128xf32>
    %7 = arith.addf %3, %6 : vector<128x128xf32>
    %c0_6 = arith.constant 0 : index
    %c0_7 = arith.constant 0 : index
    %8 = vector.load %arg8[%c0_6, %c0_7] : memref<128x128xf32, #tpu.memory_space<vmem>>, vector<128x128xf32>
    tpu.vector_store %arg8[%c0_6, %c0_7], %7 {strides = array<i32>} : memref<128x128xf32, #tpu.memory_space<vmem>>, vector<128x128xf32>,
    %c0_i32_8 = arith.constant 0 : i32
    %9 = arith.cmpi eq, %arg2, %c0_i32_8 : i32
    %10 = arith.extui %9 : i1 to i32
    %c0_i32_9 = arith.constant 0 : i32
    %11 = arith.cmpi ne, %10, %c0_i32_9 : i32
    scf.if %11 {
      %c0_10 = arith.constant 0 : index
      %c0_11 = arith.constant 0 : index
      %12 = vector.load %arg8[%c0_10, %c0_11] : memref<128x128xf32, #tpu.memory_space<vmem>>, vector<128x128xf32>
      %13 = arith.truncf %12 : vector<128x128xf32> to vector<128x128xbf16>
      %c0_12 = arith.constant 0 : index
      %c0_13 = arith.constant 0 : index
      %14 = vector.load %arg5[%c0_12, %c0_13] : memref<128x128xbf16, #tpu.memory_space<vmem>>, vector<128x128xbf16>
      tpu.vector_store %arg5[%c0_12, %c0_13], %13 {strides = array<i32>} : memref<128x128xbf16, #tpu.memory_space<vmem>>, vector<128x128xbf16>,
      %cst_14 = arith.constant dense<0.000000e+00> : vector<128xf32>
      %15 = vector.multi_reduction <add>, %12, %cst_14 [0] : vector<128x128xf32> to vector<128xf32>
      %16 = vector.shape_cast %15 : vector<128xf32> to vector<1x128xf32>
      %17 = vector.shape_cast %16 : vector<1x128xf32> to vector<1x1x128xf32>
      %c0_15 = arith.constant 0 : index
      %c0_16 = arith.constant 0 : index
      %c0_17 = arith.constant 0 : index
      %18 = vector.load %arg6[%c0_15, %c0_16, %c0_17] : memref<1x1x128xf32, #tpu.memory_space<vmem>>, vector<1x1x128xf32>
      tpu.vector_store %arg6[%c0_15, %c0_16, %c0_17], %17 {strides = array<i32>} : memref<1x1x128xf32, #tpu.memory_space<vmem>>, vector<1x1x128xf32>,
      %19 = arith.mulf %12, %12 : vector<128x128xf32>
      %cst_18 = arith.constant dense<0.000000e+00> : vector<128xf32>
      %20 = vector.multi_reduction <add>, %19, %cst_18 [0] : vector<128x128xf32> to vector<128xf32>
      %21 = vector.shape_cast %20 : vector<128xf32> to vector<1x128xf32>
      %22 = vector.shape_cast %21 : vector<1x128xf32> to vector<1x1x128xf32>
      %c0_19 = arith.constant 0 : index
      %c0_20 = arith.constant 0 : index
      %c0_21 = arith.constant 0 : index
      %23 = vector.load %arg7[%c0_19, %c0_20, %c0_21] : memref<1x1x128xf32, #tpu.memory_space<vmem>>, vector<1x1x128xf32>
      tpu.vector_store %arg7[%c0_19, %c0_20, %c0_21], %22 {strides = array<i32>} : memref<1x1x128xf32, #tpu.memory_space<vmem>>, vector<1x1x128xf32>,
    } else {
    }
    return
  }
  func.func @transform_0(%arg0: i32, %arg1: i32, %arg2: i32) -> (i32, i32) {
    %c0_i32 = arith.constant 0 : i32
    return %arg0, %arg2 : i32, i32
  }
  func.func @transform_1(%arg0: i32, %arg1: i32, %arg2: i32) -> (i32, i32) {
    %c0_i32 = arith.constant 0 : i32
    return %arg2, %arg1 : i32, i32
  }
  func.func @transform_2(%arg0: i32, %arg1: i32, %arg2: i32) -> (i32, i32) {
    %c0_i32 = arith.constant 0 : i32
    return %arg0, %arg1 : i32, i32
  }
  func.func @transform_3(%arg0: i32, %arg1: i32, %arg2: i32) -> (i32, i32, i32) {
    %c0_i32 = arith.constant 0 : i32
    %c0_i32_0 = arith.constant 0 : i32
    return %arg0, %c0_i32, %arg1 : i32, i32, i32
  }
  func.func @transform_4(%arg0: i32, %arg1: i32, %arg2: i32) -> (i32, i32, i32) {
    %c0_i32 = arith.constant 0 : i32
    %c0_i32_0 = arith.constant 0 : i32
    return %arg0, %c0_i32, %arg1 : i32, i32, i32
  }
}

module attributes {stable_mosaic.version = 11 : i64} {
  func.func @_bn_finalize_kernel(%arg0: memref<1x1x128xf32, #tpu.memory_space<vmem>>, %arg1: memref<1x1x128xf32, #tpu.memory_space<vmem>>, %arg2: memref<1x128xf32, #tpu.memory_space<vmem>>, %arg3: memref<1x128xf32, #tpu.memory_space<vmem>>, %arg4: memref<1x128xf32, #tpu.memory_space<vmem>>, %arg5: memref<1x128xf32, #tpu.memory_space<vmem>>) attributes {dimension_semantics = [], scalar_prefetch = 0 : i64, scratch_operands = 0 : i64, tpu.core_type = #tpu.core_type<tc>} {
    %c0 = arith.constant 0 : index
    %c0_0 = arith.constant 0 : index
    %c0_1 = arith.constant 0 : index
    %0 = vector.load %arg0[%c0, %c0_0, %c0_1] : memref<1x1x128xf32, #tpu.memory_space<vmem>>, vector<1x1x128xf32>
    %cst = arith.constant dense<0.000000e+00> : vector<1x128xf32>
    %1 = vector.multi_reduction <add>, %0, %cst [0] : vector<1x1x128xf32> to vector<1x128xf32>
    %c0_2 = arith.constant 0 : index
    %c0_3 = arith.constant 0 : index
    %c0_4 = arith.constant 0 : index
    %2 = vector.load %arg1[%c0_2, %c0_3, %c0_4] : memref<1x1x128xf32, #tpu.memory_space<vmem>>, vector<1x1x128xf32>
    %cst_5 = arith.constant dense<0.000000e+00> : vector<1x128xf32>
    %3 = vector.multi_reduction <add>, %2, %cst_5 [0] : vector<1x1x128xf32> to vector<1x128xf32>
    %cst_6 = arith.constant 7.812500e-03 : f32
    %4 = vector.broadcast %cst_6 : f32 to vector<1x128xf32>
    %5 = arith.mulf %1, %4 : vector<1x128xf32>
    %cst_7 = arith.constant 7.812500e-03 : f32
    %6 = vector.broadcast %cst_7 : f32 to vector<1x128xf32>
    %7 = arith.mulf %3, %6 : vector<1x128xf32>
    %8 = arith.mulf %5, %5 : vector<1x128xf32>
    %9 = arith.subf %7, %8 : vector<1x128xf32>
    %cst_8 = arith.constant 9.99999974E-6 : f32
    %10 = vector.broadcast %cst_8 : f32 to vector<1x128xf32>
    %11 = arith.addf %9, %10 : vector<1x128xf32>
    %12 = math.rsqrt %11 : vector<1x128xf32>
    %c0_9 = arith.constant 0 : index
    %c0_10 = arith.constant 0 : index
    %13 = vector.load %arg2[%c0_9, %c0_10] : memref<1x128xf32, #tpu.memory_space<vmem>>, vector<1x128xf32>
    %14 = arith.mulf %13, %12 : vector<1x128xf32>
    %c0_11 = arith.constant 0 : index
    %c0_12 = arith.constant 0 : index
    %15 = vector.load %arg4[%c0_11, %c0_12] : memref<1x128xf32, #tpu.memory_space<vmem>>, vector<1x128xf32>
    tpu.vector_store %arg4[%c0_11, %c0_12], %14 {strides = array<i32>} : memref<1x128xf32, #tpu.memory_space<vmem>>, vector<1x128xf32>,
    %c0_13 = arith.constant 0 : index
    %c0_14 = arith.constant 0 : index
    %16 = vector.load %arg3[%c0_13, %c0_14] : memref<1x128xf32, #tpu.memory_space<vmem>>, vector<1x128xf32>
    %17 = arith.mulf %5, %14 : vector<1x128xf32>
    %18 = arith.subf %16, %17 : vector<1x128xf32>
    %c0_15 = arith.constant 0 : index
    %c0_16 = arith.constant 0 : index
    %19 = vector.load %arg5[%c0_15, %c0_16] : memref<1x128xf32, #tpu.memory_space<vmem>>, vector<1x128xf32>
    tpu.vector_store %arg5[%c0_15, %c0_16], %18 {strides = array<i32>} : memref<1x128xf32, #tpu.memory_space<vmem>>, vector<1x128xf32>,
    return
  }
}

module attributes {stable_mosaic.version = 11 : i64} {
  func.func @_bn_apply_kernel(%arg0: i32, %arg1: memref<128x128xbf16, #tpu.memory_space<vmem>>, %arg2: memref<1x128xf32, #tpu.memory_space<vmem>>, %arg3: memref<1x128xf32, #tpu.memory_space<vmem>>, %arg4: memref<128x128xbf16, #tpu.memory_space<vmem>>) attributes {dimension_semantics = [#tpu.dimension_semantics<parallel>], iteration_bounds = array<i64: 1>, scalar_prefetch = 0 : i64, scratch_operands = 0 : i64, tpu.core_type = #tpu.core_type<tc>, window_params = [{transform_indices = @transform_0, window_bounds = array<i64: 128, 128>}, {pipeline_mode = #tpu.pipeline_mode<synchronous>, transform_indices = @transform_1, window_bounds = array<i64: 1, 128>}, {pipeline_mode = #tpu.pipeline_mode<synchronous>, transform_indices = @transform_2, window_bounds = array<i64: 1, 128>}, {transform_indices = @transform_3, window_bounds = array<i64: 128, 128>}]} {
    %c0 = arith.constant 0 : index
    %c0_0 = arith.constant 0 : index
    %0 = vector.load %arg1[%c0, %c0_0] : memref<128x128xbf16, #tpu.memory_space<vmem>>, vector<128x128xbf16>
    %1 = arith.extf %0 : vector<128x128xbf16> to vector<128x128xf32>
    %c0_1 = arith.constant 0 : index
    %c0_2 = arith.constant 0 : index
    %2 = vector.load %arg2[%c0_1, %c0_2] : memref<1x128xf32, #tpu.memory_space<vmem>>, vector<1x128xf32>
    %3 = vector.broadcast %2 : vector<1x128xf32> to vector<128x128xf32>
    %4 = arith.mulf %1, %3 : vector<128x128xf32>
    %c0_3 = arith.constant 0 : index
    %c0_4 = arith.constant 0 : index
    %5 = vector.load %arg3[%c0_3, %c0_4] : memref<1x128xf32, #tpu.memory_space<vmem>>, vector<1x128xf32>
    %6 = vector.broadcast %5 : vector<1x128xf32> to vector<128x128xf32>
    %7 = arith.addf %4, %6 : vector<128x128xf32>
    %8 = arith.truncf %7 : vector<128x128xf32> to vector<128x128xbf16>
    %c0_5 = arith.constant 0 : index
    %c0_6 = arith.constant 0 : index
    %9 = vector.load %arg4[%c0_5, %c0_6] : memref<128x128xbf16, #tpu.memory_space<vmem>>, vector<128x128xbf16>
    tpu.vector_store %arg4[%c0_5, %c0_6], %8 {strides = array<i32>} : memref<128x128xbf16, #tpu.memory_space<vmem>>, vector<128x128xbf16>,
    return
  }
  func.func @transform_0(%arg0: i32) -> (i32, i32) {
    %c0_i32 = arith.constant 0 : i32
    %c0_i32_0 = arith.constant 0 : i32
    return %arg0, %c0_i32 : i32, i32
  }
  func.func @transform_1(%arg0: i32) -> (i32, i32) {
    %c0_i32 = arith.constant 0 : i32
    %c0_i32_0 = arith.constant 0 : i32
    %c0_i32_1 = arith.constant 0 : i32
    return %c0_i32, %c0_i32_0 : i32, i32
  }
  func.func @transform_2(%arg0: i32) -> (i32, i32) {
    %c0_i32 = arith.constant 0 : i32
    %c0_i32_0 = arith.constant 0 : i32
    %c0_i32_1 = arith.constant 0 : i32
    return %c0_i32, %c0_i32_0 : i32, i32
  }
  func.func @transform_3(%arg0: i32) -> (i32, i32) {
    %c0_i32 = arith.constant 0 : i32
    %c0_i32_0 = arith.constant 0 : i32
    return %arg0, %c0_i32 : i32, i32
  }
}

module attributes {stable_mosaic.version = 11 : i64} {
  func.func @_bn_apply_kernel(%arg0: i32, %arg1: memref<128x128xbf16, #tpu.memory_space<vmem>>, %arg2: memref<1x128xf32, #tpu.memory_space<vmem>>, %arg3: memref<1x128xf32, #tpu.memory_space<vmem>>, %arg4: memref<128x128xbf16, #tpu.memory_space<vmem>>) attributes {dimension_semantics = [#tpu.dimension_semantics<parallel>], iteration_bounds = array<i64: 1>, scalar_prefetch = 0 : i64, scratch_operands = 0 : i64, tpu.core_type = #tpu.core_type<tc>, window_params = [{transform_indices = @transform_0, window_bounds = array<i64: 128, 128>}, {pipeline_mode = #tpu.pipeline_mode<synchronous>, transform_indices = @transform_1, window_bounds = array<i64: 1, 128>}, {pipeline_mode = #tpu.pipeline_mode<synchronous>, transform_indices = @transform_2, window_bounds = array<i64: 1, 128>}, {transform_indices = @transform_3, window_bounds = array<i64: 128, 128>}]} {
    %c0 = arith.constant 0 : index
    %c0_0 = arith.constant 0 : index
    %0 = vector.load %arg1[%c0, %c0_0] : memref<128x128xbf16, #tpu.memory_space<vmem>>, vector<128x128xbf16>
    %1 = arith.extf %0 : vector<128x128xbf16> to vector<128x128xf32>
    %c0_1 = arith.constant 0 : index
    %c0_2 = arith.constant 0 : index
    %2 = vector.load %arg2[%c0_1, %c0_2] : memref<1x128xf32, #tpu.memory_space<vmem>>, vector<1x128xf32>
    %3 = vector.broadcast %2 : vector<1x128xf32> to vector<128x128xf32>
    %4 = arith.mulf %1, %3 : vector<128x128xf32>
    %c0_3 = arith.constant 0 : index
    %c0_4 = arith.constant 0 : index
    %5 = vector.load %arg3[%c0_3, %c0_4] : memref<1x128xf32, #tpu.memory_space<vmem>>, vector<1x128xf32>
    %6 = vector.broadcast %5 : vector<1x128xf32> to vector<128x128xf32>
    %7 = arith.addf %4, %6 : vector<128x128xf32>
    %cst = arith.constant 0.000000e+00 : f32
    %8 = vector.broadcast %cst : f32 to vector<128x128xf32>
    %9 = arith.maximumf %7, %8 : vector<128x128xf32>
    %10 = arith.truncf %9 : vector<128x128xf32> to vector<128x128xbf16>
    %c0_5 = arith.constant 0 : index
    %c0_6 = arith.constant 0 : index
    %11 = vector.load %arg4[%c0_5, %c0_6] : memref<128x128xbf16, #tpu.memory_space<vmem>>, vector<128x128xbf16>
    tpu.vector_store %arg4[%c0_5, %c0_6], %10 {strides = array<i32>} : memref<128x128xbf16, #tpu.memory_space<vmem>>, vector<128x128xbf16>,
    return
  }
  func.func @transform_0(%arg0: i32) -> (i32, i32) {
    %c0_i32 = arith.constant 0 : i32
    %c0_i32_0 = arith.constant 0 : i32
    return %arg0, %c0_i32 : i32, i32
  }
  func.func @transform_1(%arg0: i32) -> (i32, i32) {
    %c0_i32 = arith.constant 0 : i32
    %c0_i32_0 = arith.constant 0 : i32
    %c0_i32_1 = arith.constant 0 : i32
    return %c0_i32, %c0_i32_0 : i32, i32
  }
  func.func @transform_2(%arg0: i32) -> (i32, i32) {
    %c0_i32 = arith.constant 0 : i32
    %c0_i32_0 = arith.constant 0 : i32
    %c0_i32_1 = arith.constant 0 : i32
    return %c0_i32, %c0_i32_0 : i32, i32
  }
  func.func @transform_3(%arg0: i32) -> (i32, i32) {
    %c0_i32 = arith.constant 0 : i32
    %c0_i32_0 = arith.constant 0 : i32
    return %arg0, %c0_i32 : i32, i32
  }
}

module attributes {stable_mosaic.version = 11 : i64} {
  func.func @_matmul_stats_kernel(%arg0: i32, %arg1: i32, %arg2: i32, %arg3: memref<128x384xbf16, #tpu.memory_space<vmem>>, %arg4: memref<384x128xbf16, #tpu.memory_space<vmem>>, %arg5: memref<128x128xbf16, #tpu.memory_space<vmem>>, %arg6: memref<1x1x128xf32, #tpu.memory_space<vmem>>, %arg7: memref<1x1x128xf32, #tpu.memory_space<vmem>>, %arg8: memref<128x128xf32, #tpu.memory_space<vmem>>) attributes {dimension_semantics = [#tpu.dimension_semantics<parallel>, #tpu.dimension_semantics<parallel>, #tpu.dimension_semantics<arbitrary>], iteration_bounds = array<i64: 1, 1, 3>, scalar_prefetch = 0 : i64, scratch_operands = 1 : i64, tpu.core_type = #tpu.core_type<tc>, window_params = [{transform_indices = @transform_0, window_bounds = array<i64: 128, 384>}, {transform_indices = @transform_1, window_bounds = array<i64: 384, 128>}, {transform_indices = @transform_2, window_bounds = array<i64: 128, 128>}, {transform_indices = @transform_3, window_bounds = array<i64: 1, 1, 128>}, {transform_indices = @transform_4, window_bounds = array<i64: 1, 1, 128>}]} {
    %c0_i32 = arith.constant 0 : i32
    %0 = arith.cmpi eq, %arg2, %c0_i32 : i32
    %1 = arith.extui %0 : i1 to i32
    %c0_i32_0 = arith.constant 0 : i32
    %2 = arith.cmpi ne, %1, %c0_i32_0 : i32
    scf.if %2 {
      %cst_9 = arith.constant 0.000000e+00 : f32
      %12 = vector.broadcast %cst_9 : f32 to vector<128x128xf32>
      %c0_10 = arith.constant 0 : index
      %c0_11 = arith.constant 0 : index
      %13 = vector.load %arg8[%c0_10, %c0_11] : memref<128x128xf32, #tpu.memory_space<vmem>>, vector<128x128xf32>
      tpu.vector_store %arg8[%c0_10, %c0_11], %12 {strides = array<i32>} : memref<128x128xf32, #tpu.memory_space<vmem>>, vector<128x128xf32>,
    } else {
    }
    %c0 = arith.constant 0 : index
    %c0_1 = arith.constant 0 : index
    %3 = vector.load %arg8[%c0, %c0_1] : memref<128x128xf32, #tpu.memory_space<vmem>>, vector<128x128xf32>
    %c0_2 = arith.constant 0 : index
    %c0_3 = arith.constant 0 : index
    %4 = vector.load %arg3[%c0_2, %c0_3] : memref<128x384xbf16, #tpu.memory_space<vmem>>, vector<128x384xbf16>
    %c0_4 = arith.constant 0 : index
    %c0_5 = arith.constant 0 : index
    %5 = vector.load %arg4[%c0_4, %c0_5] : memref<384x128xbf16, #tpu.memory_space<vmem>>, vector<384x128xbf16>
    %cst = arith.constant dense<0.000000e+00> : vector<128x128xf32>
    %6 = tpu.matmul %4, %5, %cst {dimension_numbers = #tpu.dot_dimension_numbers<[1], [0], [0], [1], [0, 0, 1, 1], [], []>} : vector<128x384xbf16>, vector<384x128xbf16>, vector<128x128xf32> -> vector<128x128xf32>
    %7 = arith.addf %3, %6 : vector<128x128xf32>
    %c0_6 = arith.constant 0 : index
    %c0_7 = arith.constant 0 : index
    %8 = vector.load %arg8[%c0_6, %c0_7] : memref<128x128xf32, #tpu.memory_space<vmem>>, vector<128x128xf32>
    tpu.vector_store %arg8[%c0_6, %c0_7], %7 {strides = array<i32>} : memref<128x128xf32, #tpu.memory_space<vmem>>, vector<128x128xf32>,
    %c2_i32 = arith.constant 2 : i32
    %9 = arith.cmpi eq, %arg2, %c2_i32 : i32
    %10 = arith.extui %9 : i1 to i32
    %c0_i32_8 = arith.constant 0 : i32
    %11 = arith.cmpi ne, %10, %c0_i32_8 : i32
    scf.if %11 {
      %c0_9 = arith.constant 0 : index
      %c0_10 = arith.constant 0 : index
      %12 = vector.load %arg8[%c0_9, %c0_10] : memref<128x128xf32, #tpu.memory_space<vmem>>, vector<128x128xf32>
      %13 = arith.truncf %12 : vector<128x128xf32> to vector<128x128xbf16>
      %c0_11 = arith.constant 0 : index
      %c0_12 = arith.constant 0 : index
      %14 = vector.load %arg5[%c0_11, %c0_12] : memref<128x128xbf16, #tpu.memory_space<vmem>>, vector<128x128xbf16>
      tpu.vector_store %arg5[%c0_11, %c0_12], %13 {strides = array<i32>} : memref<128x128xbf16, #tpu.memory_space<vmem>>, vector<128x128xbf16>,
      %cst_13 = arith.constant dense<0.000000e+00> : vector<128xf32>
      %15 = vector.multi_reduction <add>, %12, %cst_13 [0] : vector<128x128xf32> to vector<128xf32>
      %16 = vector.shape_cast %15 : vector<128xf32> to vector<1x128xf32>
      %17 = vector.shape_cast %16 : vector<1x128xf32> to vector<1x1x128xf32>
      %c0_14 = arith.constant 0 : index
      %c0_15 = arith.constant 0 : index
      %c0_16 = arith.constant 0 : index
      %18 = vector.load %arg6[%c0_14, %c0_15, %c0_16] : memref<1x1x128xf32, #tpu.memory_space<vmem>>, vector<1x1x128xf32>
      tpu.vector_store %arg6[%c0_14, %c0_15, %c0_16], %17 {strides = array<i32>} : memref<1x1x128xf32, #tpu.memory_space<vmem>>, vector<1x1x128xf32>,
      %19 = arith.mulf %12, %12 : vector<128x128xf32>
      %cst_17 = arith.constant dense<0.000000e+00> : vector<128xf32>
      %20 = vector.multi_reduction <add>, %19, %cst_17 [0] : vector<128x128xf32> to vector<128xf32>
      %21 = vector.shape_cast %20 : vector<128xf32> to vector<1x128xf32>
      %22 = vector.shape_cast %21 : vector<1x128xf32> to vector<1x1x128xf32>
      %c0_18 = arith.constant 0 : index
      %c0_19 = arith.constant 0 : index
      %c0_20 = arith.constant 0 : index
      %23 = vector.load %arg7[%c0_18, %c0_19, %c0_20] : memref<1x1x128xf32, #tpu.memory_space<vmem>>, vector<1x1x128xf32>
      tpu.vector_store %arg7[%c0_18, %c0_19, %c0_20], %22 {strides = array<i32>} : memref<1x1x128xf32, #tpu.memory_space<vmem>>, vector<1x1x128xf32>,
    } else {
    }
    return
  }
  func.func @transform_0(%arg0: i32, %arg1: i32, %arg2: i32) -> (i32, i32) {
    %c0_i32 = arith.constant 0 : i32
    return %arg0, %arg2 : i32, i32
  }
  func.func @transform_1(%arg0: i32, %arg1: i32, %arg2: i32) -> (i32, i32) {
    %c0_i32 = arith.constant 0 : i32
    return %arg2, %arg1 : i32, i32
  }
  func.func @transform_2(%arg0: i32, %arg1: i32, %arg2: i32) -> (i32, i32) {
    %c0_i32 = arith.constant 0 : i32
    return %arg0, %arg1 : i32, i32
  }
  func.func @transform_3(%arg0: i32, %arg1: i32, %arg2: i32) -> (i32, i32, i32) {
    %c0_i32 = arith.constant 0 : i32
    %c0_i32_0 = arith.constant 0 : i32
    return %arg0, %c0_i32, %arg1 : i32, i32, i32
  }
  func.func @transform_4(%arg0: i32, %arg1: i32, %arg2: i32) -> (i32, i32, i32) {
    %c0_i32 = arith.constant 0 : i32
    %c0_i32_0 = arith.constant 0 : i32
    return %arg0, %c0_i32, %arg1 : i32, i32, i32
  }
}

module attributes {stable_mosaic.version = 11 : i64} {
  func.func @_bn_apply_kernel(%arg0: i32, %arg1: memref<128x128xbf16, #tpu.memory_space<vmem>>, %arg2: memref<1x128xf32, #tpu.memory_space<vmem>>, %arg3: memref<1x128xf32, #tpu.memory_space<vmem>>, %arg4: memref<128x128xbf16, #tpu.memory_space<vmem>>, %arg5: memref<128x128xbf16, #tpu.memory_space<vmem>>) attributes {dimension_semantics = [#tpu.dimension_semantics<parallel>], iteration_bounds = array<i64: 1>, scalar_prefetch = 0 : i64, scratch_operands = 0 : i64, tpu.core_type = #tpu.core_type<tc>, window_params = [{transform_indices = @transform_0, window_bounds = array<i64: 128, 128>}, {pipeline_mode = #tpu.pipeline_mode<synchronous>, transform_indices = @transform_1, window_bounds = array<i64: 1, 128>}, {pipeline_mode = #tpu.pipeline_mode<synchronous>, transform_indices = @transform_2, window_bounds = array<i64: 1, 128>}, {transform_indices = @transform_3, window_bounds = array<i64: 128, 128>}, {transform_indices = @transform_4, window_bounds = array<i64: 128, 128>}]} {
    %c0 = arith.constant 0 : index
    %c0_0 = arith.constant 0 : index
    %0 = vector.load %arg1[%c0, %c0_0] : memref<128x128xbf16, #tpu.memory_space<vmem>>, vector<128x128xbf16>
    %1 = arith.extf %0 : vector<128x128xbf16> to vector<128x128xf32>
    %c0_1 = arith.constant 0 : index
    %c0_2 = arith.constant 0 : index
    %2 = vector.load %arg2[%c0_1, %c0_2] : memref<1x128xf32, #tpu.memory_space<vmem>>, vector<1x128xf32>
    %3 = vector.broadcast %2 : vector<1x128xf32> to vector<128x128xf32>
    %4 = arith.mulf %1, %3 : vector<128x128xf32>
    %c0_3 = arith.constant 0 : index
    %c0_4 = arith.constant 0 : index
    %5 = vector.load %arg3[%c0_3, %c0_4] : memref<1x128xf32, #tpu.memory_space<vmem>>, vector<1x128xf32>
    %6 = vector.broadcast %5 : vector<1x128xf32> to vector<128x128xf32>
    %7 = arith.addf %4, %6 : vector<128x128xf32>
    %c0_5 = arith.constant 0 : index
    %c0_6 = arith.constant 0 : index
    %8 = vector.load %arg4[%c0_5, %c0_6] : memref<128x128xbf16, #tpu.memory_space<vmem>>, vector<128x128xbf16>
    %9 = arith.extf %8 : vector<128x128xbf16> to vector<128x128xf32>
    %10 = arith.addf %7, %9 : vector<128x128xf32>
    %cst = arith.constant 0.000000e+00 : f32
    %11 = vector.broadcast %cst : f32 to vector<128x128xf32>
    %12 = arith.maximumf %10, %11 : vector<128x128xf32>
    %13 = arith.truncf %12 : vector<128x128xf32> to vector<128x128xbf16>
    %c0_7 = arith.constant 0 : index
    %c0_8 = arith.constant 0 : index
    %14 = vector.load %arg5[%c0_7, %c0_8] : memref<128x128xbf16, #tpu.memory_space<vmem>>, vector<128x128xbf16>
    tpu.vector_store %arg5[%c0_7, %c0_8], %13 {strides = array<i32>} : memref<128x128xbf16, #tpu.memory_space<vmem>>, vector<128x128xbf16>,
    return
  }
  func.func @transform_0(%arg0: i32) -> (i32, i32) {
    %c0_i32 = arith.constant 0 : i32
    %c0_i32_0 = arith.constant 0 : i32
    return %arg0, %c0_i32 : i32, i32
  }
  func.func @transform_1(%arg0: i32) -> (i32, i32) {
    %c0_i32 = arith.constant 0 : i32
    %c0_i32_0 = arith.constant 0 : i32
    %c0_i32_1 = arith.constant 0 : i32
    return %c0_i32, %c0_i32_0 : i32, i32
  }
  func.func @transform_2(%arg0: i32) -> (i32, i32) {
    %c0_i32 = arith.constant 0 : i32
    %c0_i32_0 = arith.constant 0 : i32
    %c0_i32_1 = arith.constant 0 : i32
    return %c0_i32, %c0_i32_0 : i32, i32
  }
  func.func @transform_3(%arg0: i32) -> (i32, i32) {
    %c0_i32 = arith.constant 0 : i32
    %c0_i32_0 = arith.constant 0 : i32
    return %arg0, %c0_i32 : i32, i32
  }
  func.func @transform_4(%arg0: i32) -> (i32, i32) {
    %c0_i32 = arith.constant 0 : i32
    %c0_i32_0 = arith.constant 0 : i32
    return %arg0, %c0_i32 : i32, i32
  }
}

module attributes {stable_mosaic.version = 11 : i64} {
  func.func @_matmul_stats_kernel(%arg0: i32, %arg1: i32, %arg2: i32, %arg3: memref<32x128xbf16, #tpu.memory_space<vmem>>, %arg4: memref<128x128xbf16, #tpu.memory_space<vmem>>, %arg5: memref<32x128xbf16, #tpu.memory_space<vmem>>, %arg6: memref<1x1x128xf32, #tpu.memory_space<vmem>>, %arg7: memref<1x1x128xf32, #tpu.memory_space<vmem>>, %arg8: memref<32x128xf32, #tpu.memory_space<vmem>>) attributes {dimension_semantics = [#tpu.dimension_semantics<parallel>, #tpu.dimension_semantics<parallel>, #tpu.dimension_semantics<arbitrary>], iteration_bounds = array<i64: 1, 2, 1>, scalar_prefetch = 0 : i64, scratch_operands = 1 : i64, tpu.core_type = #tpu.core_type<tc>, window_params = [{transform_indices = @transform_0, window_bounds = array<i64: 32, 128>}, {transform_indices = @transform_1, window_bounds = array<i64: 128, 128>}, {transform_indices = @transform_2, window_bounds = array<i64: 32, 128>}, {transform_indices = @transform_3, window_bounds = array<i64: 1, 1, 128>}, {transform_indices = @transform_4, window_bounds = array<i64: 1, 1, 128>}]} {
    %c0_i32 = arith.constant 0 : i32
    %0 = arith.cmpi eq, %arg2, %c0_i32 : i32
    %1 = arith.extui %0 : i1 to i32
    %c0_i32_0 = arith.constant 0 : i32
    %2 = arith.cmpi ne, %1, %c0_i32_0 : i32
    scf.if %2 {
      %cst_10 = arith.constant 0.000000e+00 : f32
      %12 = vector.broadcast %cst_10 : f32 to vector<32x128xf32>
      %c0_11 = arith.constant 0 : index
      %c0_12 = arith.constant 0 : index
      %13 = vector.load %arg8[%c0_11, %c0_12] : memref<32x128xf32, #tpu.memory_space<vmem>>, vector<32x128xf32>
      tpu.vector_store %arg8[%c0_11, %c0_12], %12 {strides = array<i32>} : memref<32x128xf32, #tpu.memory_space<vmem>>, vector<32x128xf32>,
    } else {
    }
    %c0 = arith.constant 0 : index
    %c0_1 = arith.constant 0 : index
    %3 = vector.load %arg8[%c0, %c0_1] : memref<32x128xf32, #tpu.memory_space<vmem>>, vector<32x128xf32>
    %c0_2 = arith.constant 0 : index
    %c0_3 = arith.constant 0 : index
    %4 = vector.load %arg3[%c0_2, %c0_3] : memref<32x128xbf16, #tpu.memory_space<vmem>>, vector<32x128xbf16>
    %c0_4 = arith.constant 0 : index
    %c0_5 = arith.constant 0 : index
    %5 = vector.load %arg4[%c0_4, %c0_5] : memref<128x128xbf16, #tpu.memory_space<vmem>>, vector<128x128xbf16>
    %cst = arith.constant dense<0.000000e+00> : vector<32x128xf32>
    %6 = tpu.matmul %4, %5, %cst {dimension_numbers = #tpu.dot_dimension_numbers<[1], [0], [0], [1], [0, 0, 1, 1], [], []>} : vector<32x128xbf16>, vector<128x128xbf16>, vector<32x128xf32> -> vector<32x128xf32>
    %7 = arith.addf %3, %6 : vector<32x128xf32>
    %c0_6 = arith.constant 0 : index
    %c0_7 = arith.constant 0 : index
    %8 = vector.load %arg8[%c0_6, %c0_7] : memref<32x128xf32, #tpu.memory_space<vmem>>, vector<32x128xf32>
    tpu.vector_store %arg8[%c0_6, %c0_7], %7 {strides = array<i32>} : memref<32x128xf32, #tpu.memory_space<vmem>>, vector<32x128xf32>,
    %c0_i32_8 = arith.constant 0 : i32
    %9 = arith.cmpi eq, %arg2, %c0_i32_8 : i32
    %10 = arith.extui %9 : i1 to i32
    %c0_i32_9 = arith.constant 0 : i32
    %11 = arith.cmpi ne, %10, %c0_i32_9 : i32
    scf.if %11 {
      %c0_10 = arith.constant 0 : index
      %c0_11 = arith.constant 0 : index
      %12 = vector.load %arg8[%c0_10, %c0_11] : memref<32x128xf32, #tpu.memory_space<vmem>>, vector<32x128xf32>
      %13 = arith.truncf %12 : vector<32x128xf32> to vector<32x128xbf16>
      %c0_12 = arith.constant 0 : index
      %c0_13 = arith.constant 0 : index
      %14 = vector.load %arg5[%c0_12, %c0_13] : memref<32x128xbf16, #tpu.memory_space<vmem>>, vector<32x128xbf16>
      tpu.vector_store %arg5[%c0_12, %c0_13], %13 {strides = array<i32>} : memref<32x128xbf16, #tpu.memory_space<vmem>>, vector<32x128xbf16>,
      %cst_14 = arith.constant dense<0.000000e+00> : vector<128xf32>
      %15 = vector.multi_reduction <add>, %12, %cst_14 [0] : vector<32x128xf32> to vector<128xf32>
      %16 = vector.shape_cast %15 : vector<128xf32> to vector<1x128xf32>
      %17 = vector.shape_cast %16 : vector<1x128xf32> to vector<1x1x128xf32>
      %c0_15 = arith.constant 0 : index
      %c0_16 = arith.constant 0 : index
      %c0_17 = arith.constant 0 : index
      %18 = vector.load %arg6[%c0_15, %c0_16, %c0_17] : memref<1x1x128xf32, #tpu.memory_space<vmem>>, vector<1x1x128xf32>
      tpu.vector_store %arg6[%c0_15, %c0_16, %c0_17], %17 {strides = array<i32>} : memref<1x1x128xf32, #tpu.memory_space<vmem>>, vector<1x1x128xf32>,
      %19 = arith.mulf %12, %12 : vector<32x128xf32>
      %cst_18 = arith.constant dense<0.000000e+00> : vector<128xf32>
      %20 = vector.multi_reduction <add>, %19, %cst_18 [0] : vector<32x128xf32> to vector<128xf32>
      %21 = vector.shape_cast %20 : vector<128xf32> to vector<1x128xf32>
      %22 = vector.shape_cast %21 : vector<1x128xf32> to vector<1x1x128xf32>
      %c0_19 = arith.constant 0 : index
      %c0_20 = arith.constant 0 : index
      %c0_21 = arith.constant 0 : index
      %23 = vector.load %arg7[%c0_19, %c0_20, %c0_21] : memref<1x1x128xf32, #tpu.memory_space<vmem>>, vector<1x1x128xf32>
      tpu.vector_store %arg7[%c0_19, %c0_20, %c0_21], %22 {strides = array<i32>} : memref<1x1x128xf32, #tpu.memory_space<vmem>>, vector<1x1x128xf32>,
    } else {
    }
    return
  }
  func.func @transform_0(%arg0: i32, %arg1: i32, %arg2: i32) -> (i32, i32) {
    %c0_i32 = arith.constant 0 : i32
    return %arg0, %arg2 : i32, i32
  }
  func.func @transform_1(%arg0: i32, %arg1: i32, %arg2: i32) -> (i32, i32) {
    %c0_i32 = arith.constant 0 : i32
    return %arg2, %arg1 : i32, i32
  }
  func.func @transform_2(%arg0: i32, %arg1: i32, %arg2: i32) -> (i32, i32) {
    %c0_i32 = arith.constant 0 : i32
    return %arg0, %arg1 : i32, i32
  }
  func.func @transform_3(%arg0: i32, %arg1: i32, %arg2: i32) -> (i32, i32, i32) {
    %c0_i32 = arith.constant 0 : i32
    %c0_i32_0 = arith.constant 0 : i32
    return %arg0, %c0_i32, %arg1 : i32, i32, i32
  }
  func.func @transform_4(%arg0: i32, %arg1: i32, %arg2: i32) -> (i32, i32, i32) {
    %c0_i32 = arith.constant 0 : i32
    %c0_i32_0 = arith.constant 0 : i32
    return %arg0, %c0_i32, %arg1 : i32, i32, i32
  }
}

module attributes {stable_mosaic.version = 11 : i64} {
  func.func @_bn_finalize_kernel(%arg0: memref<1x1x256xf32, #tpu.memory_space<vmem>>, %arg1: memref<1x1x256xf32, #tpu.memory_space<vmem>>, %arg2: memref<1x256xf32, #tpu.memory_space<vmem>>, %arg3: memref<1x256xf32, #tpu.memory_space<vmem>>, %arg4: memref<1x256xf32, #tpu.memory_space<vmem>>, %arg5: memref<1x256xf32, #tpu.memory_space<vmem>>) attributes {dimension_semantics = [], scalar_prefetch = 0 : i64, scratch_operands = 0 : i64, tpu.core_type = #tpu.core_type<tc>} {
    %c0 = arith.constant 0 : index
    %c0_0 = arith.constant 0 : index
    %c0_1 = arith.constant 0 : index
    %0 = vector.load %arg0[%c0, %c0_0, %c0_1] : memref<1x1x256xf32, #tpu.memory_space<vmem>>, vector<1x1x256xf32>
    %cst = arith.constant dense<0.000000e+00> : vector<1x256xf32>
    %1 = vector.multi_reduction <add>, %0, %cst [0] : vector<1x1x256xf32> to vector<1x256xf32>
    %c0_2 = arith.constant 0 : index
    %c0_3 = arith.constant 0 : index
    %c0_4 = arith.constant 0 : index
    %2 = vector.load %arg1[%c0_2, %c0_3, %c0_4] : memref<1x1x256xf32, #tpu.memory_space<vmem>>, vector<1x1x256xf32>
    %cst_5 = arith.constant dense<0.000000e+00> : vector<1x256xf32>
    %3 = vector.multi_reduction <add>, %2, %cst_5 [0] : vector<1x1x256xf32> to vector<1x256xf32>
    %cst_6 = arith.constant 3.125000e-02 : f32
    %4 = vector.broadcast %cst_6 : f32 to vector<1x256xf32>
    %5 = arith.mulf %1, %4 : vector<1x256xf32>
    %cst_7 = arith.constant 3.125000e-02 : f32
    %6 = vector.broadcast %cst_7 : f32 to vector<1x256xf32>
    %7 = arith.mulf %3, %6 : vector<1x256xf32>
    %8 = arith.mulf %5, %5 : vector<1x256xf32>
    %9 = arith.subf %7, %8 : vector<1x256xf32>
    %cst_8 = arith.constant 9.99999974E-6 : f32
    %10 = vector.broadcast %cst_8 : f32 to vector<1x256xf32>
    %11 = arith.addf %9, %10 : vector<1x256xf32>
    %12 = math.rsqrt %11 : vector<1x256xf32>
    %c0_9 = arith.constant 0 : index
    %c0_10 = arith.constant 0 : index
    %13 = vector.load %arg2[%c0_9, %c0_10] : memref<1x256xf32, #tpu.memory_space<vmem>>, vector<1x256xf32>
    %14 = arith.mulf %13, %12 : vector<1x256xf32>
    %c0_11 = arith.constant 0 : index
    %c0_12 = arith.constant 0 : index
    %15 = vector.load %arg4[%c0_11, %c0_12] : memref<1x256xf32, #tpu.memory_space<vmem>>, vector<1x256xf32>
    tpu.vector_store %arg4[%c0_11, %c0_12], %14 {strides = array<i32>} : memref<1x256xf32, #tpu.memory_space<vmem>>, vector<1x256xf32>,
    %c0_13 = arith.constant 0 : index
    %c0_14 = arith.constant 0 : index
    %16 = vector.load %arg3[%c0_13, %c0_14] : memref<1x256xf32, #tpu.memory_space<vmem>>, vector<1x256xf32>
    %17 = arith.mulf %5, %14 : vector<1x256xf32>
    %18 = arith.subf %16, %17 : vector<1x256xf32>
    %c0_15 = arith.constant 0 : index
    %c0_16 = arith.constant 0 : index
    %19 = vector.load %arg5[%c0_15, %c0_16] : memref<1x256xf32, #tpu.memory_space<vmem>>, vector<1x256xf32>
    tpu.vector_store %arg5[%c0_15, %c0_16], %18 {strides = array<i32>} : memref<1x256xf32, #tpu.memory_space<vmem>>, vector<1x256xf32>,
    return
  }
}

module attributes {stable_mosaic.version = 11 : i64} {
  func.func @_bn_apply_kernel(%arg0: i32, %arg1: memref<32x256xbf16, #tpu.memory_space<vmem>>, %arg2: memref<1x256xf32, #tpu.memory_space<vmem>>, %arg3: memref<1x256xf32, #tpu.memory_space<vmem>>, %arg4: memref<32x256xbf16, #tpu.memory_space<vmem>>) attributes {dimension_semantics = [#tpu.dimension_semantics<parallel>], iteration_bounds = array<i64: 1>, scalar_prefetch = 0 : i64, scratch_operands = 0 : i64, tpu.core_type = #tpu.core_type<tc>, window_params = [{transform_indices = @transform_0, window_bounds = array<i64: 32, 256>}, {pipeline_mode = #tpu.pipeline_mode<synchronous>, transform_indices = @transform_1, window_bounds = array<i64: 1, 256>}, {pipeline_mode = #tpu.pipeline_mode<synchronous>, transform_indices = @transform_2, window_bounds = array<i64: 1, 256>}, {transform_indices = @transform_3, window_bounds = array<i64: 32, 256>}]} {
    %c0 = arith.constant 0 : index
    %c0_0 = arith.constant 0 : index
    %0 = vector.load %arg1[%c0, %c0_0] : memref<32x256xbf16, #tpu.memory_space<vmem>>, vector<32x256xbf16>
    %1 = arith.extf %0 : vector<32x256xbf16> to vector<32x256xf32>
    %c0_1 = arith.constant 0 : index
    %c0_2 = arith.constant 0 : index
    %2 = vector.load %arg2[%c0_1, %c0_2] : memref<1x256xf32, #tpu.memory_space<vmem>>, vector<1x256xf32>
    %3 = vector.broadcast %2 : vector<1x256xf32> to vector<32x256xf32>
    %4 = arith.mulf %1, %3 : vector<32x256xf32>
    %c0_3 = arith.constant 0 : index
    %c0_4 = arith.constant 0 : index
    %5 = vector.load %arg3[%c0_3, %c0_4] : memref<1x256xf32, #tpu.memory_space<vmem>>, vector<1x256xf32>
    %6 = vector.broadcast %5 : vector<1x256xf32> to vector<32x256xf32>
    %7 = arith.addf %4, %6 : vector<32x256xf32>
    %8 = arith.truncf %7 : vector<32x256xf32> to vector<32x256xbf16>
    %c0_5 = arith.constant 0 : index
    %c0_6 = arith.constant 0 : index
    %9 = vector.load %arg4[%c0_5, %c0_6] : memref<32x256xbf16, #tpu.memory_space<vmem>>, vector<32x256xbf16>
    tpu.vector_store %arg4[%c0_5, %c0_6], %8 {strides = array<i32>} : memref<32x256xbf16, #tpu.memory_space<vmem>>, vector<32x256xbf16>,
    return
  }
  func.func @transform_0(%arg0: i32) -> (i32, i32) {
    %c0_i32 = arith.constant 0 : i32
    %c0_i32_0 = arith.constant 0 : i32
    return %arg0, %c0_i32 : i32, i32
  }
  func.func @transform_1(%arg0: i32) -> (i32, i32) {
    %c0_i32 = arith.constant 0 : i32
    %c0_i32_0 = arith.constant 0 : i32
    %c0_i32_1 = arith.constant 0 : i32
    return %c0_i32, %c0_i32_0 : i32, i32
  }
  func.func @transform_2(%arg0: i32) -> (i32, i32) {
    %c0_i32 = arith.constant 0 : i32
    %c0_i32_0 = arith.constant 0 : i32
    %c0_i32_1 = arith.constant 0 : i32
    return %c0_i32, %c0_i32_0 : i32, i32
  }
  func.func @transform_3(%arg0: i32) -> (i32, i32) {
    %c0_i32 = arith.constant 0 : i32
    %c0_i32_0 = arith.constant 0 : i32
    return %arg0, %c0_i32 : i32, i32
  }
}

module attributes {stable_mosaic.version = 11 : i64} {
  func.func @_bn_apply_kernel(%arg0: i32, %arg1: memref<32x256xbf16, #tpu.memory_space<vmem>>, %arg2: memref<1x256xf32, #tpu.memory_space<vmem>>, %arg3: memref<1x256xf32, #tpu.memory_space<vmem>>, %arg4: memref<32x256xbf16, #tpu.memory_space<vmem>>) attributes {dimension_semantics = [#tpu.dimension_semantics<parallel>], iteration_bounds = array<i64: 1>, scalar_prefetch = 0 : i64, scratch_operands = 0 : i64, tpu.core_type = #tpu.core_type<tc>, window_params = [{transform_indices = @transform_0, window_bounds = array<i64: 32, 256>}, {pipeline_mode = #tpu.pipeline_mode<synchronous>, transform_indices = @transform_1, window_bounds = array<i64: 1, 256>}, {pipeline_mode = #tpu.pipeline_mode<synchronous>, transform_indices = @transform_2, window_bounds = array<i64: 1, 256>}, {transform_indices = @transform_3, window_bounds = array<i64: 32, 256>}]} {
    %c0 = arith.constant 0 : index
    %c0_0 = arith.constant 0 : index
    %0 = vector.load %arg1[%c0, %c0_0] : memref<32x256xbf16, #tpu.memory_space<vmem>>, vector<32x256xbf16>
    %1 = arith.extf %0 : vector<32x256xbf16> to vector<32x256xf32>
    %c0_1 = arith.constant 0 : index
    %c0_2 = arith.constant 0 : index
    %2 = vector.load %arg2[%c0_1, %c0_2] : memref<1x256xf32, #tpu.memory_space<vmem>>, vector<1x256xf32>
    %3 = vector.broadcast %2 : vector<1x256xf32> to vector<32x256xf32>
    %4 = arith.mulf %1, %3 : vector<32x256xf32>
    %c0_3 = arith.constant 0 : index
    %c0_4 = arith.constant 0 : index
    %5 = vector.load %arg3[%c0_3, %c0_4] : memref<1x256xf32, #tpu.memory_space<vmem>>, vector<1x256xf32>
    %6 = vector.broadcast %5 : vector<1x256xf32> to vector<32x256xf32>
    %7 = arith.addf %4, %6 : vector<32x256xf32>
    %cst = arith.constant 0.000000e+00 : f32
    %8 = vector.broadcast %cst : f32 to vector<32x256xf32>
    %9 = arith.maximumf %7, %8 : vector<32x256xf32>
    %10 = arith.truncf %9 : vector<32x256xf32> to vector<32x256xbf16>
    %c0_5 = arith.constant 0 : index
    %c0_6 = arith.constant 0 : index
    %11 = vector.load %arg4[%c0_5, %c0_6] : memref<32x256xbf16, #tpu.memory_space<vmem>>, vector<32x256xbf16>
    tpu.vector_store %arg4[%c0_5, %c0_6], %10 {strides = array<i32>} : memref<32x256xbf16, #tpu.memory_space<vmem>>, vector<32x256xbf16>,
    return
  }
  func.func @transform_0(%arg0: i32) -> (i32, i32) {
    %c0_i32 = arith.constant 0 : i32
    %c0_i32_0 = arith.constant 0 : i32
    return %arg0, %c0_i32 : i32, i32
  }
  func.func @transform_1(%arg0: i32) -> (i32, i32) {
    %c0_i32 = arith.constant 0 : i32
    %c0_i32_0 = arith.constant 0 : i32
    %c0_i32_1 = arith.constant 0 : i32
    return %c0_i32, %c0_i32_0 : i32, i32
  }
  func.func @transform_2(%arg0: i32) -> (i32, i32) {
    %c0_i32 = arith.constant 0 : i32
    %c0_i32_0 = arith.constant 0 : i32
    %c0_i32_1 = arith.constant 0 : i32
    return %c0_i32, %c0_i32_0 : i32, i32
  }
  func.func @transform_3(%arg0: i32) -> (i32, i32) {
    %c0_i32 = arith.constant 0 : i32
    %c0_i32_0 = arith.constant 0 : i32
    return %arg0, %c0_i32 : i32, i32
  }
}

module attributes {stable_mosaic.version = 11 : i64} {
  func.func @_matmul_stats_kernel(%arg0: i32, %arg1: i32, %arg2: i32, %arg3: memref<32x384xbf16, #tpu.memory_space<vmem>>, %arg4: memref<384x128xbf16, #tpu.memory_space<vmem>>, %arg5: memref<32x128xbf16, #tpu.memory_space<vmem>>, %arg6: memref<1x1x128xf32, #tpu.memory_space<vmem>>, %arg7: memref<1x1x128xf32, #tpu.memory_space<vmem>>, %arg8: memref<32x128xf32, #tpu.memory_space<vmem>>) attributes {dimension_semantics = [#tpu.dimension_semantics<parallel>, #tpu.dimension_semantics<parallel>, #tpu.dimension_semantics<arbitrary>], iteration_bounds = array<i64: 1, 2, 3>, scalar_prefetch = 0 : i64, scratch_operands = 1 : i64, tpu.core_type = #tpu.core_type<tc>, window_params = [{transform_indices = @transform_0, window_bounds = array<i64: 32, 384>}, {transform_indices = @transform_1, window_bounds = array<i64: 384, 128>}, {transform_indices = @transform_2, window_bounds = array<i64: 32, 128>}, {transform_indices = @transform_3, window_bounds = array<i64: 1, 1, 128>}, {transform_indices = @transform_4, window_bounds = array<i64: 1, 1, 128>}]} {
    %c0_i32 = arith.constant 0 : i32
    %0 = arith.cmpi eq, %arg2, %c0_i32 : i32
    %1 = arith.extui %0 : i1 to i32
    %c0_i32_0 = arith.constant 0 : i32
    %2 = arith.cmpi ne, %1, %c0_i32_0 : i32
    scf.if %2 {
      %cst_9 = arith.constant 0.000000e+00 : f32
      %12 = vector.broadcast %cst_9 : f32 to vector<32x128xf32>
      %c0_10 = arith.constant 0 : index
      %c0_11 = arith.constant 0 : index
      %13 = vector.load %arg8[%c0_10, %c0_11] : memref<32x128xf32, #tpu.memory_space<vmem>>, vector<32x128xf32>
      tpu.vector_store %arg8[%c0_10, %c0_11], %12 {strides = array<i32>} : memref<32x128xf32, #tpu.memory_space<vmem>>, vector<32x128xf32>,
    } else {
    }
    %c0 = arith.constant 0 : index
    %c0_1 = arith.constant 0 : index
    %3 = vector.load %arg8[%c0, %c0_1] : memref<32x128xf32, #tpu.memory_space<vmem>>, vector<32x128xf32>
    %c0_2 = arith.constant 0 : index
    %c0_3 = arith.constant 0 : index
    %4 = vector.load %arg3[%c0_2, %c0_3] : memref<32x384xbf16, #tpu.memory_space<vmem>>, vector<32x384xbf16>
    %c0_4 = arith.constant 0 : index
    %c0_5 = arith.constant 0 : index
    %5 = vector.load %arg4[%c0_4, %c0_5] : memref<384x128xbf16, #tpu.memory_space<vmem>>, vector<384x128xbf16>
    %cst = arith.constant dense<0.000000e+00> : vector<32x128xf32>
    %6 = tpu.matmul %4, %5, %cst {dimension_numbers = #tpu.dot_dimension_numbers<[1], [0], [0], [1], [0, 0, 1, 1], [], []>} : vector<32x384xbf16>, vector<384x128xbf16>, vector<32x128xf32> -> vector<32x128xf32>
    %7 = arith.addf %3, %6 : vector<32x128xf32>
    %c0_6 = arith.constant 0 : index
    %c0_7 = arith.constant 0 : index
    %8 = vector.load %arg8[%c0_6, %c0_7] : memref<32x128xf32, #tpu.memory_space<vmem>>, vector<32x128xf32>
    tpu.vector_store %arg8[%c0_6, %c0_7], %7 {strides = array<i32>} : memref<32x128xf32, #tpu.memory_space<vmem>>, vector<32x128xf32>,
    %c2_i32 = arith.constant 2 : i32
    %9 = arith.cmpi eq, %arg2, %c2_i32 : i32
    %10 = arith.extui %9 : i1 to i32
    %c0_i32_8 = arith.constant 0 : i32
    %11 = arith.cmpi ne, %10, %c0_i32_8 : i32
    scf.if %11 {
      %c0_9 = arith.constant 0 : index
      %c0_10 = arith.constant 0 : index
      %12 = vector.load %arg8[%c0_9, %c0_10] : memref<32x128xf32, #tpu.memory_space<vmem>>, vector<32x128xf32>
      %13 = arith.truncf %12 : vector<32x128xf32> to vector<32x128xbf16>
      %c0_11 = arith.constant 0 : index
      %c0_12 = arith.constant 0 : index
      %14 = vector.load %arg5[%c0_11, %c0_12] : memref<32x128xbf16, #tpu.memory_space<vmem>>, vector<32x128xbf16>
      tpu.vector_store %arg5[%c0_11, %c0_12], %13 {strides = array<i32>} : memref<32x128xbf16, #tpu.memory_space<vmem>>, vector<32x128xbf16>,
      %cst_13 = arith.constant dense<0.000000e+00> : vector<128xf32>
      %15 = vector.multi_reduction <add>, %12, %cst_13 [0] : vector<32x128xf32> to vector<128xf32>
      %16 = vector.shape_cast %15 : vector<128xf32> to vector<1x128xf32>
      %17 = vector.shape_cast %16 : vector<1x128xf32> to vector<1x1x128xf32>
      %c0_14 = arith.constant 0 : index
      %c0_15 = arith.constant 0 : index
      %c0_16 = arith.constant 0 : index
      %18 = vector.load %arg6[%c0_14, %c0_15, %c0_16] : memref<1x1x128xf32, #tpu.memory_space<vmem>>, vector<1x1x128xf32>
      tpu.vector_store %arg6[%c0_14, %c0_15, %c0_16], %17 {strides = array<i32>} : memref<1x1x128xf32, #tpu.memory_space<vmem>>, vector<1x1x128xf32>,
      %19 = arith.mulf %12, %12 : vector<32x128xf32>
      %cst_17 = arith.constant dense<0.000000e+00> : vector<128xf32>
      %20 = vector.multi_reduction <add>, %19, %cst_17 [0] : vector<32x128xf32> to vector<128xf32>
      %21 = vector.shape_cast %20 : vector<128xf32> to vector<1x128xf32>
      %22 = vector.shape_cast %21 : vector<1x128xf32> to vector<1x1x128xf32>
      %c0_18 = arith.constant 0 : index
      %c0_19 = arith.constant 0 : index
      %c0_20 = arith.constant 0 : index
      %23 = vector.load %arg7[%c0_18, %c0_19, %c0_20] : memref<1x1x128xf32, #tpu.memory_space<vmem>>, vector<1x1x128xf32>
      tpu.vector_store %arg7[%c0_18, %c0_19, %c0_20], %22 {strides = array<i32>} : memref<1x1x128xf32, #tpu.memory_space<vmem>>, vector<1x1x128xf32>,
    } else {
    }
    return
  }
  func.func @transform_0(%arg0: i32, %arg1: i32, %arg2: i32) -> (i32, i32) {
    %c0_i32 = arith.constant 0 : i32
    return %arg0, %arg2 : i32, i32
  }
  func.func @transform_1(%arg0: i32, %arg1: i32, %arg2: i32) -> (i32, i32) {
    %c0_i32 = arith.constant 0 : i32
    return %arg2, %arg1 : i32, i32
  }
  func.func @transform_2(%arg0: i32, %arg1: i32, %arg2: i32) -> (i32, i32) {
    %c0_i32 = arith.constant 0 : i32
    return %arg0, %arg1 : i32, i32
  }
  func.func @transform_3(%arg0: i32, %arg1: i32, %arg2: i32) -> (i32, i32, i32) {
    %c0_i32 = arith.constant 0 : i32
    %c0_i32_0 = arith.constant 0 : i32
    return %arg0, %c0_i32, %arg1 : i32, i32, i32
  }
  func.func @transform_4(%arg0: i32, %arg1: i32, %arg2: i32) -> (i32, i32, i32) {
    %c0_i32 = arith.constant 0 : i32
    %c0_i32_0 = arith.constant 0 : i32
    return %arg0, %c0_i32, %arg1 : i32, i32, i32
  }
}

module attributes {stable_mosaic.version = 11 : i64} {
  func.func @_bn_apply_kernel(%arg0: i32, %arg1: memref<32x256xbf16, #tpu.memory_space<vmem>>, %arg2: memref<1x256xf32, #tpu.memory_space<vmem>>, %arg3: memref<1x256xf32, #tpu.memory_space<vmem>>, %arg4: memref<32x256xbf16, #tpu.memory_space<vmem>>, %arg5: memref<32x256xbf16, #tpu.memory_space<vmem>>) attributes {dimension_semantics = [#tpu.dimension_semantics<parallel>], iteration_bounds = array<i64: 1>, scalar_prefetch = 0 : i64, scratch_operands = 0 : i64, tpu.core_type = #tpu.core_type<tc>, window_params = [{transform_indices = @transform_0, window_bounds = array<i64: 32, 256>}, {pipeline_mode = #tpu.pipeline_mode<synchronous>, transform_indices = @transform_1, window_bounds = array<i64: 1, 256>}, {pipeline_mode = #tpu.pipeline_mode<synchronous>, transform_indices = @transform_2, window_bounds = array<i64: 1, 256>}, {transform_indices = @transform_3, window_bounds = array<i64: 32, 256>}, {transform_indices = @transform_4, window_bounds = array<i64: 32, 256>}]} {
    %c0 = arith.constant 0 : index
    %c0_0 = arith.constant 0 : index
    %0 = vector.load %arg1[%c0, %c0_0] : memref<32x256xbf16, #tpu.memory_space<vmem>>, vector<32x256xbf16>
    %1 = arith.extf %0 : vector<32x256xbf16> to vector<32x256xf32>
    %c0_1 = arith.constant 0 : index
    %c0_2 = arith.constant 0 : index
    %2 = vector.load %arg2[%c0_1, %c0_2] : memref<1x256xf32, #tpu.memory_space<vmem>>, vector<1x256xf32>
    %3 = vector.broadcast %2 : vector<1x256xf32> to vector<32x256xf32>
    %4 = arith.mulf %1, %3 : vector<32x256xf32>
    %c0_3 = arith.constant 0 : index
    %c0_4 = arith.constant 0 : index
    %5 = vector.load %arg3[%c0_3, %c0_4] : memref<1x256xf32, #tpu.memory_space<vmem>>, vector<1x256xf32>
    %6 = vector.broadcast %5 : vector<1x256xf32> to vector<32x256xf32>
    %7 = arith.addf %4, %6 : vector<32x256xf32>
    %c0_5 = arith.constant 0 : index
    %c0_6 = arith.constant 0 : index
    %8 = vector.load %arg4[%c0_5, %c0_6] : memref<32x256xbf16, #tpu.memory_space<vmem>>, vector<32x256xbf16>
    %9 = arith.extf %8 : vector<32x256xbf16> to vector<32x256xf32>
    %10 = arith.addf %7, %9 : vector<32x256xf32>
    %cst = arith.constant 0.000000e+00 : f32
    %11 = vector.broadcast %cst : f32 to vector<32x256xf32>
    %12 = arith.maximumf %10, %11 : vector<32x256xf32>
    %13 = arith.truncf %12 : vector<32x256xf32> to vector<32x256xbf16>
    %c0_7 = arith.constant 0 : index
    %c0_8 = arith.constant 0 : index
    %14 = vector.load %arg5[%c0_7, %c0_8] : memref<32x256xbf16, #tpu.memory_space<vmem>>, vector<32x256xbf16>
    tpu.vector_store %arg5[%c0_7, %c0_8], %13 {strides = array<i32>} : memref<32x256xbf16, #tpu.memory_space<vmem>>, vector<32x256xbf16>,
    return
  }
  func.func @transform_0(%arg0: i32) -> (i32, i32) {
    %c0_i32 = arith.constant 0 : i32
    %c0_i32_0 = arith.constant 0 : i32
    return %arg0, %c0_i32 : i32, i32
  }
  func.func @transform_1(%arg0: i32) -> (i32, i32) {
    %c0_i32 = arith.constant 0 : i32
    %c0_i32_0 = arith.constant 0 : i32
    %c0_i32_1 = arith.constant 0 : i32
    return %c0_i32, %c0_i32_0 : i32, i32
  }
  func.func @transform_2(%arg0: i32) -> (i32, i32) {
    %c0_i32 = arith.constant 0 : i32
    %c0_i32_0 = arith.constant 0 : i32
    %c0_i32_1 = arith.constant 0 : i32
    return %c0_i32, %c0_i32_0 : i32, i32
  }
  func.func @transform_3(%arg0: i32) -> (i32, i32) {
    %c0_i32 = arith.constant 0 : i32
    %c0_i32_0 = arith.constant 0 : i32
    return %arg0, %c0_i32 : i32, i32
  }
  func.func @transform_4(%arg0: i32) -> (i32, i32) {
    %c0_i32 = arith.constant 0 : i32
    %c0_i32_0 = arith.constant 0 : i32
    return %arg0, %c0_i32 : i32, i32
  }
}

module attributes {stable_mosaic.version = 11 : i64} {
  func.func @_matmul_stats_kernel(%arg0: i32, %arg1: i32, %arg2: i32, %arg3: memref<32x384xbf16, #tpu.memory_space<vmem>>, %arg4: memref<384x128xbf16, #tpu.memory_space<vmem>>, %arg5: memref<32x128xbf16, #tpu.memory_space<vmem>>, %arg6: memref<1x1x128xf32, #tpu.memory_space<vmem>>, %arg7: memref<1x1x128xf32, #tpu.memory_space<vmem>>, %arg8: memref<32x128xf32, #tpu.memory_space<vmem>>) attributes {dimension_semantics = [#tpu.dimension_semantics<parallel>, #tpu.dimension_semantics<parallel>, #tpu.dimension_semantics<arbitrary>], iteration_bounds = array<i64: 1, 2, 6>, scalar_prefetch = 0 : i64, scratch_operands = 1 : i64, tpu.core_type = #tpu.core_type<tc>, window_params = [{transform_indices = @transform_0, window_bounds = array<i64: 32, 384>}, {transform_indices = @transform_1, window_bounds = array<i64: 384, 128>}, {transform_indices = @transform_2, window_bounds = array<i64: 32, 128>}, {transform_indices = @transform_3, window_bounds = array<i64: 1, 1, 128>}, {transform_indices = @transform_4, window_bounds = array<i64: 1, 1, 128>}]} {
    %c0_i32 = arith.constant 0 : i32
    %0 = arith.cmpi eq, %arg2, %c0_i32 : i32
    %1 = arith.extui %0 : i1 to i32
    %c0_i32_0 = arith.constant 0 : i32
    %2 = arith.cmpi ne, %1, %c0_i32_0 : i32
    scf.if %2 {
      %cst_9 = arith.constant 0.000000e+00 : f32
      %12 = vector.broadcast %cst_9 : f32 to vector<32x128xf32>
      %c0_10 = arith.constant 0 : index
      %c0_11 = arith.constant 0 : index
      %13 = vector.load %arg8[%c0_10, %c0_11] : memref<32x128xf32, #tpu.memory_space<vmem>>, vector<32x128xf32>
      tpu.vector_store %arg8[%c0_10, %c0_11], %12 {strides = array<i32>} : memref<32x128xf32, #tpu.memory_space<vmem>>, vector<32x128xf32>,
    } else {
    }
    %c0 = arith.constant 0 : index
    %c0_1 = arith.constant 0 : index
    %3 = vector.load %arg8[%c0, %c0_1] : memref<32x128xf32, #tpu.memory_space<vmem>>, vector<32x128xf32>
    %c0_2 = arith.constant 0 : index
    %c0_3 = arith.constant 0 : index
    %4 = vector.load %arg3[%c0_2, %c0_3] : memref<32x384xbf16, #tpu.memory_space<vmem>>, vector<32x384xbf16>
    %c0_4 = arith.constant 0 : index
    %c0_5 = arith.constant 0 : index
    %5 = vector.load %arg4[%c0_4, %c0_5] : memref<384x128xbf16, #tpu.memory_space<vmem>>, vector<384x128xbf16>
    %cst = arith.constant dense<0.000000e+00> : vector<32x128xf32>
    %6 = tpu.matmul %4, %5, %cst {dimension_numbers = #tpu.dot_dimension_numbers<[1], [0], [0], [1], [0, 0, 1, 1], [], []>} : vector<32x384xbf16>, vector<384x128xbf16>, vector<32x128xf32> -> vector<32x128xf32>
    %7 = arith.addf %3, %6 : vector<32x128xf32>
    %c0_6 = arith.constant 0 : index
    %c0_7 = arith.constant 0 : index
    %8 = vector.load %arg8[%c0_6, %c0_7] : memref<32x128xf32, #tpu.memory_space<vmem>>, vector<32x128xf32>
    tpu.vector_store %arg8[%c0_6, %c0_7], %7 {strides = array<i32>} : memref<32x128xf32, #tpu.memory_space<vmem>>, vector<32x128xf32>,
    %c5_i32 = arith.constant 5 : i32
    %9 = arith.cmpi eq, %arg2, %c5_i32 : i32
    %10 = arith.extui %9 : i1 to i32
    %c0_i32_8 = arith.constant 0 : i32
    %11 = arith.cmpi ne, %10, %c0_i32_8 : i32
    scf.if %11 {
      %c0_9 = arith.constant 0 : index
      %c0_10 = arith.constant 0 : index
      %12 = vector.load %arg8[%c0_9, %c0_10] : memref<32x128xf32, #tpu.memory_space<vmem>>, vector<32x128xf32>
      %13 = arith.truncf %12 : vector<32x128xf32> to vector<32x128xbf16>
      %c0_11 = arith.constant 0 : index
      %c0_12 = arith.constant 0 : index
      %14 = vector.load %arg5[%c0_11, %c0_12] : memref<32x128xbf16, #tpu.memory_space<vmem>>, vector<32x128xbf16>
      tpu.vector_store %arg5[%c0_11, %c0_12], %13 {strides = array<i32>} : memref<32x128xbf16, #tpu.memory_space<vmem>>, vector<32x128xbf16>,
      %cst_13 = arith.constant dense<0.000000e+00> : vector<128xf32>
      %15 = vector.multi_reduction <add>, %12, %cst_13 [0] : vector<32x128xf32> to vector<128xf32>
      %16 = vector.shape_cast %15 : vector<128xf32> to vector<1x128xf32>
      %17 = vector.shape_cast %16 : vector<1x128xf32> to vector<1x1x128xf32>
      %c0_14 = arith.constant 0 : index
      %c0_15 = arith.constant 0 : index
      %c0_16 = arith.constant 0 : index
      %18 = vector.load %arg6[%c0_14, %c0_15, %c0_16] : memref<1x1x128xf32, #tpu.memory_space<vmem>>, vector<1x1x128xf32>
      tpu.vector_store %arg6[%c0_14, %c0_15, %c0_16], %17 {strides = array<i32>} : memref<1x1x128xf32, #tpu.memory_space<vmem>>, vector<1x1x128xf32>,
      %19 = arith.mulf %12, %12 : vector<32x128xf32>
      %cst_17 = arith.constant dense<0.000000e+00> : vector<128xf32>
      %20 = vector.multi_reduction <add>, %19, %cst_17 [0] : vector<32x128xf32> to vector<128xf32>
      %21 = vector.shape_cast %20 : vector<128xf32> to vector<1x128xf32>
      %22 = vector.shape_cast %21 : vector<1x128xf32> to vector<1x1x128xf32>
      %c0_18 = arith.constant 0 : index
      %c0_19 = arith.constant 0 : index
      %c0_20 = arith.constant 0 : index
      %23 = vector.load %arg7[%c0_18, %c0_19, %c0_20] : memref<1x1x128xf32, #tpu.memory_space<vmem>>, vector<1x1x128xf32>
      tpu.vector_store %arg7[%c0_18, %c0_19, %c0_20], %22 {strides = array<i32>} : memref<1x1x128xf32, #tpu.memory_space<vmem>>, vector<1x1x128xf32>,
    } else {
    }
    return
  }
  func.func @transform_0(%arg0: i32, %arg1: i32, %arg2: i32) -> (i32, i32) {
    %c0_i32 = arith.constant 0 : i32
    return %arg0, %arg2 : i32, i32
  }
  func.func @transform_1(%arg0: i32, %arg1: i32, %arg2: i32) -> (i32, i32) {
    %c0_i32 = arith.constant 0 : i32
    return %arg2, %arg1 : i32, i32
  }
  func.func @transform_2(%arg0: i32, %arg1: i32, %arg2: i32) -> (i32, i32) {
    %c0_i32 = arith.constant 0 : i32
    return %arg0, %arg1 : i32, i32
  }
  func.func @transform_3(%arg0: i32, %arg1: i32, %arg2: i32) -> (i32, i32, i32) {
    %c0_i32 = arith.constant 0 : i32
    %c0_i32_0 = arith.constant 0 : i32
    return %arg0, %c0_i32, %arg1 : i32, i32, i32
  }
  func.func @transform_4(%arg0: i32, %arg1: i32, %arg2: i32) -> (i32, i32, i32) {
    %c0_i32 = arith.constant 0 : i32
    %c0_i32_0 = arith.constant 0 : i32
    return %arg0, %c0_i32, %arg1 : i32, i32, i32
  }
}

module attributes {stable_mosaic.version = 11 : i64} {
  func.func @_bn_finalize_kernel(%arg0: memref<1x1x512xf32, #tpu.memory_space<vmem>>, %arg1: memref<1x1x512xf32, #tpu.memory_space<vmem>>, %arg2: memref<1x512xf32, #tpu.memory_space<vmem>>, %arg3: memref<1x512xf32, #tpu.memory_space<vmem>>, %arg4: memref<1x512xf32, #tpu.memory_space<vmem>>, %arg5: memref<1x512xf32, #tpu.memory_space<vmem>>) attributes {dimension_semantics = [], scalar_prefetch = 0 : i64, scratch_operands = 0 : i64, tpu.core_type = #tpu.core_type<tc>} {
    %c0 = arith.constant 0 : index
    %c0_0 = arith.constant 0 : index
    %c0_1 = arith.constant 0 : index
    %0 = vector.load %arg0[%c0, %c0_0, %c0_1] : memref<1x1x512xf32, #tpu.memory_space<vmem>>, vector<1x1x512xf32>
    %cst = arith.constant dense<0.000000e+00> : vector<1x512xf32>
    %1 = vector.multi_reduction <add>, %0, %cst [0] : vector<1x1x512xf32> to vector<1x512xf32>
    %c0_2 = arith.constant 0 : index
    %c0_3 = arith.constant 0 : index
    %c0_4 = arith.constant 0 : index
    %2 = vector.load %arg1[%c0_2, %c0_3, %c0_4] : memref<1x1x512xf32, #tpu.memory_space<vmem>>, vector<1x1x512xf32>
    %cst_5 = arith.constant dense<0.000000e+00> : vector<1x512xf32>
    %3 = vector.multi_reduction <add>, %2, %cst_5 [0] : vector<1x1x512xf32> to vector<1x512xf32>
    %cst_6 = arith.constant 1.250000e-01 : f32
    %4 = vector.broadcast %cst_6 : f32 to vector<1x512xf32>
    %5 = arith.mulf %1, %4 : vector<1x512xf32>
    %cst_7 = arith.constant 1.250000e-01 : f32
    %6 = vector.broadcast %cst_7 : f32 to vector<1x512xf32>
    %7 = arith.mulf %3, %6 : vector<1x512xf32>
    %8 = arith.mulf %5, %5 : vector<1x512xf32>
    %9 = arith.subf %7, %8 : vector<1x512xf32>
    %cst_8 = arith.constant 9.99999974E-6 : f32
    %10 = vector.broadcast %cst_8 : f32 to vector<1x512xf32>
    %11 = arith.addf %9, %10 : vector<1x512xf32>
    %12 = math.rsqrt %11 : vector<1x512xf32>
    %c0_9 = arith.constant 0 : index
    %c0_10 = arith.constant 0 : index
    %13 = vector.load %arg2[%c0_9, %c0_10] : memref<1x512xf32, #tpu.memory_space<vmem>>, vector<1x512xf32>
    %14 = arith.mulf %13, %12 : vector<1x512xf32>
    %c0_11 = arith.constant 0 : index
    %c0_12 = arith.constant 0 : index
    %15 = vector.load %arg4[%c0_11, %c0_12] : memref<1x512xf32, #tpu.memory_space<vmem>>, vector<1x512xf32>
    tpu.vector_store %arg4[%c0_11, %c0_12], %14 {strides = array<i32>} : memref<1x512xf32, #tpu.memory_space<vmem>>, vector<1x512xf32>,
    %c0_13 = arith.constant 0 : index
    %c0_14 = arith.constant 0 : index
    %16 = vector.load %arg3[%c0_13, %c0_14] : memref<1x512xf32, #tpu.memory_space<vmem>>, vector<1x512xf32>
    %17 = arith.mulf %5, %14 : vector<1x512xf32>
    %18 = arith.subf %16, %17 : vector<1x512xf32>
    %c0_15 = arith.constant 0 : index
    %c0_16 = arith.constant 0 : index
    %19 = vector.load %arg5[%c0_15, %c0_16] : memref<1x512xf32, #tpu.memory_space<vmem>>, vector<1x512xf32>
    tpu.vector_store %arg5[%c0_15, %c0_16], %18 {strides = array<i32>} : memref<1x512xf32, #tpu.memory_space<vmem>>, vector<1x512xf32>,
    return
  }
}

module attributes {stable_mosaic.version = 11 : i64} {
  func.func @_bn_apply_kernel(%arg0: i32, %arg1: memref<8x512xbf16, #tpu.memory_space<vmem>>, %arg2: memref<1x512xf32, #tpu.memory_space<vmem>>, %arg3: memref<1x512xf32, #tpu.memory_space<vmem>>, %arg4: memref<8x512xbf16, #tpu.memory_space<vmem>>) attributes {dimension_semantics = [#tpu.dimension_semantics<parallel>], iteration_bounds = array<i64: 1>, scalar_prefetch = 0 : i64, scratch_operands = 0 : i64, tpu.core_type = #tpu.core_type<tc>, window_params = [{transform_indices = @transform_0, window_bounds = array<i64: 8, 512>}, {pipeline_mode = #tpu.pipeline_mode<synchronous>, transform_indices = @transform_1, window_bounds = array<i64: 1, 512>}, {pipeline_mode = #tpu.pipeline_mode<synchronous>, transform_indices = @transform_2, window_bounds = array<i64: 1, 512>}, {transform_indices = @transform_3, window_bounds = array<i64: 8, 512>}]} {
    %c0 = arith.constant 0 : index
    %c0_0 = arith.constant 0 : index
    %0 = vector.load %arg1[%c0, %c0_0] : memref<8x512xbf16, #tpu.memory_space<vmem>>, vector<8x512xbf16>
    %1 = arith.extf %0 : vector<8x512xbf16> to vector<8x512xf32>
    %c0_1 = arith.constant 0 : index
    %c0_2 = arith.constant 0 : index
    %2 = vector.load %arg2[%c0_1, %c0_2] : memref<1x512xf32, #tpu.memory_space<vmem>>, vector<1x512xf32>
    %3 = vector.broadcast %2 : vector<1x512xf32> to vector<8x512xf32>
    %4 = arith.mulf %1, %3 : vector<8x512xf32>
    %c0_3 = arith.constant 0 : index
    %c0_4 = arith.constant 0 : index
    %5 = vector.load %arg3[%c0_3, %c0_4] : memref<1x512xf32, #tpu.memory_space<vmem>>, vector<1x512xf32>
    %6 = vector.broadcast %5 : vector<1x512xf32> to vector<8x512xf32>
    %7 = arith.addf %4, %6 : vector<8x512xf32>
    %8 = arith.truncf %7 : vector<8x512xf32> to vector<8x512xbf16>
    %c0_5 = arith.constant 0 : index
    %c0_6 = arith.constant 0 : index
    %9 = vector.load %arg4[%c0_5, %c0_6] : memref<8x512xbf16, #tpu.memory_space<vmem>>, vector<8x512xbf16>
    tpu.vector_store %arg4[%c0_5, %c0_6], %8 {strides = array<i32>} : memref<8x512xbf16, #tpu.memory_space<vmem>>, vector<8x512xbf16>,
    return
  }
  func.func @transform_0(%arg0: i32) -> (i32, i32) {
    %c0_i32 = arith.constant 0 : i32
    %c0_i32_0 = arith.constant 0 : i32
    return %arg0, %c0_i32 : i32, i32
  }
  func.func @transform_1(%arg0: i32) -> (i32, i32) {
    %c0_i32 = arith.constant 0 : i32
    %c0_i32_0 = arith.constant 0 : i32
    %c0_i32_1 = arith.constant 0 : i32
    return %c0_i32, %c0_i32_0 : i32, i32
  }
  func.func @transform_2(%arg0: i32) -> (i32, i32) {
    %c0_i32 = arith.constant 0 : i32
    %c0_i32_0 = arith.constant 0 : i32
    %c0_i32_1 = arith.constant 0 : i32
    return %c0_i32, %c0_i32_0 : i32, i32
  }
  func.func @transform_3(%arg0: i32) -> (i32, i32) {
    %c0_i32 = arith.constant 0 : i32
    %c0_i32_0 = arith.constant 0 : i32
    return %arg0, %c0_i32 : i32, i32
  }
}

module attributes {stable_mosaic.version = 11 : i64} {
  func.func @_matmul_stats_kernel(%arg0: i32, %arg1: i32, %arg2: i32, %arg3: memref<8x256xbf16, #tpu.memory_space<vmem>>, %arg4: memref<256x128xbf16, #tpu.memory_space<vmem>>, %arg5: memref<8x128xbf16, #tpu.memory_space<vmem>>, %arg6: memref<1x1x128xf32, #tpu.memory_space<vmem>>, %arg7: memref<1x1x128xf32, #tpu.memory_space<vmem>>, %arg8: memref<8x128xf32, #tpu.memory_space<vmem>>) attributes {dimension_semantics = [#tpu.dimension_semantics<parallel>, #tpu.dimension_semantics<parallel>, #tpu.dimension_semantics<arbitrary>], iteration_bounds = array<i64: 1, 4, 1>, scalar_prefetch = 0 : i64, scratch_operands = 1 : i64, tpu.core_type = #tpu.core_type<tc>, window_params = [{transform_indices = @transform_0, window_bounds = array<i64: 8, 256>}, {transform_indices = @transform_1, window_bounds = array<i64: 256, 128>}, {transform_indices = @transform_2, window_bounds = array<i64: 8, 128>}, {transform_indices = @transform_3, window_bounds = array<i64: 1, 1, 128>}, {transform_indices = @transform_4, window_bounds = array<i64: 1, 1, 128>}]} {
    %c0_i32 = arith.constant 0 : i32
    %0 = arith.cmpi eq, %arg2, %c0_i32 : i32
    %1 = arith.extui %0 : i1 to i32
    %c0_i32_0 = arith.constant 0 : i32
    %2 = arith.cmpi ne, %1, %c0_i32_0 : i32
    scf.if %2 {
      %cst_10 = arith.constant 0.000000e+00 : f32
      %12 = vector.broadcast %cst_10 : f32 to vector<8x128xf32>
      %c0_11 = arith.constant 0 : index
      %c0_12 = arith.constant 0 : index
      %13 = vector.load %arg8[%c0_11, %c0_12] : memref<8x128xf32, #tpu.memory_space<vmem>>, vector<8x128xf32>
      tpu.vector_store %arg8[%c0_11, %c0_12], %12 {strides = array<i32>} : memref<8x128xf32, #tpu.memory_space<vmem>>, vector<8x128xf32>,
    } else {
    }
    %c0 = arith.constant 0 : index
    %c0_1 = arith.constant 0 : index
    %3 = vector.load %arg8[%c0, %c0_1] : memref<8x128xf32, #tpu.memory_space<vmem>>, vector<8x128xf32>
    %c0_2 = arith.constant 0 : index
    %c0_3 = arith.constant 0 : index
    %4 = vector.load %arg3[%c0_2, %c0_3] : memref<8x256xbf16, #tpu.memory_space<vmem>>, vector<8x256xbf16>
    %c0_4 = arith.constant 0 : index
    %c0_5 = arith.constant 0 : index
    %5 = vector.load %arg4[%c0_4, %c0_5] : memref<256x128xbf16, #tpu.memory_space<vmem>>, vector<256x128xbf16>
    %cst = arith.constant dense<0.000000e+00> : vector<8x128xf32>
    %6 = tpu.matmul %4, %5, %cst {dimension_numbers = #tpu.dot_dimension_numbers<[1], [0], [0], [1], [0, 0, 1, 1], [], []>} : vector<8x256xbf16>, vector<256x128xbf16>, vector<8x128xf32> -> vector<8x128xf32>
    %7 = arith.addf %3, %6 : vector<8x128xf32>
    %c0_6 = arith.constant 0 : index
    %c0_7 = arith.constant 0 : index
    %8 = vector.load %arg8[%c0_6, %c0_7] : memref<8x128xf32, #tpu.memory_space<vmem>>, vector<8x128xf32>
    tpu.vector_store %arg8[%c0_6, %c0_7], %7 {strides = array<i32>} : memref<8x128xf32, #tpu.memory_space<vmem>>, vector<8x128xf32>,
    %c0_i32_8 = arith.constant 0 : i32
    %9 = arith.cmpi eq, %arg2, %c0_i32_8 : i32
    %10 = arith.extui %9 : i1 to i32
    %c0_i32_9 = arith.constant 0 : i32
    %11 = arith.cmpi ne, %10, %c0_i32_9 : i32
    scf.if %11 {
      %c0_10 = arith.constant 0 : index
      %c0_11 = arith.constant 0 : index
      %12 = vector.load %arg8[%c0_10, %c0_11] : memref<8x128xf32, #tpu.memory_space<vmem>>, vector<8x128xf32>
      %13 = arith.truncf %12 : vector<8x128xf32> to vector<8x128xbf16>
      %c0_12 = arith.constant 0 : index
      %c0_13 = arith.constant 0 : index
      %14 = vector.load %arg5[%c0_12, %c0_13] : memref<8x128xbf16, #tpu.memory_space<vmem>>, vector<8x128xbf16>
      tpu.vector_store %arg5[%c0_12, %c0_13], %13 {strides = array<i32>} : memref<8x128xbf16, #tpu.memory_space<vmem>>, vector<8x128xbf16>,
      %cst_14 = arith.constant dense<0.000000e+00> : vector<128xf32>
      %15 = vector.multi_reduction <add>, %12, %cst_14 [0] : vector<8x128xf32> to vector<128xf32>
      %16 = vector.shape_cast %15 : vector<128xf32> to vector<1x128xf32>
      %17 = vector.shape_cast %16 : vector<1x128xf32> to vector<1x1x128xf32>
      %c0_15 = arith.constant 0 : index
      %c0_16 = arith.constant 0 : index
      %c0_17 = arith.constant 0 : index
      %18 = vector.load %arg6[%c0_15, %c0_16, %c0_17] : memref<1x1x128xf32, #tpu.memory_space<vmem>>, vector<1x1x128xf32>
      tpu.vector_store %arg6[%c0_15, %c0_16, %c0_17], %17 {strides = array<i32>} : memref<1x1x128xf32, #tpu.memory_space<vmem>>, vector<1x1x128xf32>,
      %19 = arith.mulf %12, %12 : vector<8x128xf32>
      %cst_18 = arith.constant dense<0.000000e+00> : vector<128xf32>
      %20 = vector.multi_reduction <add>, %19, %cst_18 [0] : vector<8x128xf32> to vector<128xf32>
      %21 = vector.shape_cast %20 : vector<128xf32> to vector<1x128xf32>
      %22 = vector.shape_cast %21 : vector<1x128xf32> to vector<1x1x128xf32>
      %c0_19 = arith.constant 0 : index
      %c0_20 = arith.constant 0 : index
      %c0_21 = arith.constant 0 : index
      %23 = vector.load %arg7[%c0_19, %c0_20, %c0_21] : memref<1x1x128xf32, #tpu.memory_space<vmem>>, vector<1x1x128xf32>
      tpu.vector_store %arg7[%c0_19, %c0_20, %c0_21], %22 {strides = array<i32>} : memref<1x1x128xf32, #tpu.memory_space<vmem>>, vector<1x1x128xf32>,
    } else {
    }
    return
  }
  func.func @transform_0(%arg0: i32, %arg1: i32, %arg2: i32) -> (i32, i32) {
    %c0_i32 = arith.constant 0 : i32
    return %arg0, %arg2 : i32, i32
  }
  func.func @transform_1(%arg0: i32, %arg1: i32, %arg2: i32) -> (i32, i32) {
    %c0_i32 = arith.constant 0 : i32
    return %arg2, %arg1 : i32, i32
  }
  func.func @transform_2(%arg0: i32, %arg1: i32, %arg2: i32) -> (i32, i32) {
    %c0_i32 = arith.constant 0 : i32
    return %arg0, %arg1 : i32, i32
  }
  func.func @transform_3(%arg0: i32, %arg1: i32, %arg2: i32) -> (i32, i32, i32) {
    %c0_i32 = arith.constant 0 : i32
    %c0_i32_0 = arith.constant 0 : i32
    return %arg0, %c0_i32, %arg1 : i32, i32, i32
  }
  func.func @transform_4(%arg0: i32, %arg1: i32, %arg2: i32) -> (i32, i32, i32) {
    %c0_i32 = arith.constant 0 : i32
    %c0_i32_0 = arith.constant 0 : i32
    return %arg0, %c0_i32, %arg1 : i32, i32, i32
  }
}

module attributes {stable_mosaic.version = 11 : i64} {
  func.func @_bn_apply_kernel(%arg0: i32, %arg1: memref<8x512xbf16, #tpu.memory_space<vmem>>, %arg2: memref<1x512xf32, #tpu.memory_space<vmem>>, %arg3: memref<1x512xf32, #tpu.memory_space<vmem>>, %arg4: memref<8x512xbf16, #tpu.memory_space<vmem>>) attributes {dimension_semantics = [#tpu.dimension_semantics<parallel>], iteration_bounds = array<i64: 1>, scalar_prefetch = 0 : i64, scratch_operands = 0 : i64, tpu.core_type = #tpu.core_type<tc>, window_params = [{transform_indices = @transform_0, window_bounds = array<i64: 8, 512>}, {pipeline_mode = #tpu.pipeline_mode<synchronous>, transform_indices = @transform_1, window_bounds = array<i64: 1, 512>}, {pipeline_mode = #tpu.pipeline_mode<synchronous>, transform_indices = @transform_2, window_bounds = array<i64: 1, 512>}, {transform_indices = @transform_3, window_bounds = array<i64: 8, 512>}]} {
    %c0 = arith.constant 0 : index
    %c0_0 = arith.constant 0 : index
    %0 = vector.load %arg1[%c0, %c0_0] : memref<8x512xbf16, #tpu.memory_space<vmem>>, vector<8x512xbf16>
    %1 = arith.extf %0 : vector<8x512xbf16> to vector<8x512xf32>
    %c0_1 = arith.constant 0 : index
    %c0_2 = arith.constant 0 : index
    %2 = vector.load %arg2[%c0_1, %c0_2] : memref<1x512xf32, #tpu.memory_space<vmem>>, vector<1x512xf32>
    %3 = vector.broadcast %2 : vector<1x512xf32> to vector<8x512xf32>
    %4 = arith.mulf %1, %3 : vector<8x512xf32>
    %c0_3 = arith.constant 0 : index
    %c0_4 = arith.constant 0 : index
    %5 = vector.load %arg3[%c0_3, %c0_4] : memref<1x512xf32, #tpu.memory_space<vmem>>, vector<1x512xf32>
    %6 = vector.broadcast %5 : vector<1x512xf32> to vector<8x512xf32>
    %7 = arith.addf %4, %6 : vector<8x512xf32>
    %cst = arith.constant 0.000000e+00 : f32
    %8 = vector.broadcast %cst : f32 to vector<8x512xf32>
    %9 = arith.maximumf %7, %8 : vector<8x512xf32>
    %10 = arith.truncf %9 : vector<8x512xf32> to vector<8x512xbf16>
    %c0_5 = arith.constant 0 : index
    %c0_6 = arith.constant 0 : index
    %11 = vector.load %arg4[%c0_5, %c0_6] : memref<8x512xbf16, #tpu.memory_space<vmem>>, vector<8x512xbf16>
    tpu.vector_store %arg4[%c0_5, %c0_6], %10 {strides = array<i32>} : memref<8x512xbf16, #tpu.memory_space<vmem>>, vector<8x512xbf16>,
    return
  }
  func.func @transform_0(%arg0: i32) -> (i32, i32) {
    %c0_i32 = arith.constant 0 : i32
    %c0_i32_0 = arith.constant 0 : i32
    return %arg0, %c0_i32 : i32, i32
  }
  func.func @transform_1(%arg0: i32) -> (i32, i32) {
    %c0_i32 = arith.constant 0 : i32
    %c0_i32_0 = arith.constant 0 : i32
    %c0_i32_1 = arith.constant 0 : i32
    return %c0_i32, %c0_i32_0 : i32, i32
  }
  func.func @transform_2(%arg0: i32) -> (i32, i32) {
    %c0_i32 = arith.constant 0 : i32
    %c0_i32_0 = arith.constant 0 : i32
    %c0_i32_1 = arith.constant 0 : i32
    return %c0_i32, %c0_i32_0 : i32, i32
  }
  func.func @transform_3(%arg0: i32) -> (i32, i32) {
    %c0_i32 = arith.constant 0 : i32
    %c0_i32_0 = arith.constant 0 : i32
    return %arg0, %c0_i32 : i32, i32
  }
}

module attributes {stable_mosaic.version = 11 : i64} {
  func.func @_matmul_stats_kernel(%arg0: i32, %arg1: i32, %arg2: i32, %arg3: memref<8x384xbf16, #tpu.memory_space<vmem>>, %arg4: memref<384x128xbf16, #tpu.memory_space<vmem>>, %arg5: memref<8x128xbf16, #tpu.memory_space<vmem>>, %arg6: memref<1x1x128xf32, #tpu.memory_space<vmem>>, %arg7: memref<1x1x128xf32, #tpu.memory_space<vmem>>, %arg8: memref<8x128xf32, #tpu.memory_space<vmem>>) attributes {dimension_semantics = [#tpu.dimension_semantics<parallel>, #tpu.dimension_semantics<parallel>, #tpu.dimension_semantics<arbitrary>], iteration_bounds = array<i64: 1, 4, 6>, scalar_prefetch = 0 : i64, scratch_operands = 1 : i64, tpu.core_type = #tpu.core_type<tc>, window_params = [{transform_indices = @transform_0, window_bounds = array<i64: 8, 384>}, {transform_indices = @transform_1, window_bounds = array<i64: 384, 128>}, {transform_indices = @transform_2, window_bounds = array<i64: 8, 128>}, {transform_indices = @transform_3, window_bounds = array<i64: 1, 1, 128>}, {transform_indices = @transform_4, window_bounds = array<i64: 1, 1, 128>}]} {
    %c0_i32 = arith.constant 0 : i32
    %0 = arith.cmpi eq, %arg2, %c0_i32 : i32
    %1 = arith.extui %0 : i1 to i32
    %c0_i32_0 = arith.constant 0 : i32
    %2 = arith.cmpi ne, %1, %c0_i32_0 : i32
    scf.if %2 {
      %cst_9 = arith.constant 0.000000e+00 : f32
      %12 = vector.broadcast %cst_9 : f32 to vector<8x128xf32>
      %c0_10 = arith.constant 0 : index
      %c0_11 = arith.constant 0 : index
      %13 = vector.load %arg8[%c0_10, %c0_11] : memref<8x128xf32, #tpu.memory_space<vmem>>, vector<8x128xf32>
      tpu.vector_store %arg8[%c0_10, %c0_11], %12 {strides = array<i32>} : memref<8x128xf32, #tpu.memory_space<vmem>>, vector<8x128xf32>,
    } else {
    }
    %c0 = arith.constant 0 : index
    %c0_1 = arith.constant 0 : index
    %3 = vector.load %arg8[%c0, %c0_1] : memref<8x128xf32, #tpu.memory_space<vmem>>, vector<8x128xf32>
    %c0_2 = arith.constant 0 : index
    %c0_3 = arith.constant 0 : index
    %4 = vector.load %arg3[%c0_2, %c0_3] : memref<8x384xbf16, #tpu.memory_space<vmem>>, vector<8x384xbf16>
    %c0_4 = arith.constant 0 : index
    %c0_5 = arith.constant 0 : index
    %5 = vector.load %arg4[%c0_4, %c0_5] : memref<384x128xbf16, #tpu.memory_space<vmem>>, vector<384x128xbf16>
    %cst = arith.constant dense<0.000000e+00> : vector<8x128xf32>
    %6 = tpu.matmul %4, %5, %cst {dimension_numbers = #tpu.dot_dimension_numbers<[1], [0], [0], [1], [0, 0, 1, 1], [], []>} : vector<8x384xbf16>, vector<384x128xbf16>, vector<8x128xf32> -> vector<8x128xf32>
    %7 = arith.addf %3, %6 : vector<8x128xf32>
    %c0_6 = arith.constant 0 : index
    %c0_7 = arith.constant 0 : index
    %8 = vector.load %arg8[%c0_6, %c0_7] : memref<8x128xf32, #tpu.memory_space<vmem>>, vector<8x128xf32>
    tpu.vector_store %arg8[%c0_6, %c0_7], %7 {strides = array<i32>} : memref<8x128xf32, #tpu.memory_space<vmem>>, vector<8x128xf32>,
    %c5_i32 = arith.constant 5 : i32
    %9 = arith.cmpi eq, %arg2, %c5_i32 : i32
    %10 = arith.extui %9 : i1 to i32
    %c0_i32_8 = arith.constant 0 : i32
    %11 = arith.cmpi ne, %10, %c0_i32_8 : i32
    scf.if %11 {
      %c0_9 = arith.constant 0 : index
      %c0_10 = arith.constant 0 : index
      %12 = vector.load %arg8[%c0_9, %c0_10] : memref<8x128xf32, #tpu.memory_space<vmem>>, vector<8x128xf32>
      %13 = arith.truncf %12 : vector<8x128xf32> to vector<8x128xbf16>
      %c0_11 = arith.constant 0 : index
      %c0_12 = arith.constant 0 : index
      %14 = vector.load %arg5[%c0_11, %c0_12] : memref<8x128xbf16, #tpu.memory_space<vmem>>, vector<8x128xbf16>
      tpu.vector_store %arg5[%c0_11, %c0_12], %13 {strides = array<i32>} : memref<8x128xbf16, #tpu.memory_space<vmem>>, vector<8x128xbf16>,
      %cst_13 = arith.constant dense<0.000000e+00> : vector<128xf32>
      %15 = vector.multi_reduction <add>, %12, %cst_13 [0] : vector<8x128xf32> to vector<128xf32>
      %16 = vector.shape_cast %15 : vector<128xf32> to vector<1x128xf32>
      %17 = vector.shape_cast %16 : vector<1x128xf32> to vector<1x1x128xf32>
      %c0_14 = arith.constant 0 : index
      %c0_15 = arith.constant 0 : index
      %c0_16 = arith.constant 0 : index
      %18 = vector.load %arg6[%c0_14, %c0_15, %c0_16] : memref<1x1x128xf32, #tpu.memory_space<vmem>>, vector<1x1x128xf32>
      tpu.vector_store %arg6[%c0_14, %c0_15, %c0_16], %17 {strides = array<i32>} : memref<1x1x128xf32, #tpu.memory_space<vmem>>, vector<1x1x128xf32>,
      %19 = arith.mulf %12, %12 : vector<8x128xf32>
      %cst_17 = arith.constant dense<0.000000e+00> : vector<128xf32>
      %20 = vector.multi_reduction <add>, %19, %cst_17 [0] : vector<8x128xf32> to vector<128xf32>
      %21 = vector.shape_cast %20 : vector<128xf32> to vector<1x128xf32>
      %22 = vector.shape_cast %21 : vector<1x128xf32> to vector<1x1x128xf32>
      %c0_18 = arith.constant 0 : index
      %c0_19 = arith.constant 0 : index
      %c0_20 = arith.constant 0 : index
      %23 = vector.load %arg7[%c0_18, %c0_19, %c0_20] : memref<1x1x128xf32, #tpu.memory_space<vmem>>, vector<1x1x128xf32>
      tpu.vector_store %arg7[%c0_18, %c0_19, %c0_20], %22 {strides = array<i32>} : memref<1x1x128xf32, #tpu.memory_space<vmem>>, vector<1x1x128xf32>,
    } else {
    }
    return
  }
  func.func @transform_0(%arg0: i32, %arg1: i32, %arg2: i32) -> (i32, i32) {
    %c0_i32 = arith.constant 0 : i32
    return %arg0, %arg2 : i32, i32
  }
  func.func @transform_1(%arg0: i32, %arg1: i32, %arg2: i32) -> (i32, i32) {
    %c0_i32 = arith.constant 0 : i32
    return %arg2, %arg1 : i32, i32
  }
  func.func @transform_2(%arg0: i32, %arg1: i32, %arg2: i32) -> (i32, i32) {
    %c0_i32 = arith.constant 0 : i32
    return %arg0, %arg1 : i32, i32
  }
  func.func @transform_3(%arg0: i32, %arg1: i32, %arg2: i32) -> (i32, i32, i32) {
    %c0_i32 = arith.constant 0 : i32
    %c0_i32_0 = arith.constant 0 : i32
    return %arg0, %c0_i32, %arg1 : i32, i32, i32
  }
  func.func @transform_4(%arg0: i32, %arg1: i32, %arg2: i32) -> (i32, i32, i32) {
    %c0_i32 = arith.constant 0 : i32
    %c0_i32_0 = arith.constant 0 : i32
    return %arg0, %c0_i32, %arg1 : i32, i32, i32
  }
}

module attributes {stable_mosaic.version = 11 : i64} {
  func.func @_bn_apply_kernel(%arg0: i32, %arg1: memref<8x512xbf16, #tpu.memory_space<vmem>>, %arg2: memref<1x512xf32, #tpu.memory_space<vmem>>, %arg3: memref<1x512xf32, #tpu.memory_space<vmem>>, %arg4: memref<8x512xbf16, #tpu.memory_space<vmem>>, %arg5: memref<8x512xbf16, #tpu.memory_space<vmem>>) attributes {dimension_semantics = [#tpu.dimension_semantics<parallel>], iteration_bounds = array<i64: 1>, scalar_prefetch = 0 : i64, scratch_operands = 0 : i64, tpu.core_type = #tpu.core_type<tc>, window_params = [{transform_indices = @transform_0, window_bounds = array<i64: 8, 512>}, {pipeline_mode = #tpu.pipeline_mode<synchronous>, transform_indices = @transform_1, window_bounds = array<i64: 1, 512>}, {pipeline_mode = #tpu.pipeline_mode<synchronous>, transform_indices = @transform_2, window_bounds = array<i64: 1, 512>}, {transform_indices = @transform_3, window_bounds = array<i64: 8, 512>}, {transform_indices = @transform_4, window_bounds = array<i64: 8, 512>}]} {
    %c0 = arith.constant 0 : index
    %c0_0 = arith.constant 0 : index
    %0 = vector.load %arg1[%c0, %c0_0] : memref<8x512xbf16, #tpu.memory_space<vmem>>, vector<8x512xbf16>
    %1 = arith.extf %0 : vector<8x512xbf16> to vector<8x512xf32>
    %c0_1 = arith.constant 0 : index
    %c0_2 = arith.constant 0 : index
    %2 = vector.load %arg2[%c0_1, %c0_2] : memref<1x512xf32, #tpu.memory_space<vmem>>, vector<1x512xf32>
    %3 = vector.broadcast %2 : vector<1x512xf32> to vector<8x512xf32>
    %4 = arith.mulf %1, %3 : vector<8x512xf32>
    %c0_3 = arith.constant 0 : index
    %c0_4 = arith.constant 0 : index
    %5 = vector.load %arg3[%c0_3, %c0_4] : memref<1x512xf32, #tpu.memory_space<vmem>>, vector<1x512xf32>
    %6 = vector.broadcast %5 : vector<1x512xf32> to vector<8x512xf32>
    %7 = arith.addf %4, %6 : vector<8x512xf32>
    %c0_5 = arith.constant 0 : index
    %c0_6 = arith.constant 0 : index
    %8 = vector.load %arg4[%c0_5, %c0_6] : memref<8x512xbf16, #tpu.memory_space<vmem>>, vector<8x512xbf16>
    %9 = arith.extf %8 : vector<8x512xbf16> to vector<8x512xf32>
    %10 = arith.addf %7, %9 : vector<8x512xf32>
    %cst = arith.constant 0.000000e+00 : f32
    %11 = vector.broadcast %cst : f32 to vector<8x512xf32>
    %12 = arith.maximumf %10, %11 : vector<8x512xf32>
    %13 = arith.truncf %12 : vector<8x512xf32> to vector<8x512xbf16>
    %c0_7 = arith.constant 0 : index
    %c0_8 = arith.constant 0 : index
    %14 = vector.load %arg5[%c0_7, %c0_8] : memref<8x512xbf16, #tpu.memory_space<vmem>>, vector<8x512xbf16>
    tpu.vector_store %arg5[%c0_7, %c0_8], %13 {strides = array<i32>} : memref<8x512xbf16, #tpu.memory_space<vmem>>, vector<8x512xbf16>,
    return
  }
  func.func @transform_0(%arg0: i32) -> (i32, i32) {
    %c0_i32 = arith.constant 0 : i32
    %c0_i32_0 = arith.constant 0 : i32
    return %arg0, %c0_i32 : i32, i32
  }
  func.func @transform_1(%arg0: i32) -> (i32, i32) {
    %c0_i32 = arith.constant 0 : i32
    %c0_i32_0 = arith.constant 0 : i32
    %c0_i32_1 = arith.constant 0 : i32
    return %c0_i32, %c0_i32_0 : i32, i32
  }
  func.func @transform_2(%arg0: i32) -> (i32, i32) {
    %c0_i32 = arith.constant 0 : i32
    %c0_i32_0 = arith.constant 0 : i32
    %c0_i32_1 = arith.constant 0 : i32
    return %c0_i32, %c0_i32_0 : i32, i32
  }
  func.func @transform_3(%arg0: i32) -> (i32, i32) {
    %c0_i32 = arith.constant 0 : i32
    %c0_i32_0 = arith.constant 0 : i32
    return %arg0, %c0_i32 : i32, i32
  }
  func.func @transform_4(%arg0: i32) -> (i32, i32) {
    %c0_i32 = arith.constant 0 : i32
    %c0_i32_0 = arith.constant 0 : i32
    return %arg0, %c0_i32 : i32, i32
  }
}

module attributes {stable_mosaic.version = 11 : i64} {
  func.func @_matmul_stats_kernel(%arg0: i32, %arg1: i32, %arg2: i32, %arg3: memref<8x512xbf16, #tpu.memory_space<vmem>>, %arg4: memref<512x128xbf16, #tpu.memory_space<vmem>>, %arg5: memref<8x128xbf16, #tpu.memory_space<vmem>>, %arg6: memref<1x1x128xf32, #tpu.memory_space<vmem>>, %arg7: memref<1x1x128xf32, #tpu.memory_space<vmem>>, %arg8: memref<8x128xf32, #tpu.memory_space<vmem>>) attributes {dimension_semantics = [#tpu.dimension_semantics<parallel>, #tpu.dimension_semantics<parallel>, #tpu.dimension_semantics<arbitrary>], iteration_bounds = array<i64: 1, 4, 9>, scalar_prefetch = 0 : i64, scratch_operands = 1 : i64, tpu.core_type = #tpu.core_type<tc>, window_params = [{transform_indices = @transform_0, window_bounds = array<i64: 8, 512>}, {transform_indices = @transform_1, window_bounds = array<i64: 512, 128>}, {transform_indices = @transform_2, window_bounds = array<i64: 8, 128>}, {transform_indices = @transform_3, window_bounds = array<i64: 1, 1, 128>}, {transform_indices = @transform_4, window_bounds = array<i64: 1, 1, 128>}]} {
    %c0_i32 = arith.constant 0 : i32
    %0 = arith.cmpi eq, %arg2, %c0_i32 : i32
    %1 = arith.extui %0 : i1 to i32
    %c0_i32_0 = arith.constant 0 : i32
    %2 = arith.cmpi ne, %1, %c0_i32_0 : i32
    scf.if %2 {
      %cst_9 = arith.constant 0.000000e+00 : f32
      %12 = vector.broadcast %cst_9 : f32 to vector<8x128xf32>
      %c0_10 = arith.constant 0 : index
      %c0_11 = arith.constant 0 : index
      %13 = vector.load %arg8[%c0_10, %c0_11] : memref<8x128xf32, #tpu.memory_space<vmem>>, vector<8x128xf32>
      tpu.vector_store %arg8[%c0_10, %c0_11], %12 {strides = array<i32>} : memref<8x128xf32, #tpu.memory_space<vmem>>, vector<8x128xf32>,
    } else {
    }
    %c0 = arith.constant 0 : index
    %c0_1 = arith.constant 0 : index
    %3 = vector.load %arg8[%c0, %c0_1] : memref<8x128xf32, #tpu.memory_space<vmem>>, vector<8x128xf32>
    %c0_2 = arith.constant 0 : index
    %c0_3 = arith.constant 0 : index
    %4 = vector.load %arg3[%c0_2, %c0_3] : memref<8x512xbf16, #tpu.memory_space<vmem>>, vector<8x512xbf16>
    %c0_4 = arith.constant 0 : index
    %c0_5 = arith.constant 0 : index
    %5 = vector.load %arg4[%c0_4, %c0_5] : memref<512x128xbf16, #tpu.memory_space<vmem>>, vector<512x128xbf16>
    %cst = arith.constant dense<0.000000e+00> : vector<8x128xf32>
    %6 = tpu.matmul %4, %5, %cst {dimension_numbers = #tpu.dot_dimension_numbers<[1], [0], [0], [1], [0, 0, 1, 1], [], []>} : vector<8x512xbf16>, vector<512x128xbf16>, vector<8x128xf32> -> vector<8x128xf32>
    %7 = arith.addf %3, %6 : vector<8x128xf32>
    %c0_6 = arith.constant 0 : index
    %c0_7 = arith.constant 0 : index
    %8 = vector.load %arg8[%c0_6, %c0_7] : memref<8x128xf32, #tpu.memory_space<vmem>>, vector<8x128xf32>
    tpu.vector_store %arg8[%c0_6, %c0_7], %7 {strides = array<i32>} : memref<8x128xf32, #tpu.memory_space<vmem>>, vector<8x128xf32>,
    %c8_i32 = arith.constant 8 : i32
    %9 = arith.cmpi eq, %arg2, %c8_i32 : i32
    %10 = arith.extui %9 : i1 to i32
    %c0_i32_8 = arith.constant 0 : i32
    %11 = arith.cmpi ne, %10, %c0_i32_8 : i32
    scf.if %11 {
      %c0_9 = arith.constant 0 : index
      %c0_10 = arith.constant 0 : index
      %12 = vector.load %arg8[%c0_9, %c0_10] : memref<8x128xf32, #tpu.memory_space<vmem>>, vector<8x128xf32>
      %13 = arith.truncf %12 : vector<8x128xf32> to vector<8x128xbf16>
      %c0_11 = arith.constant 0 : index
      %c0_12 = arith.constant 0 : index
      %14 = vector.load %arg5[%c0_11, %c0_12] : memref<8x128xbf16, #tpu.memory_space<vmem>>, vector<8x128xbf16>
      tpu.vector_store %arg5[%c0_11, %c0_12], %13 {strides = array<i32>} : memref<8x128xbf16, #tpu.memory_space<vmem>>, vector<8x128xbf16>,
      %cst_13 = arith.constant dense<0.000000e+00> : vector<128xf32>
      %15 = vector.multi_reduction <add>, %12, %cst_13 [0] : vector<8x128xf32> to vector<128xf32>
      %16 = vector.shape_cast %15 : vector<128xf32> to vector<1x128xf32>
      %17 = vector.shape_cast %16 : vector<1x128xf32> to vector<1x1x128xf32>
      %c0_14 = arith.constant 0 : index
      %c0_15 = arith.constant 0 : index
      %c0_16 = arith.constant 0 : index
      %18 = vector.load %arg6[%c0_14, %c0_15, %c0_16] : memref<1x1x128xf32, #tpu.memory_space<vmem>>, vector<1x1x128xf32>
      tpu.vector_store %arg6[%c0_14, %c0_15, %c0_16], %17 {strides = array<i32>} : memref<1x1x128xf32, #tpu.memory_space<vmem>>, vector<1x1x128xf32>,
      %19 = arith.mulf %12, %12 : vector<8x128xf32>
      %cst_17 = arith.constant dense<0.000000e+00> : vector<128xf32>
      %20 = vector.multi_reduction <add>, %19, %cst_17 [0] : vector<8x128xf32> to vector<128xf32>
      %21 = vector.shape_cast %20 : vector<128xf32> to vector<1x128xf32>
      %22 = vector.shape_cast %21 : vector<1x128xf32> to vector<1x1x128xf32>
      %c0_18 = arith.constant 0 : index
      %c0_19 = arith.constant 0 : index
      %c0_20 = arith.constant 0 : index
      %23 = vector.load %arg7[%c0_18, %c0_19, %c0_20] : memref<1x1x128xf32, #tpu.memory_space<vmem>>, vector<1x1x128xf32>
      tpu.vector_store %arg7[%c0_18, %c0_19, %c0_20], %22 {strides = array<i32>} : memref<1x1x128xf32, #tpu.memory_space<vmem>>, vector<1x1x128xf32>,
    } else {
    }
    return
  }
  func.func @transform_0(%arg0: i32, %arg1: i32, %arg2: i32) -> (i32, i32) {
    %c0_i32 = arith.constant 0 : i32
    return %arg0, %arg2 : i32, i32
  }
  func.func @transform_1(%arg0: i32, %arg1: i32, %arg2: i32) -> (i32, i32) {
    %c0_i32 = arith.constant 0 : i32
    return %arg2, %arg1 : i32, i32
  }
  func.func @transform_2(%arg0: i32, %arg1: i32, %arg2: i32) -> (i32, i32) {
    %c0_i32 = arith.constant 0 : i32
    return %arg0, %arg1 : i32, i32
  }
  func.func @transform_3(%arg0: i32, %arg1: i32, %arg2: i32) -> (i32, i32, i32) {
    %c0_i32 = arith.constant 0 : i32
    %c0_i32_0 = arith.constant 0 : i32
    return %arg0, %c0_i32, %arg1 : i32, i32, i32
  }
  func.func @transform_4(%arg0: i32, %arg1: i32, %arg2: i32) -> (i32, i32, i32) {
    %c0_i32 = arith.constant 0 : i32
    %c0_i32_0 = arith.constant 0 : i32
    return %arg0, %c0_i32, %arg1 : i32, i32, i32
  }
}

module attributes {stable_mosaic.version = 11 : i64} {
  func.func @_avgpool_kernel(%arg0: i32, %arg1: memref<2x4x512xbf16, #tpu.memory_space<vmem>>, %arg2: memref<2x512xf32, #tpu.memory_space<vmem>>, %arg3: memref<2x512xf32, #tpu.memory_space<vmem>>) attributes {dimension_semantics = [#tpu.dimension_semantics<arbitrary>], iteration_bounds = array<i64: 1>, scalar_prefetch = 0 : i64, scratch_operands = 1 : i64, tpu.core_type = #tpu.core_type<tc>, window_params = [{transform_indices = @transform_0, window_bounds = array<i64: 2, 4, 512>}, {pipeline_mode = #tpu.pipeline_mode<synchronous>, transform_indices = @transform_1, window_bounds = array<i64: 2, 512>}]} {
    %c0_i32 = arith.constant 0 : i32
    %0 = arith.cmpi eq, %arg0, %c0_i32 : i32
    %1 = arith.extui %0 : i1 to i32
    %c0_i32_0 = arith.constant 0 : i32
    %2 = arith.cmpi ne, %1, %c0_i32_0 : i32
    scf.if %2 {
      %cst_9 = arith.constant 0.000000e+00 : f32
      %12 = vector.broadcast %cst_9 : f32 to vector<2x512xf32>
      %c0_10 = arith.constant 0 : index
      %c0_11 = arith.constant 0 : index
      %13 = vector.load %arg3[%c0_10, %c0_11] : memref<2x512xf32, #tpu.memory_space<vmem>>, vector<2x512xf32>
      tpu.vector_store %arg3[%c0_10, %c0_11], %12 {strides = array<i32>} : memref<2x512xf32, #tpu.memory_space<vmem>>, vector<2x512xf32>,
    } else {
    }
    %c0 = arith.constant 0 : index
    %c0_1 = arith.constant 0 : index
    %3 = vector.load %arg3[%c0, %c0_1] : memref<2x512xf32, #tpu.memory_space<vmem>>, vector<2x512xf32>
    %c0_2 = arith.constant 0 : index
    %c0_3 = arith.constant 0 : index
    %c0_4 = arith.constant 0 : index
    %4 = vector.load %arg1[%c0_2, %c0_3, %c0_4] : memref<2x4x512xbf16, #tpu.memory_space<vmem>>, vector<2x4x512xbf16>
    %5 = arith.extf %4 : vector<2x4x512xbf16> to vector<2x4x512xf32>
    %cst = arith.constant dense<0.000000e+00> : vector<2x512xf32>
    %6 = vector.multi_reduction <add>, %5, %cst [1] : vector<2x4x512xf32> to vector<2x512xf32>
    %7 = arith.addf %3, %6 : vector<2x512xf32>
    %c0_5 = arith.constant 0 : index
    %c0_6 = arith.constant 0 : index
    %8 = vector.load %arg3[%c0_5, %c0_6] : memref<2x512xf32, #tpu.memory_space<vmem>>, vector<2x512xf32>
    tpu.vector_store %arg3[%c0_5, %c0_6], %7 {strides = array<i32>} : memref<2x512xf32, #tpu.memory_space<vmem>>, vector<2x512xf32>,
    %c0_i32_7 = arith.constant 0 : i32
    %9 = arith.cmpi eq, %arg0, %c0_i32_7 : i32
    %10 = arith.extui %9 : i1 to i32
    %c0_i32_8 = arith.constant 0 : i32
    %11 = arith.cmpi ne, %10, %c0_i32_8 : i32
    scf.if %11 {
      %c0_9 = arith.constant 0 : index
      %c0_10 = arith.constant 0 : index
      %12 = vector.load %arg3[%c0_9, %c0_10] : memref<2x512xf32, #tpu.memory_space<vmem>>, vector<2x512xf32>
      %cst_11 = arith.constant 2.500000e-01 : f32
      %13 = vector.broadcast %cst_11 : f32 to vector<2x512xf32>
      %14 = arith.mulf %12, %13 : vector<2x512xf32>
      %c0_12 = arith.constant 0 : index
      %c0_13 = arith.constant 0 : index
      %15 = vector.load %arg2[%c0_12, %c0_13] : memref<2x512xf32, #tpu.memory_space<vmem>>, vector<2x512xf32>
      tpu.vector_store %arg2[%c0_12, %c0_13], %14 {strides = array<i32>} : memref<2x512xf32, #tpu.memory_space<vmem>>, vector<2x512xf32>,
    } else {
    }
    return
  }
  func.func @transform_0(%arg0: i32) -> (i32, i32, i32) {
    %c0_i32 = arith.constant 0 : i32
    %c0_i32_0 = arith.constant 0 : i32
    %c0_i32_1 = arith.constant 0 : i32
    return %c0_i32, %arg0, %c0_i32_0 : i32, i32, i32
  }
  func.func @transform_1(%arg0: i32) -> (i32, i32) {
    %c0_i32 = arith.constant 0 : i32
    %c0_i32_0 = arith.constant 0 : i32
    %c0_i32_1 = arith.constant 0 : i32
    return %c0_i32, %c0_i32_0 : i32, i32
  }
}

module attributes {stable_mosaic.version = 11 : i64} {
  func.func @_matmul_bias_kernel(%arg0: i32, %arg1: i32, %arg2: i32, %arg3: memref<8x512xbf16, #tpu.memory_space<vmem>>, %arg4: memref<512x128xbf16, #tpu.memory_space<vmem>>, %arg5: memref<1x128xf32, #tpu.memory_space<vmem>>, %arg6: memref<8x128xf32, #tpu.memory_space<vmem>>, %arg7: memref<8x128xf32, #tpu.memory_space<vmem>>) attributes {dimension_semantics = [#tpu.dimension_semantics<parallel>, #tpu.dimension_semantics<parallel>, #tpu.dimension_semantics<arbitrary>], iteration_bounds = array<i64: 1, 1, 1>, scalar_prefetch = 0 : i64, scratch_operands = 1 : i64, tpu.core_type = #tpu.core_type<tc>, window_params = [{transform_indices = @transform_0, window_bounds = array<i64: 8, 512>}, {transform_indices = @transform_1, window_bounds = array<i64: 512, 128>}, {transform_indices = @transform_2, window_bounds = array<i64: 1, 128>}, {transform_indices = @transform_3, window_bounds = array<i64: 8, 128>}]} {
    %c0_i32 = arith.constant 0 : i32
    %0 = arith.cmpi eq, %arg2, %c0_i32 : i32
    %1 = arith.extui %0 : i1 to i32
    %c0_i32_0 = arith.constant 0 : i32
    %2 = arith.cmpi ne, %1, %c0_i32_0 : i32
    scf.if %2 {
      %cst_10 = arith.constant 0.000000e+00 : f32
      %12 = vector.broadcast %cst_10 : f32 to vector<8x128xf32>
      %c0_11 = arith.constant 0 : index
      %c0_12 = arith.constant 0 : index
      %13 = vector.load %arg7[%c0_11, %c0_12] : memref<8x128xf32, #tpu.memory_space<vmem>>, vector<8x128xf32>
      tpu.vector_store %arg7[%c0_11, %c0_12], %12 {strides = array<i32>} : memref<8x128xf32, #tpu.memory_space<vmem>>, vector<8x128xf32>,
    } else {
    }
    %c0 = arith.constant 0 : index
    %c0_1 = arith.constant 0 : index
    %3 = vector.load %arg7[%c0, %c0_1] : memref<8x128xf32, #tpu.memory_space<vmem>>, vector<8x128xf32>
    %c0_2 = arith.constant 0 : index
    %c0_3 = arith.constant 0 : index
    %4 = vector.load %arg3[%c0_2, %c0_3] : memref<8x512xbf16, #tpu.memory_space<vmem>>, vector<8x512xbf16>
    %c0_4 = arith.constant 0 : index
    %c0_5 = arith.constant 0 : index
    %5 = vector.load %arg4[%c0_4, %c0_5] : memref<512x128xbf16, #tpu.memory_space<vmem>>, vector<512x128xbf16>
    %cst = arith.constant dense<0.000000e+00> : vector<8x128xf32>
    %6 = tpu.matmul %4, %5, %cst {dimension_numbers = #tpu.dot_dimension_numbers<[1], [0], [0], [1], [0, 0, 1, 1], [], []>} : vector<8x512xbf16>, vector<512x128xbf16>, vector<8x128xf32> -> vector<8x128xf32>
    %7 = arith.addf %3, %6 : vector<8x128xf32>
    %c0_6 = arith.constant 0 : index
    %c0_7 = arith.constant 0 : index
    %8 = vector.load %arg7[%c0_6, %c0_7] : memref<8x128xf32, #tpu.memory_space<vmem>>, vector<8x128xf32>
    tpu.vector_store %arg7[%c0_6, %c0_7], %7 {strides = array<i32>} : memref<8x128xf32, #tpu.memory_space<vmem>>, vector<8x128xf32>,
    %c0_i32_8 = arith.constant 0 : i32
    %9 = arith.cmpi eq, %arg2, %c0_i32_8 : i32
    %10 = arith.extui %9 : i1 to i32
    %c0_i32_9 = arith.constant 0 : i32
    %11 = arith.cmpi ne, %10, %c0_i32_9 : i32
    scf.if %11 {
      %c0_10 = arith.constant 0 : index
      %c0_11 = arith.constant 0 : index
      %12 = vector.load %arg7[%c0_10, %c0_11] : memref<8x128xf32, #tpu.memory_space<vmem>>, vector<8x128xf32>
      %c0_12 = arith.constant 0 : index
      %c0_13 = arith.constant 0 : index
      %13 = vector.load %arg5[%c0_12, %c0_13] : memref<1x128xf32, #tpu.memory_space<vmem>>, vector<1x128xf32>
      %14 = vector.broadcast %13 : vector<1x128xf32> to vector<8x128xf32>
      %15 = arith.addf %12, %14 : vector<8x128xf32>
      %c0_14 = arith.constant 0 : index
      %c0_15 = arith.constant 0 : index
      %16 = vector.load %arg6[%c0_14, %c0_15] : memref<8x128xf32, #tpu.memory_space<vmem>>, vector<8x128xf32>
      tpu.vector_store %arg6[%c0_14, %c0_15], %15 {strides = array<i32>} : memref<8x128xf32, #tpu.memory_space<vmem>>, vector<8x128xf32>,
    } else {
    }
    return
  }
  func.func @transform_0(%arg0: i32, %arg1: i32, %arg2: i32) -> (i32, i32) {
    %c0_i32 = arith.constant 0 : i32
    return %arg0, %arg2 : i32, i32
  }
  func.func @transform_1(%arg0: i32, %arg1: i32, %arg2: i32) -> (i32, i32) {
    %c0_i32 = arith.constant 0 : i32
    return %arg2, %arg1 : i32, i32
  }
  func.func @transform_2(%arg0: i32, %arg1: i32, %arg2: i32) -> (i32, i32) {
    %c0_i32 = arith.constant 0 : i32
    %c0_i32_0 = arith.constant 0 : i32
    return %c0_i32, %arg1 : i32, i32
  }
  func.func @transform_3(%arg0: i32, %arg1: i32, %arg2: i32) -> (i32, i32) {
    %c0_i32 = arith.constant 0 : i32
    return %arg0, %arg1 : i32, i32
  }
}

</mosaic_0001>

<bundles_post_ra>
// kernel: resnet_forward.39
= control target key start
LH: loop header
LB: loop body
LE: loop exit
PB: predicated region body
PF: predicated region fallthrough
CT: control target
= control target key end

     0   :  { %11 = vsyncpa [#allocation3], 0  ;;  %s104_s21 = smov [#allocation2]   ;;  %s159_s0 = inlined_call_operand.vmem [shape: f32[2,1,128], index: 0, kind: input, shape index: {}]   ;;  %s160_s1 = inlined_call_operand.vmem [shape: f32[2,1,128], index: 1, kind: input, shape index: {}]   ;;  %s161_s2 = inlined_call_operand.hbm [shape: f32[1,128], index: 2, kind: input, shape index: {}]   ;;  %s162_s3 = inlined_call_operand.vmem [shape: f32[1,128], index: 3, kind: input, shape index: {}]   ;;  %s163_s4 = inlined_call_operand.vmem [shape: f32[1,128], index: 4, kind: output, shape index: {0}]   ;;  %s164_s5 = inlined_call_operand.vmem [shape: f32[1,128], index: 5, kind: output, shape index: {1}]  }
   0x1   :  { %s21_s20 = sshll.u32 %s161_s2, 4  ;;  %s23_s22 = sshll.u32 %s104_s21, 4  ;;  %s22_s20 = int_to_ptr.hbm [resolvable:$true] %s21_s20  ;;  %s24_s22 = int_to_ptr.vmem [resolvable:$true] %s23_s22 }
   0x2   :  { %26 = dma.hbm_to_vmem [thread:$0]  %s22_s20, 16, %s24_s22, [#allocation3]  }
   0x3   :  { %102 = dma.done.wait [#allocation3], 16  }
   0x4   :  { %103 = vsyncadd [#allocation3], 4294967280  ;;  %vm35_vm0 = vcmask 1040384   ;;  %v33_v0 = vld [vmem:[%s159_s0] sm:$0x1] }
   0x5   :  { %v34_v1 = vld [vmem:[%s159_s0 + $0x1] sm:$0x1]  ;;  %v39_v2 = vld [vmem:[%s160_s1] sm:$0x1]  ;;  %v36_v3 = vsel %vm35_vm0, %v33_v0, 0.0 }
   0x6   :  { %v37_v4 = vsel %vm35_vm0, %v34_v1, 0.0  ;;  %v40_v5 = vld [vmem:[%s160_s1 + $0x1] sm:$0x1]  ;;  %v41_v6 = vsel %vm35_vm0, %v39_v2, 0.0  ;;  %v59_v21 = vld [vmem:[#allocation2] sm:$0x1] }
   0x7   :  { %v38_v7 = vadd.f32 %v37_v4, %v36_v3  ;;  %v42_v8 = vsel %vm35_vm0, %v40_v5, 0.0  ;;  %v62_v24 = vld [vmem:[%s162_s3] sm:$0x1] }
   0x8   :  { %v43_v9 = vadd.f32 %v42_v8, %v41_v6 }
   0x9   :  { %v44_v10 = vmul.f32 0.001953125, %v38_v7 }
   0xa   :  { %v45_v11 = vmul.f32 0.001953125, %v43_v9 }
   0xb   :  { %v46_v12 = vmul.f32 %v44_v10, %v44_v10 }
   0xd   :  { %v47_v13 = vsub.f32 %v45_v11, %v46_v12 }
   0xf   :  { %v48_v14 = vadd.f32 1e-05, %v47_v13 }
  0x11   :  { %76 = vrsqrt.f32 %v48_v14  ;;  %vm55_vm1 = vweird.f32 %v48_v14 }
  0x17   :  { %v77_v15 = vpop.eup %76 }
  0x18   :  { %v50_v16 = vmul.f32 %v77_v15, %v48_v14  ;;  %vm56_vm2 = vweird.f32 %v77_v15 }
  0x19   :  { %vm57_vm3 = vmor %vm55_vm1, %vm56_vm2 }
  0x1a   :  { %v51_v17 = vmul.f32 %v77_v15, %v50_v16 }
  0x1c   :  { %v52_v18 = vmul.f32 0.5, %v51_v17 }
  0x1e   :  { %v53_v19 = vsub.f32 1.5, %v52_v18 }
  0x20   :  { %v54_v20 = vmul.f32 %v77_v15, %v53_v19 }
  0x22   :  { %v58_v22 = vsel %vm57_vm3, %v77_v15, %v54_v20 }
  0x23   :  { %v60_v23 = vmul.f32 %v59_v21, %v58_v22 }
  0x25   :  { %61 = vst [vmem:[%s163_s4] sm:$0x1] %v60_v23  ;;  %v63_v25 = vmul.f32 %v60_v23, %v44_v10 }
  0x27   :  { %v64_v26 = vsub.f32 %v62_v24, %v63_v25 }
  0x29   :  { %65 = vst [vmem:[%s164_s5] sm:$0x1] %v64_v26 }
  0x2a   :  { %74 = vsyncpa [#allocation3], 1 }

// kernel: resnet_forward.40
= control target key start
LH: loop header
LB: loop body
LE: loop exit
PB: predicated region body
PF: predicated region fallthrough
CT: control target
= control target key end

     0   :  { %s1176_s0 = inlined_call_operand.vmem [shape: bf16[512,128], index: 0, kind: input, shape index: {}]   ;;  %s1177_s1 = inlined_call_operand.vmem [shape: f32[1,128], index: 1, kind: input, shape index: {}]   ;;  %s1178_s2 = inlined_call_operand.vmem [shape: f32[1,128], index: 2, kind: input, shape index: {}]   ;;  %s1179_s3 = inlined_call_operand.vmem [shape: bf16[512,128], index: 3, kind: output, shape index: {}]  }
   0x1   :  { %v475_v0 = vld [vmem:[%s1176_s0] sm:$0xff]   ;;  %v762_v5 = vld [vmem:[%s1176_s0 + $0x8] sm:$0xff]   ;;  %v763_v8 = vld [vmem:[%s1176_s0 + $0x10] sm:$0xff]  }
   0x2   :  { %v852_v1 = vld [vmem:[%s1177_s1] ss:$0 sm:$0xff]  ;;  %v476_v2 = vunpack.c.l.bf16 %v475_v0  ;;  %v477_v3 = vunpack.c.h.bf16 %v475_v0  ;;  %v480_v6 = vunpack.c.l.bf16 %v762_v5  ;;  %v481_v7 = vunpack.c.h.bf16 %v762_v5  ;;  %v764_v9 = vld [vmem:[%s1176_s0 + $0x18] sm:$0xff]   ;;  %v766_v35 = vld [vmem:[%s1176_s0 + $0x28] sm:$0xff]  }
   0x3   :  { %v857_v4 = vld [vmem:[%s1178_s2] ss:$0 sm:$0xff]  ;;  %v484_v12 = vunpack.c.l.bf16 %v763_v8  ;;  %v485_v13 = vunpack.c.h.bf16 %v763_v8  ;;  %v488_v16 = vunpack.c.l.bf16 %v764_v9  ;;  %v489_v17 = vunpack.c.h.bf16 %v764_v9  ;;  %v767_v40 = vld [vmem:[%s1176_s0 + $0x30] sm:$0xff]   ;;  %v768_v45 = vld [vmem:[%s1176_s0 + $0x38] sm:$0xff]  }
   0x4   :  { %v146_v10 = vmul.f32 %v852_v1, %v476_v2  ;;  %v147_v11 = vmul.f32 %v852_v1, %v477_v3  ;;  %v148_v14 = vmul.f32 %v852_v1, %v480_v6  ;;  %v149_v15 = vmul.f32 %v852_v1, %v481_v7  ;;  %v765_v26 = vld [vmem:[%s1176_s0 + $0x20] sm:$0xff]  }
   0x5   :  { %v150_v20 = vmul.f32 %v852_v1, %v484_v12  ;;  %v151_v21 = vmul.f32 %v852_v1, %v485_v13  ;;  %v152_v24 = vmul.f32 %v852_v1, %v488_v16  ;;  %v153_v25 = vmul.f32 %v852_v1, %v489_v17  ;;  %v769_v62 = vld [vmem:[%s1176_s0 + $0x40] sm:$0xff]   ;;  %v770_v13 = vld [vmem:[%s1176_s0 + $0x48] sm:$0xff]  }
   0x6   :  { %v214_v18 = vadd.f32 %v857_v4, %v146_v10  ;;  %v215_v19 = vadd.f32 %v857_v4, %v147_v11  ;;  %v216_v22 = vadd.f32 %v857_v4, %v148_v14  ;;  %v217_v23 = vadd.f32 %v857_v4, %v149_v15 }
   0x7   :  { %v218_v29 = vadd.f32 %v857_v4, %v150_v20  ;;  %v219_v30 = vadd.f32 %v857_v4, %v151_v21  ;;  %v220_v33 = vadd.f32 %v857_v4, %v152_v24  ;;  %v221_v34 = vadd.f32 %v857_v4, %v153_v25 }
   0x8   :  { %v278_v27 = vmax.f32 %v214_v18, 0.0  ;;  %v279_v28 = vmax.f32 %v215_v19, 0.0  ;;  %v280_v31 = vmax.f32 %v216_v22, 0.0  ;;  %v281_v32 = vmax.f32 %v217_v23, 0.0  ;;  %v771_v18 = vld [vmem:[%s1176_s0 + $0x50] sm:$0xff]   ;;  %v772_v23 = vld [vmem:[%s1176_s0 + $0x58] sm:$0xff]  }
   0x9   :  { %v282_v37 = vmax.f32 %v218_v29, 0.0  ;;  %v283_v38 = vmax.f32 %v219_v30, 0.0  ;;  %v492_v39 = vunpack.c.l.bf16 %v765_v26  ;;  %v284_v42 = vmax.f32 %v220_v33, 0.0 }
   0xa   :  { %v605_v36 = vpack.c.bf16 %v279_v28, %v278_v27  ;;  %v610_v41 = vpack.c.bf16 %v281_v32, %v280_v31  ;;  %v285_v43 = vmax.f32 %v221_v34, 0.0  ;;  %v493_v44 = vunpack.c.h.bf16 %v765_v26 }
   0xb   :  { %v615_v46 = vpack.c.bf16 %v283_v38, %v282_v37  ;;  %v154_v47 = vmul.f32 %v852_v1, %v492_v39  ;;  %v496_v48 = vunpack.c.l.bf16 %v766_v35  ;;  %v497_v49 = vunpack.c.h.bf16 %v766_v35 }
   0xc   :  { %606 = vst [vmem:[%s1179_s3] sm:$0xff] %v605_v36   ;;  %v620_v50 = vpack.c.bf16 %v285_v43, %v284_v42  ;;  %v155_v51 = vmul.f32 %v852_v1, %v493_v44  ;;  %v500_v52 = vunpack.c.l.bf16 %v767_v40  ;;  %v501_v53 = vunpack.c.h.bf16 %v767_v40  ;;  %v773_v36 = vld [vmem:[%s1176_s0 + $0x60] sm:$0xff]  }
   0xd   :  { %793 = vst [vmem:[%s1179_s3 + $0x8] sm:$0xff] %v610_v41   ;;  %v222_v54 = vadd.f32 %v857_v4, %v154_v47  ;;  %v156_v55 = vmul.f32 %v852_v1, %v496_v48  ;;  %v157_v56 = vmul.f32 %v852_v1, %v497_v49  ;;  %v504_v57 = vunpack.c.l.bf16 %v768_v45 }
   0xe   :  { %794 = vst [vmem:[%s1179_s3 + $0x10] sm:$0xff] %v615_v46   ;;  %v223_v58 = vadd.f32 %v857_v4, %v155_v51  ;;  %v158_v59 = vmul.f32 %v852_v1, %v500_v52  ;;  %v159_v60 = vmul.f32 %v852_v1, %v501_v53  ;;  %v505_v61 = vunpack.c.h.bf16 %v768_v45  ;;  %v774_v53 = vld [vmem:[%s1176_s0 + $0x68] sm:$0xff]  }
   0xf   :  { %795 = vst [vmem:[%s1179_s3 + $0x18] sm:$0xff] %v620_v50   ;;  %v286_v63 = vmax.f32 %v222_v54, 0.0  ;;  %v224_v0 = vadd.f32 %v857_v4, %v156_v55  ;;  %v225_v2 = vadd.f32 %v857_v4, %v157_v56  ;;  %v160_v3 = vmul.f32 %v852_v1, %v504_v57 }
  0x10   :  { %v287_v5 = vmax.f32 %v223_v58, 0.0  ;;  %v226_v6 = vadd.f32 %v857_v4, %v158_v59  ;;  %v227_v7 = vadd.f32 %v857_v4, %v159_v60  ;;  %v161_v8 = vmul.f32 %v852_v1, %v505_v61  ;;  %v775_v58 = vld [vmem:[%s1176_s0 + $0x70] sm:$0xff]  }
  0x11   :  { %v288_v9 = vmax.f32 %v224_v0, 0.0  ;;  %v289_v10 = vmax.f32 %v225_v2, 0.0  ;;  %v228_v11 = vadd.f32 %v857_v4, %v160_v3  ;;  %v508_v12 = vunpack.c.l.bf16 %v769_v62 }
  0x12   :  { %v625_v14 = vpack.c.bf16 %v287_v5, %v286_v63  ;;  %v290_v15 = vmax.f32 %v226_v6, 0.0  ;;  %v291_v16 = vmax.f32 %v227_v7, 0.0  ;;  %v229_v17 = vadd.f32 %v857_v4, %v161_v8  ;;  %v776_v63 = vld [vmem:[%s1176_s0 + $0x78] sm:$0xff]  }
  0x13   :  { %v630_v19 = vpack.c.bf16 %v289_v10, %v288_v9  ;;  %v292_v20 = vmax.f32 %v228_v11, 0.0  ;;  %v509_v21 = vunpack.c.h.bf16 %v769_v62  ;;  %v162_v22 = vmul.f32 %v852_v1, %v508_v12 }
  0x14   :  { %796 = vst [vmem:[%s1179_s3 + $0x20] sm:$0xff] %v625_v14   ;;  %v635_v24 = vpack.c.bf16 %v291_v16, %v290_v15  ;;  %v293_v25 = vmax.f32 %v229_v17, 0.0  ;;  %v512_v26 = vunpack.c.l.bf16 %v770_v13  ;;  %v513_v27 = vunpack.c.h.bf16 %v770_v13  ;;  %v777_v14 = vld [vmem:[%s1176_s0 + $0x80] sm:$0xff]  }
  0x15   :  { %797 = vst [vmem:[%s1179_s3 + $0x28] sm:$0xff] %v630_v19   ;;  %v163_v28 = vmul.f32 %v852_v1, %v509_v21  ;;  %v230_v29 = vadd.f32 %v857_v4, %v162_v22  ;;  %v516_v30 = vunpack.c.l.bf16 %v771_v18  ;;  %v517_v31 = vunpack.c.h.bf16 %v771_v18 }
  0x16   :  { %798 = vst [vmem:[%s1179_s3 + $0x30] sm:$0xff] %v635_v24   ;;  %v640_v32 = vpack.c.bf16 %v293_v25, %v292_v20  ;;  %v164_v33 = vmul.f32 %v852_v1, %v512_v26  ;;  %v165_v34 = vmul.f32 %v852_v1, %v513_v27  ;;  %v520_v35 = vunpack.c.l.bf16 %v772_v23  ;;  %v778_v27 = vld [vmem:[%s1176_s0 + $0x88] sm:$0xff]  }
  0x17   :  { %v231_v37 = vadd.f32 %v857_v4, %v163_v28  ;;  %v294_v38 = vmax.f32 %v230_v29, 0.0  ;;  %v166_v39 = vmul.f32 %v852_v1, %v516_v30  ;;  %v167_v40 = vmul.f32 %v852_v1, %v517_v31 }
  0x18   :  { %799 = vst [vmem:[%s1179_s3 + $0x38] sm:$0xff] %v640_v32   ;;  %v232_v41 = vadd.f32 %v857_v4, %v164_v33  ;;  %v233_v42 = vadd.f32 %v857_v4, %v165_v34  ;;  %v521_v43 = vunpack.c.h.bf16 %v772_v23  ;;  %v168_v44 = vmul.f32 %v852_v1, %v520_v35 }
  0x19   :  { %v295_v45 = vmax.f32 %v231_v37, 0.0  ;;  %v234_v46 = vadd.f32 %v857_v4, %v166_v39  ;;  %v235_v47 = vadd.f32 %v857_v4, %v167_v40  ;;  %v524_v48 = vunpack.c.l.bf16 %v773_v36 }
  0x1a   :  { %v296_v49 = vmax.f32 %v232_v41, 0.0  ;;  %v297_v50 = vmax.f32 %v233_v42, 0.0  ;;  %v169_v51 = vmul.f32 %v852_v1, %v521_v43  ;;  %v236_v52 = vadd.f32 %v857_v4, %v168_v44  ;;  %v780_v41 = vld [vmem:[%s1176_s0 + $0x98] sm:$0xff]  }
  0x1b   :  { %v645_v54 = vpack.c.bf16 %v295_v45, %v294_v38  ;;  %v298_v55 = vmax.f32 %v234_v46, 0.0  ;;  %v299_v56 = vmax.f32 %v235_v47, 0.0  ;;  %v525_v57 = vunpack.c.h.bf16 %v773_v36  ;;  %v779_v36 = vld [vmem:[%s1176_s0 + $0x90] sm:$0xff]  }
  0x1c   :  { %v650_v59 = vpack.c.bf16 %v297_v50, %v296_v49  ;;  %v237_v60 = vadd.f32 %v857_v4, %v169_v51  ;;  %v300_v61 = vmax.f32 %v236_v52, 0.0  ;;  %v170_v62 = vmul.f32 %v852_v1, %v524_v48 }
  0x1d   :  { %800 = vst [vmem:[%s1179_s3 + $0x40] sm:$0xff] %v645_v54   ;;  %v655_v0 = vpack.c.bf16 %v299_v56, %v298_v55  ;;  %v171_v2 = vmul.f32 %v852_v1, %v525_v57  ;;  %v528_v3 = vunpack.c.l.bf16 %v774_v53  ;;  %v529_v5 = vunpack.c.h.bf16 %v774_v53  ;;  %v781_v54 = vld [vmem:[%s1176_s0 + $0xa0] sm:$0xff]  }
  0x1e   :  { %801 = vst [vmem:[%s1179_s3 + $0x48] sm:$0xff] %v650_v59   ;;  %v301_v6 = vmax.f32 %v237_v60, 0.0  ;;  %v238_v7 = vadd.f32 %v857_v4, %v170_v62  ;;  %v532_v8 = vunpack.c.l.bf16 %v775_v58  ;;  %v533_v9 = vunpack.c.h.bf16 %v775_v58 }
  0x1f   :  { %802 = vst [vmem:[%s1179_s3 + $0x50] sm:$0xff] %v655_v0   ;;  %v239_v10 = vadd.f32 %v857_v4, %v171_v2  ;;  %v172_v11 = vmul.f32 %v852_v1, %v528_v3  ;;  %v173_v12 = vmul.f32 %v852_v1, %v529_v5  ;;  %v536_v13 = vunpack.c.l.bf16 %v776_v63  ;;  %v782_v5 = vld [vmem:[%s1176_s0 + $0xa8] sm:$0xff]  }
  0x20   :  { %v660_v15 = vpack.c.bf16 %v301_v6, %v300_v61  ;;  %v302_v16 = vmax.f32 %v238_v7, 0.0  ;;  %v174_v17 = vmul.f32 %v852_v1, %v532_v8  ;;  %v175_v18 = vmul.f32 %v852_v1, %v533_v9 }
  0x21   :  { %v303_v19 = vmax.f32 %v239_v10, 0.0  ;;  %v240_v20 = vadd.f32 %v857_v4, %v172_v11  ;;  %v241_v21 = vadd.f32 %v857_v4, %v173_v12  ;;  %v537_v22 = vunpack.c.h.bf16 %v776_v63 }
  0x22   :  { %803 = vst [vmem:[%s1179_s3 + $0x58] sm:$0xff] %v660_v15   ;;  %v242_v23 = vadd.f32 %v857_v4, %v174_v17  ;;  %v243_v24 = vadd.f32 %v857_v4, %v175_v18  ;;  %v176_v25 = vmul.f32 %v852_v1, %v536_v13  ;;  %v540_v26 = vunpack.c.l.bf16 %v777_v14 }
  0x23   :  { %v665_v28 = vpack.c.bf16 %v303_v19, %v302_v16  ;;  %v304_v29 = vmax.f32 %v240_v20, 0.0  ;;  %v305_v30 = vmax.f32 %v241_v21, 0.0  ;;  %v177_v31 = vmul.f32 %v852_v1, %v537_v22 }
  0x24   :  { %v306_v32 = vmax.f32 %v242_v23, 0.0  ;;  %v307_v33 = vmax.f32 %v243_v24, 0.0  ;;  %v244_v34 = vadd.f32 %v857_v4, %v176_v25  ;;  %v541_v35 = vunpack.c.h.bf16 %v777_v14  ;;  %v783_v14 = vld [vmem:[%s1176_s0 + $0xb0] sm:$0xff]   ;;  %v784_v23 = vld [vmem:[%s1176_s0 + $0xb8] sm:$0xff]  }
  0x25   :  { %804 = vst [vmem:[%s1179_s3 + $0x60] sm:$0xff] %v665_v28   ;;  %v670_v37 = vpack.c.bf16 %v305_v30, %v304_v29  ;;  %v245_v38 = vadd.f32 %v857_v4, %v177_v31  ;;  %v178_v39 = vmul.f32 %v852_v1, %v540_v26  ;;  %v544_v40 = vunpack.c.l.bf16 %v778_v27 }
  0x26   :  { %v675_v42 = vpack.c.bf16 %v307_v33, %v306_v32  ;;  %v308_v43 = vmax.f32 %v244_v34, 0.0  ;;  %v179_v44 = vmul.f32 %v852_v1, %v541_v35  ;;  %v545_v45 = vunpack.c.h.bf16 %v778_v27  ;;  %v785_v32 = vld [vmem:[%s1176_s0 + $0xc0] sm:$0xff]  }
  0x27   :  { %805 = vst [vmem:[%s1179_s3 + $0x68] sm:$0xff] %v670_v37   ;;  %v309_v46 = vmax.f32 %v245_v38, 0.0  ;;  %v246_v47 = vadd.f32 %v857_v4, %v178_v39  ;;  %v180_v48 = vmul.f32 %v852_v1, %v544_v40  ;;  %v548_v49 = vunpack.c.l.bf16 %v779_v36 }
  0x28   :  { %806 = vst [vmem:[%s1179_s3 + $0x70] sm:$0xff] %v675_v42   ;;  %v247_v50 = vadd.f32 %v857_v4, %v179_v44  ;;  %v181_v51 = vmul.f32 %v852_v1, %v545_v45  ;;  %v549_v52 = vunpack.c.h.bf16 %v779_v36  ;;  %v552_v53 = vunpack.c.l.bf16 %v780_v41  ;;  %v786_v45 = vld [vmem:[%s1176_s0 + $0xc8] sm:$0xff]  }
  0x29   :  { %v680_v55 = vpack.c.bf16 %v309_v46, %v308_v43  ;;  %v310_v56 = vmax.f32 %v246_v47, 0.0  ;;  %v248_v57 = vadd.f32 %v857_v4, %v180_v48  ;;  %v182_v58 = vmul.f32 %v852_v1, %v548_v49 }
  0x2a   :  { %v311_v59 = vmax.f32 %v247_v50, 0.0  ;;  %v249_v60 = vadd.f32 %v857_v4, %v181_v51  ;;  %v183_v61 = vmul.f32 %v852_v1, %v549_v52  ;;  %v553_v62 = vunpack.c.h.bf16 %v780_v41 }
  0x2b   :  { %807 = vst [vmem:[%s1179_s3 + $0x78] sm:$0xff] %v680_v55   ;;  %v312_v63 = vmax.f32 %v248_v57, 0.0  ;;  %v250_v0 = vadd.f32 %v857_v4, %v182_v58  ;;  %v184_v2 = vmul.f32 %v852_v1, %v552_v53  ;;  %v556_v3 = vunpack.c.l.bf16 %v781_v54 }
  0x2c   :  { %v685_v6 = vpack.c.bf16 %v311_v59, %v310_v56  ;;  %v313_v7 = vmax.f32 %v249_v60, 0.0  ;;  %v251_v8 = vadd.f32 %v857_v4, %v183_v61  ;;  %v185_v9 = vmul.f32 %v852_v1, %v553_v62 }
  0x2d   :  { %v314_v10 = vmax.f32 %v250_v0, 0.0  ;;  %v252_v11 = vadd.f32 %v857_v4, %v184_v2  ;;  %v557_v12 = vunpack.c.h.bf16 %v781_v54  ;;  %v186_v13 = vmul.f32 %v852_v1, %v556_v3  ;;  %v787_v54 = vld [vmem:[%s1176_s0 + $0xd0] sm:$0xff]  }
  0x2e   :  { %808 = vst [vmem:[%s1179_s3 + $0x80] sm:$0xff] %v685_v6   ;;  %v690_v15 = vpack.c.bf16 %v313_v7, %v312_v63  ;;  %v315_v16 = vmax.f32 %v251_v8, 0.0  ;;  %v253_v17 = vadd.f32 %v857_v4, %v185_v9  ;;  %v560_v18 = vunpack.c.l.bf16 %v782_v5  ;;  %v788_v63 = vld [vmem:[%s1176_s0 + $0xd8] sm:$0xff]  }
  0x2f   :  { %v316_v19 = vmax.f32 %v252_v11, 0.0  ;;  %v187_v20 = vmul.f32 %v852_v1, %v557_v12  ;;  %v254_v21 = vadd.f32 %v857_v4, %v186_v13  ;;  %v561_v22 = vunpack.c.h.bf16 %v782_v5 }
  0x30   :  { %809 = vst [vmem:[%s1179_s3 + $0x88] sm:$0xff] %v690_v15   ;;  %v695_v24 = vpack.c.bf16 %v315_v16, %v314_v10  ;;  %v317_v25 = vmax.f32 %v253_v17, 0.0  ;;  %v188_v26 = vmul.f32 %v852_v1, %v560_v18  ;;  %v564_v27 = vunpack.c.l.bf16 %v783_v14  ;;  %v789_v10 = vld [vmem:[%s1176_s0 + $0xe0] sm:$0xff]  }
  0x31   :  { %v255_v28 = vadd.f32 %v857_v4, %v187_v20  ;;  %v318_v29 = vmax.f32 %v254_v21, 0.0  ;;  %v189_v30 = vmul.f32 %v852_v1, %v561_v22  ;;  %v565_v31 = vunpack.c.h.bf16 %v783_v14 }
  0x32   :  { %810 = vst [vmem:[%s1179_s3 + $0x90] sm:$0xff] %v695_v24   ;;  %v700_v33 = vpack.c.bf16 %v317_v25, %v316_v19  ;;  %v256_v34 = vadd.f32 %v857_v4, %v188_v26  ;;  %v190_v35 = vmul.f32 %v852_v1, %v564_v27  ;;  %v568_v36 = vunpack.c.l.bf16 %v784_v23 }
  0x33   :  { %v319_v37 = vmax.f32 %v255_v28, 0.0  ;;  %v257_v38 = vadd.f32 %v857_v4, %v189_v30  ;;  %v191_v39 = vmul.f32 %v852_v1, %v565_v31  ;;  %v569_v40 = vunpack.c.h.bf16 %v784_v23  ;;  %v790_v23 = vld [vmem:[%s1176_s0 + $0xe8] sm:$0xff]  }
  0x34   :  { %811 = vst [vmem:[%s1179_s3 + $0x98] sm:$0xff] %v700_v33   ;;  %v320_v41 = vmax.f32 %v256_v34, 0.0  ;;  %v258_v42 = vadd.f32 %v857_v4, %v190_v35  ;;  %v192_v43 = vmul.f32 %v852_v1, %v568_v36  ;;  %v572_v44 = vunpack.c.l.bf16 %v785_v32 }
  0x35   :  { %v705_v46 = vpack.c.bf16 %v319_v37, %v318_v29  ;;  %v321_v47 = vmax.f32 %v257_v38, 0.0  ;;  %v259_v48 = vadd.f32 %v857_v4, %v191_v39  ;;  %v193_v49 = vmul.f32 %v852_v1, %v569_v40 }
  0x36   :  { %v322_v50 = vmax.f32 %v258_v42, 0.0  ;;  %v260_v51 = vadd.f32 %v857_v4, %v192_v43  ;;  %v573_v52 = vunpack.c.h.bf16 %v785_v32  ;;  %v194_v53 = vmul.f32 %v852_v1, %v572_v44  ;;  %v791_v32 = vld [vmem:[%s1176_s0 + $0xf0] sm:$0xff]  }
  0x37   :  { %812 = vst [vmem:[%s1179_s3 + $0xa0] sm:$0xff] %v705_v46   ;;  %v710_v55 = vpack.c.bf16 %v321_v47, %v320_v41  ;;  %v323_v56 = vmax.f32 %v259_v48, 0.0  ;;  %v261_v57 = vadd.f32 %v857_v4, %v193_v49  ;;  %v576_v58 = vunpack.c.l.bf16 %v786_v45  ;;  %v792_v41 = vld [vmem:[%s1176_s0 + $0xf8] sm:$0xff]  }
  0x38   :  { %v324_v59 = vmax.f32 %v260_v51, 0.0  ;;  %v195_v60 = vmul.f32 %v852_v1, %v573_v52  ;;  %v262_v61 = vadd.f32 %v857_v4, %v194_v53  ;;  %v577_v62 = vunpack.c.h.bf16 %v786_v45 }
  0x39   :  { %813 = vst [vmem:[%s1179_s3 + $0xa8] sm:$0xff] %v710_v55   ;;  %v715_v0 = vpack.c.bf16 %v323_v56, %v322_v50  ;;  %v325_v2 = vmax.f32 %v261_v57, 0.0  ;;  %v196_v3 = vmul.f32 %v852_v1, %v576_v58  ;;  %v580_v5 = vunpack.c.l.bf16 %v787_v54 }
  0x3a   :  { %v263_v6 = vadd.f32 %v857_v4, %v195_v60  ;;  %v326_v7 = vmax.f32 %v262_v61, 0.0  ;;  %v197_v8 = vmul.f32 %v852_v1, %v577_v62  ;;  %v581_v9 = vunpack.c.h.bf16 %v787_v54 }
  0x3b   :  { %814 = vst [vmem:[%s1179_s3 + $0xb0] sm:$0xff] %v715_v0   ;;  %v720_v11 = vpack.c.bf16 %v325_v2, %v324_v59  ;;  %v264_v12 = vadd.f32 %v857_v4, %v196_v3  ;;  %v198_v13 = vmul.f32 %v852_v1, %v580_v5  ;;  %v584_v14 = vunpack.c.l.bf16 %v788_v63 }
  0x3c   :  { %v327_v15 = vmax.f32 %v263_v6, 0.0  ;;  %v265_v16 = vadd.f32 %v857_v4, %v197_v8  ;;  %v199_v17 = vmul.f32 %v852_v1, %v581_v9  ;;  %v585_v18 = vunpack.c.h.bf16 %v788_v63 }
  0x3d   :  { %815 = vst [vmem:[%s1179_s3 + $0xb8] sm:$0xff] %v720_v11   ;;  %v328_v19 = vmax.f32 %v264_v12, 0.0  ;;  %v266_v20 = vadd.f32 %v857_v4, %v198_v13  ;;  %v200_v21 = vmul.f32 %v852_v1, %v584_v14  ;;  %v588_v22 = vunpack.c.l.bf16 %v789_v10 }
  0x3e   :  { %v725_v24 = vpack.c.bf16 %v327_v15, %v326_v7  ;;  %v329_v25 = vmax.f32 %v265_v16, 0.0  ;;  %v267_v26 = vadd.f32 %v857_v4, %v199_v17  ;;  %v201_v27 = vmul.f32 %v852_v1, %v585_v18 }
  0x3f   :  { %v330_v28 = vmax.f32 %v266_v20, 0.0  ;;  %v268_v29 = vadd.f32 %v857_v4, %v200_v21  ;;  %v589_v30 = vunpack.c.h.bf16 %v789_v10  ;;  %v202_v31 = vmul.f32 %v852_v1, %v588_v22 }
  0x40   :  { %816 = vst [vmem:[%s1179_s3 + $0xc0] sm:$0xff] %v725_v24   ;;  %v730_v33 = vpack.c.bf16 %v329_v25, %v328_v19  ;;  %v331_v34 = vmax.f32 %v267_v26, 0.0  ;;  %v269_v35 = vadd.f32 %v857_v4, %v201_v27  ;;  %v592_v36 = vunpack.c.l.bf16 %v790_v23 }
  0x41   :  { %v332_v37 = vmax.f32 %v268_v29, 0.0  ;;  %v203_v38 = vmul.f32 %v852_v1, %v589_v30  ;;  %v270_v39 = vadd.f32 %v857_v4, %v202_v31  ;;  %v593_v40 = vunpack.c.h.bf16 %v790_v23 }
  0x42   :  { %817 = vst [vmem:[%s1179_s3 + $0xc8] sm:$0xff] %v730_v33   ;;  %v735_v42 = vpack.c.bf16 %v331_v34, %v330_v28  ;;  %v333_v43 = vmax.f32 %v269_v35, 0.0  ;;  %v204_v44 = vmul.f32 %v852_v1, %v592_v36  ;;  %v596_v45 = vunpack.c.l.bf16 %v791_v32 }
  0x43   :  { %v271_v46 = vadd.f32 %v857_v4, %v203_v38  ;;  %v334_v47 = vmax.f32 %v270_v39, 0.0  ;;  %v205_v48 = vmul.f32 %v852_v1, %v593_v40  ;;  %v597_v49 = vunpack.c.h.bf16 %v791_v32 }
  0x44   :  { %818 = vst [vmem:[%s1179_s3 + $0xd0] sm:$0xff] %v735_v42   ;;  %v740_v50 = vpack.c.bf16 %v333_v43, %v332_v37  ;;  %v272_v51 = vadd.f32 %v857_v4, %v204_v44  ;;  %v206_v52 = vmul.f32 %v852_v1, %v596_v45  ;;  %v600_v53 = vunpack.c.l.bf16 %v792_v41 }
  0x45   :  { %v335_v54 = vmax.f32 %v271_v46, 0.0  ;;  %v273_v55 = vadd.f32 %v857_v4, %v205_v48  ;;  %v207_v56 = vmul.f32 %v852_v1, %v597_v49  ;;  %v601_v57 = vunpack.c.h.bf16 %v792_v41 }
  0x46   :  { %819 = vst [vmem:[%s1179_s3 + $0xd8] sm:$0xff] %v740_v50   ;;  %v336_v58 = vmax.f32 %v272_v51, 0.0  ;;  %v274_v59 = vadd.f32 %v857_v4, %v206_v52  ;;  %v208_v60 = vmul.f32 %v852_v1, %v600_v53 }
  0x47   :  { %v745_v61 = vpack.c.bf16 %v335_v54, %v334_v47  ;;  %v337_v62 = vmax.f32 %v273_v55, 0.0  ;;  %v275_v63 = vadd.f32 %v857_v4, %v207_v56  ;;  %v209_v0 = vmul.f32 %v852_v1, %v601_v57 }
  0x48   :  { %v338_v2 = vmax.f32 %v274_v59, 0.0  ;;  %v276_v3 = vadd.f32 %v857_v4, %v208_v60 }
  0x49   :  { %820 = vst [vmem:[%s1179_s3 + $0xe0] sm:$0xff] %v745_v61   ;;  %v750_v5 = vpack.c.bf16 %v337_v62, %v336_v58  ;;  %v339_v6 = vmax.f32 %v275_v63, 0.0  ;;  %v277_v7 = vadd.f32 %v857_v4, %v209_v0 }
  0x4a   :  { %v340_v8 = vmax.f32 %v276_v3, 0.0 }
  0x4b   :  { %821 = vst [vmem:[%s1179_s3 + $0xe8] sm:$0xff] %v750_v5   ;;  %v755_v9 = vpack.c.bf16 %v339_v6, %v338_v2  ;;  %v341_v10 = vmax.f32 %v277_v7, 0.0 }
  0x4d   :  { %822 = vst [vmem:[%s1179_s3 + $0xf0] sm:$0xff] %v755_v9   ;;  %v760_v1 = vpack.c.bf16 %v341_v10, %v340_v8 }
  0x4f   :  { %823 = vst [vmem:[%s1179_s3 + $0xf8] sm:$0xff] %v760_v1  }

// kernel: resnet_forward.38
= control target key start
LH: loop header
LB: loop body
LE: loop exit
PB: predicated region body
PF: predicated region fallthrough
CT: control target
= control target key end

     0   :  { %10 = vsyncpa [#allocation4], 0  ;;  %s1463_s15 = smov 0   ;;  %s1465_s16 = smov 0   ;;  %s1668_s0 = inlined_call_operand.vmem [shape: bf16[512,128], index: 0, kind: input, shape index: {}]   ;;  %s1669_s1 = inlined_call_operand.hbm [shape: bf16[128,128], index: 1, kind: input, shape index: {}]   ;;  %s1670_s2 = inlined_call_operand.vmem [shape: bf16[512,128], index: 2, kind: output, shape index: {0}]   ;;  %s1671_s3 = inlined_call_operand.vmem [shape: f32[2,1,128], index: 3, kind: output, shape index: {1}]   ;;  %s1672_s4 = inlined_call_operand.vmem [shape: f32[2,1,128], index: 4, kind: output, shape index: {2}]  }
   0x1   :  { %s1467_s17 = smov 0  }
   0x2 LB: > { %s1088_s18 = sadd.s32 4294967295, %s1433_s17   ;;  %s35_s19 = sadd.s32 1, %s1429_s16  ;;  %s1433_s17 = sphi %s1467_s17, %s16_s17   ;;  %s1429_s16 = sphi %s1465_s16, %s1674_s16   ;;  %s1425_s15 = sphi %s1463_s15, %s1673_s15  }
   0x3   : > { %p37_p0 = scmp.ge.s32.totalorder %s35_s19, 2  ;;  %p1090_p1 = scmp.ge.s32.totalorder %s1433_s17, 1 }
   0x4   : > { %p180_p2 = scmp.lt.s32.totalorder %s1433_s17, 3  ;;  %p1348_p4 = scmp.eq.s32.totalorder %s1088_s18, 0 }
   0x5   : > { %s1676_s19 = smov (%p37_p0, %s35_s19), 0  ;;  %s195_s22 = sshll.u32 %s1669_s1, 4  ;;  %s196_s22 = int_to_ptr.hbm [resolvable:$true] %s195_s22 }
   0x6   : > { %p181_p3 = pnand %p1090_p1, %p180_p2  ;;  %s1435_s23 = smov [#allocation3]  }
   0x7   : > { %s197_s24 = sshll.u32 %s1435_s23, 4  ;;  %s1436_s25 = smov 64   ;;  %s198_s24 = int_to_ptr.vmem [resolvable:$true] %s197_s24 }
   0x8   : > { %p1344_p5 = pneg %p181_p3  ;;  %s1437_s26 = smov 4  }
   0x9   : > { %225 = sbr.rel (%p181_p3) target bundleno = 294 (0x126), region = 28 }
   0xa   : > { %p1345_p6 = pnand %p1348_p4, %p1344_p5 }
   0xc   : > { %1347 = dma.hbm_to_vmem [thread:$0]  (!%p1345_p6), %s196_s22, 1024, %s198_s24, [#allocation4], %s1436_s25, %s1436_s25, %s1437_s26  }
   0xe   : > { %1420 = dma.done.wait (%p1348_p4), [#allocation4], 1024  }
   0xf   : > { %1422 = vsyncadd (%p1348_p4), [#allocation4], 4294966272  ;;  %v1220_v0 = vld [vmem:[#allocation3 + $0x38] sm:$0xff]  ;;  %v1219_v1 = vld [vmem:[#allocation3 + $0x30] sm:$0xff]  ;;  %s1095_s27 = sshll.u32 %s1425_s15, 5  ;;  %p289_p8 = scmp.lt.s32.totalorder %s1425_s15, 1 }
  0x10   : > { %561 = vmatpush.bf16.msra.mxu0 %v1220_v0  ;;  %1316 = vmatpush.bf16.msra.mxu1 %v1220_v0  ;;  %v1218_v2 = vld [vmem:[#allocation3 + $0x28] sm:$0xff]  ;;  %v1217_v3 = vld [vmem:[#allocation3 + $0x20] sm:$0xff]  ;;  %v1216_v4 = vld [vmem:[#allocation3 + $0x18] sm:$0xff]  ;;  %p271_p7 = scmp.lt.s32.totalorder %s1095_s27, 63 }
  0x11   : > { %1317 = vmatpush.bf16.msra.mxu2 %v1220_v0  ;;  %1318 = vmatpush.bf16.msra.mxu3 %v1220_v0  ;;  %v1215_v5 = vld [vmem:[#allocation3 + $0x10] sm:$0xff]  ;;  %v1214_v6 = vld [vmem:[#allocation3 + $0x8] sm:$0xff]  ;;  %v1213_v7 = vld [vmem:[#allocation3] sm:$0xff]  ;;  %s1680_s15 = smov (!%p289_p8, %s1425_s15), 1 }
  0x12   : > { %s1678_s27 = smov (!%p271_p7, %s1095_s27), 63  ;;  %s294_s11 = scalar_lea.vmem %s1671_s3, %s1680_s15 }
  0x13   : > { %s1096_s28 = sshll.u32 %s1678_s27, 2  ;;  %s300_s14 = scalar_lea.vmem %s1672_s4, %s1680_s15 }
  0x14   : > { %562 = vmatpush.bf16.msra.mxu0 %v1219_v1  ;;  %1319 = vmatpush.bf16.msra.mxu1 %v1219_v1  ;;  %s1496_s5 = scalar_lea.vmem %s1668_s0, %s1096_s28  ;;  %s1523_s8 = scalar_lea.vmem %s1670_s2, %s1096_s28 }
  0x15   : > { %1320 = vmatpush.bf16.msra.mxu2 %v1219_v1  ;;  %1321 = vmatpush.bf16.msra.mxu3 %v1219_v1  ;;  %v1197_v8 = vld [vmem:[%s1496_s5] sm:$0xff]  ;;  %v1198_v12 = vld [vmem:[%s1496_s5 + $0x8] sm:$0xff]  ;;  %v1199_v16 = vld [vmem:[%s1496_s5 + $0x10] sm:$0xff] }
  0x16   : > { %v1201_v9 = vld [vmem:[%s1496_s5 + $0x20] sm:$0xff]  ;;  %v1202_v13 = vld [vmem:[%s1496_s5 + $0x28] sm:$0xff]  ;;  %v1203_v17 = vld [vmem:[%s1496_s5 + $0x30] sm:$0xff] }
  0x17   : > { %v1205_v10 = vld [vmem:[%s1496_s5 + $0x40] sm:$0xff]  ;;  %v1206_v14 = vld [vmem:[%s1496_s5 + $0x48] sm:$0xff]  ;;  %v1207_v18 = vld [vmem:[%s1496_s5 + $0x50] sm:$0xff] }
  0x18   : > { %563 = vmatpush.bf16.msra.mxu0 %v1218_v2  ;;  %1322 = vmatpush.bf16.msra.mxu1 %v1218_v2  ;;  %v1209_v11 = vld [vmem:[%s1496_s5 + $0x60] sm:$0xff]  ;;  %v1210_v15 = vld [vmem:[%s1496_s5 + $0x68] sm:$0xff]  ;;  %v1211_v19 = vld [vmem:[%s1496_s5 + $0x70] sm:$0xff] }
  0x19   : > { %1323 = vmatpush.bf16.msra.mxu2 %v1218_v2  ;;  %1324 = vmatpush.bf16.msra.mxu3 %v1218_v2  ;;  %v1200_v20 = vld [vmem:[%s1496_s5 + $0x18] sm:$0xff] }
  0x1a   : > { %v1204_v21 = vld [vmem:[%s1496_s5 + $0x38] sm:$0xff] }
  0x1b   : > { %v1208_v22 = vld [vmem:[%s1496_s5 + $0x58] sm:$0xff] }
  0x1c   : > { %564 = vmatpush.bf16.msra.mxu0 %v1217_v3  ;;  %1325 = vmatpush.bf16.msra.mxu1 %v1217_v3  ;;  %v1212_v23 = vld [vmem:[%s1496_s5 + $0x78] sm:$0xff] }
  0x1d   : > { %1326 = vmatpush.bf16.msra.mxu2 %v1217_v3  ;;  %1327 = vmatpush.bf16.msra.mxu3 %v1217_v3 }
  0x20   : > { %565 = vmatpush.bf16.msra.mxu0 %v1216_v4  ;;  %1328 = vmatpush.bf16.msra.mxu1 %v1216_v4 }
  0x21   : > { %1329 = vmatpush.bf16.msra.mxu2 %v1216_v4  ;;  %1330 = vmatpush.bf16.msra.mxu3 %v1216_v4 }
  0x24   : > { %566 = vmatpush.bf16.msra.mxu0 %v1215_v5  ;;  %1331 = vmatpush.bf16.msra.mxu1 %v1215_v5 }
  0x25   : > { %1332 = vmatpush.bf16.msra.mxu2 %v1215_v5  ;;  %1333 = vmatpush.bf16.msra.mxu3 %v1215_v5 }
  0x28   : > { %567 = vmatpush.bf16.msra.mxu0 %v1214_v6  ;;  %1334 = vmatpush.bf16.msra.mxu1 %v1214_v6 }
  0x29   : > { %1335 = vmatpush.bf16.msra.mxu2 %v1214_v6  ;;  %1336 = vmatpush.bf16.msra.mxu3 %v1214_v6 }
  0x2c   : > { %568 = vmatpush.bf16.msra.mxu0 %v1213_v7  ;;  %1337 = vmatpush.bf16.msra.mxu1 %v1213_v7 }
  0x2d   : > { %1338 = vmatpush.bf16.msra.mxu2 %v1213_v7  ;;  %1339 = vmatpush.bf16.msra.mxu3 %v1213_v7 }
  0x2f   : > { %569 = vmatmul.bf16.vlgmr.msra.gmra.mxu0 %v1197_v8  ;;  %589 = vmatmul.bf16.vlgmr.msra.gmra.mxu1 %v1201_v9 }
  0x30   : > { %609 = vmatmul.bf16.vlgmr.msra.gmra.mxu2 %v1205_v10  ;;  %629 = vmatmul.bf16.vlgmr.msra.gmra.mxu3 %v1209_v11 }
  0x3f   : > { %574 = vmatmul.bf16.gmra.mxu0 %v1198_v12  ;;  %594 = vmatmul.bf16.gmra.mxu1 %v1202_v13 }
  0x40   : > { %614 = vmatmul.bf16.gmra.mxu2 %v1206_v14  ;;  %634 = vmatmul.bf16.gmra.mxu3 %v1210_v15 }
  0x4f   : > { %579 = vmatmul.bf16.gmra.mxu0 %v1199_v16  ;;  %599 = vmatmul.bf16.gmra.mxu1 %v1203_v17 }
  0x50   : > { %619 = vmatmul.bf16.gmra.mxu2 %v1207_v18  ;;  %639 = vmatmul.bf16.gmra.mxu3 %v1211_v19 }
  0x5f   : > { %584 = vmatmul.bf16.gmra.mxu0 %v1200_v20  ;;  %604 = vmatmul.bf16.gmra.mxu1 %v1204_v21 }
  0x60   : > { %624 = vmatmul.bf16.gmra.mxu2 %v1208_v22  ;;  %644 = vmatmul.bf16.gmra.mxu3 %v1212_v23 }
  0xac   : > { %v570_v24 = vpop.f32.mrf.mxu0  ;;  %v1514_v25 = vpop.f32.mrf.mxu1 }
  0xad   : > { %v851_v57 = vmul.f32 %v570_v24, %v570_v24 }
  0xb3   : > { %v1516_v26 = vpop.f32.mrf.mxu2  ;;  %v1529_v31 = vpop.f32.mrf.mxu3 }
  0xb4   : > { %v572_v27 = vpop.f32.mrf.mxu0  ;;  %v1525_v28 = vpop.f32.mrf.mxu1 }
  0xb5   : > { %v1224_v29 = vpack.c.bf16 %v572_v27, %v570_v24  ;;  %v1244_v30 = vpack.c.bf16 %v1525_v28, %v1514_v25  ;;  %v852_v56 = vmul.f32 %v572_v27, %v572_v27  ;;  %v813_v59 = vadd.f32 %v572_v27, %v570_v24 }
  0xb6   : > { %v859_v27 = vmul.f32 %v1514_v25, %v1514_v25 }
  0xb7   : > { %1225 = vst [vmem:[%s1523_s8] sm:$0xff] %v1224_v29   ;;  %v883_v60 = vadd.f32 %v852_v56, %v851_v57 }
  0xb8   : > { %1304 = vst [vmem:[%s1523_s8 + $0x20] sm:$0xff] %v1244_v30  }
  0xbb   : > { %v1533_v32 = vpop.f32.mrf.mxu2  ;;  %v1539_v36 = vpop.f32.mrf.mxu3 }
  0xbc   : > { %v575_v33 = vpop.f32.mrf.mxu0  ;;  %v1535_v34 = vpop.f32.mrf.mxu1  ;;  %v1264_v35 = vpack.c.bf16 %v1533_v32, %v1516_v26  ;;  %v1284_v37 = vpack.c.bf16 %v1539_v36, %v1529_v31 }
  0xbd   : > { %v853_v58 = vmul.f32 %v575_v33, %v575_v33  ;;  %v814_v62 = vadd.f32 %v813_v59, %v575_v33 }
  0xbe   : > { %1308 = vst [vmem:[%s1523_s8 + $0x40] sm:$0xff] %v1264_v35  }
  0xbf   : > { %1312 = vst [vmem:[%s1523_s8 + $0x60] sm:$0xff] %v1284_v37   ;;  %v884_v0 = vadd.f32 %v883_v60, %v853_v58 }
  0xc3   : > { %v1545_v38 = vpop.f32.mrf.mxu2  ;;  %v1551_v43 = vpop.f32.mrf.mxu3 }
  0xc4   : > { %v577_v39 = vpop.f32.mrf.mxu0  ;;  %v1547_v40 = vpop.f32.mrf.mxu1 }
  0xc5   : > { %v1229_v41 = vpack.c.bf16 %v577_v39, %v575_v33  ;;  %v1249_v42 = vpack.c.bf16 %v1547_v40, %v1535_v34  ;;  %v854_v61 = vmul.f32 %v577_v39, %v577_v39  ;;  %v815_v5 = vadd.f32 %v814_v62, %v577_v39 }
  0xc6   : > { %v860_v33 = vmul.f32 %v1525_v28, %v1525_v28  ;;  %v861_v39 = vmul.f32 %v1535_v34, %v1535_v34 }
  0xc7   : > { %1301 = vst [vmem:[%s1523_s8 + $0x8] sm:$0xff] %v1229_v41   ;;  %v885_v7 = vadd.f32 %v884_v0, %v854_v61 }
  0xc8   : > { %1305 = vst [vmem:[%s1523_s8 + $0x28] sm:$0xff] %v1249_v42  }
  0xcb   : > { %v1555_v44 = vpop.f32.mrf.mxu2  ;;  %v1561_v48 = vpop.f32.mrf.mxu3 }
  0xcc   : > { %v580_v45 = vpop.f32.mrf.mxu0  ;;  %v1557_v46 = vpop.f32.mrf.mxu1  ;;  %v1269_v47 = vpack.c.bf16 %v1555_v44, %v1545_v38  ;;  %v1289_v49 = vpack.c.bf16 %v1561_v48, %v1551_v43 }
  0xcd   : > { %v855_v1 = vmul.f32 %v580_v45, %v580_v45  ;;  %v816_v10 = vadd.f32 %v815_v5, %v580_v45  ;;  %v868_v5 = vmul.f32 %v1533_v32, %v1533_v32 }
  0xce   : > { %1309 = vst [vmem:[%s1523_s8 + $0x48] sm:$0xff] %v1269_v47  }
  0xcf   : > { %1313 = vst [vmem:[%s1523_s8 + $0x68] sm:$0xff] %v1289_v49   ;;  %v886_v11 = vadd.f32 %v885_v7, %v855_v1 }
  0xd3   : > { %v1567_v50 = vpop.f32.mrf.mxu2  ;;  %v1573_v55 = vpop.f32.mrf.mxu3 }
  0xd4   : > { %v582_v51 = vpop.f32.mrf.mxu0  ;;  %v1569_v52 = vpop.f32.mrf.mxu1 }
  0xd5   : > { %v1234_v53 = vpack.c.bf16 %v582_v51, %v580_v45  ;;  %v1254_v54 = vpack.c.bf16 %v1569_v52, %v1557_v46  ;;  %v856_v8 = vmul.f32 %v582_v51, %v582_v51  ;;  %v817_v13 = vadd.f32 %v816_v10, %v582_v51 }
  0xd6   : > { %v870_v10 = vmul.f32 %v1555_v44, %v1555_v44 }
  0xd7   : > { %1302 = vst [vmem:[%s1523_s8 + $0x10] sm:$0xff] %v1234_v53   ;;  %v887_v14 = vadd.f32 %v886_v11, %v856_v8 }
  0xd8   : > { %1306 = vst [vmem:[%s1523_s8 + $0x30] sm:$0xff] %v1254_v54   ;;  %v863_v54 = vmul.f32 %v1557_v46, %v1557_v46 }
  0xdb   : > { %v1577_v63 = vpop.f32.mrf.mxu2  ;;  %v1581_v6 = vpop.f32.mrf.mxu3 }
  0xdc   : > { %v585_v2 = vpop.f32.mrf.mxu0  ;;  %v605_v3 = vpop.f32.mrf.mxu1  ;;  %v1274_v4 = vpack.c.bf16 %v1577_v63, %v1567_v50  ;;  %v1294_v9 = vpack.c.bf16 %v1581_v6, %v1573_v55 }
  0xdd   : > { %v857_v12 = vmul.f32 %v585_v2, %v585_v2  ;;  %v818_v15 = vadd.f32 %v817_v13, %v585_v2  ;;  %v865_v61 = vmul.f32 %v605_v3, %v605_v3 }
  0xde   : > { %1310 = vst [vmem:[%s1523_s8 + $0x50] sm:$0xff] %v1274_v4  }
  0xdf   : > { %1314 = vst [vmem:[%s1523_s8 + $0x70] sm:$0xff] %v1294_v9   ;;  %v888_v17 = vadd.f32 %v887_v14, %v857_v12 }
  0xe3   : > { %v625_v16 = vpop.f32.mrf.mxu2  ;;  %v1587_v24 = vpop.f32.mrf.mxu3 }
  0xe4   : > { %v587_v18 = vpop.f32.mrf.mxu0  ;;  %v607_v19 = vpop.f32.mrf.mxu1 }
  0xe5   : > { %v1239_v20 = vpack.c.bf16 %v587_v18, %v585_v2  ;;  %v819_v21 = vadd.f32 %v818_v15, %v587_v18  ;;  %v858_v22 = vmul.f32 %v587_v18, %v587_v18  ;;  %v1259_v23 = vpack.c.bf16 %v607_v19, %v605_v3 }
  0xe6   : > { %v866_v1 = vmul.f32 %v607_v19, %v607_v19  ;;  %v867_v2 = vmul.f32 %v1516_v26, %v1516_v26  ;;  %v872_v15 = vmul.f32 %v1577_v63, %v1577_v63 }
  0xe7   : > { %1303 = vst [vmem:[%s1523_s8 + $0x18] sm:$0xff] %v1239_v20   ;;  %v820_v29 = vadd.f32 %v819_v21, %v1514_v25  ;;  %v889_v30 = vadd.f32 %v888_v17, %v858_v22  ;;  %v862_v25 = vmul.f32 %v1547_v40, %v1547_v40 }
  0xe8   : > { %1307 = vst [vmem:[%s1523_s8 + $0x38] sm:$0xff] %v1259_v23  }
  0xe9   : > { %v821_v35 = vadd.f32 %v820_v29, %v1525_v28  ;;  %v890_v37 = vadd.f32 %v889_v30, %v859_v27 }
  0xeb   : > { %v822_v41 = vadd.f32 %v821_v35, %v1535_v34  ;;  %v891_v42 = vadd.f32 %v890_v37, %v860_v33  ;;  %v627_v45 = vpop.f32.mrf.mxu2  ;;  %v647_v53 = vpop.f32.mrf.mxu3  ;;  %v864_v34 = vmul.f32 %v1569_v52, %v1569_v52  ;;  %v878_v35 = vmul.f32 %v1561_v48, %v1561_v48 }
  0xec   : > { %v1279_v47 = vpack.c.bf16 %v627_v45, %v625_v16  ;;  %v1299_v28 = vpack.c.bf16 %v647_v53, %v1587_v24  ;;  %v874_v22 = vmul.f32 %v627_v45, %v627_v45 }
  0xed   : > { %v892_v49 = vadd.f32 %v891_v42, %v861_v39  ;;  %v823_v51 = vadd.f32 %v822_v41, %v1547_v40  ;;  %v879_v39 = vmul.f32 %v1573_v55, %v1573_v55 }
  0xee   : > { %1311 = vst [vmem:[%s1523_s8 + $0x58] sm:$0xff] %v1279_v47  }
  0xef   : > { %v824_v56 = vadd.f32 %v823_v51, %v1557_v46  ;;  %v893_v57 = vadd.f32 %v892_v49, %v862_v25  ;;  %1315 = vst [vmem:[%s1523_s8 + $0x78] sm:$0xff] %v1299_v28   ;;  %v881_v49 = vmul.f32 %v1587_v24, %v1587_v24  ;;  %v882_v28 = vmul.f32 %v647_v53, %v647_v53 }
  0xf1   : > { %v825_v58 = vadd.f32 %v824_v56, %v1569_v52  ;;  %v894_v59 = vadd.f32 %v893_v57, %v863_v54  ;;  %v869_v52 = vmul.f32 %v1545_v38, %v1545_v38 }
  0xf3   : > { %v826_v60 = vadd.f32 %v825_v58, %v605_v3  ;;  %v895_v40 = vadd.f32 %v894_v59, %v864_v34 }
  0xf5   : > { %v896_v62 = vadd.f32 %v895_v40, %v865_v61  ;;  %v827_v0 = vadd.f32 %v826_v60, %v607_v19  ;;  %v873_v19 = vmul.f32 %v625_v16, %v625_v16 }
  0xf7   : > { %v828_v4 = vadd.f32 %v827_v0, %v1516_v26  ;;  %v897_v46 = vadd.f32 %v896_v62, %v866_v1  ;;  %v871_v26 = vmul.f32 %v1567_v50, %v1567_v50 }
  0xf9   : > { %v829_v7 = vadd.f32 %v828_v4, %v1533_v32  ;;  %v898_v8 = vadd.f32 %v897_v46, %v867_v2 }
  0xfb   : > { %v830_v3 = vadd.f32 %v829_v7, %v1545_v38  ;;  %v899_v9 = vadd.f32 %v898_v8, %v868_v5 }
  0xfd   : > { %v900_v11 = vadd.f32 %v899_v9, %v869_v52  ;;  %v831_v12 = vadd.f32 %v830_v3, %v1555_v44  ;;  %v875_v44 = vmul.f32 %v1529_v31, %v1529_v31 }
  0xff   : > { %v832_v13 = vadd.f32 %v831_v12, %v1567_v50  ;;  %v901_v14 = vadd.f32 %v900_v11, %v870_v10  ;;  %v876_v50 = vmul.f32 %v1539_v36, %v1539_v36 }
 0x101   : > { %v833_v32 = vadd.f32 %v832_v13, %v1577_v63  ;;  %v902_v17 = vadd.f32 %v901_v14, %v871_v26  ;;  %v877_v63 = vmul.f32 %v1551_v43, %v1551_v43 }
 0x103   : > { %v903_v38 = vadd.f32 %v902_v17, %v872_v15  ;;  %v834_v18 = vadd.f32 %v833_v32, %v625_v16 }
 0x105   : > { %v904_v20 = vadd.f32 %v903_v38, %v873_v19  ;;  %v835_v21 = vadd.f32 %v834_v18, %v627_v45 }
 0x107   : > { %v836_v23 = vadd.f32 %v835_v21, %v1529_v31  ;;  %v905_v27 = vadd.f32 %v904_v20, %v874_v22 }
 0x109   : > { %v837_v29 = vadd.f32 %v836_v23, %v1539_v36  ;;  %v906_v30 = vadd.f32 %v905_v27, %v875_v44 }
 0x10b   : > { %v838_v16 = vadd.f32 %v837_v29, %v1551_v43  ;;  %v907_v33 = vadd.f32 %v906_v30, %v876_v50  ;;  %v880_v43 = vmul.f32 %v1581_v6, %v1581_v6 }
 0x10d   : > { %v908_v37 = vadd.f32 %v907_v33, %v877_v63  ;;  %v839_v31 = vadd.f32 %v838_v16, %v1561_v48 }
 0x10f   : > { %v840_v41 = vadd.f32 %v839_v31, %v1573_v55  ;;  %v909_v36 = vadd.f32 %v908_v37, %v878_v35 }
 0x111   : > { %v841_v42 = vadd.f32 %v840_v41, %v1581_v6  ;;  %v910_v45 = vadd.f32 %v909_v36, %v879_v39 }
 0x113   : > { %v911_v47 = vadd.f32 %v910_v45, %v880_v43  ;;  %v842_v25 = vadd.f32 %v841_v42, %v1587_v24 }
 0x115   : > { %v912_v48 = vadd.f32 %v911_v47, %v881_v49  ;;  %v843_v51 = vadd.f32 %v842_v25, %v647_v53 }
 0x117   : > { %v844_v54 = vrot.slane %v843_v51, 4  ;;  %v913_v56 = vadd.f32 %v912_v48, %v882_v28 }
 0x119   : > { %v845_v55 = vadd.f32 %v844_v54, %v843_v51  ;;  %v914_v57 = vrot.slane %v913_v56, 4 }
 0x11b   : > { %v846_v34 = vrot.slane %v845_v55, 2  ;;  %v915_v58 = vadd.f32 %v914_v57, %v913_v56 }
 0x11d   : > { %v847_v59 = vadd.f32 %v846_v34, %v845_v55  ;;  %v916_v6 = vrot.slane %v915_v58, 2 }
 0x11f   : > { %v848_v60 = vrot.slane %v847_v59, 1  ;;  %v917_v61 = vadd.f32 %v916_v6, %v915_v58 }
 0x121   : > { %v849_v24 = vadd.f32 %v848_v60, %v847_v59  ;;  %v918_v40 = vrot.slane %v917_v61, 1 }
 0x123   : > { %850 = vst [vmem:[%s294_s11] sm:$0x1] %v849_v24  ;;  %v919_v53 = vadd.f32 %v918_v40, %v917_v61 }
 0x125   : > { %920 = vst [vmem:[%s300_s14] sm:$0x1] %v919_v53 }
 0x126 PF: > { %s16_s17 = sadd.s32 1, %s1433_s17   ;;  %s1673_s15 = smov %s1429_s16 }
 0x127   : > { %p13_p9 = scmp.ge.s32.totalorder %s16_s17, 4   ;;  %s1674_s16 = smov %s1676_s19 }
 0x129   :  { %15 = sbr.rel (!%p13_p9) target bundleno = 2 (0x2), region = 96 }
 0x12e   :  { %985 = vsyncpa [#allocation4], 1 }
 0x12f   :  { %987 = vsyncpa [#allocation4 + $0x1], 1 }

// kernel: resnet_forward.42
= control target key start
LH: loop header
LB: loop body
LE: loop exit
PB: predicated region body
PF: predicated region fallthrough
CT: control target
= control target key end

     0   :  { %vm21_vm0 = vcmask 1040384   ;;  %s116_s0 = inlined_call_operand.vmem [shape: f32[2,1,128], index: 0, kind: input, shape index: {}]   ;;  %s117_s1 = inlined_call_operand.vmem [shape: f32[2,1,128], index: 1, kind: input, shape index: {}]   ;;  %s118_s2 = inlined_call_operand.vmem [shape: f32[1,128], index: 2, kind: input, shape index: {}]   ;;  %s119_s3 = inlined_call_operand.vmem [shape: f32[1,128], index: 3, kind: input, shape index: {}]   ;;  %s120_s4 = inlined_call_operand.vmem [shape: f32[1,128], index: 4, kind: output, shape index: {0}]   ;;  %s121_s5 = inlined_call_operand.vmem [shape: f32[1,128], index: 5, kind: output, shape index: {1}]  }
   0x1   :  { %v19_v0 = vld [vmem:[%s116_s0] sm:$0x1]  ;;  %v20_v1 = vld [vmem:[%s116_s0 + $0x1] sm:$0x1] }
   0x2   :  { %v25_v2 = vld [vmem:[%s117_s1] sm:$0x1]  ;;  %v22_v3 = vsel %vm21_vm0, %v19_v0, 0.0  ;;  %v23_v4 = vsel %vm21_vm0, %v20_v1, 0.0  ;;  %v26_v5 = vld [vmem:[%s117_s1 + $0x1] sm:$0x1] }
   0x3   :  { %v27_v6 = vsel %vm21_vm0, %v25_v2, 0.0  ;;  %v24_v7 = vadd.f32 %v23_v4, %v22_v3  ;;  %v28_v8 = vsel %vm21_vm0, %v26_v5, 0.0  ;;  %v45_v21 = vld [vmem:[%s118_s2] sm:$0x1] }
   0x4   :  { %v29_v9 = vadd.f32 %v28_v8, %v27_v6  ;;  %v48_v24 = vld [vmem:[%s119_s3] sm:$0x1] }
   0x5   :  { %v30_v10 = vmul.f32 0.001953125, %v24_v7 }
   0x6   :  { %v31_v11 = vmul.f32 0.001953125, %v29_v9 }
   0x7   :  { %v32_v12 = vmul.f32 %v30_v10, %v30_v10 }
   0x9   :  { %v33_v13 = vsub.f32 %v31_v11, %v32_v12 }
   0xb   :  { %v34_v14 = vadd.f32 1e-05, %v33_v13 }
   0xd   :  { %60 = vrsqrt.f32 %v34_v14  ;;  %vm41_vm1 = vweird.f32 %v34_v14 }
  0x13   :  { %v61_v15 = vpop.eup %60 }
  0x14   :  { %v36_v16 = vmul.f32 %v61_v15, %v34_v14  ;;  %vm42_vm2 = vweird.f32 %v61_v15 }
  0x15   :  { %vm43_vm3 = vmor %vm41_vm1, %vm42_vm2 }
  0x16   :  { %v37_v17 = vmul.f32 %v61_v15, %v36_v16 }
  0x18   :  { %v38_v18 = vmul.f32 0.5, %v37_v17 }
  0x1a   :  { %v39_v19 = vsub.f32 1.5, %v38_v18 }
  0x1c   :  { %v40_v20 = vmul.f32 %v61_v15, %v39_v19 }
  0x1e   :  { %v44_v22 = vsel %vm43_vm3, %v61_v15, %v40_v20 }
  0x1f   :  { %v46_v23 = vmul.f32 %v45_v21, %v44_v22 }
  0x21   :  { %47 = vst [vmem:[%s120_s4] sm:$0x1] %v46_v23  ;;  %v49_v25 = vmul.f32 %v46_v23, %v30_v10 }
  0x23   :  { %v50_v26 = vsub.f32 %v48_v24, %v49_v25 }
  0x25   :  { %51 = vst [vmem:[%s121_s5] sm:$0x1] %v50_v26 }

// kernel: resnet_forward.46
= control target key start
LH: loop header
LB: loop body
LE: loop exit
PB: predicated region body
PF: predicated region fallthrough
CT: control target
= control target key end

     0   :  { %s1631_s0 = inlined_call_operand.vmem [shape: bf16[512,128], index: 0, kind: input, shape index: {}]   ;;  %s1632_s1 = inlined_call_operand.vmem [shape: f32[1,128], index: 1, kind: input, shape index: {}]   ;;  %s1633_s2 = inlined_call_operand.vmem [shape: f32[1,128], index: 2, kind: input, shape index: {}]   ;;  %s1634_s3 = inlined_call_operand.vmem [shape: bf16[512,128], index: 3, kind: input, shape index: {}]   ;;  %s1635_s4 = inlined_call_operand.vmem [shape: bf16[512,128], index: 4, kind: output, shape index: {}]  }
   0x1   :  { %v670_v0 = vld [vmem:[%s1631_s0] sm:$0xff]   ;;  %v1085_v8 = vld [vmem:[%s1631_s0 + $0x8] sm:$0xff]   ;;  %v1086_v10 = vld [vmem:[%s1631_s0 + $0x10] sm:$0xff]  }
   0x2   :  { %v1211_v1 = vld [vmem:[%s1632_s1] ss:$0 sm:$0xff]  ;;  %v671_v2 = vunpack.c.l.bf16 %v670_v0  ;;  %v672_v3 = vunpack.c.h.bf16 %v670_v0  ;;  %v1116_v9 = vld [vmem:[%s1634_s3 + $0x8] sm:$0xff]   ;;  %v675_v13 = vunpack.c.l.bf16 %v1085_v8  ;;  %v676_v14 = vunpack.c.h.bf16 %v1085_v8  ;;  %v1117_v15 = vld [vmem:[%s1634_s3 + $0x10] sm:$0xff]  }
   0x3   :  { %v1216_v4 = vld [vmem:[%s1633_s2] ss:$0 sm:$0xff]  ;;  %v803_v16 = vunpack.c.l.bf16 %v1116_v9  ;;  %v804_v17 = vunpack.c.h.bf16 %v1116_v9  ;;  %v679_v18 = vunpack.c.l.bf16 %v1086_v10  ;;  %v680_v19 = vunpack.c.h.bf16 %v1086_v10  ;;  %v1087_v24 = vld [vmem:[%s1631_s0 + $0x18] sm:$0xff]   ;;  %v1089_v56 = vld [vmem:[%s1631_s0 + $0x28] sm:$0xff]  }
   0x4   :  { %v798_v5 = vld [vmem:[%s1634_s3] sm:$0xff]   ;;  %v149_v11 = vmul.f32 %v1211_v1, %v671_v2  ;;  %v150_v12 = vmul.f32 %v1211_v1, %v672_v3  ;;  %v151_v22 = vmul.f32 %v1211_v1, %v675_v13  ;;  %v152_v23 = vmul.f32 %v1211_v1, %v676_v14  ;;  %v1118_v37 = vld [vmem:[%s1634_s3 + $0x18] sm:$0xff]   ;;  %v1120_v61 = vld [vmem:[%s1634_s3 + $0x28] sm:$0xff]  }
   0x5   :  { %v799_v6 = vunpack.c.l.bf16 %v798_v5  ;;  %v800_v7 = vunpack.c.h.bf16 %v798_v5  ;;  %v153_v25 = vmul.f32 %v1211_v1, %v679_v18  ;;  %v154_v26 = vmul.f32 %v1211_v1, %v680_v19  ;;  %v1088_v46 = vld [vmem:[%s1631_s0 + $0x20] sm:$0xff]   ;;  %v1090_v8 = vld [vmem:[%s1631_s0 + $0x30] sm:$0xff]  }
   0x6   :  { %v217_v20 = vadd.f32 %v1216_v4, %v149_v11  ;;  %v218_v21 = vadd.f32 %v1216_v4, %v150_v12  ;;  %v807_v27 = vunpack.c.l.bf16 %v1117_v15  ;;  %v808_v28 = vunpack.c.h.bf16 %v1117_v15  ;;  %v1119_v51 = vld [vmem:[%s1634_s3 + $0x20] sm:$0xff]   ;;  %v1121_v9 = vld [vmem:[%s1634_s3 + $0x30] sm:$0xff]  }
   0x7   :  { %v219_v31 = vadd.f32 %v1216_v4, %v151_v22  ;;  %v220_v32 = vadd.f32 %v1216_v4, %v152_v23  ;;  %v221_v33 = vadd.f32 %v1216_v4, %v153_v25  ;;  %v222_v34 = vadd.f32 %v1216_v4, %v154_v26  ;;  %v1091_v22 = vld [vmem:[%s1631_s0 + $0x38] sm:$0xff]  }
   0x8   :  { %v409_v29 = vadd.f32 %v799_v6, %v217_v20  ;;  %v410_v30 = vadd.f32 %v800_v7, %v218_v21  ;;  %v683_v35 = vunpack.c.l.bf16 %v1087_v24  ;;  %v684_v36 = vunpack.c.h.bf16 %v1087_v24 }
   0x9   :  { %v411_v40 = vadd.f32 %v803_v16, %v219_v31  ;;  %v412_v41 = vadd.f32 %v804_v17, %v220_v32  ;;  %v413_v42 = vadd.f32 %v807_v27, %v221_v33  ;;  %v414_v43 = vadd.f32 %v808_v28, %v222_v34  ;;  %v1122_v31 = vld [vmem:[%s1634_s3 + $0x38] sm:$0xff]  }
   0xa   :  { %v473_v38 = vmax.f32 %v409_v29, 0.0  ;;  %v474_v39 = vmax.f32 %v410_v30, 0.0  ;;  %v155_v44 = vmul.f32 %v1211_v1, %v683_v35  ;;  %v156_v45 = vmul.f32 %v1211_v1, %v684_v36 }
   0xb   :  { %v475_v48 = vmax.f32 %v411_v40, 0.0  ;;  %v476_v49 = vmax.f32 %v412_v41, 0.0  ;;  %v811_v50 = vunpack.c.l.bf16 %v1118_v37  ;;  %v477_v52 = vmax.f32 %v413_v42, 0.0  ;;  %v1092_v40 = vld [vmem:[%s1631_s0 + $0x40] sm:$0xff]  }
   0xc   :  { %v928_v47 = vpack.c.bf16 %v474_v39, %v473_v38  ;;  %v478_v53 = vmax.f32 %v414_v43, 0.0  ;;  %v223_v54 = vadd.f32 %v1216_v4, %v155_v44  ;;  %v224_v55 = vadd.f32 %v1216_v4, %v156_v45 }
   0xd   :  { %v933_v57 = vpack.c.bf16 %v476_v49, %v475_v48  ;;  %v812_v58 = vunpack.c.h.bf16 %v1118_v37  ;;  %v687_v59 = vunpack.c.l.bf16 %v1088_v46  ;;  %v688_v60 = vunpack.c.h.bf16 %v1088_v46  ;;  %v1123_v49 = vld [vmem:[%s1634_s3 + $0x40] sm:$0xff]  }
   0xe   :  { %929 = vst [vmem:[%s1635_s4] sm:$0xff] %v928_v47   ;;  %v938_v62 = vpack.c.bf16 %v478_v53, %v477_v52  ;;  %v415_v63 = vadd.f32 %v811_v50, %v223_v54  ;;  %v815_v0 = vunpack.c.l.bf16 %v1119_v51  ;;  %v816_v2 = vunpack.c.h.bf16 %v1119_v51  ;;  %v1093_v54 = vld [vmem:[%s1631_s0 + $0x48] sm:$0xff]  }
   0xf   :  { %1147 = vst [vmem:[%s1635_s4 + $0x8] sm:$0xff] %v933_v57   ;;  %v416_v3 = vadd.f32 %v812_v58, %v224_v55  ;;  %v157_v5 = vmul.f32 %v1211_v1, %v687_v59  ;;  %v158_v6 = vmul.f32 %v1211_v1, %v688_v60  ;;  %v691_v7 = vunpack.c.l.bf16 %v1089_v56 }
  0x10   :  { %1148 = vst [vmem:[%s1635_s4 + $0x10] sm:$0xff] %v938_v62   ;;  %v479_v10 = vmax.f32 %v415_v63, 0.0  ;;  %v692_v11 = vunpack.c.h.bf16 %v1089_v56  ;;  %v819_v12 = vunpack.c.l.bf16 %v1120_v61  ;;  %v820_v13 = vunpack.c.h.bf16 %v1120_v61  ;;  %v1124_v63 = vld [vmem:[%s1634_s3 + $0x48] sm:$0xff]  }
  0x11   :  { %v480_v14 = vmax.f32 %v416_v3, 0.0  ;;  %v225_v15 = vadd.f32 %v1216_v4, %v157_v5  ;;  %v226_v16 = vadd.f32 %v1216_v4, %v158_v6  ;;  %v159_v17 = vmul.f32 %v1211_v1, %v691_v7  ;;  %v1094_v6 = vld [vmem:[%s1631_s0 + $0x50] sm:$0xff]  }
  0x12   :  { %v160_v18 = vmul.f32 %v1211_v1, %v692_v11  ;;  %v695_v19 = vunpack.c.l.bf16 %v1090_v8  ;;  %v696_v20 = vunpack.c.h.bf16 %v1090_v8  ;;  %v823_v21 = vunpack.c.l.bf16 %v1121_v9  ;;  %v1125_v11 = vld [vmem:[%s1634_s3 + $0x50] sm:$0xff]  }
  0x13   :  { %v943_v23 = vpack.c.bf16 %v480_v14, %v479_v10  ;;  %v417_v24 = vadd.f32 %v815_v0, %v225_v15  ;;  %v418_v25 = vadd.f32 %v816_v2, %v226_v16  ;;  %v227_v26 = vadd.f32 %v1216_v4, %v159_v17 }
  0x14   :  { %v228_v27 = vadd.f32 %v1216_v4, %v160_v18  ;;  %v161_v28 = vmul.f32 %v1211_v1, %v695_v19  ;;  %v162_v29 = vmul.f32 %v1211_v1, %v696_v20  ;;  %v824_v30 = vunpack.c.h.bf16 %v1121_v9  ;;  %v1095_v20 = vld [vmem:[%s1631_s0 + $0x58] sm:$0xff]  }
  0x15   :  { %1149 = vst [vmem:[%s1635_s4 + $0x18] sm:$0xff] %v943_v23   ;;  %v481_v32 = vmax.f32 %v417_v24, 0.0  ;;  %v482_v33 = vmax.f32 %v418_v25, 0.0  ;;  %v419_v34 = vadd.f32 %v819_v12, %v227_v26  ;;  %v699_v35 = vunpack.c.l.bf16 %v1091_v22 }
  0x16   :  { %v420_v36 = vadd.f32 %v820_v13, %v228_v27  ;;  %v229_v37 = vadd.f32 %v1216_v4, %v161_v28  ;;  %v230_v38 = vadd.f32 %v1216_v4, %v162_v29  ;;  %v700_v39 = vunpack.c.h.bf16 %v1091_v22  ;;  %v1126_v29 = vld [vmem:[%s1634_s3 + $0x58] sm:$0xff]  }
  0x17   :  { %v948_v41 = vpack.c.bf16 %v482_v33, %v481_v32  ;;  %v483_v42 = vmax.f32 %v419_v34, 0.0  ;;  %v163_v43 = vmul.f32 %v1211_v1, %v699_v35  ;;  %v827_v44 = vunpack.c.l.bf16 %v1122_v31 }
  0x18   :  { %v484_v45 = vmax.f32 %v420_v36, 0.0  ;;  %v421_v46 = vadd.f32 %v823_v21, %v229_v37  ;;  %v422_v47 = vadd.f32 %v824_v30, %v230_v38  ;;  %v164_v48 = vmul.f32 %v1211_v1, %v700_v39  ;;  %v1096_v38 = vld [vmem:[%s1631_s0 + $0x60] sm:$0xff]  }
  0x19   :  { %1150 = vst [vmem:[%s1635_s4 + $0x20] sm:$0xff] %v948_v41   ;;  %v231_v50 = vadd.f32 %v1216_v4, %v163_v43  ;;  %v828_v51 = vunpack.c.h.bf16 %v1122_v31  ;;  %v703_v52 = vunpack.c.l.bf16 %v1092_v40  ;;  %v704_v53 = vunpack.c.h.bf16 %v1092_v40  ;;  %v1127_v43 = vld [vmem:[%s1634_s3 + $0x60] sm:$0xff]  }
  0x1a   :  { %v953_v55 = vpack.c.bf16 %v484_v45, %v483_v42  ;;  %v485_v56 = vmax.f32 %v421_v46, 0.0  ;;  %v486_v57 = vmax.f32 %v422_v47, 0.0  ;;  %v232_v58 = vadd.f32 %v1216_v4, %v164_v48 }
  0x1b   :  { %v423_v59 = vadd.f32 %v827_v44, %v231_v50  ;;  %v165_v60 = vmul.f32 %v1211_v1, %v703_v52  ;;  %v166_v61 = vmul.f32 %v1211_v1, %v704_v53  ;;  %v831_v62 = vunpack.c.l.bf16 %v1123_v49  ;;  %v1097_v52 = vld [vmem:[%s1631_s0 + $0x68] sm:$0xff]  }
  0x1c   :  { %1151 = vst [vmem:[%s1635_s4 + $0x28] sm:$0xff] %v953_v55   ;;  %v958_v0 = vpack.c.bf16 %v486_v57, %v485_v56  ;;  %v424_v2 = vadd.f32 %v828_v51, %v232_v58  ;;  %v832_v3 = vunpack.c.h.bf16 %v1123_v49  ;;  %v707_v5 = vunpack.c.l.bf16 %v1093_v54 }
  0x1d   :  { %v487_v7 = vmax.f32 %v423_v59, 0.0  ;;  %v233_v8 = vadd.f32 %v1216_v4, %v165_v60  ;;  %v234_v9 = vadd.f32 %v1216_v4, %v166_v61  ;;  %v708_v10 = vunpack.c.h.bf16 %v1093_v54  ;;  %v1128_v61 = vld [vmem:[%s1634_s3 + $0x68] sm:$0xff]  }
  0x1e   :  { %1152 = vst [vmem:[%s1635_s4 + $0x30] sm:$0xff] %v958_v0   ;;  %v488_v12 = vmax.f32 %v424_v2, 0.0  ;;  %v167_v13 = vmul.f32 %v1211_v1, %v707_v5  ;;  %v835_v14 = vunpack.c.l.bf16 %v1124_v63  ;;  %v836_v15 = vunpack.c.h.bf16 %v1124_v63 }
  0x1f   :  { %v425_v16 = vadd.f32 %v831_v62, %v233_v8  ;;  %v426_v17 = vadd.f32 %v832_v3, %v234_v9  ;;  %v168_v18 = vmul.f32 %v1211_v1, %v708_v10  ;;  %v711_v19 = vunpack.c.l.bf16 %v1094_v6  ;;  %v1098_v3 = vld [vmem:[%s1631_s0 + $0x70] sm:$0xff]  }
  0x20   :  { %v963_v21 = vpack.c.bf16 %v488_v12, %v487_v7  ;;  %v235_v22 = vadd.f32 %v1216_v4, %v167_v13  ;;  %v712_v23 = vunpack.c.h.bf16 %v1094_v6  ;;  %v839_v24 = vunpack.c.l.bf16 %v1125_v11  ;;  %v1129_v13 = vld [vmem:[%s1634_s3 + $0x70] sm:$0xff]  }
  0x21   :  { %v489_v25 = vmax.f32 %v425_v16, 0.0  ;;  %v490_v26 = vmax.f32 %v426_v17, 0.0  ;;  %v236_v27 = vadd.f32 %v1216_v4, %v168_v18  ;;  %v169_v28 = vmul.f32 %v1211_v1, %v711_v19 }
  0x22   :  { %1153 = vst [vmem:[%s1635_s4 + $0x38] sm:$0xff] %v963_v21   ;;  %v427_v30 = vadd.f32 %v835_v14, %v235_v22  ;;  %v170_v31 = vmul.f32 %v1211_v1, %v712_v23  ;;  %v840_v32 = vunpack.c.h.bf16 %v1125_v11  ;;  %v715_v33 = vunpack.c.l.bf16 %v1095_v20  ;;  %v1099_v22 = vld [vmem:[%s1631_s0 + $0x78] sm:$0xff]  }
  0x23   :  { %v968_v34 = vpack.c.bf16 %v490_v26, %v489_v25  ;;  %v428_v35 = vadd.f32 %v836_v15, %v236_v27  ;;  %v237_v36 = vadd.f32 %v1216_v4, %v169_v28  ;;  %v716_v37 = vunpack.c.h.bf16 %v1095_v20  ;;  %v1130_v27 = vld [vmem:[%s1634_s3 + $0x78] sm:$0xff]  }
  0x24   :  { %v491_v39 = vmax.f32 %v427_v30, 0.0  ;;  %v238_v40 = vadd.f32 %v1216_v4, %v170_v31  ;;  %v171_v41 = vmul.f32 %v1211_v1, %v715_v33  ;;  %v843_v42 = vunpack.c.l.bf16 %v1126_v29 }
  0x25   :  { %1154 = vst [vmem:[%s1635_s4 + $0x40] sm:$0xff] %v968_v34   ;;  %v492_v44 = vmax.f32 %v428_v35, 0.0  ;;  %v429_v45 = vadd.f32 %v839_v24, %v237_v36  ;;  %v172_v46 = vmul.f32 %v1211_v1, %v716_v37  ;;  %v844_v47 = vunpack.c.h.bf16 %v1126_v29  ;;  %v1100_v36 = vld [vmem:[%s1631_s0 + $0x80] sm:$0xff]  }
  0x26   :  { %v430_v48 = vadd.f32 %v840_v32, %v238_v40  ;;  %v239_v49 = vadd.f32 %v1216_v4, %v171_v41  ;;  %v719_v50 = vunpack.c.l.bf16 %v1096_v38  ;;  %v720_v51 = vunpack.c.h.bf16 %v1096_v38  ;;  %v1131_v41 = vld [vmem:[%s1634_s3 + $0x80] sm:$0xff]  }
  0x27   :  { %v973_v53 = vpack.c.bf16 %v492_v44, %v491_v39  ;;  %v493_v54 = vmax.f32 %v429_v45, 0.0  ;;  %v240_v55 = vadd.f32 %v1216_v4, %v172_v46  ;;  %v847_v56 = vunpack.c.l.bf16 %v1127_v43 }
  0x28   :  { %v494_v57 = vmax.f32 %v430_v48, 0.0  ;;  %v431_v58 = vadd.f32 %v843_v42, %v239_v49  ;;  %v173_v59 = vmul.f32 %v1211_v1, %v719_v50  ;;  %v174_v60 = vmul.f32 %v1211_v1, %v720_v51  ;;  %v1101_v50 = vld [vmem:[%s1631_s0 + $0x88] sm:$0xff]  }
  0x29   :  { %1155 = vst [vmem:[%s1635_s4 + $0x48] sm:$0xff] %v973_v53   ;;  %v432_v62 = vadd.f32 %v844_v47, %v240_v55  ;;  %v848_v63 = vunpack.c.h.bf16 %v1127_v43  ;;  %v723_v0 = vunpack.c.l.bf16 %v1097_v52  ;;  %v724_v2 = vunpack.c.h.bf16 %v1097_v52  ;;  %v1132_v55 = vld [vmem:[%s1634_s3 + $0x88] sm:$0xff]  }
  0x2a   :  { %v978_v5 = vpack.c.bf16 %v494_v57, %v493_v54  ;;  %v495_v6 = vmax.f32 %v431_v58, 0.0  ;;  %v241_v7 = vadd.f32 %v1216_v4, %v173_v59  ;;  %v242_v8 = vadd.f32 %v1216_v4, %v174_v60 }
  0x2b   :  { %v496_v9 = vmax.f32 %v432_v62, 0.0  ;;  %v175_v10 = vmul.f32 %v1211_v1, %v723_v0  ;;  %v176_v11 = vmul.f32 %v1211_v1, %v724_v2  ;;  %v851_v12 = vunpack.c.l.bf16 %v1128_v61  ;;  %v1102_v0 = vld [vmem:[%s1631_s0 + $0x90] sm:$0xff]  }
  0x2c   :  { %1156 = vst [vmem:[%s1635_s4 + $0x50] sm:$0xff] %v978_v5   ;;  %v433_v14 = vadd.f32 %v847_v56, %v241_v7  ;;  %v434_v15 = vadd.f32 %v848_v63, %v242_v8  ;;  %v852_v16 = vunpack.c.h.bf16 %v1128_v61  ;;  %v727_v17 = vunpack.c.l.bf16 %v1098_v3 }
  0x2d   :  { %v983_v18 = vpack.c.bf16 %v496_v9, %v495_v6  ;;  %v243_v19 = vadd.f32 %v1216_v4, %v175_v10  ;;  %v244_v20 = vadd.f32 %v1216_v4, %v176_v11  ;;  %v728_v21 = vunpack.c.h.bf16 %v1098_v3  ;;  %v1133_v11 = vld [vmem:[%s1634_s3 + $0x90] sm:$0xff]  }
  0x2e   :  { %v497_v23 = vmax.f32 %v433_v14, 0.0  ;;  %v498_v24 = vmax.f32 %v434_v15, 0.0  ;;  %v177_v25 = vmul.f32 %v1211_v1, %v727_v17  ;;  %v855_v26 = vunpack.c.l.bf16 %v1129_v13 }
  0x2f   :  { %1157 = vst [vmem:[%s1635_s4 + $0x58] sm:$0xff] %v983_v18   ;;  %v435_v28 = vadd.f32 %v851_v12, %v243_v19  ;;  %v436_v29 = vadd.f32 %v852_v16, %v244_v20  ;;  %v178_v30 = vmul.f32 %v1211_v1, %v728_v21  ;;  %v856_v31 = vunpack.c.h.bf16 %v1129_v13  ;;  %v1103_v20 = vld [vmem:[%s1631_s0 + $0x98] sm:$0xff]  }
  0x30   :  { %v988_v32 = vpack.c.bf16 %v498_v24, %v497_v23  ;;  %v245_v33 = vadd.f32 %v1216_v4, %v177_v25  ;;  %v731_v34 = vunpack.c.l.bf16 %v1099_v22  ;;  %v732_v35 = vunpack.c.h.bf16 %v1099_v22  ;;  %v1134_v25 = vld [vmem:[%s1634_s3 + $0x98] sm:$0xff]  }
  0x31   :  { %v499_v37 = vmax.f32 %v435_v28, 0.0  ;;  %v500_v38 = vmax.f32 %v436_v29, 0.0  ;;  %v246_v39 = vadd.f32 %v1216_v4, %v178_v30  ;;  %v859_v40 = vunpack.c.l.bf16 %v1130_v27 }
  0x32   :  { %1158 = vst [vmem:[%s1635_s4 + $0x60] sm:$0xff] %v988_v32   ;;  %v437_v42 = vadd.f32 %v855_v26, %v245_v33  ;;  %v179_v43 = vmul.f32 %v1211_v1, %v731_v34  ;;  %v180_v44 = vmul.f32 %v1211_v1, %v732_v35  ;;  %v860_v45 = vunpack.c.h.bf16 %v1130_v27  ;;  %v1104_v34 = vld [vmem:[%s1631_s0 + $0xa0] sm:$0xff]  }
  0x33   :  { %v993_v46 = vpack.c.bf16 %v500_v38, %v499_v37  ;;  %v438_v47 = vadd.f32 %v856_v31, %v246_v39  ;;  %v735_v48 = vunpack.c.l.bf16 %v1100_v36  ;;  %v736_v49 = vunpack.c.h.bf16 %v1100_v36  ;;  %v1135_v39 = vld [vmem:[%s1634_s3 + $0xa0] sm:$0xff]  }
  0x34   :  { %v501_v51 = vmax.f32 %v437_v42, 0.0  ;;  %v247_v52 = vadd.f32 %v1216_v4, %v179_v43  ;;  %v248_v53 = vadd.f32 %v1216_v4, %v180_v44  ;;  %v863_v54 = vunpack.c.l.bf16 %v1131_v41 }
  0x35   :  { %1159 = vst [vmem:[%s1635_s4 + $0x68] sm:$0xff] %v993_v46   ;;  %v502_v56 = vmax.f32 %v438_v47, 0.0  ;;  %v181_v57 = vmul.f32 %v1211_v1, %v735_v48  ;;  %v182_v58 = vmul.f32 %v1211_v1, %v736_v49  ;;  %v864_v59 = vunpack.c.h.bf16 %v1131_v41  ;;  %v1105_v48 = vld [vmem:[%s1631_s0 + $0xa8] sm:$0xff]  }
  0x36   :  { %v439_v60 = vadd.f32 %v859_v40, %v247_v52  ;;  %v440_v61 = vadd.f32 %v860_v45, %v248_v53  ;;  %v739_v62 = vunpack.c.l.bf16 %v1101_v50  ;;  %v740_v63 = vunpack.c.h.bf16 %v1101_v50  ;;  %v1136_v53 = vld [vmem:[%s1634_s3 + $0xa8] sm:$0xff]  }
  0x37   :  { %v998_v2 = vpack.c.bf16 %v502_v56, %v501_v51  ;;  %v249_v3 = vadd.f32 %v1216_v4, %v181_v57  ;;  %v250_v5 = vadd.f32 %v1216_v4, %v182_v58  ;;  %v867_v6 = vunpack.c.l.bf16 %v1132_v55 }
  0x38   :  { %v503_v7 = vmax.f32 %v439_v60, 0.0  ;;  %v504_v8 = vmax.f32 %v440_v61, 0.0  ;;  %v183_v9 = vmul.f32 %v1211_v1, %v739_v62  ;;  %v184_v10 = vmul.f32 %v1211_v1, %v740_v63  ;;  %v1106_v62 = vld [vmem:[%s1631_s0 + $0xb0] sm:$0xff]  }
  0x39   :  { %1160 = vst [vmem:[%s1635_s4 + $0x70] sm:$0xff] %v998_v2   ;;  %v441_v12 = vadd.f32 %v863_v54, %v249_v3  ;;  %v442_v13 = vadd.f32 %v864_v59, %v250_v5  ;;  %v868_v14 = vunpack.c.h.bf16 %v1132_v55  ;;  %v743_v15 = vunpack.c.l.bf16 %v1102_v0 }
  0x3a   :  { %v1003_v16 = vpack.c.bf16 %v504_v8, %v503_v7  ;;  %v251_v17 = vadd.f32 %v1216_v4, %v183_v9  ;;  %v252_v18 = vadd.f32 %v1216_v4, %v184_v10  ;;  %v744_v19 = vunpack.c.h.bf16 %v1102_v0  ;;  %v1137_v9 = vld [vmem:[%s1634_s3 + $0xb0] sm:$0xff]  }
  0x3b   :  { %v505_v21 = vmax.f32 %v441_v12, 0.0  ;;  %v506_v22 = vmax.f32 %v442_v13, 0.0  ;;  %v185_v23 = vmul.f32 %v1211_v1, %v743_v15  ;;  %v871_v24 = vunpack.c.l.bf16 %v1133_v11 }
  0x3c   :  { %1161 = vst [vmem:[%s1635_s4 + $0x78] sm:$0xff] %v1003_v16   ;;  %v443_v26 = vadd.f32 %v867_v6, %v251_v17  ;;  %v444_v27 = vadd.f32 %v868_v14, %v252_v18  ;;  %v186_v28 = vmul.f32 %v1211_v1, %v744_v19  ;;  %v872_v29 = vunpack.c.h.bf16 %v1133_v11  ;;  %v1107_v18 = vld [vmem:[%s1631_s0 + $0xb8] sm:$0xff]  }
  0x3d   :  { %v1008_v30 = vpack.c.bf16 %v506_v22, %v505_v21  ;;  %v253_v31 = vadd.f32 %v1216_v4, %v185_v23  ;;  %v747_v32 = vunpack.c.l.bf16 %v1103_v20  ;;  %v748_v33 = vunpack.c.h.bf16 %v1103_v20  ;;  %v1138_v23 = vld [vmem:[%s1634_s3 + $0xb8] sm:$0xff]  }
  0x3e   :  { %v507_v35 = vmax.f32 %v443_v26, 0.0  ;;  %v508_v36 = vmax.f32 %v444_v27, 0.0  ;;  %v254_v37 = vadd.f32 %v1216_v4, %v186_v28  ;;  %v875_v38 = vunpack.c.l.bf16 %v1134_v25 }
  0x3f   :  { %1162 = vst [vmem:[%s1635_s4 + $0x80] sm:$0xff] %v1008_v30   ;;  %v445_v40 = vadd.f32 %v871_v24, %v253_v31  ;;  %v187_v41 = vmul.f32 %v1211_v1, %v747_v32  ;;  %v188_v42 = vmul.f32 %v1211_v1, %v748_v33  ;;  %v876_v43 = vunpack.c.h.bf16 %v1134_v25  ;;  %v1108_v32 = vld [vmem:[%s1631_s0 + $0xc0] sm:$0xff]  }
  0x40   :  { %v1013_v44 = vpack.c.bf16 %v508_v36, %v507_v35  ;;  %v446_v45 = vadd.f32 %v872_v29, %v254_v37  ;;  %v751_v46 = vunpack.c.l.bf16 %v1104_v34  ;;  %v752_v47 = vunpack.c.h.bf16 %v1104_v34  ;;  %v1139_v37 = vld [vmem:[%s1634_s3 + $0xc0] sm:$0xff]  }
  0x41   :  { %v509_v49 = vmax.f32 %v445_v40, 0.0  ;;  %v255_v50 = vadd.f32 %v1216_v4, %v187_v41  ;;  %v256_v51 = vadd.f32 %v1216_v4, %v188_v42  ;;  %v879_v52 = vunpack.c.l.bf16 %v1135_v39 }
  0x42   :  { %1163 = vst [vmem:[%s1635_s4 + $0x88] sm:$0xff] %v1013_v44   ;;  %v510_v54 = vmax.f32 %v446_v45, 0.0  ;;  %v189_v55 = vmul.f32 %v1211_v1, %v751_v46  ;;  %v190_v56 = vmul.f32 %v1211_v1, %v752_v47  ;;  %v880_v57 = vunpack.c.h.bf16 %v1135_v39  ;;  %v1109_v46 = vld [vmem:[%s1631_s0 + $0xc8] sm:$0xff]  }
  0x43   :  { %v447_v58 = vadd.f32 %v875_v38, %v255_v50  ;;  %v448_v59 = vadd.f32 %v876_v43, %v256_v51  ;;  %v755_v60 = vunpack.c.l.bf16 %v1105_v48  ;;  %v756_v61 = vunpack.c.h.bf16 %v1105_v48  ;;  %v1140_v51 = vld [vmem:[%s1634_s3 + $0xc8] sm:$0xff]  }
  0x44   :  { %v1018_v63 = vpack.c.bf16 %v510_v54, %v509_v49  ;;  %v257_v0 = vadd.f32 %v1216_v4, %v189_v55  ;;  %v258_v2 = vadd.f32 %v1216_v4, %v190_v56  ;;  %v883_v3 = vunpack.c.l.bf16 %v1136_v53 }
  0x45   :  { %v511_v5 = vmax.f32 %v447_v58, 0.0  ;;  %v512_v6 = vmax.f32 %v448_v59, 0.0  ;;  %v191_v7 = vmul.f32 %v1211_v1, %v755_v60  ;;  %v192_v8 = vmul.f32 %v1211_v1, %v756_v61  ;;  %v1110_v60 = vld [vmem:[%s1631_s0 + $0xd0] sm:$0xff]  }
  0x46   :  { %1164 = vst [vmem:[%s1635_s4 + $0x90] sm:$0xff] %v1018_v63   ;;  %v449_v10 = vadd.f32 %v879_v52, %v257_v0  ;;  %v450_v11 = vadd.f32 %v880_v57, %v258_v2  ;;  %v884_v12 = vunpack.c.h.bf16 %v1136_v53  ;;  %v759_v13 = vunpack.c.l.bf16 %v1106_v62 }
  0x47   :  { %v1023_v14 = vpack.c.bf16 %v512_v6, %v511_v5  ;;  %v259_v15 = vadd.f32 %v1216_v4, %v191_v7  ;;  %v260_v16 = vadd.f32 %v1216_v4, %v192_v8  ;;  %v760_v17 = vunpack.c.h.bf16 %v1106_v62  ;;  %v1141_v7 = vld [vmem:[%s1634_s3 + $0xd0] sm:$0xff]  }
  0x48   :  { %v513_v19 = vmax.f32 %v449_v10, 0.0  ;;  %v514_v20 = vmax.f32 %v450_v11, 0.0  ;;  %v193_v21 = vmul.f32 %v1211_v1, %v759_v13  ;;  %v887_v22 = vunpack.c.l.bf16 %v1137_v9 }
  0x49   :  { %1165 = vst [vmem:[%s1635_s4 + $0x98] sm:$0xff] %v1023_v14   ;;  %v451_v24 = vadd.f32 %v883_v3, %v259_v15  ;;  %v452_v25 = vadd.f32 %v884_v12, %v260_v16  ;;  %v194_v26 = vmul.f32 %v1211_v1, %v760_v17  ;;  %v888_v27 = vunpack.c.h.bf16 %v1137_v9  ;;  %v1111_v16 = vld [vmem:[%s1631_s0 + $0xd8] sm:$0xff]  }
  0x4a   :  { %v1028_v28 = vpack.c.bf16 %v514_v20, %v513_v19  ;;  %v261_v29 = vadd.f32 %v1216_v4, %v193_v21  ;;  %v763_v30 = vunpack.c.l.bf16 %v1107_v18  ;;  %v764_v31 = vunpack.c.h.bf16 %v1107_v18  ;;  %v1142_v21 = vld [vmem:[%s1634_s3 + $0xd8] sm:$0xff]  }
  0x4b   :  { %v515_v33 = vmax.f32 %v451_v24, 0.0  ;;  %v516_v34 = vmax.f32 %v452_v25, 0.0  ;;  %v262_v35 = vadd.f32 %v1216_v4, %v194_v26  ;;  %v891_v36 = vunpack.c.l.bf16 %v1138_v23 }
  0x4c   :  { %1166 = vst [vmem:[%s1635_s4 + $0xa0] sm:$0xff] %v1028_v28   ;;  %v453_v38 = vadd.f32 %v887_v22, %v261_v29  ;;  %v195_v39 = vmul.f32 %v1211_v1, %v763_v30  ;;  %v196_v40 = vmul.f32 %v1211_v1, %v764_v31  ;;  %v892_v41 = vunpack.c.h.bf16 %v1138_v23  ;;  %v1112_v30 = vld [vmem:[%s1631_s0 + $0xe0] sm:$0xff]  }
  0x4d   :  { %v1033_v42 = vpack.c.bf16 %v516_v34, %v515_v33  ;;  %v454_v43 = vadd.f32 %v888_v27, %v262_v35  ;;  %v767_v44 = vunpack.c.l.bf16 %v1108_v32  ;;  %v768_v45 = vunpack.c.h.bf16 %v1108_v32  ;;  %v1143_v35 = vld [vmem:[%s1634_s3 + $0xe0] sm:$0xff]  }
  0x4e   :  { %v517_v47 = vmax.f32 %v453_v38, 0.0  ;;  %v263_v48 = vadd.f32 %v1216_v4, %v195_v39  ;;  %v264_v49 = vadd.f32 %v1216_v4, %v196_v40  ;;  %v895_v50 = vunpack.c.l.bf16 %v1139_v37 }
  0x4f   :  { %1167 = vst [vmem:[%s1635_s4 + $0xa8] sm:$0xff] %v1033_v42   ;;  %v518_v52 = vmax.f32 %v454_v43, 0.0  ;;  %v197_v53 = vmul.f32 %v1211_v1, %v767_v44  ;;  %v198_v54 = vmul.f32 %v1211_v1, %v768_v45  ;;  %v896_v55 = vunpack.c.h.bf16 %v1139_v37  ;;  %v1113_v44 = vld [vmem:[%s1631_s0 + $0xe8] sm:$0xff]  }
  0x50   :  { %v455_v56 = vadd.f32 %v891_v36, %v263_v48  ;;  %v456_v57 = vadd.f32 %v892_v41, %v264_v49  ;;  %v771_v58 = vunpack.c.l.bf16 %v1109_v46  ;;  %v772_v59 = vunpack.c.h.bf16 %v1109_v46  ;;  %v1144_v49 = vld [vmem:[%s1634_s3 + $0xe8] sm:$0xff]  }
  0x51   :  { %v1038_v61 = vpack.c.bf16 %v518_v52, %v517_v47  ;;  %v265_v62 = vadd.f32 %v1216_v4, %v197_v53  ;;  %v266_v63 = vadd.f32 %v1216_v4, %v198_v54  ;;  %v899_v0 = vunpack.c.l.bf16 %v1140_v51 }
  0x52   :  { %v519_v2 = vmax.f32 %v455_v56, 0.0  ;;  %v520_v3 = vmax.f32 %v456_v57, 0.0  ;;  %v199_v5 = vmul.f32 %v1211_v1, %v771_v58  ;;  %v200_v6 = vmul.f32 %v1211_v1, %v772_v59  ;;  %v1114_v58 = vld [vmem:[%s1631_s0 + $0xf0] sm:$0xff]  }
  0x53   :  { %1168 = vst [vmem:[%s1635_s4 + $0xb0] sm:$0xff] %v1038_v61   ;;  %v457_v8 = vadd.f32 %v895_v50, %v265_v62  ;;  %v458_v9 = vadd.f32 %v896_v55, %v266_v63  ;;  %v900_v10 = vunpack.c.h.bf16 %v1140_v51  ;;  %v775_v11 = vunpack.c.l.bf16 %v1110_v60 }
  0x54   :  { %v1043_v12 = vpack.c.bf16 %v520_v3, %v519_v2  ;;  %v267_v13 = vadd.f32 %v1216_v4, %v199_v5  ;;  %v268_v14 = vadd.f32 %v1216_v4, %v200_v6  ;;  %v776_v15 = vunpack.c.h.bf16 %v1110_v60  ;;  %v1145_v5 = vld [vmem:[%s1634_s3 + $0xf0] sm:$0xff]  }
  0x55   :  { %v521_v17 = vmax.f32 %v457_v8, 0.0  ;;  %v522_v18 = vmax.f32 %v458_v9, 0.0  ;;  %v201_v19 = vmul.f32 %v1211_v1, %v775_v11  ;;  %v903_v20 = vunpack.c.l.bf16 %v1141_v7 }
  0x56   :  { %1169 = vst [vmem:[%s1635_s4 + $0xb8] sm:$0xff] %v1043_v12   ;;  %v459_v22 = vadd.f32 %v899_v0, %v267_v13  ;;  %v460_v23 = vadd.f32 %v900_v10, %v268_v14  ;;  %v202_v24 = vmul.f32 %v1211_v1, %v776_v15  ;;  %v904_v25 = vunpack.c.h.bf16 %v1141_v7  ;;  %v1115_v14 = vld [vmem:[%s1631_s0 + $0xf8] sm:$0xff]  }
  0x57   :  { %v1048_v26 = vpack.c.bf16 %v522_v18, %v521_v17  ;;  %v269_v27 = vadd.f32 %v1216_v4, %v201_v19  ;;  %v779_v28 = vunpack.c.l.bf16 %v1111_v16  ;;  %v780_v29 = vunpack.c.h.bf16 %v1111_v16  ;;  %v1146_v19 = vld [vmem:[%s1634_s3 + $0xf8] sm:$0xff]  }
  0x58   :  { %v523_v31 = vmax.f32 %v459_v22, 0.0  ;;  %v524_v32 = vmax.f32 %v460_v23, 0.0  ;;  %v270_v33 = vadd.f32 %v1216_v4, %v202_v24  ;;  %v907_v34 = vunpack.c.l.bf16 %v1142_v21 }
  0x59   :  { %1170 = vst [vmem:[%s1635_s4 + $0xc0] sm:$0xff] %v1048_v26   ;;  %v461_v36 = vadd.f32 %v903_v20, %v269_v27  ;;  %v203_v37 = vmul.f32 %v1211_v1, %v779_v28  ;;  %v204_v38 = vmul.f32 %v1211_v1, %v780_v29  ;;  %v908_v39 = vunpack.c.h.bf16 %v1142_v21 }
  0x5a   :  { %v1053_v40 = vpack.c.bf16 %v524_v32, %v523_v31  ;;  %v462_v41 = vadd.f32 %v904_v25, %v270_v33  ;;  %v783_v42 = vunpack.c.l.bf16 %v1112_v30  ;;  %v784_v43 = vunpack.c.h.bf16 %v1112_v30 }
  0x5b   :  { %v525_v45 = vmax.f32 %v461_v36, 0.0  ;;  %v271_v46 = vadd.f32 %v1216_v4, %v203_v37  ;;  %v272_v47 = vadd.f32 %v1216_v4, %v204_v38  ;;  %v911_v48 = vunpack.c.l.bf16 %v1143_v35 }
  0x5c   :  { %1171 = vst [vmem:[%s1635_s4 + $0xc8] sm:$0xff] %v1053_v40   ;;  %v526_v50 = vmax.f32 %v462_v41, 0.0  ;;  %v205_v51 = vmul.f32 %v1211_v1, %v783_v42  ;;  %v206_v52 = vmul.f32 %v1211_v1, %v784_v43  ;;  %v912_v53 = vunpack.c.h.bf16 %v1143_v35 }
  0x5d   :  { %v463_v54 = vadd.f32 %v907_v34, %v271_v46  ;;  %v464_v55 = vadd.f32 %v908_v39, %v272_v47  ;;  %v787_v56 = vunpack.c.l.bf16 %v1113_v44  ;;  %v788_v57 = vunpack.c.h.bf16 %v1113_v44 }
  0x5e   :  { %v1058_v59 = vpack.c.bf16 %v526_v50, %v525_v45  ;;  %v273_v60 = vadd.f32 %v1216_v4, %v205_v51  ;;  %v274_v61 = vadd.f32 %v1216_v4, %v206_v52  ;;  %v915_v62 = vunpack.c.l.bf16 %v1144_v49 }
  0x5f   :  { %v527_v63 = vmax.f32 %v463_v54, 0.0  ;;  %v528_v0 = vmax.f32 %v464_v55, 0.0  ;;  %v207_v2 = vmul.f32 %v1211_v1, %v787_v56  ;;  %v208_v3 = vmul.f32 %v1211_v1, %v788_v57 }
  0x60   :  { %1172 = vst [vmem:[%s1635_s4 + $0xd0] sm:$0xff] %v1058_v59   ;;  %v465_v6 = vadd.f32 %v911_v48, %v273_v60  ;;  %v466_v7 = vadd.f32 %v912_v53, %v274_v61  ;;  %v916_v8 = vunpack.c.h.bf16 %v1144_v49  ;;  %v791_v9 = vunpack.c.l.bf16 %v1114_v58 }
  0x61   :  { %v1063_v10 = vpack.c.bf16 %v528_v0, %v527_v63  ;;  %v275_v11 = vadd.f32 %v1216_v4, %v207_v2  ;;  %v276_v12 = vadd.f32 %v1216_v4, %v208_v3  ;;  %v792_v13 = vunpack.c.h.bf16 %v1114_v58 }
  0x62   :  { %v529_v15 = vmax.f32 %v465_v6, 0.0  ;;  %v530_v16 = vmax.f32 %v466_v7, 0.0  ;;  %v209_v17 = vmul.f32 %v1211_v1, %v791_v9  ;;  %v919_v18 = vunpack.c.l.bf16 %v1145_v5 }
  0x63   :  { %1173 = vst [vmem:[%s1635_s4 + $0xd8] sm:$0xff] %v1063_v10   ;;  %v467_v20 = vadd.f32 %v915_v62, %v275_v11  ;;  %v468_v21 = vadd.f32 %v916_v8, %v276_v12  ;;  %v210_v22 = vmul.f32 %v1211_v1, %v792_v13  ;;  %v920_v23 = vunpack.c.h.bf16 %v1145_v5 }
  0x64   :  { %v1068_v24 = vpack.c.bf16 %v530_v16, %v529_v15  ;;  %v277_v25 = vadd.f32 %v1216_v4, %v209_v17  ;;  %v795_v26 = vunpack.c.l.bf16 %v1115_v14  ;;  %v796_v27 = vunpack.c.h.bf16 %v1115_v14 }
  0x65   :  { %v531_v28 = vmax.f32 %v467_v20, 0.0  ;;  %v532_v29 = vmax.f32 %v468_v21, 0.0  ;;  %v278_v30 = vadd.f32 %v1216_v4, %v210_v22  ;;  %v923_v31 = vunpack.c.l.bf16 %v1146_v19 }
  0x66   :  { %1174 = vst [vmem:[%s1635_s4 + $0xe0] sm:$0xff] %v1068_v24   ;;  %v469_v32 = vadd.f32 %v919_v18, %v277_v25  ;;  %v211_v33 = vmul.f32 %v1211_v1, %v795_v26  ;;  %v212_v34 = vmul.f32 %v1211_v1, %v796_v27  ;;  %v924_v35 = vunpack.c.h.bf16 %v1146_v19 }
  0x67   :  { %v1073_v36 = vpack.c.bf16 %v532_v29, %v531_v28  ;;  %v470_v37 = vadd.f32 %v920_v23, %v278_v30 }
  0x68   :  { %v533_v38 = vmax.f32 %v469_v32, 0.0  ;;  %v279_v39 = vadd.f32 %v1216_v4, %v211_v33  ;;  %v280_v40 = vadd.f32 %v1216_v4, %v212_v34 }
  0x69   :  { %1175 = vst [vmem:[%s1635_s4 + $0xe8] sm:$0xff] %v1073_v36   ;;  %v534_v41 = vmax.f32 %v470_v37, 0.0 }
  0x6a   :  { %v471_v42 = vadd.f32 %v923_v31, %v279_v39  ;;  %v472_v43 = vadd.f32 %v924_v35, %v280_v40 }
  0x6b   :  { %v1078_v44 = vpack.c.bf16 %v534_v41, %v533_v38 }
  0x6c   :  { %v535_v45 = vmax.f32 %v471_v42, 0.0  ;;  %v536_v46 = vmax.f32 %v472_v43, 0.0 }
  0x6d   :  { %1176 = vst [vmem:[%s1635_s4 + $0xf0] sm:$0xff] %v1078_v44  }
  0x6e   :  { %v1083_v1 = vpack.c.bf16 %v536_v46, %v535_v45 }
  0x70   :  { %1177 = vst [vmem:[%s1635_s4 + $0xf8] sm:$0xff] %v1083_v1  }

// kernel: resnet_forward.41
= control target key start
LH: loop header
LB: loop body
LE: loop exit
PB: predicated region body
PF: predicated region fallthrough
CT: control target
= control target key end

     0   :  { %s2453_s15 = smov 0   ;;  %s2455_s16 = smov 0   ;;  %s3003_s0 = inlined_call_operand.vmem [shape: bf16[512,1152], index: 0, kind: input, shape index: {}]   ;;  %s3004_s1 = inlined_call_operand.vmem [shape: bf16[1152,128], index: 1, kind: input, shape index: {}]   ;;  %s3005_s2 = inlined_call_operand.vmem [shape: bf16[512,128], index: 2, kind: output, shape index: {0}]   ;;  %s3006_s3 = inlined_call_operand.vmem [shape: f32[2,1,128], index: 3, kind: output, shape index: {1}]   ;;  %s3007_s4 = inlined_call_operand.vmem [shape: f32[2,1,128], index: 4, kind: output, shape index: {2}]  }
   0x1   :  { %s2457_s17 = smov 0   ;;  %s2459_s18 = smov 0  }
   0x2   :  { %s2461_s19 = smov 0   ;;  %s2463_s20 = smov 0  }
   0x3   :  { %s2465_s21 = smov 0  }
   0x4 LB: > { %s27_s22 = sadd.s32 1, %s2417_s19  ;;  %s34_s23 = sadd.s32 1, %s2421_s20  ;;  %s2425_s21 = sphi %s2465_s21, %s15_s21   ;;  %s2421_s20 = sphi %s2463_s20, %s3013_s20   ;;  %s2417_s19 = sphi %s2461_s19, %s3012_s19   ;;  %s2413_s18 = sphi %s2459_s18, %s3011_s18   ;;  %s2409_s17 = sphi %s2457_s17, %s3010_s17   ;;  %s2405_s16 = sphi %s2455_s16, %s3009_s16   ;;  %s2401_s15 = sphi %s2453_s15, %s3008_s15  }
   0x5   : > { %p28_p0 = scmp.ge.s32.totalorder %s27_s22, 3  ;;  %p50_p1 = scmp.ne.s32.totalorder %s2405_s16, %s2401_s15 }
   0x6   : > { %p51_p2 = scmp.eq.s32.totalorder %s2425_s21, 0  ;;  %s43_s27 = sadd.s32 1, %s2405_s16 }
   0x7   : > { %s3015_s22 = smov (%p28_p0, %s27_s22), 0  ;;  %s3017_s23 = smov (!%p28_p0, %s34_s23), %s2421_s20 }
   0x8   : > { %p52_p3 = por %p51_p2, %p50_p1  ;;  %p36_p4 = scmp.ge.s32.totalorder %s3017_s23, 2 }
   0x9   : > { %s39_s24 = ssub.s32 %s2417_s19, %s3015_s22  ;;  %p1756_p6 = scmp.ge.s32.totalorder %s2425_s21, 6 }
   0xa   : > { %s3019_s23 = smov (%p36_p4, %s3017_s23), 0 }
   0xb   : > { %s38_s25 = ssub.s32 %s2421_s20, %s3019_s23  ;;  %188 = sbr.rel (%p1756_p6) target bundleno = 89 (0x59), region = 16 }
   0xc   : > { %s40_s26 = sor.u32 %s39_s24, %s38_s25 }
   0xd   : > { %p41_p5 = scmp.eq.s32.totalorder %s40_s26, 0 }
   0xf   : > { %s2504_s28 = scalar_select %p41_p5, %s2405_s16, %s43_s27  }
  0x10   : > { %191 = sbr.rel (!%p52_p3) target bundleno = 89 (0x59), region = 20  ;;  %s193_s29 = sand.u32 (%p52_p3), 1, %s2405_s16  }
  0x11   : > { %s197_s30 = smul.u32 (%p52_p3), 3, %s2417_s19 }
  0x12   : > { %s2311_s5 = smul.u32 (%p52_p3), 384, %s193_s29 }
  0x13   : > { %s2312_s6 = smul.u32 (%p52_p3), 288, %s2421_s20 }
  0x14   : > { %s2518_s12 = scalar_lea.vmem (%p52_p3), [#allocation3], %s2311_s5 }
  0x15   : > { %s199_s7 = sadd.s32 %s2312_s6, %s197_s30 }
  0x16   : > { %s1759_s8 = sshll.u32 %s199_s7, 2 }
  0x17   : > { %s2513_s11 = scalar_lea.vmem %s3003_s0, %s1759_s8 }
  0x18   : > { %v216_v0 = vld [vmem:[%s2513_s11] sm:$0xff]  ;;  %v220_v2 = vld [vmem:[%s2513_s11 + $0x48] sm:$0xff]  ;;  %v224_v4 = vld [vmem:[%s2513_s11 + $0x90] sm:$0xff] }
  0x19   : > { %v218_v1 = vld [vmem:[%s2513_s11 + $0x24] sm:$0xff]  ;;  %217 = vst [vmem:[%s2518_s12] sm:$0xff] %v216_v0  ;;  %v222_v3 = vld [vmem:[%s2513_s11 + $0x6c] sm:$0xff]  ;;  %v226_v5 = vld [vmem:[%s2513_s11 + $0xb4] sm:$0xff] }
  0x1a   : > { %219 = vst [vmem:[%s2518_s12 + $0xc] sm:$0xff] %v218_v1  ;;  %v228_v6 = vld [vmem:[%s2513_s11 + $0xd8] sm:$0xff]  ;;  %v232_v8 = vld [vmem:[%s2513_s11 + $0x120] sm:$0xff]  ;;  %v236_v10 = vld [vmem:[%s2513_s11 + $0x168] sm:$0xff] }
  0x1b   : > { %221 = vst [vmem:[%s2518_s12 + $0x18] sm:$0xff] %v220_v2  ;;  %v230_v7 = vld [vmem:[%s2513_s11 + $0xfc] sm:$0xff]  ;;  %v234_v9 = vld [vmem:[%s2513_s11 + $0x144] sm:$0xff]  ;;  %v238_v11 = vld [vmem:[%s2513_s11 + $0x18c] sm:$0xff] }
  0x1c   : > { %223 = vst [vmem:[%s2518_s12 + $0x24] sm:$0xff] %v222_v3  ;;  %v240_v12 = vld [vmem:[%s2513_s11 + $0x1b0] sm:$0xff]  ;;  %v244_v14 = vld [vmem:[%s2513_s11 + $0x1f8] sm:$0xff]  ;;  %v248_v16 = vld [vmem:[%s2513_s11 + $0x240] sm:$0xff] }
  0x1d   : > { %225 = vst [vmem:[%s2518_s12 + $0x30] sm:$0xff] %v224_v4  ;;  %v242_v13 = vld [vmem:[%s2513_s11 + $0x1d4] sm:$0xff]  ;;  %v246_v15 = vld [vmem:[%s2513_s11 + $0x21c] sm:$0xff]  ;;  %v250_v17 = vld [vmem:[%s2513_s11 + $0x264] sm:$0xff] }
  0x1e   : > { %227 = vst [vmem:[%s2518_s12 + $0x3c] sm:$0xff] %v226_v5  ;;  %v252_v18 = vld [vmem:[%s2513_s11 + $0x288] sm:$0xff]  ;;  %v256_v20 = vld [vmem:[%s2513_s11 + $0x2d0] sm:$0xff]  ;;  %v260_v22 = vld [vmem:[%s2513_s11 + $0x318] sm:$0xff] }
  0x1f   : > { %229 = vst [vmem:[%s2518_s12 + $0x48] sm:$0xff] %v228_v6  ;;  %v254_v19 = vld [vmem:[%s2513_s11 + $0x2ac] sm:$0xff]  ;;  %v258_v21 = vld [vmem:[%s2513_s11 + $0x2f4] sm:$0xff]  ;;  %v262_v23 = vld [vmem:[%s2513_s11 + $0x33c] sm:$0xff] }
  0x20   : > { %231 = vst [vmem:[%s2518_s12 + $0x54] sm:$0xff] %v230_v7  ;;  %v264_v24 = vld [vmem:[%s2513_s11 + $0x360] sm:$0xff]  ;;  %v268_v26 = vld [vmem:[%s2513_s11 + $0x3a8] sm:$0xff]  ;;  %v272_v28 = vld [vmem:[%s2513_s11 + $0x3f0] sm:$0xff] }
  0x21   : > { %233 = vst [vmem:[%s2518_s12 + $0x60] sm:$0xff] %v232_v8  ;;  %v266_v25 = vld [vmem:[%s2513_s11 + $0x384] sm:$0xff]  ;;  %v270_v27 = vld [vmem:[%s2513_s11 + $0x3cc] sm:$0xff]  ;;  %v274_v29 = vld [vmem:[%s2513_s11 + $0x414] sm:$0xff] }
  0x22   : > { %235 = vst [vmem:[%s2518_s12 + $0x6c] sm:$0xff] %v234_v9  ;;  %v276_v30 = vld [vmem:[%s2513_s11 + $0x438] sm:$0xff]  ;;  %v1760_v32 = vld [vmem:[%s2513_s11 + $0x8] sm:$0xf]  ;;  %v1762_v33 = vld [vmem:[%s2513_s11 + $0x2c] sm:$0xf] }
  0x23   : > { %237 = vst [vmem:[%s2518_s12 + $0x78] sm:$0xff] %v236_v10  ;;  %v278_v31 = vld [vmem:[%s2513_s11 + $0x45c] sm:$0xff]  ;;  %v1764_v34 = vld [vmem:[%s2513_s11 + $0x50] sm:$0xf]  ;;  %v1766_v35 = vld [vmem:[%s2513_s11 + $0x74] sm:$0xf] }
  0x24   : > { %239 = vst [vmem:[%s2518_s12 + $0x84] sm:$0xff] %v238_v11  ;;  %v1768_v36 = vld [vmem:[%s2513_s11 + $0x98] sm:$0xf]  ;;  %v1770_v37 = vld [vmem:[%s2513_s11 + $0xbc] sm:$0xf] }
  0x25   : > { %241 = vst [vmem:[%s2518_s12 + $0x90] sm:$0xff] %v240_v12  ;;  %v1772_v38 = vld [vmem:[%s2513_s11 + $0xe0] sm:$0xf]  ;;  %v1774_v39 = vld [vmem:[%s2513_s11 + $0x104] sm:$0xf] }
  0x26   : > { %243 = vst [vmem:[%s2518_s12 + $0x9c] sm:$0xff] %v242_v13  ;;  %v1776_v40 = vld [vmem:[%s2513_s11 + $0x128] sm:$0xf]  ;;  %v1778_v41 = vld [vmem:[%s2513_s11 + $0x14c] sm:$0xf] }
  0x27   : > { %245 = vst [vmem:[%s2518_s12 + $0xa8] sm:$0xff] %v244_v14  ;;  %v1780_v42 = vld [vmem:[%s2513_s11 + $0x170] sm:$0xf]  ;;  %v1782_v43 = vld [vmem:[%s2513_s11 + $0x194] sm:$0xf] }
  0x28   : > { %247 = vst [vmem:[%s2518_s12 + $0xb4] sm:$0xff] %v246_v15  ;;  %v1784_v44 = vld [vmem:[%s2513_s11 + $0x1b8] sm:$0xf]  ;;  %v1786_v45 = vld [vmem:[%s2513_s11 + $0x1dc] sm:$0xf] }
  0x29   : > { %249 = vst [vmem:[%s2518_s12 + $0xc0] sm:$0xff] %v248_v16  ;;  %v1788_v46 = vld [vmem:[%s2513_s11 + $0x200] sm:$0xf]  ;;  %v1790_v47 = vld [vmem:[%s2513_s11 + $0x224] sm:$0xf] }
  0x2a   : > { %251 = vst [vmem:[%s2518_s12 + $0xcc] sm:$0xff] %v250_v17  ;;  %v1792_v48 = vld [vmem:[%s2513_s11 + $0x248] sm:$0xf]  ;;  %v1794_v49 = vld [vmem:[%s2513_s11 + $0x26c] sm:$0xf] }
  0x2b   : > { %253 = vst [vmem:[%s2518_s12 + $0xd8] sm:$0xff] %v252_v18  ;;  %v1796_v50 = vld [vmem:[%s2513_s11 + $0x290] sm:$0xf]  ;;  %v1798_v51 = vld [vmem:[%s2513_s11 + $0x2b4] sm:$0xf] }
  0x2c   : > { %255 = vst [vmem:[%s2518_s12 + $0xe4] sm:$0xff] %v254_v19  ;;  %v1800_v52 = vld [vmem:[%s2513_s11 + $0x2d8] sm:$0xf]  ;;  %v1802_v53 = vld [vmem:[%s2513_s11 + $0x2fc] sm:$0xf] }
  0x2d   : > { %257 = vst [vmem:[%s2518_s12 + $0xf0] sm:$0xff] %v256_v20  ;;  %v1804_v54 = vld [vmem:[%s2513_s11 + $0x320] sm:$0xf]  ;;  %v1806_v55 = vld [vmem:[%s2513_s11 + $0x344] sm:$0xf] }
  0x2e   : > { %259 = vst [vmem:[%s2518_s12 + $0xfc] sm:$0xff] %v258_v21  ;;  %v1808_v56 = vld [vmem:[%s2513_s11 + $0x368] sm:$0xf]  ;;  %v1810_v57 = vld [vmem:[%s2513_s11 + $0x38c] sm:$0xf] }
  0x2f   : > { %261 = vst [vmem:[%s2518_s12 + $0x108] sm:$0xff] %v260_v22  ;;  %v1812_v58 = vld [vmem:[%s2513_s11 + $0x3b0] sm:$0xf]  ;;  %v1814_v59 = vld [vmem:[%s2513_s11 + $0x3d4] sm:$0xf] }
  0x30   : > { %263 = vst [vmem:[%s2518_s12 + $0x114] sm:$0xff] %v262_v23  ;;  %v1816_v60 = vld [vmem:[%s2513_s11 + $0x3f8] sm:$0xf]  ;;  %v1818_v61 = vld [vmem:[%s2513_s11 + $0x41c] sm:$0xf] }
  0x31   : > { %265 = vst [vmem:[%s2518_s12 + $0x120] sm:$0xff] %v264_v24  ;;  %v1820_v62 = vld [vmem:[%s2513_s11 + $0x440] sm:$0xf]  ;;  %v1822_v63 = vld [vmem:[%s2513_s11 + $0x464] sm:$0xf] }
  0x32   : > { %267 = vst [vmem:[%s2518_s12 + $0x12c] sm:$0xff] %v266_v25 }
  0x33   : > { %269 = vst [vmem:[%s2518_s12 + $0x138] sm:$0xff] %v268_v26 }
  0x34   : > { %271 = vst [vmem:[%s2518_s12 + $0x144] sm:$0xff] %v270_v27 }
  0x35   : > { %273 = vst [vmem:[%s2518_s12 + $0x150] sm:$0xff] %v272_v28 }
  0x36   : > { %275 = vst [vmem:[%s2518_s12 + $0x15c] sm:$0xff] %v274_v29 }
  0x37   : > { %277 = vst [vmem:[%s2518_s12 + $0x168] sm:$0xff] %v276_v30 }
  0x38   : > { %279 = vst [vmem:[%s2518_s12 + $0x174] sm:$0xff] %v278_v31 }
  0x39   : > { %1761 = vst [vmem:[%s2518_s12 + $0x8] sm:$0xf] %v1760_v32 }
  0x3a   : > { %1763 = vst [vmem:[%s2518_s12 + $0x14] sm:$0xf] %v1762_v33 }
  0x3b   : > { %1765 = vst [vmem:[%s2518_s12 + $0x20] sm:$0xf] %v1764_v34 }
  0x3c   : > { %1767 = vst [vmem:[%s2518_s12 + $0x2c] sm:$0xf] %v1766_v35 }
  0x3d   : > { %1769 = vst [vmem:[%s2518_s12 + $0x38] sm:$0xf] %v1768_v36 }
  0x3e   : > { %1771 = vst [vmem:[%s2518_s12 + $0x44] sm:$0xf] %v1770_v37 }
  0x3f   : > { %1773 = vst [vmem:[%s2518_s12 + $0x50] sm:$0xf] %v1772_v38 }
  0x40   : > { %1775 = vst [vmem:[%s2518_s12 + $0x5c] sm:$0xf] %v1774_v39 }
  0x41   : > { %1777 = vst [vmem:[%s2518_s12 + $0x68] sm:$0xf] %v1776_v40 }
  0x42   : > { %1779 = vst [vmem:[%s2518_s12 + $0x74] sm:$0xf] %v1778_v41 }
  0x43   : > { %1781 = vst [vmem:[%s2518_s12 + $0x80] sm:$0xf] %v1780_v42 }
  0x44   : > { %1783 = vst [vmem:[%s2518_s12 + $0x8c] sm:$0xf] %v1782_v43 }
  0x45   : > { %1785 = vst [vmem:[%s2518_s12 + $0x98] sm:$0xf] %v1784_v44 }
  0x46   : > { %1787 = vst [vmem:[%s2518_s12 + $0xa4] sm:$0xf] %v1786_v45 }
  0x47   : > { %1789 = vst [vmem:[%s2518_s12 + $0xb0] sm:$0xf] %v1788_v46 }
  0x48   : > { %1791 = vst [vmem:[%s2518_s12 + $0xbc] sm:$0xf] %v1790_v47 }
  0x49   : > { %1793 = vst [vmem:[%s2518_s12 + $0xc8] sm:$0xf] %v1792_v48 }
  0x4a   : > { %1795 = vst [vmem:[%s2518_s12 + $0xd4] sm:$0xf] %v1794_v49 }
  0x4b   : > { %1797 = vst [vmem:[%s2518_s12 + $0xe0] sm:$0xf] %v1796_v50 }
  0x4c   : > { %1799 = vst [vmem:[%s2518_s12 + $0xec] sm:$0xf] %v1798_v51 }
  0x4d   : > { %1801 = vst [vmem:[%s2518_s12 + $0xf8] sm:$0xf] %v1800_v52 }
  0x4e   : > { %1803 = vst [vmem:[%s2518_s12 + $0x104] sm:$0xf] %v1802_v53 }
  0x4f   : > { %1805 = vst [vmem:[%s2518_s12 + $0x110] sm:$0xf] %v1804_v54 }
  0x50   : > { %1807 = vst [vmem:[%s2518_s12 + $0x11c] sm:$0xf] %v1806_v55 }
  0x51   : > { %1809 = vst [vmem:[%s2518_s12 + $0x128] sm:$0xf] %v1808_v56 }
  0x52   : > { %1811 = vst [vmem:[%s2518_s12 + $0x134] sm:$0xf] %v1810_v57 }
  0x53   : > { %1813 = vst [vmem:[%s2518_s12 + $0x140] sm:$0xf] %v1812_v58 }
  0x54   : > { %1815 = vst [vmem:[%s2518_s12 + $0x14c] sm:$0xf] %v1814_v59 }
  0x55   : > { %1817 = vst [vmem:[%s2518_s12 + $0x158] sm:$0xf] %v1816_v60 }
  0x56   : > { %1819 = vst [vmem:[%s2518_s12 + $0x164] sm:$0xf] %v1818_v61 }
  0x57   : > { %1821 = vst [vmem:[%s2518_s12 + $0x170] sm:$0xf] %v1820_v62 }
  0x58   : > { %1823 = vst [vmem:[%s2518_s12 + $0x17c] sm:$0xf] %v1822_v63 }
  0x59 PF: > { %p1824_p7 = scmp.ge.s32.totalorder %s2425_s21, 1  ;;  %p368_p8 = scmp.lt.s32.totalorder %s2425_s21, 7 }
  0x5b   : > { %p369_p9 = pnand %p1824_p7, %p368_p8 }
  0x5c   : > { %s375_s13 = sand.u32 (!%p369_p9), 1, %s2401_s15   ;;  %s425_s14 = smul.u32 (!%p369_p9), 48, %s2409_s17 }
  0x5d   : > { %372 = sbr.rel (%p369_p9) target bundleno = 574 (0x23e), region = 50  ;;  %s1826_s25 = sshll.u32 (!%p369_p9), %s2413_s18, 5 }
  0x5e   : > { %s2313_s24 = smul.u32 (!%p369_p9), 384, %s375_s13  ;;  %p426_p10 = scmp.lt.s32.totalorder (!%p369_p9), %s425_s14, 143 }
  0x5f   : > { %p435_p11 = scmp.lt.s32.totalorder (!%p369_p9), %s1826_s25, 63  ;;  %p443_p12 = scmp.lt.s32.totalorder (!%p369_p9), %s2413_s18, 1 }
  0x60   : > { %p1828_p13 = scmp.ne.s32.totalorder (!%p369_p9), %s2409_s17, 0 }
  0x62   : > { %s3021_s14 = smov (!%p426_p10, %s425_s14), 143  ;;  %s3023_s25 = smov (!%p435_p11, %s1826_s25), 63 }
  0x63   : > { %s1825_s26 = sshll.u32 %s3021_s14, 2  ;;  %s1827_s5 = sshll.u32 %s3023_s25, 2 }
  0x64   : > { %s2654_s30 = scalar_lea.vmem %s3004_s1, %s1825_s26  ;;  %s2659_s8 = scalar_lea.vmem %s3005_s2, %s1827_s5 }
  0x65   : > { %s3025_s18 = smov (!%p443_p12, %s2413_s18), 1  ;;  %s2672_s14 = scalar_lea.vmem [#allocation3], %s2313_s24 }
  0x66   : > { %s448_s10 = scalar_lea.vmem %s3006_s3, %s3025_s18  ;;  %s454_s13 = scalar_lea.vmem %s3007_s4, %s3025_s18 }
  0x67   : > { %458 = sbr.rel (%p1828_p13) target bundleno = 141 (0x8d), region = 58 }
  0x6c   : > { %v2427_v0 = vmov 0.0  }
  0x6d   : > { %459 = vst [vmem:[#allocation2 + $0xb0] sm:$0xff] %v2427_v0 }
  0x6e   : > { %460 = vst [vmem:[#allocation2] sm:$0xff] %v2427_v0 }
  0x6f   : > { %461 = vst [vmem:[#allocation2 + $0xd8] sm:$0xff] %v2427_v0 }
  0x70   : > { %462 = vst [vmem:[#allocation2 + $0x18] sm:$0xff] %v2427_v0 }
  0x71   : > { %463 = vst [vmem:[#allocation2 + $0x50] sm:$0xff] %v2427_v0 }
  0x72   : > { %464 = vst [vmem:[#allocation2 + $0x68] sm:$0xff] %v2427_v0 }
  0x73   : > { %465 = vst [vmem:[#allocation2 + $0x30] sm:$0xff] %v2427_v0 }
  0x74   : > { %466 = vst [vmem:[#allocation2 + $0x48] sm:$0xff] %v2427_v0 }
  0x75   : > { %467 = vst [vmem:[#allocation2 + $0x80] sm:$0xff] %v2427_v0 }
  0x76   : > { %468 = vst [vmem:[#allocation2 + $0x88] sm:$0xff] %v2427_v0 }
  0x77   : > { %469 = vst [vmem:[#allocation2 + $0xe8] sm:$0xff] %v2427_v0 }
  0x78   : > { %470 = vst [vmem:[#allocation2 + $0xb8] sm:$0xff] %v2427_v0 }
  0x79   : > { %471 = vst [vmem:[#allocation2 + $0x60] sm:$0xff] %v2427_v0 }
  0x7a   : > { %472 = vst [vmem:[#allocation2 + $0xf0] sm:$0xff] %v2427_v0 }
  0x7b   : > { %473 = vst [vmem:[#allocation2 + $0x8] sm:$0xff] %v2427_v0 }
  0x7c   : > { %474 = vst [vmem:[#allocation2 + $0x78] sm:$0xff] %v2427_v0 }
  0x7d   : > { %475 = vst [vmem:[#allocation2 + $0x38] sm:$0xff] %v2427_v0 }
  0x7e   : > { %476 = vst [vmem:[#allocation2 + $0x58] sm:$0xff] %v2427_v0 }
  0x7f   : > { %477 = vst [vmem:[#allocation2 + $0x40] sm:$0xff] %v2427_v0 }
  0x80   : > { %478 = vst [vmem:[#allocation2 + $0xc8] sm:$0xff] %v2427_v0 }
  0x81   : > { %479 = vst [vmem:[#allocation2 + $0xe0] sm:$0xff] %v2427_v0 }
  0x82   : > { %480 = vst [vmem:[#allocation2 + $0x90] sm:$0xff] %v2427_v0 }
  0x83   : > { %481 = vst [vmem:[#allocation2 + $0x70] sm:$0xff] %v2427_v0 }
  0x84   : > { %482 = vst [vmem:[#allocation2 + $0xc0] sm:$0xff] %v2427_v0 }
  0x85   : > { %483 = vst [vmem:[#allocation2 + $0xa8] sm:$0xff] %v2427_v0 }
  0x86   : > { %484 = vst [vmem:[#allocation2 + $0xd0] sm:$0xff] %v2427_v0 }
  0x87   : > { %485 = vst [vmem:[#allocation2 + $0x10] sm:$0xff] %v2427_v0 }
  0x88   : > { %486 = vst [vmem:[#allocation2 + $0x28] sm:$0xff] %v2427_v0 }
  0x89   : > { %487 = vst [vmem:[#allocation2 + $0xa0] sm:$0xff] %v2427_v0 }
  0x8a   : > { %488 = vst [vmem:[#allocation2 + $0xf8] sm:$0xff] %v2427_v0 }
  0x8b   : > { %489 = vst [vmem:[#allocation2 + $0x20] sm:$0xff] %v2427_v0 }
  0x8c   : > { %490 = vst [vmem:[#allocation2 + $0x98] sm:$0xff] %v2427_v0 }
  0x8d PF: > { %v2175_v1 = vld [vmem:[%s2654_s30 + $0x38] sm:$0xff]  ;;  %v2174_v4 = vld [vmem:[%s2654_s30 + $0x30] sm:$0xff]  ;;  %v2173_v7 = vld [vmem:[%s2654_s30 + $0x28] sm:$0xff]  ;;  %p2117_p0 = scmp.ne.s32.totalorder %s2409_s17, 2 }
  0x8e   : > { %v2677_v2 = vld [vmem:[%s2654_s30 + $0x78] sm:$0xff]  ;;  %1035 = vmatpush.bf16.msra.mxu0 %v2175_v1  ;;  %2287 = vmatpush.bf16.msra.mxu3 %v2175_v1  ;;  %v2686_v5 = vld [vmem:[%s2654_s30 + $0x70] sm:$0xff]  ;;  %v2181_v8 = vld [vmem:[%s2654_s30 + $0x68] sm:$0xff] }
  0x8f   : > { %v2680_v3 = vld [vmem:[%s2654_s30 + $0xb8] sm:$0xff]  ;;  %1124 = vmatpush.bf16.msra.mxu1 %v2677_v2  ;;  %v2689_v6 = vld [vmem:[%s2654_s30 + $0xb0] sm:$0xff]  ;;  %v2696_v9 = vld [vmem:[%s2654_s30 + $0xa8] sm:$0xff] }
  0x90   : > { %1213 = vmatpush.bf16.msra.mxu2 %v2680_v3  ;;  %v2172_v10 = vld [vmem:[%s2654_s30 + $0x20] sm:$0xff]  ;;  %v2171_v13 = vld [vmem:[%s2654_s30 + $0x18] sm:$0xff]  ;;  %v2170_v16 = vld [vmem:[%s2654_s30 + $0x10] sm:$0xff] }
  0x91   : > { %v2180_v11 = vld [vmem:[%s2654_s30 + $0x60] sm:$0xff]  ;;  %v2179_v14 = vld [vmem:[%s2654_s30 + $0x58] sm:$0xff]  ;;  %v2178_v17 = vld [vmem:[%s2654_s30 + $0x50] sm:$0xff] }
  0x92   : > { %1036 = vmatpush.bf16.msra.mxu0 %v2174_v4  ;;  %2288 = vmatpush.bf16.msra.mxu3 %v2174_v4  ;;  %v2702_v12 = vld [vmem:[%s2654_s30 + $0xa0] sm:$0xff]  ;;  %v2708_v15 = vld [vmem:[%s2654_s30 + $0x98] sm:$0xff]  ;;  %v2714_v18 = vld [vmem:[%s2654_s30 + $0x90] sm:$0xff] }
  0x93   : > { %1125 = vmatpush.bf16.msra.mxu1 %v2686_v5  ;;  %v2169_v19 = vld [vmem:[%s2654_s30 + $0x8] sm:$0xff]  ;;  %v2168_v22 = vld [vmem:[%s2654_s30] sm:$0xff]  ;;  %v1833_v30 = vld [vmem:[%s2672_s14 + $0xc] sm:$0xf0] }
  0x94   : > { %1214 = vmatpush.bf16.msra.mxu2 %v2689_v6  ;;  %v2177_v20 = vld [vmem:[%s2654_s30 + $0x48] sm:$0xff]  ;;  %v2176_v23 = vld [vmem:[%s2654_s30 + $0x40] sm:$0xff]  ;;  %v2122_v32 = vld [vmem:[%s2672_s14 + $0x10] sm:$0xf0] }
  0x95   : > { %v2720_v21 = vld [vmem:[%s2654_s30 + $0x88] sm:$0xff]  ;;  %v2725_v24 = vld [vmem:[%s2654_s30 + $0x80] sm:$0xff]  ;;  %v1843_v37 = vld [vmem:[%s2672_s14 + $0x18] sm:$0xf] }
  0x96   : > { %1037 = vmatpush.bf16.msra.mxu0 %v2173_v7  ;;  %2289 = vmatpush.bf16.msra.mxu3 %v2173_v7  ;;  %v1831_v25 = vld [vmem:[%s2672_s14] sm:$0xf]  ;;  %v2121_v26 = vld [vmem:[%s2672_s14 + $0x8] sm:$0xf0]  ;;  %v2120_v29 = vld [vmem:[%s2672_s14 + $0x4] sm:$0xf] }
  0x97   : > { %1126 = vmatpush.bf16.msra.mxu1 %v2181_v8  ;;  %v1975_v27 = vld [vmem:[%s2672_s14 + $0x120] sm:$0xf]  ;;  %v2157_v28 = vld [vmem:[%s2672_s14 + $0x128] sm:$0xf0]  ;;  %v1839_v31 = vld [vmem:[%s2672_s14 + $0x8] sm:$0xf]  ;;  %v1832_v33 = vor.u32 %v2121_v26, %v1831_v25  ;;  %v1836_v35 = vor.u32 %v2120_v29, %v1833_v30 }
  0x98   : > { %1215 = vmatpush.bf16.msra.mxu2 %v2696_v9  ;;  %v1976_v34 = vor.u32 %v2157_v28, %v1975_v27  ;;  %v1840_v36 = vor.u32 %v2122_v32, %v1839_v31  ;;  %v2124_v38 = vld [vmem:[%s2672_s14 + $0x20] sm:$0xf0]  ;;  %v1987_v39 = vld [vmem:[%s2672_s14 + $0x138] sm:$0xf]  ;;  %v2123_v41 = vld [vmem:[%s2672_s14 + $0x1c] sm:$0xf] }
  0x99   : > { %v2160_v40 = vld [vmem:[%s2672_s14 + $0x140] sm:$0xf0]  ;;  %v1845_v42 = vld [vmem:[%s2672_s14 + $0x24] sm:$0xf0]  ;;  %v1851_v43 = vld [vmem:[%s2672_s14 + $0x20] sm:$0xf]  ;;  %v1844_v45 = vor.u32 %v2124_v38, %v1843_v37 }
  0x9a   : > { %1038 = vmatpush.bf16.msra.mxu0 %v2172_v10  ;;  %2290 = vmatpush.bf16.msra.mxu3 %v2172_v10  ;;  %v2125_v44 = vld [vmem:[%s2672_s14 + $0x28] sm:$0xf0]  ;;  %v1988_v46 = vor.u32 %v2160_v40, %v1987_v39  ;;  %v1848_v47 = vor.u32 %v2123_v41, %v1845_v42  ;;  %v1855_v49 = vld [vmem:[%s2672_s14 + $0x30] sm:$0xf]  ;;  %v2127_v50 = vld [vmem:[%s2672_s14 + $0x38] sm:$0xf0] }
  0x9b   : > { %1127 = vmatpush.bf16.msra.mxu1 %v2180_v11  ;;  %v1852_v48 = vor.u32 %v2125_v44, %v1851_v43  ;;  %v1999_v51 = vld [vmem:[%s2672_s14 + $0x150] sm:$0xf]  ;;  %v2163_v52 = vld [vmem:[%s2672_s14 + $0x158] sm:$0xf0]  ;;  %v2126_v53 = vld [vmem:[%s2672_s14 + $0x34] sm:$0xf]  ;;  %v1856_v57 = vor.u32 %v2127_v50, %v1855_v49 }
  0x9c   : > { %1216 = vmatpush.bf16.msra.mxu2 %v2702_v12  ;;  %v1857_v54 = vld [vmem:[%s2672_s14 + $0x3c] sm:$0xf0]  ;;  %v1863_v55 = vld [vmem:[%s2672_s14 + $0x38] sm:$0xf]  ;;  %v2128_v56 = vld [vmem:[%s2672_s14 + $0x40] sm:$0xf0]  ;;  %v2000_v58 = vor.u32 %v2163_v52, %v1999_v51 }
  0x9d   : > { %v1860_v59 = vor.u32 %v2126_v53, %v1857_v54  ;;  %v1864_v60 = vor.u32 %v2128_v56, %v1863_v55  ;;  %v1867_v61 = vld [vmem:[%s2672_s14 + $0x48] sm:$0xf]  ;;  %v2130_v62 = vld [vmem:[%s2672_s14 + $0x50] sm:$0xf0]  ;;  %v2129_v1 = vld [vmem:[%s2672_s14 + $0x4c] sm:$0xf] }
  0x9e   : > { %1039 = vmatpush.bf16.msra.mxu0 %v2171_v13  ;;  %2291 = vmatpush.bf16.msra.mxu3 %v2171_v13  ;;  %v2011_v63 = vld [vmem:[%s2672_s14 + $0x168] sm:$0xf]  ;;  %v2166_v0 = vld [vmem:[%s2672_s14 + $0x170] sm:$0xf0]  ;;  %v2131_v4 = vld [vmem:[%s2672_s14 + $0x58] sm:$0xf0] }
  0x9f   : > { %1128 = vmatpush.bf16.msra.mxu1 %v2179_v14  ;;  %v2133_v10 = vld [vmem:[%s2672_s14 + $0x68] sm:$0xf0]  ;;  %v1977_v13 = vld [vmem:[%s2672_s14 + $0x12c] sm:$0xf0]  ;;  %v2159_v25 = vld [vmem:[%s2672_s14 + $0x13c] sm:$0xf] }
  0xa0   : > { %1217 = vmatpush.bf16.msra.mxu2 %v2708_v15  ;;  %v1989_v26 = vld [vmem:[%s2672_s14 + $0x144] sm:$0xf0]  ;;  %v1899_v27 = vld [vmem:[%s2672_s14 + $0x80] sm:$0xf]  ;;  %v2137_v28 = vld [vmem:[%s2672_s14 + $0x88] sm:$0xf0] }
  0xa1   : > { %v1992_v30 = vor.u32 %v2159_v25, %v1989_v26  ;;  %v1900_v32 = vor.u32 %v2137_v28, %v1899_v27  ;;  %v2001_v37 = vld [vmem:[%s2672_s14 + $0x15c] sm:$0xf0]  ;;  %v1911_v39 = vld [vmem:[%s2672_s14 + $0x98] sm:$0xf]  ;;  %v2140_v40 = vld [vmem:[%s2672_s14 + $0xa0] sm:$0xf0] }
  0xa2   : > { %1040 = vmatpush.bf16.msra.mxu0 %v2170_v16  ;;  %2292 = vmatpush.bf16.msra.mxu3 %v2170_v16  ;;  %v2134_v16 = vld [vmem:[%s2672_s14 + $0x70] sm:$0xf0]  ;;  %v1905_v38 = vld [vmem:[%s2672_s14 + $0x9c] sm:$0xf0]  ;;  %v1912_v44 = vor.u32 %v2140_v40, %v1911_v39  ;;  %v2013_v49 = vld [vmem:[%s2672_s14 + $0x174] sm:$0xf0] }
  0xa3   : > { %1129 = vmatpush.bf16.msra.mxu1 %v2178_v17  ;;  %v1917_v50 = vld [vmem:[%s2672_s14 + $0xb4] sm:$0xf0]  ;;  %v1923_v51 = vld [vmem:[%s2672_s14 + $0xb0] sm:$0xf]  ;;  %v2143_v52 = vld [vmem:[%s2672_s14 + $0xb8] sm:$0xf0] }
  0xa4   : > { %1218 = vmatpush.bf16.msra.mxu2 %v2714_v18  ;;  %v1924_v56 = vor.u32 %v2143_v52, %v1923_v51  ;;  %v492_v26 = vld [vmem:[#allocation2] sm:$0xff] }
  0xa6   : > { %1041 = vmatpush.bf16.msra.mxu0 %v2169_v19  ;;  %2293 = vmatpush.bf16.msra.mxu3 %v2169_v19 }
  0xa7   : > { %1130 = vmatpush.bf16.msra.mxu1 %v2177_v20 }
  0xa8   : > { %1219 = vmatpush.bf16.msra.mxu2 %v2720_v21 }
  0xaa   : > { %1042 = vmatpush.bf16.msra.mxu0 %v2168_v22  ;;  %2294 = vmatpush.bf16.msra.mxu3 %v2168_v22  ;;  %v2136_v22 = vld [vmem:[%s2672_s14 + $0x80] sm:$0xf0] }
  0xab   : > { %1131 = vmatpush.bf16.msra.mxu1 %v2176_v23 }
  0xac   : > { %1220 = vmatpush.bf16.msra.mxu2 %v2725_v24 }
  0xad   : > { %1043 = vmatmul.bf16.vlgmr.msra.gmra.mxu0 %v1832_v33  ;;  %1103 = vmatmul.bf16.vlgmr.msra.gmra.mxu3 %v1976_v34  ;;  %v1903_v33 = vld [vmem:[%s2672_s14 + $0x90] sm:$0xf]  ;;  %v2139_v34 = vld [vmem:[%s2672_s14 + $0x98] sm:$0xf0] }
  0xae   : > { %2295 = vmatpush.bf16.msrb.mxu3 %v2677_v2  ;;  %1132 = vmatmul.bf16.vlgmr.msra.gmra.mxu1 %v1836_v35  ;;  %v1869_v2 = vld [vmem:[%s2672_s14 + $0x54] sm:$0xf0]  ;;  %v2138_v35 = vld [vmem:[%s2672_s14 + $0x94] sm:$0xf]  ;;  %v1904_v41 = vor.u32 %v2139_v34, %v1903_v33 }
  0xaf   : > { %1221 = vmatmul.bf16.vlgmr.msra.gmra.mxu2 %v1840_v36  ;;  %v1872_v7 = vor.u32 %v2129_v1, %v1869_v2  ;;  %v2162_v36 = vld [vmem:[%s2672_s14 + $0x154] sm:$0xf]  ;;  %v1908_v43 = vor.u32 %v2138_v35, %v1905_v38 }
  0xb0   : > { %v2004_v42 = vor.u32 %v2162_v36, %v2001_v37  ;;  %v493_v37 = vld [vmem:[#allocation2 + $0xd8] sm:$0xff] }
  0xb2   : > { %2296 = vmatpush.bf16.msrb.mxu3 %v2686_v5  ;;  %v1868_v5 = vor.u32 %v2130_v62, %v1867_v61  ;;  %v2158_v61 = vld [vmem:[%s2672_s14 + $0x130] sm:$0xf0]  ;;  %v1929_v62 = vld [vmem:[%s2672_s14 + $0xcc] sm:$0xf0] }
  0xb6   : > { %2297 = vmatpush.bf16.msrb.mxu3 %v2181_v8 }
  0xba   : > { %2298 = vmatpush.bf16.msrb.mxu3 %v2180_v11  ;;  %v2132_v11 = vld [vmem:[%s2672_s14 + $0x64] sm:$0xf] }
  0xbd   : > { %1048 = vmatmul.bf16.gmra.mxu0 %v1844_v45  ;;  %1108 = vmatmul.bf16.gmra.mxu3 %v1988_v46  ;;  %v1915_v45 = vld [vmem:[%s2672_s14 + $0xa8] sm:$0xf]  ;;  %v2142_v46 = vld [vmem:[%s2672_s14 + $0xb0] sm:$0xf0] }
  0xbe   : > { %2299 = vmatpush.bf16.msrb.mxu3 %v2179_v14  ;;  %1137 = vmatmul.bf16.gmra.mxu1 %v1848_v47  ;;  %v1881_v14 = vld [vmem:[%s2672_s14 + $0x6c] sm:$0xf0]  ;;  %v2141_v47 = vld [vmem:[%s2672_s14 + $0xac] sm:$0xf]  ;;  %v1916_v53 = vor.u32 %v2142_v46, %v1915_v45  ;;  %v2150_v45 = vld [vmem:[%s2672_s14 + $0xf4] sm:$0xf] }
  0xbf   : > { %1226 = vmatmul.bf16.gmra.mxu2 %v1852_v48  ;;  %v1884_v19 = vor.u32 %v2132_v11, %v1881_v14  ;;  %v2165_v48 = vld [vmem:[%s2672_s14 + $0x16c] sm:$0xf]  ;;  %v1920_v55 = vor.u32 %v2141_v47, %v1917_v50  ;;  %v2007_v46 = vld [vmem:[%s2672_s14 + $0x158] sm:$0xf]  ;;  %v2164_v47 = vld [vmem:[%s2672_s14 + $0x160] sm:$0xf0] }
  0xc0   : > { %v2016_v54 = vor.u32 %v2165_v48, %v2013_v49  ;;  %v1953_v48 = vld [vmem:[%s2672_s14 + $0xfc] sm:$0xf0]  ;;  %v1959_v49 = vld [vmem:[%s2672_s14 + $0xf8] sm:$0xf]  ;;  %v2152_v50 = vld [vmem:[%s2672_s14 + $0x100] sm:$0xf0] }
  0xc2   : > { %2300 = vmatpush.bf16.msrb.mxu3 %v2178_v17 }
  0xc6   : > { %2301 = vmatpush.bf16.msrb.mxu3 %v2177_v20 }
  0xca   : > { %2302 = vmatpush.bf16.msrb.mxu3 %v2176_v23  ;;  %v2135_v23 = vld [vmem:[%s2672_s14 + $0x7c] sm:$0xf] }
  0xcd   : > { %1053 = vmatmul.bf16.gmra.mxu0 %v1856_v57  ;;  %1113 = vmatmul.bf16.gmra.mxu3 %v2000_v58  ;;  %v1927_v57 = vld [vmem:[%s2672_s14 + $0xc0] sm:$0xf]  ;;  %v2145_v58 = vld [vmem:[%s2672_s14 + $0xc8] sm:$0xf0] }
  0xce   : > { %2303 = vmatpush.bf16.msra.mxu3 %v2680_v3  ;;  %1142 = vmatmul.bf16.gmra.mxu1 %v1860_v59  ;;  %v1875_v3 = vld [vmem:[%s2672_s14 + $0x50] sm:$0xf]  ;;  %v2144_v59 = vld [vmem:[%s2672_s14 + $0xc4] sm:$0xf]  ;;  %v1928_v1 = vor.u32 %v2145_v58, %v1927_v57 }
  0xcf   : > { %1231 = vmatmul.bf16.gmra.mxu2 %v1864_v60  ;;  %v1876_v8 = vor.u32 %v2131_v4, %v1875_v3  ;;  %v1983_v60 = vld [vmem:[%s2672_s14 + $0x128] sm:$0xf]  ;;  %v1932_v4 = vor.u32 %v2144_v59, %v1929_v62  ;;  %v1956_v59 = vor.u32 %v2150_v45, %v1953_v48  ;;  %v499_v48 = vld [vmem:[#allocation2 + $0x80] sm:$0xff] }
  0xd0   : > { %v1984_v2 = vor.u32 %v2158_v61, %v1983_v60  ;;  %v1960_v60 = vor.u32 %v2152_v50, %v1959_v49 }
  0xd2   : > { %2304 = vmatpush.bf16.msra.mxu3 %v2689_v6  ;;  %v2012_v6 = vor.u32 %v2166_v0, %v2011_v63  ;;  %v1935_v63 = vld [vmem:[%s2672_s14 + $0xc8] sm:$0xf]  ;;  %v2146_v0 = vld [vmem:[%s2672_s14 + $0xd0] sm:$0xf0] }
  0xd6   : > { %2305 = vmatpush.bf16.msra.mxu3 %v2696_v9  ;;  %v1879_v9 = vld [vmem:[%s2672_s14 + $0x60] sm:$0xf] }
  0xd7   : > { %v1880_v17 = vor.u32 %v2133_v10, %v1879_v9  ;;  %v491_v9 = vld [vmem:[#allocation2 + $0xb0] sm:$0xff] }
  0xda   : > { %2306 = vmatpush.bf16.msra.mxu3 %v2702_v12  ;;  %v2156_v12 = vld [vmem:[%s2672_s14 + $0x124] sm:$0xf] }
  0xdd   : > { %1058 = vmatmul.bf16.gmra.mxu0 %v1868_v5  ;;  %1118 = vmatmul.bf16.gmra.mxu3 %v2012_v6  ;;  %v1936_v5 = vor.u32 %v2146_v0, %v1935_v63 }
  0xde   : > { %2307 = vmatpush.bf16.msra.mxu3 %v2708_v15  ;;  %1147 = vmatmul.bf16.gmra.mxu1 %v1872_v7  ;;  %v1887_v15 = vld [vmem:[%s2672_s14 + $0x68] sm:$0xf] }
  0xdf   : > { %1236 = vmatmul.bf16.gmra.mxu2 %v1876_v8  ;;  %v1888_v20 = vor.u32 %v2134_v16, %v1887_v15  ;;  %v1939_v15 = vld [vmem:[%s2672_s14 + $0xd8] sm:$0xf]  ;;  %v2148_v16 = vld [vmem:[%s2672_s14 + $0xe0] sm:$0xf0] }
  0xe0   : > { %v1940_v27 = vor.u32 %v2148_v16, %v1939_v15  ;;  %v2155_v15 = vld [vmem:[%s2672_s14 + $0x118] sm:$0xf0] }
  0xe2   : > { %2308 = vmatpush.bf16.msra.mxu3 %v2714_v18  ;;  %v1980_v18 = vor.u32 %v2156_v12, %v1977_v13 }
  0xe6   : > { %2309 = vmatpush.bf16.msra.mxu3 %v2720_v21  ;;  %v1891_v21 = vld [vmem:[%s2672_s14 + $0x78] sm:$0xf] }
  0xe7   : > { %v1892_v29 = vor.u32 %v2136_v22, %v1891_v21  ;;  %v1947_v21 = vld [vmem:[%s2672_s14 + $0xe0] sm:$0xf]  ;;  %v2149_v22 = vld [vmem:[%s2672_s14 + $0xe8] sm:$0xf0] }
  0xea   : > { %2310 = vmatpush.bf16.msra.mxu3 %v2725_v24  ;;  %v1893_v24 = vld [vmem:[%s2672_s14 + $0x84] sm:$0xf0] }
  0xeb   : > { %v1896_v31 = vor.u32 %v2135_v23, %v1893_v24 }
  0xed   : > { %1063 = vmatmul.bf16.gmra.mxu0 %v1880_v17  ;;  %1192 = vmatmul.bf16.vlgmr.msrb.gmra.mxu3 %v1980_v18  ;;  %v2147_v17 = vld [vmem:[%s2672_s14 + $0xdc] sm:$0xf]  ;;  %v1995_v18 = vld [vmem:[%s2672_s14 + $0x140] sm:$0xf] }
  0xee   : > { %1152 = vmatmul.bf16.gmra.mxu1 %v1884_v19  ;;  %v2161_v19 = vld [vmem:[%s2672_s14 + $0x148] sm:$0xf0] }
  0xef   : > { %1241 = vmatmul.bf16.gmra.mxu2 %v1888_v20  ;;  %v1941_v20 = vld [vmem:[%s2672_s14 + $0xe4] sm:$0xf0]  ;;  %v1996_v28 = vor.u32 %v2161_v19, %v1995_v18 }
  0xf0   : > { %v496_v18 = vld [vmem:[#allocation2 + $0x68] sm:$0xff] }
  0xfd   : > { %1068 = vmatmul.bf16.gmra.mxu0 %v1892_v29  ;;  %1197 = vmatmul.bf16.gmra.mxu3 %v1992_v30 }
  0xfe   : > { %1157 = vmatmul.bf16.gmra.mxu1 %v1896_v31  ;;  %v1944_v31 = vor.u32 %v2147_v17, %v1941_v20 }
  0xff   : > { %1246 = vmatmul.bf16.gmra.mxu2 %v1900_v32  ;;  %v1948_v32 = vor.u32 %v2149_v22, %v1947_v21 }
 0x10d   : > { %1073 = vmatmul.bf16.gmra.mxu0 %v1904_v41  ;;  %1202 = vmatmul.bf16.gmra.mxu3 %v2004_v42 }
 0x10e   : > { %1162 = vmatmul.bf16.gmra.mxu1 %v1908_v43  ;;  %v1951_v43 = vld [vmem:[%s2672_s14 + $0xf0] sm:$0xf] }
 0x10f   : > { %1251 = vmatmul.bf16.gmra.mxu2 %v1912_v44  ;;  %v2151_v44 = vld [vmem:[%s2672_s14 + $0xf8] sm:$0xf0] }
 0x11d   : > { %1078 = vmatmul.bf16.gmra.mxu0 %v1916_v53  ;;  %1207 = vmatmul.bf16.gmra.mxu3 %v2016_v54  ;;  %v494_v53 = vld [vmem:[#allocation2 + $0x18] sm:$0xff] }
 0x11e   : > { %1167 = vmatmul.bf16.gmra.mxu1 %v1920_v55  ;;  %v1952_v55 = vor.u32 %v2151_v44, %v1951_v43 }
 0x11f   : > { %1256 = vmatmul.bf16.gmra.mxu2 %v1924_v56  ;;  %v2008_v56 = vor.u32 %v2164_v47, %v2007_v46 }
 0x12a   : > { %v1044_v3 = vpop.f32.mrf.mxu0 }
 0x12b   : > { %v1133_v6 = vpop.f32.mrf.mxu1 }
 0x12c   : > { %v1134_v7 = vadd.f32 %v1133_v6, %v1044_v3 }
 0x12d   : > { %1083 = vmatmul.bf16.gmra.mxu0 %v1928_v1  ;;  %1281 = vmatmul.bf16.vlgmr.msra.gmra.mxu3 %v1984_v2  ;;  %v495_v1 = vld [vmem:[#allocation2 + $0x50] sm:$0xff] }
 0x12e   : > { %1172 = vmatmul.bf16.gmra.mxu1 %v1932_v4 }
 0x12f   : > { %1261 = vmatmul.bf16.gmra.mxu2 %v1936_v5 }
 0x130   : > { %v2811_v8 = vpop.f32.mrf.mxu3 }
 0x132   : > { %v1222_v10 = vpop.f32.mrf.mxu2  ;;  %v1046_v12 = vpop.f32.mrf.mxu0 }
 0x133   : > { %v1223_v11 = vadd.f32 %v1222_v10, %v1134_v7  ;;  %v1135_v13 = vpop.f32.mrf.mxu1  ;;  %v1963_v7 = vld [vmem:[%s2672_s14 + $0x108] sm:$0xf]  ;;  %v2153_v10 = vld [vmem:[%s2672_s14 + $0x10c] sm:$0xf] }
 0x134   : > { %v1136_v23 = vadd.f32 %v1135_v13, %v1046_v12  ;;  %v2167_v12 = vld [vmem:[%s2672_s14 + $0x178] sm:$0xf0]  ;;  %v1965_v13 = vld [vmem:[%s2672_s14 + $0x114] sm:$0xf0] }
 0x135   : > { %v1302_v14 = vadd.f32 %v1223_v11, %v491_v9  ;;  %v2154_v9 = vld [vmem:[%s2672_s14 + $0x110] sm:$0xf0]  ;;  %v2019_v11 = vld [vmem:[%s2672_s14 + $0x170] sm:$0xf] }
 0x136   : > { %v1964_v20 = vor.u32 %v2154_v9, %v1963_v7  ;;  %v2020_v21 = vor.u32 %v2167_v12, %v2019_v11  ;;  %v502_v11 = vld [vmem:[#allocation2 + $0xb8] sm:$0xff] }
 0x137   : > { %1334 = vst [vmem:[#allocation2 + $0xb0] sm:$0xff] %v1302_v14  ;;  %v1971_v14 = vld [vmem:[%s2672_s14 + $0x110] sm:$0xf] }
 0x138   : > { %v2821_v25 = vpop.f32.mrf.mxu3 }
 0x13a   : > { %v1224_v24 = vpop.f32.mrf.mxu2  ;;  %v1049_v30 = vpop.f32.mrf.mxu0 }
 0x13b   : > { %v1225_v29 = vadd.f32 %v1224_v24, %v1136_v23  ;;  %v1138_v33 = vpop.f32.mrf.mxu1  ;;  %v1972_v24 = vor.u32 %v2155_v15, %v1971_v14 }
 0x13c   : > { %v1139_v35 = vadd.f32 %v1138_v33, %v1049_v30 }
 0x13d   : > { %v1303_v34 = vadd.f32 %v1225_v29, %v492_v26  ;;  %1088 = vmatmul.bf16.gmra.mxu0 %v1940_v27  ;;  %1286 = vmatmul.bf16.gmra.mxu3 %v1996_v28  ;;  %v1968_v26 = vor.u32 %v2153_v10, %v1965_v13 }
 0x13e   : > { %1177 = vmatmul.bf16.gmra.mxu1 %v1944_v31  ;;  %v497_v31 = vld [vmem:[#allocation2 + $0x30] sm:$0xff] }
 0x13f   : > { %1335 = vst [vmem:[#allocation2] sm:$0xff] %v1303_v34  ;;  %1266 = vmatmul.bf16.gmra.mxu2 %v1948_v32 }
 0x140   : > { %v2823_v36 = vpop.f32.mrf.mxu3 }
 0x142   : > { %v1227_v38 = vpop.f32.mrf.mxu2  ;;  %v1051_v40 = vpop.f32.mrf.mxu0 }
 0x143   : > { %v1228_v39 = vadd.f32 %v1227_v38, %v1139_v35  ;;  %v1140_v41 = vpop.f32.mrf.mxu1 }
 0x144   : > { %v1141_v51 = vadd.f32 %v1140_v41, %v1051_v40  ;;  %v498_v40 = vld [vmem:[#allocation2 + $0x48] sm:$0xff] }
 0x145   : > { %v1304_v42 = vadd.f32 %v1228_v39, %v493_v37 }
 0x147   : > { %1336 = vst [vmem:[#allocation2 + $0xd8] sm:$0xff] %v1304_v42 }
 0x148   : > { %v2833_v52 = vpop.f32.mrf.mxu3 }
 0x14a   : > { %v1229_v54 = vpop.f32.mrf.mxu2  ;;  %v1054_v58 = vpop.f32.mrf.mxu0 }
 0x14b   : > { %v1230_v57 = vadd.f32 %v1229_v54, %v1141_v51  ;;  %v1143_v61 = vpop.f32.mrf.mxu1 }
 0x14c   : > { %v1144_v63 = vadd.f32 %v1143_v61, %v1054_v58 }
 0x14d   : > { %v1305_v62 = vadd.f32 %v1230_v57, %v494_v53  ;;  %1093 = vmatmul.bf16.gmra.mxu0 %v1952_v55  ;;  %1291 = vmatmul.bf16.gmra.mxu3 %v2008_v56  ;;  %v500_v57 = vld [vmem:[#allocation2 + $0x88] sm:$0xff] }
 0x14e   : > { %1182 = vmatmul.bf16.gmra.mxu1 %v1956_v59 }
 0x14f   : > { %1337 = vst [vmem:[#allocation2 + $0x18] sm:$0xff] %v1305_v62  ;;  %1271 = vmatmul.bf16.gmra.mxu2 %v1960_v60 }
 0x150   : > { %v2835_v0 = vpop.f32.mrf.mxu3 }
 0x152   : > { %v1232_v2 = vpop.f32.mrf.mxu2  ;;  %v1056_v4 = vpop.f32.mrf.mxu0 }
 0x153   : > { %v1233_v3 = vadd.f32 %v1232_v2, %v1144_v63  ;;  %v1145_v5 = vpop.f32.mrf.mxu1  ;;  %v501_v2 = vld [vmem:[#allocation2 + $0xe8] sm:$0xff] }
 0x154   : > { %v1146_v16 = vadd.f32 %v1145_v5, %v1056_v4 }
 0x155   : > { %v1306_v6 = vadd.f32 %v1233_v3, %v495_v1 }
 0x157   : > { %1338 = vst [vmem:[#allocation2 + $0x50] sm:$0xff] %v1306_v6 }
 0x158   : > { %v2845_v17 = vpop.f32.mrf.mxu3 }
 0x15a   : > { %v1234_v19 = vpop.f32.mrf.mxu2  ;;  %v1059_v23 = vpop.f32.mrf.mxu0 }
 0x15b   : > { %v1235_v22 = vadd.f32 %v1234_v19, %v1146_v16  ;;  %v1148_v27 = vpop.f32.mrf.mxu1 }
 0x15c   : > { %v1149_v29 = vadd.f32 %v1148_v27, %v1059_v23 }
 0x15d   : > { %v1307_v28 = vadd.f32 %v1235_v22, %v496_v18  ;;  %1098 = vmatmul.bf16.gmra.mxu0 %v1964_v20  ;;  %1296 = vmatmul.bf16.gmra.mxu3 %v2020_v21  ;;  %v503_v20 = vld [vmem:[#allocation2 + $0x60] sm:$0xff] }
 0x15e   : > { %1187 = vmatmul.bf16.gmra.mxu1 %v1968_v26 }
 0x15f   : > { %1339 = vst [vmem:[#allocation2 + $0x68] sm:$0xff] %v1307_v28  ;;  %1276 = vmatmul.bf16.gmra.mxu2 %v1972_v24 }
 0x160   : > { %v2847_v30 = vpop.f32.mrf.mxu3 }
 0x162   : > { %v1237_v32 = vpop.f32.mrf.mxu2  ;;  %v1061_v34 = vpop.f32.mrf.mxu0 }
 0x163   : > { %v1238_v33 = vadd.f32 %v1237_v32, %v1149_v29  ;;  %v1150_v35 = vpop.f32.mrf.mxu1  ;;  %v504_v29 = vld [vmem:[#allocation2 + $0xf0] sm:$0xff] }
 0x164   : > { %v1151_v38 = vadd.f32 %v1150_v35, %v1061_v34 }
 0x165   : > { %v1308_v37 = vadd.f32 %v1238_v33, %v497_v31 }
 0x167   : > { %1340 = vst [vmem:[#allocation2 + $0x30] sm:$0xff] %v1308_v37 }
 0x168   : > { %v2849_v39 = vpop.f32.mrf.mxu3 }
 0x16a   : > { %v1239_v41 = vpop.f32.mrf.mxu2  ;;  %v1064_v43 = vpop.f32.mrf.mxu0 }
 0x16b   : > { %v1240_v42 = vadd.f32 %v1239_v41, %v1151_v38  ;;  %v1153_v44 = vpop.f32.mrf.mxu1 }
 0x16c   : > { %v1154_v46 = vadd.f32 %v1153_v44, %v1064_v43 }
 0x16d   : > { %v1309_v45 = vadd.f32 %v1240_v42, %v498_v40  ;;  %v505_v40 = vld [vmem:[#allocation2 + $0x8] sm:$0xff] }
 0x16f   : > { %1341 = vst [vmem:[#allocation2 + $0x48] sm:$0xff] %v1309_v45 }
 0x170   : > { %v2851_v47 = vpop.f32.mrf.mxu3 }
 0x172   : > { %v1242_v49 = vpop.f32.mrf.mxu2  ;;  %v1066_v51 = vpop.f32.mrf.mxu0 }
 0x173   : > { %v1243_v50 = vadd.f32 %v1242_v49, %v1154_v46  ;;  %v1155_v53 = vpop.f32.mrf.mxu1  ;;  %v506_v49 = vld [vmem:[#allocation2 + $0x78] sm:$0xff] }
 0x174   : > { %v1156_v55 = vadd.f32 %v1155_v53, %v1066_v51 }
 0x175   : > { %v1310_v54 = vadd.f32 %v1243_v50, %v499_v48 }
 0x177   : > { %1342 = vst [vmem:[#allocation2 + $0x80] sm:$0xff] %v1310_v54 }
 0x178   : > { %v2853_v56 = vpop.f32.mrf.mxu3 }
 0x17a   : > { %v1244_v58 = vpop.f32.mrf.mxu2  ;;  %v1069_v60 = vpop.f32.mrf.mxu0 }
 0x17b   : > { %v1245_v59 = vadd.f32 %v1244_v58, %v1156_v55  ;;  %v1158_v61 = vpop.f32.mrf.mxu1  ;;  %v1194_v58 = vadd.f32 %v2851_v47, %v2811_v8 }
 0x17c   : > { %v1159_v63 = vadd.f32 %v1158_v61, %v1069_v60  ;;  %v507_v61 = vld [vmem:[#allocation2 + $0x38] sm:$0xff] }
 0x17d   : > { %v1311_v62 = vadd.f32 %v1245_v59, %v500_v57  ;;  %v515_v59 = vld [vmem:[#allocation2 + $0xa8] sm:$0xff] }
 0x17f   : > { %1343 = vst [vmem:[#allocation2 + $0x88] sm:$0xff] %v1311_v62 }
 0x180   : > { %v2855_v1 = vpop.f32.mrf.mxu3 }
 0x182   : > { %v1247_v3 = vpop.f32.mrf.mxu2  ;;  %v1071_v5 = vpop.f32.mrf.mxu0 }
 0x183   : > { %v1248_v4 = vadd.f32 %v1247_v3, %v1159_v63  ;;  %v1160_v6 = vpop.f32.mrf.mxu1 }
 0x184   : > { %v1161_v9 = vadd.f32 %v1160_v6, %v1071_v5 }
 0x185   : > { %v1312_v7 = vadd.f32 %v1248_v4, %v501_v2 }
 0x187   : > { %1344 = vst [vmem:[#allocation2 + $0xe8] sm:$0xff] %v1312_v7  ;;  %v1196_v7 = vadd.f32 %v2853_v56, %v2821_v25  ;;  %v509_v25 = vld [vmem:[#allocation2 + $0x40] sm:$0xff] }
 0x188   : > { %v2857_v10 = vpop.f32.mrf.mxu3 }
 0x18a   : > { %v1249_v12 = vpop.f32.mrf.mxu2  ;;  %v1074_v14 = vpop.f32.mrf.mxu0 }
 0x18b   : > { %v1250_v13 = vadd.f32 %v1249_v12, %v1161_v9  ;;  %v1163_v15 = vpop.f32.mrf.mxu1 }
 0x18c   : > { %v1164_v18 = vadd.f32 %v1163_v15, %v1074_v14 }
 0x18d   : > { %v1313_v16 = vadd.f32 %v1250_v13, %v502_v11  ;;  %v516_v11 = vld [vmem:[#allocation2 + $0xd0] sm:$0xff]  ;;  %v508_v13 = vld [vmem:[#allocation2 + $0x58] sm:$0xff] }
 0x18f   : > { %1345 = vst [vmem:[#allocation2 + $0xb8] sm:$0xff] %v1313_v16 }
 0x190   : > { %v2859_v19 = vpop.f32.mrf.mxu3 }
 0x192   : > { %v1252_v21 = vpop.f32.mrf.mxu2  ;;  %v1076_v23 = vpop.f32.mrf.mxu0 }
 0x193   : > { %v1253_v22 = vadd.f32 %v1252_v21, %v1164_v18  ;;  %v1165_v26 = vpop.f32.mrf.mxu1 }
 0x194   : > { %v1166_v27 = vadd.f32 %v1165_v26, %v1076_v23  ;;  %v517_v23 = vld [vmem:[#allocation2 + $0x10] sm:$0xff] }
 0x195   : > { %v1314_v24 = vadd.f32 %v1253_v22, %v503_v20  ;;  %v1199_v22 = vadd.f32 %v2855_v1, %v2823_v36 }
 0x197   : > { %1346 = vst [vmem:[#allocation2 + $0x60] sm:$0xff] %v1314_v24 }
 0x198   : > { %v2861_v28 = vpop.f32.mrf.mxu3 }
 0x19a   : > { %v1254_v31 = vpop.f32.mrf.mxu2  ;;  %v1079_v33 = vpop.f32.mrf.mxu0 }
 0x19b   : > { %v1255_v32 = vadd.f32 %v1254_v31, %v1166_v27  ;;  %v1168_v34 = vpop.f32.mrf.mxu1 }
 0x19c   : > { %v1169_v37 = vadd.f32 %v1168_v34, %v1079_v33  ;;  %v1201_v34 = vadd.f32 %v2857_v10, %v2833_v52  ;;  %v511_v52 = vld [vmem:[#allocation2 + $0xe0] sm:$0xff] }
 0x19d   : > { %v1315_v35 = vadd.f32 %v1255_v32, %v504_v29 }
 0x19f   : > { %1347 = vst [vmem:[#allocation2 + $0xf0] sm:$0xff] %v1315_v35 }
 0x1a0   : > { %v2863_v38 = vpop.f32.mrf.mxu3 }
 0x1a2   : > { %v1257_v41 = vpop.f32.mrf.mxu2  ;;  %v1081_v43 = vpop.f32.mrf.mxu0 }
 0x1a3   : > { %v1258_v42 = vadd.f32 %v1257_v41, %v1169_v37  ;;  %v1170_v44 = vpop.f32.mrf.mxu1  ;;  %v518_v37 = vld [vmem:[#allocation2 + $0x28] sm:$0xff] }
 0x1a4   : > { %v1171_v46 = vadd.f32 %v1170_v44, %v1081_v43  ;;  %v510_v41 = vld [vmem:[#allocation2 + $0xc8] sm:$0xff] }
 0x1a5   : > { %v1316_v45 = vadd.f32 %v1258_v42, %v505_v40 }
 0x1a7   : > { %1348 = vst [vmem:[#allocation2 + $0x8] sm:$0xff] %v1316_v45 }
 0x1a8   : > { %v2865_v48 = vpop.f32.mrf.mxu3 }
 0x1aa   : > { %v1259_v50 = vpop.f32.mrf.mxu2  ;;  %v1084_v53 = vpop.f32.mrf.mxu0 }
 0x1ab   : > { %v1260_v51 = vadd.f32 %v1259_v50, %v1171_v46  ;;  %v1173_v54 = vpop.f32.mrf.mxu1  ;;  %v1204_v50 = vadd.f32 %v2859_v19, %v2835_v0 }
 0x1ac   : > { %v1174_v57 = vadd.f32 %v1173_v54, %v1084_v53 }
 0x1ad   : > { %v1317_v55 = vadd.f32 %v1260_v51, %v506_v49  ;;  %v519_v51 = vld [vmem:[#allocation2 + $0xa0] sm:$0xff] }
 0x1af   : > { %1349 = vst [vmem:[#allocation2 + $0x78] sm:$0xff] %v1317_v55 }
 0x1b0   : > { %v1282_v60 = vpop.f32.mrf.mxu3 }
 0x1b1   : > { %v1283_v63 = vadd.f32 %v1282_v60, %v1194_v58 }
 0x1b2   : > { %v1262_v62 = vpop.f32.mrf.mxu2  ;;  %v1086_v3 = vpop.f32.mrf.mxu0 }
 0x1b3   : > { %v1263_v2 = vadd.f32 %v1262_v62, %v1174_v57  ;;  %v1326_v4 = vadd.f32 %v1283_v63, %v515_v59  ;;  %v1175_v5 = vpop.f32.mrf.mxu1  ;;  %v520_v63 = vld [vmem:[#allocation2 + $0xf8] sm:$0xff] }
 0x1b4   : > { %v1176_v9 = vadd.f32 %v1175_v5, %v1086_v3  ;;  %v512_v3 = vld [vmem:[#allocation2 + $0x90] sm:$0xff] }
 0x1b5   : > { %v1318_v6 = vadd.f32 %v1263_v2, %v507_v61  ;;  %1358 = vst [vmem:[#allocation2 + $0xa8] sm:$0xff] %v1326_v4  ;;  %v1206_v61 = vadd.f32 %v2861_v28, %v2845_v17  ;;  %v513_v17 = vld [vmem:[#allocation2 + $0x70] sm:$0xff] }
 0x1b7   : > { %1350 = vst [vmem:[#allocation2 + $0x38] sm:$0xff] %v1318_v6 }
 0x1b8   : > { %v1284_v12 = vpop.f32.mrf.mxu3 }
 0x1b9   : > { %v1285_v47 = vadd.f32 %v1284_v12, %v1196_v7  ;;  %v1209_v12 = vadd.f32 %v2863_v38, %v2847_v30 }
 0x1ba   : > { %v1264_v8 = vpop.f32.mrf.mxu2  ;;  %v1089_v15 = vpop.f32.mrf.mxu0 }
 0x1bb   : > { %v1265_v14 = vadd.f32 %v1264_v8, %v1176_v9  ;;  %v1327_v16 = vadd.f32 %v1285_v47, %v516_v11  ;;  %v1178_v18 = vpop.f32.mrf.mxu1 }
 0x1bc   : > { %v1179_v21 = vadd.f32 %v1178_v18, %v1089_v15 }
 0x1bd   : > { %v1319_v20 = vadd.f32 %v1265_v14, %v508_v13  ;;  %1359 = vst [vmem:[#allocation2 + $0xd0] sm:$0xff] %v1327_v16  ;;  %v521_v13 = vld [vmem:[#allocation2 + $0x20] sm:$0xff] }
 0x1bf   : > { %1351 = vst [vmem:[#allocation2 + $0x58] sm:$0xff] %v1319_v20 }
 0x1c0   : > { %v1287_v26 = vpop.f32.mrf.mxu3 }
 0x1c1   : > { %v1288_v24 = vadd.f32 %v1287_v26, %v1199_v22 }
 0x1c2   : > { %v1267_v56 = vpop.f32.mrf.mxu2  ;;  %v1091_v29 = vpop.f32.mrf.mxu0 }
 0x1c3   : > { %v1268_v27 = vadd.f32 %v1267_v56, %v1179_v21  ;;  %v1328_v31 = vadd.f32 %v1288_v24, %v517_v23  ;;  %v1180_v32 = vpop.f32.mrf.mxu1  ;;  %v1211_v21 = vadd.f32 %v2865_v48, %v2849_v39  ;;  %v522_v23 = vld [vmem:[#allocation2 + $0x98] sm:$0xff] }
 0x1c4   : > { %v1181_v35 = vadd.f32 %v1180_v32, %v1091_v29 }
 0x1c5   : > { %v1320_v33 = vadd.f32 %v1268_v27, %v509_v25  ;;  %1360 = vst [vmem:[#allocation2 + $0x10] sm:$0xff] %v1328_v31  ;;  %v514_v25 = vld [vmem:[#allocation2 + $0xc0] sm:$0xff] }
 0x1c7   : > { %1352 = vst [vmem:[#allocation2 + $0x40] sm:$0xff] %v1320_v33 }
 0x1c8   : > { %v1289_v40 = vpop.f32.mrf.mxu3 }
 0x1c9   : > { %v1290_v1 = vadd.f32 %v1289_v40, %v1201_v34 }
 0x1ca   : > { %v1269_v36 = vpop.f32.mrf.mxu2  ;;  %v1094_v43 = vpop.f32.mrf.mxu0 }
 0x1cb   : > { %v1270_v42 = vadd.f32 %v1269_v36, %v1181_v35  ;;  %v1329_v44 = vadd.f32 %v1290_v1, %v518_v37  ;;  %v1183_v45 = vpop.f32.mrf.mxu1 }
 0x1cc   : > { %v1184_v49 = vadd.f32 %v1183_v45, %v1094_v43 }
 0x1cd   : > { %v1321_v46 = vadd.f32 %v1270_v42, %v510_v41  ;;  %1361 = vst [vmem:[#allocation2 + $0x28] sm:$0xff] %v1329_v44 }
 0x1cf   : > { %1353 = vst [vmem:[#allocation2 + $0xc8] sm:$0xff] %v1321_v46 }
 0x1d0   : > { %v1292_v53 = vpop.f32.mrf.mxu3 }
 0x1d1   : > { %v1293_v54 = vadd.f32 %v1292_v53, %v1204_v50 }
 0x1d2   : > { %v1272_v10 = vpop.f32.mrf.mxu2  ;;  %v1096_v57 = vpop.f32.mrf.mxu0 }
 0x1d3   : > { %v1273_v55 = vadd.f32 %v1272_v10, %v1184_v49  ;;  %v1330_v58 = vadd.f32 %v1293_v54, %v519_v51  ;;  %v1185_v59 = vpop.f32.mrf.mxu1 }
 0x1d4   : > { %v1186_v62 = vadd.f32 %v1185_v59, %v1096_v57 }
 0x1d5   : > { %v1322_v60 = vadd.f32 %v1273_v55, %v511_v52  ;;  %1362 = vst [vmem:[#allocation2 + $0xa0] sm:$0xff] %v1330_v58 }
 0x1d7   : > { %1354 = vst [vmem:[#allocation2 + $0xe0] sm:$0xff] %v1322_v60 }
 0x1d8   : > { %v1294_v2 = vpop.f32.mrf.mxu3 }
 0x1d9   : > { %v1295_v19 = vadd.f32 %v1294_v2, %v1206_v61 }
 0x1da   : > { %v1274_v0 = vpop.f32.mrf.mxu2  ;;  %v1099_v6 = vpop.f32.mrf.mxu0 }
 0x1db   : > { %v1275_v4 = vadd.f32 %v1274_v0, %v1186_v62  ;;  %v1331_v5 = vadd.f32 %v1295_v19, %v520_v63  ;;  %v1188_v7 = vpop.f32.mrf.mxu1 }
 0x1dc   : > { %v1189_v11 = vadd.f32 %v1188_v7, %v1099_v6 }
 0x1dd   : > { %v1323_v9 = vadd.f32 %v1275_v4, %v512_v3  ;;  %1363 = vst [vmem:[#allocation2 + $0xf8] sm:$0xff] %v1331_v5 }
 0x1df   : > { %1355 = vst [vmem:[#allocation2 + $0x90] sm:$0xff] %v1323_v9 }
 0x1e0   : > { %v1297_v8 = vpop.f32.mrf.mxu3 }
 0x1e1   : > { %v1298_v47 = vadd.f32 %v1297_v8, %v1209_v12 }
 0x1e2   : > { %v1277_v28 = vpop.f32.mrf.mxu2  ;;  %v1101_v18 = vpop.f32.mrf.mxu0 }
 0x1e3   : > { %v1278_v14 = vadd.f32 %v1277_v28, %v1189_v11  ;;  %v1332_v15 = vadd.f32 %v1298_v47, %v521_v13  ;;  %v1190_v20 = vpop.f32.mrf.mxu1 }
 0x1e4   : > { %v1191_v22 = vadd.f32 %v1190_v20, %v1101_v18 }
 0x1e5   : > { %v1324_v16 = vadd.f32 %v1278_v14, %v513_v17  ;;  %1364 = vst [vmem:[#allocation2 + $0x20] sm:$0xff] %v1332_v15 }
 0x1e7   : > { %1356 = vst [vmem:[#allocation2 + $0x70] sm:$0xff] %v1324_v16 }
 0x1e8   : > { %v1299_v26 = vpop.f32.mrf.mxu3 }
 0x1e9   : > { %v1300_v38 = vadd.f32 %v1299_v26, %v1211_v21 }
 0x1ea   : > { %v1279_v30 = vpop.f32.mrf.mxu2 }
 0x1eb   : > { %v1280_v56 = vadd.f32 %v1279_v30, %v1191_v22  ;;  %v1333_v24 = vadd.f32 %v1300_v38, %v522_v23  ;;  %1369 = sbr.rel (%p2117_p0) target bundleno = 574 (0x23e), region = 62 }
 0x1ed   : > { %v1325_v27 = vadd.f32 %v1280_v56, %v514_v25  ;;  %1365 = vst [vmem:[#allocation2 + $0x98] sm:$0xff] %v1333_v24 }
 0x1ef   : > { %1357 = vst [vmem:[#allocation2 + $0xc0] sm:$0xff] %v1325_v27 }
 0x1f0   : > { %v1370_v29 = vld [vmem:[#allocation2 + $0xb0] sm:$0xff]  ;;  %v1371_v31 = vld [vmem:[#allocation2] sm:$0xff]  ;;  %v1372_v32 = vld [vmem:[#allocation2 + $0xd8] sm:$0xff] }
 0x1f1   : > { %v2195_v33 = vpack.c.bf16 %v1371_v31, %v1370_v29  ;;  %v1466_v39 = vadd.f32 %v1371_v31, %v1370_v29  ;;  %v1504_v48 = vmul.f32 %v1370_v29, %v1370_v29  ;;  %v1505_v34 = vmul.f32 %v1371_v31, %v1371_v31  ;;  %v1373_v35 = vld [vmem:[#allocation2 + $0x18] sm:$0xff]  ;;  %v1374_v37 = vld [vmem:[#allocation2 + $0x50] sm:$0xff]  ;;  %v1375_v40 = vld [vmem:[#allocation2 + $0x68] sm:$0xff] }
 0x1f2   : > { %v2200_v41 = vpack.c.bf16 %v1373_v35, %v1372_v32  ;;  %v1506_v36 = vmul.f32 %v1372_v32, %v1372_v32  ;;  %v2205_v1 = vpack.c.bf16 %v1375_v40, %v1374_v37  ;;  %v1376_v42 = vld [vmem:[#allocation2 + $0x30] sm:$0xff]  ;;  %v1507_v45 = vmul.f32 %v1373_v35, %v1373_v35  ;;  %v1377_v46 = vld [vmem:[#allocation2 + $0x48] sm:$0xff]  ;;  %v1378_v49 = vld [vmem:[#allocation2 + $0x80] sm:$0xff] }
 0x1f3   : > { %2196 = vst [vmem:[%s2659_s8] sm:$0xff] %v2195_v33   ;;  %v1536_v43 = vadd.f32 %v1505_v34, %v1504_v48  ;;  %v1467_v44 = vadd.f32 %v1466_v39, %v1372_v32  ;;  %v1379_v50 = vld [vmem:[#allocation2 + $0x88] sm:$0xff]  ;;  %v2210_v51 = vpack.c.bf16 %v1377_v46, %v1376_v42  ;;  %v1508_v55 = vmul.f32 %v1374_v37, %v1374_v37  ;;  %v1381_v57 = vld [vmem:[#allocation2 + $0xb8] sm:$0xff]  ;;  %v1382_v58 = vld [vmem:[#allocation2 + $0x60] sm:$0xff] }
 0x1f4   : > { %2272 = vst [vmem:[%s2659_s8 + $0x8] sm:$0xff] %v2200_v41   ;;  %v2215_v53 = vpack.c.bf16 %v1379_v50, %v1378_v49  ;;  %v1380_v52 = vld [vmem:[#allocation2 + $0xe8] sm:$0xff]  ;;  %v2887_v59 = vld [vmem:[#allocation2 + $0xf0] sm:$0xff]  ;;  %v1509_v3 = vmul.f32 %v1375_v40, %v1375_v40  ;;  %v2894_v0 = vld [vmem:[#allocation2 + $0x78] sm:$0xff]  ;;  %v1510_v12 = vmul.f32 %v1376_v42, %v1376_v42  ;;  %v1511_v16 = vmul.f32 %v1377_v46, %v1377_v46 }
 0x1f5   : > { %v1468_v10 = vadd.f32 %v1467_v44, %v1373_v35  ;;  %v1537_v54 = vadd.f32 %v1536_v43, %v1506_v36  ;;  %2273 = vst [vmem:[%s2659_s8 + $0x10] sm:$0xff] %v2205_v1   ;;  %v2220_v60 = vpack.c.bf16 %v1381_v57, %v1380_v52  ;;  %v2225_v61 = vpack.c.bf16 %v2887_v59, %v1382_v58  ;;  %v2891_v62 = vld [vmem:[#allocation2 + $0x8] sm:$0xff]  ;;  %v2896_v19 = vld [vmem:[#allocation2 + $0x38] sm:$0xff]  ;;  %v2905_v7 = vld [vmem:[#allocation2 + $0x40] sm:$0xff] }
 0x1f6   : > { %2274 = vst [vmem:[%s2659_s8 + $0x18] sm:$0xff] %v2210_v51   ;;  %v2898_v4 = vld [vmem:[#allocation2 + $0x58] sm:$0xff]  ;;  %v2230_v5 = vpack.c.bf16 %v2894_v0, %v2891_v62  ;;  %v2908_v13 = vld [vmem:[#allocation2 + $0xc8] sm:$0xff]  ;;  %v2910_v8 = vld [vmem:[#allocation2 + $0xe0] sm:$0xff]  ;;  %v1512_v26 = vmul.f32 %v1378_v49, %v1378_v49  ;;  %v1513_v38 = vmul.f32 %v1379_v50, %v1379_v50  ;;  %v1514_v32 = vmul.f32 %v1380_v52, %v1380_v52 }
 0x1f7   : > { %v1538_v63 = vadd.f32 %v1537_v54, %v1507_v45  ;;  %v1469_v2 = vadd.f32 %v1468_v10, %v1374_v37  ;;  %2275 = vst [vmem:[%s2659_s8 + $0x20] sm:$0xff] %v2215_v53   ;;  %v2235_v6 = vpack.c.bf16 %v2898_v4, %v2896_v19  ;;  %v2912_v17 = vld [vmem:[#allocation2 + $0x90] sm:$0xff]  ;;  %v2240_v28 = vpack.c.bf16 %v2908_v13, %v2905_v7  ;;  %v2922_v20 = vld [vmem:[#allocation2 + $0xc0] sm:$0xff]  ;;  %v1394_v56 = vld [vmem:[#allocation2 + $0xa8] sm:$0xff] }
 0x1f8   : > { %2276 = vst [vmem:[%s2659_s8 + $0x28] sm:$0xff] %v2220_v60   ;;  %v2245_v47 = vpack.c.bf16 %v2912_v17, %v2910_v8  ;;  %v2920_v18 = vld [vmem:[#allocation2 + $0x70] sm:$0xff]  ;;  %v1515_v48 = vmul.f32 %v1381_v57, %v1381_v57  ;;  %v1397_v35 = vld [vmem:[#allocation2 + $0x28] sm:$0xff]  ;;  %v1516_v36 = vmul.f32 %v1382_v58, %v1382_v58  ;;  %v1517_v43 = vmul.f32 %v2887_v59, %v2887_v59  ;;  %v1398_v44 = vld [vmem:[#allocation2 + $0xa0] sm:$0xff] }
 0x1f9   : > { %v1470_v9 = vadd.f32 %v1469_v2, %v1375_v40  ;;  %v1539_v11 = vadd.f32 %v1538_v63, %v1508_v55  ;;  %2277 = vst [vmem:[%s2659_s8 + $0x30] sm:$0xff] %v2225_v61   ;;  %v2250_v21 = vpack.c.bf16 %v2922_v20, %v2920_v18  ;;  %v2929_v24 = vld [vmem:[#allocation2 + $0xd0] sm:$0xff]  ;;  %v1399_v45 = vld [vmem:[#allocation2 + $0xf8] sm:$0xff]  ;;  %v1518_v51 = vmul.f32 %v2891_v62, %v2891_v62  ;;  %v1400_v54 = vld [vmem:[#allocation2 + $0x20] sm:$0xff] }
 0x1fa   : > { %2278 = vst [vmem:[%s2659_s8 + $0x38] sm:$0xff] %v2230_v5   ;;  %v2255_v27 = vpack.c.bf16 %v2929_v24, %v1394_v56  ;;  %v1396_v34 = vld [vmem:[#allocation2 + $0x10] sm:$0xff]  ;;  %v1519_v10 = vmul.f32 %v2894_v0, %v2894_v0  ;;  %v1401_v55 = vld [vmem:[#allocation2 + $0x98] sm:$0xff]  ;;  %v1521_v2 = vmul.f32 %v2898_v4, %v2898_v4  ;;  %v1522_v5 = vmul.f32 %v2905_v7, %v2905_v7 }
 0x1fb   : > { %v1540_v14 = vadd.f32 %v1539_v11, %v1509_v3  ;;  %v1471_v15 = vadd.f32 %v1470_v9, %v1376_v42  ;;  %2279 = vst [vmem:[%s2659_s8 + $0x40] sm:$0xff] %v2235_v6   ;;  %v2260_v37 = vpack.c.bf16 %v1397_v35, %v1396_v34  ;;  %v1523_v9 = vmul.f32 %v2908_v13, %v2908_v13 }
 0x1fc   : > { %2280 = vst [vmem:[%s2659_s8 + $0x48] sm:$0xff] %v2240_v28  }
 0x1fd   : > { %v1472_v22 = vadd.f32 %v1471_v15, %v1377_v46  ;;  %v1541_v23 = vadd.f32 %v1540_v14, %v1510_v12  ;;  %2281 = vst [vmem:[%s2659_s8 + $0x50] sm:$0xff] %v2245_v47   ;;  %v2265_v46 = vpack.c.bf16 %v1399_v45, %v1398_v44 }
 0x1fe   : > { %2282 = vst [vmem:[%s2659_s8 + $0x58] sm:$0xff] %v2250_v21  }
 0x1ff   : > { %v1542_v25 = vadd.f32 %v1541_v23, %v1511_v16  ;;  %v1473_v30 = vadd.f32 %v1472_v22, %v1378_v49  ;;  %2283 = vst [vmem:[%s2659_s8 + $0x60] sm:$0xff] %v2255_v27   ;;  %v1530_v27 = vmul.f32 %v1396_v34, %v1396_v34 }
 0x200   : > { %2284 = vst [vmem:[%s2659_s8 + $0x68] sm:$0xff] %v2260_v37  }
 0x201   : > { %v1474_v29 = vadd.f32 %v1473_v30, %v1379_v50  ;;  %v1543_v31 = vadd.f32 %v1542_v25, %v1512_v26  ;;  %2285 = vst [vmem:[%s2659_s8 + $0x70] sm:$0xff] %v2265_v46   ;;  %v1528_v26 = vmul.f32 %v1394_v56, %v1394_v56  ;;  %v1529_v30 = vmul.f32 %v2929_v24, %v2929_v24 }
 0x203   : > { %v1544_v33 = vadd.f32 %v1543_v31, %v1513_v38  ;;  %v1475_v39 = vadd.f32 %v1474_v29, %v1380_v52 }
 0x205   : > { %v1476_v40 = vadd.f32 %v1475_v39, %v1381_v57  ;;  %v1545_v41 = vadd.f32 %v1544_v33, %v1514_v32  ;;  %v2270_v57 = vpack.c.bf16 %v1401_v55, %v1400_v54  ;;  %v1531_v32 = vmul.f32 %v1397_v35, %v1397_v35 }
 0x206   : > { %v1532_v39 = vmul.f32 %v1398_v44, %v1398_v44 }
 0x207   : > { %v1546_v1 = vadd.f32 %v1545_v41, %v1515_v48  ;;  %v1477_v42 = vadd.f32 %v1476_v40, %v1382_v58  ;;  %2286 = vst [vmem:[%s2659_s8 + $0x78] sm:$0xff] %v2270_v57  }
 0x209   : > { %v1478_v49 = vadd.f32 %v1477_v42, %v2887_v59  ;;  %v1547_v50 = vadd.f32 %v1546_v1, %v1516_v36  ;;  %v1520_v59 = vmul.f32 %v2896_v19, %v2896_v19  ;;  %v1534_v36 = vmul.f32 %v1400_v54, %v1400_v54 }
 0x20a   : > { %v1535_v42 = vmul.f32 %v1401_v55, %v1401_v55 }
 0x20b   : > { %v1548_v53 = vadd.f32 %v1547_v50, %v1517_v43  ;;  %v1479_v52 = vadd.f32 %v1478_v49, %v2891_v62 }
 0x20d   : > { %v1480_v58 = vadd.f32 %v1479_v52, %v2894_v0  ;;  %v1549_v60 = vadd.f32 %v1548_v53, %v1518_v51 }
 0x20f   : > { %v1550_v61 = vadd.f32 %v1549_v60, %v1519_v10  ;;  %v1481_v63 = vadd.f32 %v1480_v58, %v2896_v19  ;;  %v1524_v19 = vmul.f32 %v2910_v8, %v2910_v8 }
 0x211   : > { %v1482_v62 = vadd.f32 %v1481_v63, %v2898_v4  ;;  %v1551_v3 = vadd.f32 %v1550_v61, %v1520_v59  ;;  %v1525_v4 = vmul.f32 %v2912_v17, %v2912_v17 }
 0x213   : > { %v1552_v6 = vadd.f32 %v1551_v3, %v1521_v2  ;;  %v1483_v0 = vadd.f32 %v1482_v62, %v2905_v7  ;;  %v1526_v7 = vmul.f32 %v2920_v18, %v2920_v18 }
 0x215   : > { %v1484_v11 = vadd.f32 %v1483_v0, %v2908_v13  ;;  %v1553_v12 = vadd.f32 %v1552_v6, %v1522_v5  ;;  %v1527_v13 = vmul.f32 %v2922_v20, %v2922_v20 }
 0x217   : > { %v1554_v28 = vadd.f32 %v1553_v12, %v1523_v9  ;;  %v1485_v47 = vadd.f32 %v1484_v11, %v2910_v8 }
 0x219   : > { %v1486_v14 = vadd.f32 %v1485_v47, %v2912_v17  ;;  %v1555_v15 = vadd.f32 %v1554_v28, %v1524_v19 }
 0x21b   : > { %v1556_v16 = vadd.f32 %v1555_v15, %v1525_v4  ;;  %v1487_v21 = vadd.f32 %v1486_v14, %v2920_v18 }
 0x21d   : > { %v1488_v22 = vadd.f32 %v1487_v21, %v2922_v20  ;;  %v1557_v23 = vadd.f32 %v1556_v16, %v1526_v7  ;;  %v1533_v20 = vmul.f32 %v1399_v45, %v1399_v45 }
 0x21f   : > { %v1558_v8 = vadd.f32 %v1557_v23, %v1527_v13  ;;  %v1489_v25 = vadd.f32 %v1488_v22, %v1394_v56 }
 0x221   : > { %v1490_v17 = vadd.f32 %v1489_v25, %v2929_v24  ;;  %v1559_v38 = vadd.f32 %v1558_v8, %v1528_v26 }
 0x223   : > { %v1560_v29 = vadd.f32 %v1559_v38, %v1529_v30  ;;  %v1491_v31 = vadd.f32 %v1490_v17, %v1396_v34 }
 0x225   : > { %v1492_v18 = vadd.f32 %v1491_v31, %v1397_v35  ;;  %v1561_v33 = vadd.f32 %v1560_v29, %v1530_v27 }
 0x227   : > { %v1562_v48 = vadd.f32 %v1561_v33, %v1531_v32  ;;  %v1493_v37 = vadd.f32 %v1492_v18, %v1398_v44 }
 0x229   : > { %v1494_v40 = vadd.f32 %v1493_v37, %v1399_v45  ;;  %v1563_v41 = vadd.f32 %v1562_v48, %v1532_v39 }
 0x22b   : > { %v1564_v56 = vadd.f32 %v1563_v41, %v1533_v20  ;;  %v1495_v1 = vadd.f32 %v1494_v40, %v1400_v54 }
 0x22d   : > { %v1496_v43 = vadd.f32 %v1495_v1, %v1401_v55  ;;  %v1565_v24 = vadd.f32 %v1564_v56, %v1534_v36 }
 0x22f   : > { %v1497_v46 = vrot.slane %v1496_v43, 4  ;;  %v1566_v49 = vadd.f32 %v1565_v24, %v1535_v42 }
 0x231   : > { %v1498_v34 = vadd.f32 %v1497_v46, %v1496_v43  ;;  %v1567_v50 = vrot.slane %v1566_v49, 4 }
 0x233   : > { %v1499_v35 = vrot.slane %v1498_v34, 2  ;;  %v1568_v51 = vadd.f32 %v1567_v50, %v1566_v49 }
 0x235   : > { %v1500_v53 = vadd.f32 %v1499_v35, %v1498_v34  ;;  %v1569_v52 = vrot.slane %v1568_v51, 2 }
 0x237   : > { %v1501_v44 = vrot.slane %v1500_v53, 1  ;;  %v1570_v10 = vadd.f32 %v1569_v52, %v1568_v51 }
 0x239   : > { %v1502_v45 = vadd.f32 %v1501_v44, %v1500_v53  ;;  %v1571_v57 = vrot.slane %v1570_v10, 1 }
 0x23b   : > { %1503 = vst [vmem:[%s448_s10] sm:$0x1] %v1502_v45  ;;  %v1572_v54 = vadd.f32 %v1571_v57, %v1570_v10 }
 0x23d   : > { %1573 = vst [vmem:[%s454_s13] sm:$0x1] %v1572_v54 }
 0x23e PF: > { %s15_s21 = sadd.s32 1, %s2425_s21   ;;  %s3008_s15 = smov %s2405_s16 }
 0x23f   : > { %p12_p1 = scmp.ge.s32.totalorder %s15_s21, 8   ;;  %s3009_s16 = smov %s2504_s28 }
 0x240   : > { %s3010_s17 = smov %s2417_s19  ;;  %s3011_s18 = smov %s2421_s20 }
 0x241   : > { %s3012_s19 = smov %s3015_s22  ;;  %s3013_s20 = smov %s3019_s23 }
 0x242   :  { %14 = sbr.rel (!%p12_p1) target bundleno = 4 (0x4), region = 130 }

// kernel: resnet_forward.51
= control target key start
LH: loop header
LB: loop body
LE: loop exit
PB: predicated region body
PF: predicated region fallthrough
CT: control target
= control target key end

     0   :  { %s103_s0 = inlined_call_operand.vmem [shape: f32[1,1,128], index: 0, kind: input, shape index: {}]   ;;  %s104_s1 = inlined_call_operand.vmem [shape: f32[1,1,128], index: 1, kind: input, shape index: {}]   ;;  %s105_s2 = inlined_call_operand.vmem [shape: f32[1,128], index: 2, kind: input, shape index: {}]   ;;  %s106_s3 = inlined_call_operand.vmem [shape: f32[1,128], index: 3, kind: input, shape index: {}]   ;;  %s107_s4 = inlined_call_operand.vmem [shape: f32[1,128], index: 4, kind: output, shape index: {0}]   ;;  %s108_s5 = inlined_call_operand.vmem [shape: f32[1,128], index: 5, kind: output, shape index: {1}]  }
   0x1   :  { %v19_v0 = vld [vmem:[%s103_s0] sm:$0x1] }
   0x2   :  { %v21_v1 = vld [vmem:[%s104_s1] sm:$0x1]  ;;  %v23_v2 = vmul.f32 0.0078125, %v19_v0 }
   0x3   :  { %v24_v3 = vmul.f32 0.0078125, %v21_v1  ;;  %v38_v13 = vld [vmem:[%s105_s2] sm:$0x1] }
   0x4   :  { %v25_v4 = vmul.f32 %v23_v2, %v23_v2  ;;  %v41_v16 = vld [vmem:[%s106_s3] sm:$0x1] }
   0x6   :  { %v26_v5 = vsub.f32 %v24_v3, %v25_v4 }
   0x8   :  { %v27_v6 = vadd.f32 1e-05, %v26_v5 }
   0xa   :  { %53 = vrsqrt.f32 %v27_v6  ;;  %vm34_vm0 = vweird.f32 %v27_v6 }
  0x10   :  { %v54_v7 = vpop.eup %53 }
  0x11   :  { %v29_v8 = vmul.f32 %v54_v7, %v27_v6  ;;  %vm35_vm1 = vweird.f32 %v54_v7 }
  0x12   :  { %vm36_vm2 = vmor %vm34_vm0, %vm35_vm1 }
  0x13   :  { %v30_v9 = vmul.f32 %v54_v7, %v29_v8 }
  0x15   :  { %v31_v10 = vmul.f32 0.5, %v30_v9 }
  0x17   :  { %v32_v11 = vsub.f32 1.5, %v31_v10 }
  0x19   :  { %v33_v12 = vmul.f32 %v54_v7, %v32_v11 }
  0x1b   :  { %v37_v14 = vsel %vm36_vm2, %v54_v7, %v33_v12 }
  0x1c   :  { %v39_v15 = vmul.f32 %v38_v13, %v37_v14 }
  0x1e   :  { %40 = vst [vmem:[%s107_s4] sm:$0x1] %v39_v15  ;;  %v42_v17 = vmul.f32 %v39_v15, %v23_v2 }
  0x20   :  { %v43_v18 = vsub.f32 %v41_v16, %v42_v17 }
  0x22   :  { %44 = vst [vmem:[%s108_s5] sm:$0x1] %v43_v18 }

// kernel: resnet_forward.50
= control target key start
LH: loop header
LB: loop body
LE: loop exit
PB: predicated region body
PF: predicated region fallthrough
CT: control target
= control target key end

     0   :  { %s642_s1 = inlined_call_operand.vmem [shape: bf16[128,128], index: 1, kind: input, shape index: {}]   ;;  %s643_s0 = inlined_call_operand.vmem [shape: bf16[128,128], index: 0, kind: input, shape index: {}]   ;;  %s644_s2 = inlined_call_operand.vmem [shape: bf16[128,128], index: 2, kind: output, shape index: {0}]   ;;  %s645_s3 = inlined_call_operand.vmem [shape: f32[1,1,128], index: 3, kind: output, shape index: {1}]   ;;  %s646_s4 = inlined_call_operand.vmem [shape: f32[1,1,128], index: 4, kind: output, shape index: {2}]  }
   0x1   :  { %v461_v0 = vld [vmem:[%s642_s1 + $0x38] sm:$0xff]  ;;  %v460_v1 = vld [vmem:[%s642_s1 + $0x30] sm:$0xff]  ;;  %v459_v2 = vld [vmem:[%s642_s1 + $0x28] sm:$0xff] }
   0x2   :  { %178 = vmatpush.bf16.msra.mxu0 %v461_v0  ;;  %509 = vmatpush.bf16.msra.mxu1 %v461_v0  ;;  %v458_v3 = vld [vmem:[%s642_s1 + $0x20] sm:$0xff]  ;;  %v457_v4 = vld [vmem:[%s642_s1 + $0x18] sm:$0xff]  ;;  %v456_v5 = vld [vmem:[%s642_s1 + $0x10] sm:$0xff] }
   0x3   :  { %510 = vmatpush.bf16.msra.mxu2 %v461_v0  ;;  %511 = vmatpush.bf16.msra.mxu3 %v461_v0  ;;  %v455_v6 = vld [vmem:[%s642_s1 + $0x8] sm:$0xff]  ;;  %v454_v7 = vld [vmem:[%s642_s1] sm:$0xff]  ;;  %v448_v9 = vld [vmem:[%s643_s0 + $0x10] sm:$0xff] }
   0x4   :  { %v446_v8 = vld [vmem:[%s643_s0] sm:$0xff]  ;;  %v452_v11 = vld [vmem:[%s643_s0 + $0x30] sm:$0xff]  ;;  %v447_v12 = vld [vmem:[%s643_s0 + $0x8] sm:$0xff] }
   0x5   :  { %v450_v10 = vld [vmem:[%s643_s0 + $0x20] sm:$0xff]  ;;  %v449_v13 = vld [vmem:[%s643_s0 + $0x18] sm:$0xff]  ;;  %v451_v14 = vld [vmem:[%s643_s0 + $0x28] sm:$0xff] }
   0x6   :  { %179 = vmatpush.bf16.msra.mxu0 %v460_v1  ;;  %512 = vmatpush.bf16.msra.mxu1 %v460_v1  ;;  %v453_v15 = vld [vmem:[%s643_s0 + $0x38] sm:$0xff] }
   0x7   :  { %513 = vmatpush.bf16.msra.mxu2 %v460_v1  ;;  %514 = vmatpush.bf16.msra.mxu3 %v460_v1 }
   0xa   :  { %180 = vmatpush.bf16.msra.mxu0 %v459_v2  ;;  %515 = vmatpush.bf16.msra.mxu1 %v459_v2 }
   0xb   :  { %516 = vmatpush.bf16.msra.mxu2 %v459_v2  ;;  %517 = vmatpush.bf16.msra.mxu3 %v459_v2 }
   0xe   :  { %181 = vmatpush.bf16.msra.mxu0 %v458_v3  ;;  %518 = vmatpush.bf16.msra.mxu1 %v458_v3 }
   0xf   :  { %519 = vmatpush.bf16.msra.mxu2 %v458_v3  ;;  %520 = vmatpush.bf16.msra.mxu3 %v458_v3 }
  0x12   :  { %182 = vmatpush.bf16.msra.mxu0 %v457_v4  ;;  %521 = vmatpush.bf16.msra.mxu1 %v457_v4 }
  0x13   :  { %522 = vmatpush.bf16.msra.mxu2 %v457_v4  ;;  %523 = vmatpush.bf16.msra.mxu3 %v457_v4 }
  0x16   :  { %183 = vmatpush.bf16.msra.mxu0 %v456_v5  ;;  %524 = vmatpush.bf16.msra.mxu1 %v456_v5 }
  0x17   :  { %525 = vmatpush.bf16.msra.mxu2 %v456_v5  ;;  %526 = vmatpush.bf16.msra.mxu3 %v456_v5 }
  0x1a   :  { %184 = vmatpush.bf16.msra.mxu0 %v455_v6  ;;  %527 = vmatpush.bf16.msra.mxu1 %v455_v6 }
  0x1b   :  { %528 = vmatpush.bf16.msra.mxu2 %v455_v6  ;;  %529 = vmatpush.bf16.msra.mxu3 %v455_v6 }
  0x1e   :  { %185 = vmatpush.bf16.msra.mxu0 %v454_v7  ;;  %530 = vmatpush.bf16.msra.mxu1 %v454_v7 }
  0x1f   :  { %531 = vmatpush.bf16.msra.mxu2 %v454_v7  ;;  %532 = vmatpush.bf16.msra.mxu3 %v454_v7 }
  0x21   :  { %186 = vmatmul.bf16.vlgmr.msra.gmra.mxu0 %v446_v8  ;;  %196 = vmatmul.bf16.vlgmr.msra.gmra.mxu1 %v448_v9 }
  0x22   :  { %206 = vmatmul.bf16.vlgmr.msra.gmra.mxu2 %v450_v10  ;;  %216 = vmatmul.bf16.vlgmr.msra.gmra.mxu3 %v452_v11 }
  0x31   :  { %191 = vmatmul.bf16.gmra.mxu0 %v447_v12  ;;  %201 = vmatmul.bf16.gmra.mxu1 %v449_v13 }
  0x32   :  { %211 = vmatmul.bf16.gmra.mxu2 %v451_v14  ;;  %221 = vmatmul.bf16.gmra.mxu3 %v453_v15 }
  0x9e   :  { %v187_v16 = vpop.f32.mrf.mxu0  ;;  %v197_v17 = vpop.f32.mrf.mxu1 }
  0x9f   :  { %v332_v31 = vmul.f32 %v187_v16, %v187_v16  ;;  %v336_v45 = vmul.f32 %v197_v17, %v197_v17 }
  0xa5   :  { %v207_v18 = vpop.f32.mrf.mxu2  ;;  %v606_v19 = vpop.f32.mrf.mxu3 }
  0xa6   :  { %v189_v20 = vpop.f32.mrf.mxu0  ;;  %v199_v21 = vpop.f32.mrf.mxu1  ;;  %v340_v61 = vmul.f32 %v207_v18, %v207_v18  ;;  %v344_v9 = vmul.f32 %v606_v19, %v606_v19 }
  0xa7   :  { %v465_v22 = vpack.c.bf16 %v189_v20, %v187_v16  ;;  %v475_v23 = vpack.c.bf16 %v199_v21, %v197_v17  ;;  %v333_v30 = vmul.f32 %v189_v20, %v189_v20  ;;  %v310_v33 = vadd.f32 %v189_v20, %v187_v16 }
  0xa8   :  { %v337_v48 = vmul.f32 %v199_v21, %v199_v21 }
  0xa9   :  { %466 = vst [vmem:[%s644_s2] sm:$0xff] %v465_v22   ;;  %v348_v34 = vadd.f32 %v333_v30, %v332_v31 }
  0xaa   :  { %503 = vst [vmem:[%s644_s2 + $0x10] sm:$0xff] %v475_v23  }
  0xad   :  { %v209_v24 = vpop.f32.mrf.mxu2  ;;  %v219_v25 = vpop.f32.mrf.mxu3 }
  0xae   :  { %v192_v26 = vpop.f32.mrf.mxu0  ;;  %v202_v27 = vpop.f32.mrf.mxu1  ;;  %v485_v28 = vpack.c.bf16 %v209_v24, %v207_v18  ;;  %v495_v29 = vpack.c.bf16 %v219_v25, %v606_v19  ;;  %v341_v0 = vmul.f32 %v209_v24, %v209_v24  ;;  %v345_v12 = vmul.f32 %v219_v25, %v219_v25 }
  0xaf   :  { %v334_v32 = vmul.f32 %v192_v26, %v192_v26  ;;  %v311_v35 = vadd.f32 %v310_v33, %v192_v26  ;;  %v338_v51 = vmul.f32 %v202_v27, %v202_v27 }
  0xb0   :  { %505 = vst [vmem:[%s644_s2 + $0x20] sm:$0xff] %v485_v28  }
  0xb1   :  { %507 = vst [vmem:[%s644_s2 + $0x30] sm:$0xff] %v495_v29   ;;  %v349_v38 = vadd.f32 %v348_v34, %v334_v32 }
  0xb5   :  { %v212_v36 = vpop.f32.mrf.mxu2  ;;  %v222_v37 = vpop.f32.mrf.mxu3 }
  0xb6   :  { %v194_v39 = vpop.f32.mrf.mxu0  ;;  %v204_v40 = vpop.f32.mrf.mxu1  ;;  %v342_v4 = vmul.f32 %v212_v36, %v212_v36  ;;  %v346_v16 = vmul.f32 %v222_v37, %v222_v37 }
  0xb7   :  { %v470_v41 = vpack.c.bf16 %v194_v39, %v192_v26  ;;  %v312_v42 = vadd.f32 %v311_v35, %v194_v39  ;;  %v335_v43 = vmul.f32 %v194_v39, %v194_v39  ;;  %v480_v44 = vpack.c.bf16 %v204_v40, %v202_v27 }
  0xb8   :  { %v339_v59 = vmul.f32 %v204_v40, %v204_v40 }
  0xb9   :  { %502 = vst [vmem:[%s644_s2 + $0x8] sm:$0xff] %v470_v41   ;;  %v313_v46 = vadd.f32 %v312_v42, %v197_v17  ;;  %v350_v47 = vadd.f32 %v349_v38, %v335_v43 }
  0xba   :  { %504 = vst [vmem:[%s644_s2 + $0x18] sm:$0xff] %v480_v44  }
  0xbb   :  { %v351_v49 = vadd.f32 %v350_v47, %v336_v45  ;;  %v314_v50 = vadd.f32 %v313_v46, %v199_v21 }
  0xbd   :  { %v315_v52 = vadd.f32 %v314_v50, %v202_v27  ;;  %v352_v53 = vadd.f32 %v351_v49, %v337_v48  ;;  %v214_v54 = vpop.f32.mrf.mxu2  ;;  %v224_v55 = vpop.f32.mrf.mxu3 }
  0xbe   :  { %v490_v56 = vpack.c.bf16 %v214_v54, %v212_v36  ;;  %v500_v57 = vpack.c.bf16 %v224_v55, %v222_v37  ;;  %v343_v8 = vmul.f32 %v214_v54, %v214_v54  ;;  %v347_v21 = vmul.f32 %v224_v55, %v224_v55 }
  0xbf   :  { %v316_v58 = vadd.f32 %v315_v52, %v204_v40  ;;  %v353_v60 = vadd.f32 %v352_v53, %v338_v51 }
  0xc0   :  { %506 = vst [vmem:[%s644_s2 + $0x28] sm:$0xff] %v490_v56  }
  0xc1   :  { %v317_v62 = vadd.f32 %v316_v58, %v207_v18  ;;  %v354_v63 = vadd.f32 %v353_v60, %v339_v59  ;;  %508 = vst [vmem:[%s644_s2 + $0x38] sm:$0xff] %v500_v57  }
  0xc3   :  { %v355_v1 = vadd.f32 %v354_v63, %v340_v61  ;;  %v318_v2 = vadd.f32 %v317_v62, %v209_v24 }
  0xc5   :  { %v319_v3 = vadd.f32 %v318_v2, %v212_v36  ;;  %v356_v5 = vadd.f32 %v355_v1, %v341_v0 }
  0xc7   :  { %v357_v6 = vadd.f32 %v356_v5, %v342_v4  ;;  %v320_v7 = vadd.f32 %v319_v3, %v214_v54 }
  0xc9   :  { %v321_v10 = vadd.f32 %v320_v7, %v606_v19  ;;  %v358_v11 = vadd.f32 %v357_v6, %v343_v8 }
  0xcb   :  { %v359_v13 = vadd.f32 %v358_v11, %v344_v9  ;;  %v322_v14 = vadd.f32 %v321_v10, %v219_v25 }
  0xcd   :  { %v323_v15 = vadd.f32 %v322_v14, %v222_v37  ;;  %v360_v17 = vadd.f32 %v359_v13, %v345_v12 }
  0xcf   :  { %v361_v18 = vadd.f32 %v360_v17, %v346_v16  ;;  %v324_v20 = vadd.f32 %v323_v15, %v224_v55 }
  0xd1   :  { %v325_v22 = vrot.slane %v324_v20, 4  ;;  %v362_v23 = vadd.f32 %v361_v18, %v347_v21 }
  0xd3   :  { %v326_v24 = vadd.f32 %v325_v22, %v324_v20  ;;  %v363_v26 = vrot.slane %v362_v23, 4 }
  0xd5   :  { %v327_v27 = vrot.slane %v326_v24, 2  ;;  %v364_v28 = vadd.f32 %v363_v26, %v362_v23 }
  0xd7   :  { %v328_v29 = vadd.f32 %v327_v27, %v326_v24  ;;  %v365_v30 = vrot.slane %v364_v28, 2 }
  0xd9   :  { %v329_v31 = vrot.slane %v328_v29, 1  ;;  %v366_v19 = vadd.f32 %v365_v30, %v364_v28 }
  0xdb   :  { %v330_v32 = vadd.f32 %v329_v31, %v328_v29  ;;  %v367_v33 = vrot.slane %v366_v19, 1 }
  0xdd   :  { %331 = vst [vmem:[%s645_s3] sm:$0x1] %v330_v32  ;;  %v368_v25 = vadd.f32 %v367_v33, %v366_v19 }
  0xdf   :  { %369 = vst [vmem:[%s646_s4] sm:$0x1] %v368_v25 }

// kernel: resnet_forward.52
= control target key start
LH: loop header
LB: loop body
LE: loop exit
PB: predicated region body
PF: predicated region fallthrough
CT: control target
= control target key end

     0   :  { %s320_s0 = inlined_call_operand.vmem [shape: bf16[128,128], index: 0, kind: input, shape index: {}]   ;;  %s321_s1 = inlined_call_operand.vmem [shape: f32[1,128], index: 1, kind: input, shape index: {}]   ;;  %s322_s2 = inlined_call_operand.vmem [shape: f32[1,128], index: 2, kind: input, shape index: {}]   ;;  %s323_s3 = inlined_call_operand.vmem [shape: bf16[128,128], index: 3, kind: output, shape index: {}]  }
   0x1   :  { %v123_v0 = vld [vmem:[%s320_s0] sm:$0xff]   ;;  %v194_v5 = vld [vmem:[%s320_s0 + $0x8] sm:$0xff]   ;;  %v195_v8 = vld [vmem:[%s320_s0 + $0x10] sm:$0xff]  }
   0x2   :  { %v236_v1 = vld [vmem:[%s321_s1] ss:$0 sm:$0xff]  ;;  %v124_v2 = vunpack.c.l.bf16 %v123_v0  ;;  %v125_v3 = vunpack.c.h.bf16 %v123_v0  ;;  %v128_v6 = vunpack.c.l.bf16 %v194_v5  ;;  %v129_v7 = vunpack.c.h.bf16 %v194_v5  ;;  %v196_v9 = vld [vmem:[%s320_s0 + $0x18] sm:$0xff]   ;;  %v198_v27 = vld [vmem:[%s320_s0 + $0x28] sm:$0xff]  }
   0x3   :  { %v241_v4 = vld [vmem:[%s322_s2] ss:$0 sm:$0xff]  ;;  %v132_v12 = vunpack.c.l.bf16 %v195_v8  ;;  %v133_v13 = vunpack.c.h.bf16 %v195_v8  ;;  %v136_v16 = vunpack.c.l.bf16 %v196_v9  ;;  %v137_v17 = vunpack.c.h.bf16 %v196_v9  ;;  %v199_v32 = vld [vmem:[%s320_s0 + $0x30] sm:$0xff]   ;;  %v200_v37 = vld [vmem:[%s320_s0 + $0x38] sm:$0xff]  }
   0x4   :  { %v50_v10 = vmul.f32 %v236_v1, %v124_v2  ;;  %v51_v11 = vmul.f32 %v236_v1, %v125_v3  ;;  %v52_v14 = vmul.f32 %v236_v1, %v128_v6  ;;  %v53_v15 = vmul.f32 %v236_v1, %v129_v7  ;;  %v197_v18 = vld [vmem:[%s320_s0 + $0x20] sm:$0xff]  }
   0x5   :  { %v54_v21 = vmul.f32 %v236_v1, %v132_v12  ;;  %v55_v22 = vmul.f32 %v236_v1, %v133_v13  ;;  %v56_v25 = vmul.f32 %v236_v1, %v136_v16  ;;  %v57_v26 = vmul.f32 %v236_v1, %v137_v17 }
   0x6   :  { %v70_v19 = vadd.f32 %v241_v4, %v50_v10  ;;  %v71_v20 = vadd.f32 %v241_v4, %v51_v11  ;;  %v72_v23 = vadd.f32 %v241_v4, %v52_v14  ;;  %v73_v24 = vadd.f32 %v241_v4, %v53_v15 }
   0x7   :  { %v74_v29 = vadd.f32 %v241_v4, %v54_v21  ;;  %v75_v30 = vadd.f32 %v241_v4, %v55_v22  ;;  %v140_v31 = vunpack.c.l.bf16 %v197_v18  ;;  %v76_v34 = vadd.f32 %v241_v4, %v56_v25 }
   0x8   :  { %v157_v28 = vpack.c.bf16 %v71_v20, %v70_v19  ;;  %v162_v33 = vpack.c.bf16 %v73_v24, %v72_v23  ;;  %v77_v35 = vadd.f32 %v241_v4, %v57_v26  ;;  %v141_v36 = vunpack.c.h.bf16 %v197_v18 }
   0x9   :  { %v167_v38 = vpack.c.bf16 %v75_v30, %v74_v29  ;;  %v58_v39 = vmul.f32 %v236_v1, %v140_v31  ;;  %v144_v40 = vunpack.c.l.bf16 %v198_v27  ;;  %v145_v41 = vunpack.c.h.bf16 %v198_v27 }
   0xa   :  { %158 = vst [vmem:[%s323_s3] sm:$0xff] %v157_v28   ;;  %v172_v42 = vpack.c.bf16 %v77_v35, %v76_v34  ;;  %v59_v43 = vmul.f32 %v236_v1, %v141_v36  ;;  %v148_v44 = vunpack.c.l.bf16 %v199_v32  ;;  %v149_v45 = vunpack.c.h.bf16 %v199_v32 }
   0xb   :  { %201 = vst [vmem:[%s323_s3 + $0x8] sm:$0xff] %v162_v33   ;;  %v78_v46 = vadd.f32 %v241_v4, %v58_v39  ;;  %v60_v47 = vmul.f32 %v236_v1, %v144_v40  ;;  %v61_v48 = vmul.f32 %v236_v1, %v145_v41  ;;  %v152_v49 = vunpack.c.l.bf16 %v200_v37 }
   0xc   :  { %202 = vst [vmem:[%s323_s3 + $0x10] sm:$0xff] %v167_v38   ;;  %v79_v50 = vadd.f32 %v241_v4, %v59_v43  ;;  %v62_v51 = vmul.f32 %v236_v1, %v148_v44  ;;  %v63_v52 = vmul.f32 %v236_v1, %v149_v45  ;;  %v153_v53 = vunpack.c.h.bf16 %v200_v37 }
   0xd   :  { %203 = vst [vmem:[%s323_s3 + $0x18] sm:$0xff] %v172_v42   ;;  %v80_v54 = vadd.f32 %v241_v4, %v60_v47  ;;  %v81_v55 = vadd.f32 %v241_v4, %v61_v48  ;;  %v64_v56 = vmul.f32 %v236_v1, %v152_v49 }
   0xe   :  { %v177_v57 = vpack.c.bf16 %v79_v50, %v78_v46  ;;  %v82_v58 = vadd.f32 %v241_v4, %v62_v51  ;;  %v83_v59 = vadd.f32 %v241_v4, %v63_v52  ;;  %v65_v60 = vmul.f32 %v236_v1, %v153_v53 }
   0xf   :  { %v182_v61 = vpack.c.bf16 %v81_v55, %v80_v54  ;;  %v84_v62 = vadd.f32 %v241_v4, %v64_v56 }
  0x10   :  { %204 = vst [vmem:[%s323_s3 + $0x20] sm:$0xff] %v177_v57   ;;  %v187_v63 = vpack.c.bf16 %v83_v59, %v82_v58  ;;  %v85_v0 = vadd.f32 %v241_v4, %v65_v60 }
  0x11   :  { %205 = vst [vmem:[%s323_s3 + $0x28] sm:$0xff] %v182_v61  }
  0x12   :  { %206 = vst [vmem:[%s323_s3 + $0x30] sm:$0xff] %v187_v63   ;;  %v192_v2 = vpack.c.bf16 %v85_v0, %v84_v62 }
  0x14   :  { %207 = vst [vmem:[%s323_s3 + $0x38] sm:$0xff] %v192_v2  }

// kernel: resnet_forward.49
= control target key start
LH: loop header
LB: loop body
LE: loop exit
PB: predicated region body
PF: predicated region fallthrough
CT: control target
= control target key end

     0   :  { %s336_s0 = inlined_call_operand.vmem [shape: bf16[128,128], index: 0, kind: input, shape index: {}]   ;;  %s337_s1 = inlined_call_operand.vmem [shape: f32[1,128], index: 1, kind: input, shape index: {}]   ;;  %s338_s2 = inlined_call_operand.vmem [shape: f32[1,128], index: 2, kind: input, shape index: {}]   ;;  %s339_s3 = inlined_call_operand.vmem [shape: bf16[128,128], index: 3, kind: output, shape index: {}]  }
   0x1   :  { %v139_v0 = vld [vmem:[%s336_s0] sm:$0xff]   ;;  %v210_v5 = vld [vmem:[%s336_s0 + $0x8] sm:$0xff]   ;;  %v211_v8 = vld [vmem:[%s336_s0 + $0x10] sm:$0xff]  }
   0x2   :  { %v252_v1 = vld [vmem:[%s337_s1] ss:$0 sm:$0xff]  ;;  %v140_v2 = vunpack.c.l.bf16 %v139_v0  ;;  %v141_v3 = vunpack.c.h.bf16 %v139_v0  ;;  %v144_v6 = vunpack.c.l.bf16 %v210_v5  ;;  %v145_v7 = vunpack.c.h.bf16 %v210_v5  ;;  %v212_v9 = vld [vmem:[%s336_s0 + $0x18] sm:$0xff]   ;;  %v214_v35 = vld [vmem:[%s336_s0 + $0x28] sm:$0xff]  }
   0x3   :  { %v257_v4 = vld [vmem:[%s338_s2] ss:$0 sm:$0xff]  ;;  %v148_v12 = vunpack.c.l.bf16 %v211_v8  ;;  %v149_v13 = vunpack.c.h.bf16 %v211_v8  ;;  %v152_v16 = vunpack.c.l.bf16 %v212_v9  ;;  %v153_v17 = vunpack.c.h.bf16 %v212_v9  ;;  %v215_v40 = vld [vmem:[%s336_s0 + $0x30] sm:$0xff]   ;;  %v216_v45 = vld [vmem:[%s336_s0 + $0x38] sm:$0xff]  }
   0x4   :  { %v50_v10 = vmul.f32 %v252_v1, %v140_v2  ;;  %v51_v11 = vmul.f32 %v252_v1, %v141_v3  ;;  %v52_v14 = vmul.f32 %v252_v1, %v144_v6  ;;  %v53_v15 = vmul.f32 %v252_v1, %v145_v7  ;;  %v213_v26 = vld [vmem:[%s336_s0 + $0x20] sm:$0xff]  }
   0x5   :  { %v54_v20 = vmul.f32 %v252_v1, %v148_v12  ;;  %v55_v21 = vmul.f32 %v252_v1, %v149_v13  ;;  %v56_v24 = vmul.f32 %v252_v1, %v152_v16  ;;  %v57_v25 = vmul.f32 %v252_v1, %v153_v17 }
   0x6   :  { %v70_v18 = vadd.f32 %v257_v4, %v50_v10  ;;  %v71_v19 = vadd.f32 %v257_v4, %v51_v11  ;;  %v72_v22 = vadd.f32 %v257_v4, %v52_v14  ;;  %v73_v23 = vadd.f32 %v257_v4, %v53_v15 }
   0x7   :  { %v74_v29 = vadd.f32 %v257_v4, %v54_v20  ;;  %v75_v30 = vadd.f32 %v257_v4, %v55_v21  ;;  %v76_v33 = vadd.f32 %v257_v4, %v56_v24  ;;  %v77_v34 = vadd.f32 %v257_v4, %v57_v25 }
   0x8   :  { %v86_v27 = vmax.f32 %v70_v18, 0.0  ;;  %v87_v28 = vmax.f32 %v71_v19, 0.0  ;;  %v88_v31 = vmax.f32 %v72_v22, 0.0  ;;  %v89_v32 = vmax.f32 %v73_v23, 0.0 }
   0x9   :  { %v90_v37 = vmax.f32 %v74_v29, 0.0  ;;  %v91_v38 = vmax.f32 %v75_v30, 0.0  ;;  %v156_v39 = vunpack.c.l.bf16 %v213_v26  ;;  %v92_v42 = vmax.f32 %v76_v33, 0.0 }
   0xa   :  { %v173_v36 = vpack.c.bf16 %v87_v28, %v86_v27  ;;  %v178_v41 = vpack.c.bf16 %v89_v32, %v88_v31  ;;  %v93_v43 = vmax.f32 %v77_v34, 0.0  ;;  %v157_v44 = vunpack.c.h.bf16 %v213_v26 }
   0xb   :  { %v183_v46 = vpack.c.bf16 %v91_v38, %v90_v37  ;;  %v58_v47 = vmul.f32 %v252_v1, %v156_v39  ;;  %v160_v48 = vunpack.c.l.bf16 %v214_v35  ;;  %v161_v49 = vunpack.c.h.bf16 %v214_v35 }
   0xc   :  { %174 = vst [vmem:[%s339_s3] sm:$0xff] %v173_v36   ;;  %v188_v50 = vpack.c.bf16 %v93_v43, %v92_v42  ;;  %v59_v51 = vmul.f32 %v252_v1, %v157_v44  ;;  %v164_v52 = vunpack.c.l.bf16 %v215_v40  ;;  %v165_v53 = vunpack.c.h.bf16 %v215_v40 }
   0xd   :  { %217 = vst [vmem:[%s339_s3 + $0x8] sm:$0xff] %v178_v41   ;;  %v78_v54 = vadd.f32 %v257_v4, %v58_v47  ;;  %v60_v55 = vmul.f32 %v252_v1, %v160_v48  ;;  %v61_v56 = vmul.f32 %v252_v1, %v161_v49  ;;  %v168_v57 = vunpack.c.l.bf16 %v216_v45 }
   0xe   :  { %218 = vst [vmem:[%s339_s3 + $0x10] sm:$0xff] %v183_v46   ;;  %v79_v58 = vadd.f32 %v257_v4, %v59_v51  ;;  %v62_v59 = vmul.f32 %v252_v1, %v164_v52  ;;  %v63_v60 = vmul.f32 %v252_v1, %v165_v53  ;;  %v169_v61 = vunpack.c.h.bf16 %v216_v45 }
   0xf   :  { %219 = vst [vmem:[%s339_s3 + $0x18] sm:$0xff] %v188_v50   ;;  %v94_v62 = vmax.f32 %v78_v54, 0.0  ;;  %v80_v63 = vadd.f32 %v257_v4, %v60_v55  ;;  %v81_v0 = vadd.f32 %v257_v4, %v61_v56  ;;  %v64_v2 = vmul.f32 %v252_v1, %v168_v57 }
  0x10   :  { %v95_v3 = vmax.f32 %v79_v58, 0.0  ;;  %v82_v5 = vadd.f32 %v257_v4, %v62_v59  ;;  %v83_v6 = vadd.f32 %v257_v4, %v63_v60  ;;  %v65_v7 = vmul.f32 %v252_v1, %v169_v61 }
  0x11   :  { %v96_v8 = vmax.f32 %v80_v63, 0.0  ;;  %v97_v9 = vmax.f32 %v81_v0, 0.0  ;;  %v84_v10 = vadd.f32 %v257_v4, %v64_v2 }
  0x12   :  { %v193_v11 = vpack.c.bf16 %v95_v3, %v94_v62  ;;  %v98_v12 = vmax.f32 %v82_v5, 0.0  ;;  %v99_v13 = vmax.f32 %v83_v6, 0.0  ;;  %v85_v14 = vadd.f32 %v257_v4, %v65_v7 }
  0x13   :  { %v198_v15 = vpack.c.bf16 %v97_v9, %v96_v8  ;;  %v100_v16 = vmax.f32 %v84_v10, 0.0 }
  0x14   :  { %220 = vst [vmem:[%s339_s3 + $0x20] sm:$0xff] %v193_v11   ;;  %v203_v17 = vpack.c.bf16 %v99_v13, %v98_v12  ;;  %v101_v18 = vmax.f32 %v85_v14, 0.0 }
  0x15   :  { %221 = vst [vmem:[%s339_s3 + $0x28] sm:$0xff] %v198_v15  }
  0x16   :  { %222 = vst [vmem:[%s339_s3 + $0x30] sm:$0xff] %v203_v17   ;;  %v208_v1 = vpack.c.bf16 %v101_v18, %v100_v16 }
  0x18   :  { %223 = vst [vmem:[%s339_s3 + $0x38] sm:$0xff] %v208_v1  }

// kernel: resnet_forward.47
= control target key start
LH: loop header
LB: loop body
LE: loop exit
PB: predicated region body
PF: predicated region fallthrough
CT: control target
= control target key end

     0   :  { %s1704_s15 = smov 0   ;;  %s1706_s16 = smov 0   ;;  %s1997_s0 = inlined_call_operand.vmem [shape: bf16[128,1152], index: 0, kind: input, shape index: {}]   ;;  %s1998_s1 = inlined_call_operand.vmem [shape: bf16[1152,128], index: 1, kind: input, shape index: {}]   ;;  %s1999_s2 = inlined_call_operand.vmem [shape: bf16[128,128], index: 2, kind: output, shape index: {0}]   ;;  %s2000_s3 = inlined_call_operand.vmem [shape: f32[1,1,128], index: 3, kind: output, shape index: {1}]   ;;  %s2001_s4 = inlined_call_operand.vmem [shape: f32[1,1,128], index: 4, kind: output, shape index: {2}]  }
   0x1   :  { %s1708_s17 = smov 0   ;;  %s1710_s18 = smov 0  }
   0x2   :  { %s1712_s19 = smov 0  }
   0x3 LB: > { %s27_s20 = sadd.s32 1, %s1672_s18  ;;  %p50_p1 = scmp.ne.s32.totalorder %s1664_s16, %s1660_s15  ;;  %s1676_s19 = sphi %s1712_s19, %s15_s19   ;;  %s1672_s18 = sphi %s1710_s18, %s2005_s18   ;;  %s1668_s17 = sphi %s1708_s17, %s2004_s17   ;;  %s1664_s16 = sphi %s1706_s16, %s2003_s16   ;;  %s1660_s15 = sphi %s1704_s15, %s2002_s15  }
   0x4   : > { %p28_p0 = scmp.ge.s32.totalorder %s27_s20, 3  ;;  %p51_p2 = scmp.eq.s32.totalorder %s1676_s19, 0 }
   0x5   : > { %s43_s22 = sadd.s32 1, %s1664_s16  ;;  %p1239_p5 = scmp.ge.s32.totalorder %s1676_s19, 3 }
   0x6   : > { %s2007_s20 = smov (%p28_p0, %s27_s20), 0  ;;  %p52_p3 = por %p51_p2, %p50_p1 }
   0x7   : > { %s39_s21 = ssub.s32 %s1672_s18, %s2007_s20  ;;  %188 = sbr.rel (%p1239_p5) target bundleno = 49 (0x31), region = 16 }
   0x8   : > { %p41_p4 = scmp.eq.s32.totalorder %s39_s21, 0 }
   0xa   : > { %s1739_s23 = scalar_select %p41_p4, %s1664_s16, %s43_s22  }
   0xc   : > { %191 = sbr.rel (!%p52_p3) target bundleno = 49 (0x31), region = 20  ;;  %s193_s24 = sand.u32 (%p52_p3), 1, %s1664_s16  }
   0xd   : > { %s1475_s25 = smul.u32 (%p52_p3), 12, %s1672_s18 }
   0xe   : > { %s1595_s26 = smul.u32 (%p52_p3), 192, %s193_s24 }
   0xf   : > { %s1747_s29 = scalar_lea.vmem (%p52_p3), %s1997_s0, %s1475_s25 }
  0x10   : > { %v216_v0 = vld [vmem:[%s1747_s29] sm:$0xff] (%p52_p3)  ;;  %v220_v2 = vld [vmem:[%s1747_s29 + $0x48] sm:$0xff] (%p52_p3)  ;;  %s1752_s30 = scalar_lea.vmem (%p52_p3), [#allocation3], %s1595_s26  ;;  %v224_v4 = vld [vmem:[%s1747_s29 + $0x90] sm:$0xff] (%p52_p3) }
  0x11   : > { %v218_v1 = vld [vmem:[%s1747_s29 + $0x24] sm:$0xff]  ;;  %217 = vst [vmem:[%s1752_s30] sm:$0xff] %v216_v0  ;;  %v222_v3 = vld [vmem:[%s1747_s29 + $0x6c] sm:$0xff]  ;;  %v226_v5 = vld [vmem:[%s1747_s29 + $0xb4] sm:$0xff] }
  0x12   : > { %219 = vst [vmem:[%s1752_s30 + $0xc] sm:$0xff] %v218_v1  ;;  %v228_v6 = vld [vmem:[%s1747_s29 + $0xd8] sm:$0xff]  ;;  %v232_v8 = vld [vmem:[%s1747_s29 + $0x120] sm:$0xff]  ;;  %v236_v10 = vld [vmem:[%s1747_s29 + $0x168] sm:$0xff] }
  0x13   : > { %221 = vst [vmem:[%s1752_s30 + $0x18] sm:$0xff] %v220_v2  ;;  %v230_v7 = vld [vmem:[%s1747_s29 + $0xfc] sm:$0xff]  ;;  %v234_v9 = vld [vmem:[%s1747_s29 + $0x144] sm:$0xff]  ;;  %v238_v11 = vld [vmem:[%s1747_s29 + $0x18c] sm:$0xff] }
  0x14   : > { %223 = vst [vmem:[%s1752_s30 + $0x24] sm:$0xff] %v222_v3  ;;  %v240_v12 = vld [vmem:[%s1747_s29 + $0x1b0] sm:$0xff]  ;;  %v244_v14 = vld [vmem:[%s1747_s29 + $0x1f8] sm:$0xff]  ;;  %v1241_v16 = vld [vmem:[%s1747_s29 + $0x8] sm:$0xf] }
  0x15   : > { %225 = vst [vmem:[%s1752_s30 + $0x30] sm:$0xff] %v224_v4  ;;  %v242_v13 = vld [vmem:[%s1747_s29 + $0x1d4] sm:$0xff]  ;;  %v246_v15 = vld [vmem:[%s1747_s29 + $0x21c] sm:$0xff]  ;;  %v1243_v17 = vld [vmem:[%s1747_s29 + $0x2c] sm:$0xf] }
  0x16   : > { %227 = vst [vmem:[%s1752_s30 + $0x3c] sm:$0xff] %v226_v5  ;;  %v1245_v18 = vld [vmem:[%s1747_s29 + $0x50] sm:$0xf]  ;;  %v1247_v19 = vld [vmem:[%s1747_s29 + $0x74] sm:$0xf] }
  0x17   : > { %229 = vst [vmem:[%s1752_s30 + $0x48] sm:$0xff] %v228_v6  ;;  %v1249_v20 = vld [vmem:[%s1747_s29 + $0x98] sm:$0xf]  ;;  %v1251_v21 = vld [vmem:[%s1747_s29 + $0xbc] sm:$0xf] }
  0x18   : > { %231 = vst [vmem:[%s1752_s30 + $0x54] sm:$0xff] %v230_v7  ;;  %v1253_v22 = vld [vmem:[%s1747_s29 + $0xe0] sm:$0xf]  ;;  %v1255_v23 = vld [vmem:[%s1747_s29 + $0x104] sm:$0xf] }
  0x19   : > { %233 = vst [vmem:[%s1752_s30 + $0x60] sm:$0xff] %v232_v8  ;;  %v1257_v24 = vld [vmem:[%s1747_s29 + $0x128] sm:$0xf]  ;;  %v1259_v25 = vld [vmem:[%s1747_s29 + $0x14c] sm:$0xf] }
  0x1a   : > { %235 = vst [vmem:[%s1752_s30 + $0x6c] sm:$0xff] %v234_v9  ;;  %v1261_v26 = vld [vmem:[%s1747_s29 + $0x170] sm:$0xf]  ;;  %v1263_v27 = vld [vmem:[%s1747_s29 + $0x194] sm:$0xf] }
  0x1b   : > { %237 = vst [vmem:[%s1752_s30 + $0x78] sm:$0xff] %v236_v10  ;;  %v1265_v28 = vld [vmem:[%s1747_s29 + $0x1b8] sm:$0xf]  ;;  %v1267_v29 = vld [vmem:[%s1747_s29 + $0x1dc] sm:$0xf] }
  0x1c   : > { %239 = vst [vmem:[%s1752_s30 + $0x84] sm:$0xff] %v238_v11  ;;  %v1269_v30 = vld [vmem:[%s1747_s29 + $0x200] sm:$0xf]  ;;  %v1271_v31 = vld [vmem:[%s1747_s29 + $0x224] sm:$0xf] }
  0x1d   : > { %241 = vst [vmem:[%s1752_s30 + $0x90] sm:$0xff] %v240_v12 }
  0x1e   : > { %243 = vst [vmem:[%s1752_s30 + $0x9c] sm:$0xff] %v242_v13 }
  0x1f   : > { %245 = vst [vmem:[%s1752_s30 + $0xa8] sm:$0xff] %v244_v14 }
  0x20   : > { %247 = vst [vmem:[%s1752_s30 + $0xb4] sm:$0xff] %v246_v15 }
  0x21   : > { %1242 = vst [vmem:[%s1752_s30 + $0x8] sm:$0xf] %v1241_v16 }
  0x22   : > { %1244 = vst [vmem:[%s1752_s30 + $0x14] sm:$0xf] %v1243_v17 }
  0x23   : > { %1246 = vst [vmem:[%s1752_s30 + $0x20] sm:$0xf] %v1245_v18 }
  0x24   : > { %1248 = vst [vmem:[%s1752_s30 + $0x2c] sm:$0xf] %v1247_v19 }
  0x25   : > { %1250 = vst [vmem:[%s1752_s30 + $0x38] sm:$0xf] %v1249_v20 }
  0x26   : > { %1252 = vst [vmem:[%s1752_s30 + $0x44] sm:$0xf] %v1251_v21 }
  0x27   : > { %1254 = vst [vmem:[%s1752_s30 + $0x50] sm:$0xf] %v1253_v22 }
  0x28   : > { %1256 = vst [vmem:[%s1752_s30 + $0x5c] sm:$0xf] %v1255_v23 }
  0x29   : > { %1258 = vst [vmem:[%s1752_s30 + $0x68] sm:$0xf] %v1257_v24 }
  0x2a   : > { %1260 = vst [vmem:[%s1752_s30 + $0x74] sm:$0xf] %v1259_v25 }
  0x2b   : > { %1262 = vst [vmem:[%s1752_s30 + $0x80] sm:$0xf] %v1261_v26 }
  0x2c   : > { %1264 = vst [vmem:[%s1752_s30 + $0x8c] sm:$0xf] %v1263_v27 }
  0x2d   : > { %1266 = vst [vmem:[%s1752_s30 + $0x98] sm:$0xf] %v1265_v28 }
  0x2e   : > { %1268 = vst [vmem:[%s1752_s30 + $0xa4] sm:$0xf] %v1267_v29 }
  0x2f   : > { %1270 = vst [vmem:[%s1752_s30 + $0xb0] sm:$0xf] %v1269_v30 }
  0x30   : > { %1272 = vst [vmem:[%s1752_s30 + $0xbc] sm:$0xf] %v1271_v31 }
  0x31 PF: > { %p1273_p6 = scmp.ge.s32.totalorder %s1676_s19, 1  ;;  %p304_p7 = scmp.lt.s32.totalorder %s1676_s19, 4 }
  0x33   : > { %p305_p8 = pnand %p1273_p6, %p304_p7 }
  0x34   : > { %s311_s5 = sand.u32 (!%p305_p8), 1, %s1660_s15   ;;  %s361_s6 = smul.u32 (!%p305_p8), 48, %s1668_s17 }
  0x35   : > { %308 = sbr.rel (%p305_p8) target bundleno = 385 (0x181), region = 50  ;;  %p1275_p10 = scmp.ne.s32.totalorder (!%p305_p8), %s1668_s17, 0 }
  0x36   : > { %s1596_s7 = smul.u32 (!%p305_p8), 192, %s311_s5  ;;  %p362_p9 = scmp.lt.s32.totalorder (!%p305_p8), %s361_s6, 143 }
  0x38   : > { %s1824_s12 = scalar_lea.vmem (!%p305_p8), [#allocation3], %s1596_s7 }
  0x3a   : > { %s2009_s6 = smov (!%p362_p9, %s361_s6), 143  ;;  %394 = sbr.rel (%p1275_p10) target bundleno = 80 (0x50), region = 58 }
  0x3b   : > { %s1274_s8 = sshll.u32 %s2009_s6, 2 }
  0x3c   : > { %s1822_s11 = scalar_lea.vmem %s1998_s1, %s1274_s8 }
  0x3f   : > { %v1678_v32 = vmov 0.0  }
  0x40   : > { %395 = vst [vmem:[#allocation2 + $0x30] sm:$0xff] %v1678_v32 }
  0x41   : > { %396 = vst [vmem:[#allocation2] sm:$0xff] %v1678_v32 }
  0x42   : > { %397 = vst [vmem:[#allocation2 + $0x58] sm:$0xff] %v1678_v32 }
  0x43   : > { %398 = vst [vmem:[#allocation2 + $0x18] sm:$0xff] %v1678_v32 }
  0x44   : > { %399 = vst [vmem:[#allocation2 + $0x50] sm:$0xff] %v1678_v32 }
  0x45   : > { %400 = vst [vmem:[#allocation2 + $0x68] sm:$0xff] %v1678_v32 }
  0x46   : > { %401 = vst [vmem:[#allocation2 + $0x8] sm:$0xff] %v1678_v32 }
  0x47   : > { %402 = vst [vmem:[#allocation2 + $0x48] sm:$0xff] %v1678_v32 }
  0x48   : > { %403 = vst [vmem:[#allocation2 + $0x40] sm:$0xff] %v1678_v32 }
  0x49   : > { %404 = vst [vmem:[#allocation2 + $0x20] sm:$0xff] %v1678_v32 }
  0x4a   : > { %405 = vst [vmem:[#allocation2 + $0x10] sm:$0xff] %v1678_v32 }
  0x4b   : > { %406 = vst [vmem:[#allocation2 + $0x38] sm:$0xff] %v1678_v32 }
  0x4c   : > { %407 = vst [vmem:[#allocation2 + $0x60] sm:$0xff] %v1678_v32 }
  0x4d   : > { %408 = vst [vmem:[#allocation2 + $0x70] sm:$0xff] %v1678_v32 }
  0x4e   : > { %409 = vst [vmem:[#allocation2 + $0x78] sm:$0xff] %v1678_v32 }
  0x4f   : > { %410 = vst [vmem:[#allocation2 + $0x28] sm:$0xff] %v1678_v32 }
  0x50 PF: > { %v1507_v33 = vld [vmem:[%s1822_s11 + $0x38] sm:$0xff]  ;;  %v1506_v36 = vld [vmem:[%s1822_s11 + $0x30] sm:$0xff]  ;;  %v1505_v39 = vld [vmem:[%s1822_s11 + $0x28] sm:$0xff]  ;;  %p1468_p11 = scmp.ne.s32.totalorder %s1668_s17, 2 }
  0x51   : > { %v1829_v34 = vld [vmem:[%s1822_s11 + $0x78] sm:$0xff]  ;;  %779 = vmatpush.bf16.msra.mxu0 %v1507_v33  ;;  %1571 = vmatpush.bf16.msra.mxu3 %v1507_v33  ;;  %v1838_v37 = vld [vmem:[%s1822_s11 + $0x70] sm:$0xff]  ;;  %v1513_v40 = vld [vmem:[%s1822_s11 + $0x68] sm:$0xff] }
  0x52   : > { %v1832_v35 = vld [vmem:[%s1822_s11 + $0xb8] sm:$0xff]  ;;  %828 = vmatpush.bf16.msra.mxu1 %v1829_v34  ;;  %v1841_v38 = vld [vmem:[%s1822_s11 + $0xb0] sm:$0xff]  ;;  %v1848_v41 = vld [vmem:[%s1822_s11 + $0xa8] sm:$0xff] }
  0x53   : > { %877 = vmatpush.bf16.msra.mxu2 %v1832_v35  ;;  %v1504_v42 = vld [vmem:[%s1822_s11 + $0x20] sm:$0xff]  ;;  %v1503_v45 = vld [vmem:[%s1822_s11 + $0x18] sm:$0xff]  ;;  %v1502_v48 = vld [vmem:[%s1822_s11 + $0x10] sm:$0xff] }
  0x54   : > { %v1512_v43 = vld [vmem:[%s1822_s11 + $0x60] sm:$0xff]  ;;  %v1511_v46 = vld [vmem:[%s1822_s11 + $0x58] sm:$0xff]  ;;  %v1510_v49 = vld [vmem:[%s1822_s11 + $0x50] sm:$0xff] }
  0x55   : > { %780 = vmatpush.bf16.msra.mxu0 %v1506_v36  ;;  %1572 = vmatpush.bf16.msra.mxu3 %v1506_v36  ;;  %v1854_v44 = vld [vmem:[%s1822_s11 + $0xa0] sm:$0xff]  ;;  %v1860_v47 = vld [vmem:[%s1822_s11 + $0x98] sm:$0xff]  ;;  %v1866_v50 = vld [vmem:[%s1822_s11 + $0x90] sm:$0xff] }
  0x56   : > { %829 = vmatpush.bf16.msra.mxu1 %v1838_v37  ;;  %v1501_v51 = vld [vmem:[%s1822_s11 + $0x8] sm:$0xff]  ;;  %v1500_v54 = vld [vmem:[%s1822_s11] sm:$0xff]  ;;  %v1350_v59 = vld [vmem:[%s1824_s12 + $0x90] sm:$0xf] }
  0x57   : > { %878 = vmatpush.bf16.msra.mxu2 %v1841_v38  ;;  %v1509_v52 = vld [vmem:[%s1822_s11 + $0x48] sm:$0xff]  ;;  %v1508_v55 = vld [vmem:[%s1822_s11 + $0x40] sm:$0xff]  ;;  %v1495_v60 = vld [vmem:[%s1824_s12 + $0x98] sm:$0xf0] }
  0x58   : > { %v1872_v53 = vld [vmem:[%s1822_s11 + $0x88] sm:$0xff]  ;;  %v1877_v56 = vld [vmem:[%s1822_s11 + $0x80] sm:$0xff]  ;;  %v1280_v62 = vld [vmem:[%s1824_s12 + $0xc] sm:$0xf0]  ;;  %v1351_v2 = vor.u32 %v1495_v60, %v1350_v59 }
  0x59   : > { %781 = vmatpush.bf16.msra.mxu0 %v1505_v39  ;;  %1573 = vmatpush.bf16.msra.mxu3 %v1505_v39  ;;  %v1278_v57 = vld [vmem:[%s1824_s12] sm:$0xf]  ;;  %v1477_v58 = vld [vmem:[%s1824_s12 + $0x8] sm:$0xf0]  ;;  %v1476_v61 = vld [vmem:[%s1824_s12 + $0x4] sm:$0xf] }
  0x5a   : > { %830 = vmatpush.bf16.msra.mxu1 %v1513_v40  ;;  %v1286_v63 = vld [vmem:[%s1824_s12 + $0x8] sm:$0xf]  ;;  %v1478_v0 = vld [vmem:[%s1824_s12 + $0x10] sm:$0xf0]  ;;  %v1279_v1 = vor.u32 %v1477_v58, %v1278_v57  ;;  %v1283_v3 = vor.u32 %v1476_v61, %v1280_v62  ;;  %v1290_v5 = vld [vmem:[%s1824_s12 + $0x18] sm:$0xf] }
  0x5b   : > { %879 = vmatpush.bf16.msra.mxu2 %v1848_v41  ;;  %v1287_v4 = vor.u32 %v1478_v0, %v1286_v63  ;;  %v1480_v6 = vld [vmem:[%s1824_s12 + $0x20] sm:$0xf0]  ;;  %v1362_v7 = vld [vmem:[%s1824_s12 + $0xa8] sm:$0xf]  ;;  %v1498_v8 = vld [vmem:[%s1824_s12 + $0xb0] sm:$0xf0] }
  0x5c   : > { %v1479_v9 = vld [vmem:[%s1824_s12 + $0x1c] sm:$0xf]  ;;  %v1292_v10 = vld [vmem:[%s1824_s12 + $0x24] sm:$0xf0]  ;;  %v1298_v11 = vld [vmem:[%s1824_s12 + $0x20] sm:$0xf]  ;;  %v1291_v13 = vor.u32 %v1480_v6, %v1290_v5  ;;  %v1363_v14 = vor.u32 %v1498_v8, %v1362_v7 }
  0x5d   : > { %782 = vmatpush.bf16.msra.mxu0 %v1504_v42  ;;  %1574 = vmatpush.bf16.msra.mxu3 %v1504_v42  ;;  %v1481_v12 = vld [vmem:[%s1824_s12 + $0x28] sm:$0xf0]  ;;  %v1295_v15 = vor.u32 %v1479_v9, %v1292_v10  ;;  %v1302_v17 = vld [vmem:[%s1824_s12 + $0x30] sm:$0xf]  ;;  %v1483_v18 = vld [vmem:[%s1824_s12 + $0x38] sm:$0xf0] }
  0x5e   : > { %831 = vmatpush.bf16.msra.mxu1 %v1512_v43  ;;  %v1299_v16 = vor.u32 %v1481_v12, %v1298_v11  ;;  %v1482_v19 = vld [vmem:[%s1824_s12 + $0x34] sm:$0xf]  ;;  %v1352_v21 = vld [vmem:[%s1824_s12 + $0x9c] sm:$0xf0]  ;;  %v1310_v23 = vld [vmem:[%s1824_s12 + $0x38] sm:$0xf]  ;;  %v1303_v25 = vor.u32 %v1483_v18, %v1302_v17 }
  0x5f   : > { %880 = vmatpush.bf16.msra.mxu2 %v1854_v44  ;;  %v1494_v20 = vld [vmem:[%s1824_s12 + $0x94] sm:$0xf]  ;;  %v1304_v22 = vld [vmem:[%s1824_s12 + $0x3c] sm:$0xf0]  ;;  %v1484_v24 = vld [vmem:[%s1824_s12 + $0x40] sm:$0xf0] }
  0x60   : > { %v1355_v26 = vor.u32 %v1494_v20, %v1352_v21  ;;  %v1307_v27 = vor.u32 %v1482_v19, %v1304_v22  ;;  %v1311_v28 = vor.u32 %v1484_v24, %v1310_v23  ;;  %v1314_v29 = vld [vmem:[%s1824_s12 + $0x48] sm:$0xf]  ;;  %v1486_v30 = vld [vmem:[%s1824_s12 + $0x50] sm:$0xf0]  ;;  %v1485_v31 = vld [vmem:[%s1824_s12 + $0x4c] sm:$0xf] }
  0x61   : > { %783 = vmatpush.bf16.msra.mxu0 %v1503_v45  ;;  %1575 = vmatpush.bf16.msra.mxu3 %v1503_v45  ;;  %v1497_v32 = vld [vmem:[%s1824_s12 + $0xac] sm:$0xf]  ;;  %v1364_v33 = vld [vmem:[%s1824_s12 + $0xb4] sm:$0xf0]  ;;  %v1487_v36 = vld [vmem:[%s1824_s12 + $0x58] sm:$0xf0] }
  0x62   : > { %832 = vmatpush.bf16.msra.mxu1 %v1511_v46  ;;  %v1367_v39 = vor.u32 %v1497_v32, %v1364_v33  ;;  %v1489_v42 = vld [vmem:[%s1824_s12 + $0x68] sm:$0xf0]  ;;  %v1496_v45 = vld [vmem:[%s1824_s12 + $0xa0] sm:$0xf0]  ;;  %v1370_v57 = vld [vmem:[%s1824_s12 + $0xb0] sm:$0xf] }
  0x63   : > { %881 = vmatpush.bf16.msra.mxu2 %v1860_v47  ;;  %v1340_v58 = vld [vmem:[%s1824_s12 + $0x84] sm:$0xf0]  ;;  %v1346_v59 = vld [vmem:[%s1824_s12 + $0x80] sm:$0xf]  ;;  %v1493_v60 = vld [vmem:[%s1824_s12 + $0x88] sm:$0xf0] }
  0x64   : > { %v1347_v0 = vor.u32 %v1493_v60, %v1346_v59  ;;  %v411_v5 = vld [vmem:[#allocation2 + $0x30] sm:$0xff]  ;;  %v413_v21 = vld [vmem:[#allocation2 + $0x58] sm:$0xff] }
  0x65   : > { %784 = vmatpush.bf16.msra.mxu0 %v1502_v48  ;;  %1576 = vmatpush.bf16.msra.mxu3 %v1502_v48  ;;  %v1490_v48 = vld [vmem:[%s1824_s12 + $0x70] sm:$0xf0] }
  0x66   : > { %833 = vmatpush.bf16.msra.mxu1 %v1510_v49 }
  0x67   : > { %882 = vmatpush.bf16.msra.mxu2 %v1866_v50 }
  0x69   : > { %785 = vmatpush.bf16.msra.mxu0 %v1501_v51  ;;  %1577 = vmatpush.bf16.msra.mxu3 %v1501_v51 }
  0x6a   : > { %834 = vmatpush.bf16.msra.mxu1 %v1509_v52 }
  0x6b   : > { %883 = vmatpush.bf16.msra.mxu2 %v1872_v53 }
  0x6d   : > { %786 = vmatpush.bf16.msra.mxu0 %v1500_v54  ;;  %1578 = vmatpush.bf16.msra.mxu3 %v1500_v54  ;;  %v1492_v54 = vld [vmem:[%s1824_s12 + $0x80] sm:$0xf0] }
  0x6e   : > { %835 = vmatpush.bf16.msra.mxu1 %v1508_v55 }
  0x6f   : > { %884 = vmatpush.bf16.msra.mxu2 %v1877_v56 }
  0x70   : > { %787 = vmatmul.bf16.vlgmr.msra.gmra.mxu0 %v1279_v1  ;;  %817 = vmatmul.bf16.vlgmr.msra.gmra.mxu3 %v1351_v2 }
  0x71   : > { %1579 = vmatpush.bf16.msrb.mxu3 %v1829_v34  ;;  %836 = vmatmul.bf16.vlgmr.msra.gmra.mxu1 %v1283_v3  ;;  %v1316_v34 = vld [vmem:[%s1824_s12 + $0x54] sm:$0xf0] }
  0x72   : > { %885 = vmatmul.bf16.vlgmr.msra.gmra.mxu2 %v1287_v4 }
  0x75   : > { %1580 = vmatpush.bf16.msrb.mxu3 %v1838_v37  ;;  %v1315_v37 = vor.u32 %v1486_v30, %v1314_v29  ;;  %v414_v29 = vld [vmem:[#allocation2 + $0x18] sm:$0xff] }
  0x79   : > { %1581 = vmatpush.bf16.msrb.mxu3 %v1513_v40 }
  0x7d   : > { %1582 = vmatpush.bf16.msrb.mxu3 %v1512_v43  ;;  %v1488_v43 = vld [vmem:[%s1824_s12 + $0x64] sm:$0xf] }
  0x80   : > { %792 = vmatmul.bf16.gmra.mxu0 %v1291_v13  ;;  %822 = vmatmul.bf16.gmra.mxu3 %v1363_v14  ;;  %v412_v13 = vld [vmem:[#allocation2] sm:$0xff] }
  0x81   : > { %1583 = vmatpush.bf16.msrb.mxu3 %v1511_v46  ;;  %841 = vmatmul.bf16.gmra.mxu1 %v1295_v15  ;;  %v1328_v46 = vld [vmem:[%s1824_s12 + $0x6c] sm:$0xf0] }
  0x82   : > { %890 = vmatmul.bf16.gmra.mxu2 %v1299_v16  ;;  %v1331_v51 = vor.u32 %v1488_v43, %v1328_v46 }
  0x85   : > { %1584 = vmatpush.bf16.msrb.mxu3 %v1510_v49 }
  0x89   : > { %1585 = vmatpush.bf16.msrb.mxu3 %v1509_v52 }
  0x8d   : > { %1586 = vmatpush.bf16.msrb.mxu3 %v1508_v55  ;;  %v1491_v55 = vld [vmem:[%s1824_s12 + $0x7c] sm:$0xf] }
  0x8e   : > { %v1343_v63 = vor.u32 %v1491_v55, %v1340_v58 }
  0x90   : > { %797 = vmatmul.bf16.gmra.mxu0 %v1303_v25  ;;  %866 = vmatmul.bf16.vlgmr.msrb.gmra.mxu3 %v1355_v26 }
  0x91   : > { %1587 = vmatpush.bf16.msra.mxu3 %v1832_v35  ;;  %846 = vmatmul.bf16.gmra.mxu1 %v1307_v27  ;;  %v1322_v35 = vld [vmem:[%s1824_s12 + $0x50] sm:$0xf] }
  0x92   : > { %895 = vmatmul.bf16.gmra.mxu2 %v1311_v28  ;;  %v1323_v40 = vor.u32 %v1487_v36, %v1322_v35 }
  0x95   : > { %1588 = vmatpush.bf16.msra.mxu3 %v1841_v38  ;;  %v1319_v38 = vor.u32 %v1485_v31, %v1316_v34 }
  0x99   : > { %1589 = vmatpush.bf16.msra.mxu3 %v1848_v41  ;;  %v1326_v41 = vld [vmem:[%s1824_s12 + $0x60] sm:$0xf] }
  0x9a   : > { %v1327_v49 = vor.u32 %v1489_v42, %v1326_v41 }
  0x9d   : > { %1590 = vmatpush.bf16.msra.mxu3 %v1854_v44  ;;  %v1358_v44 = vld [vmem:[%s1824_s12 + $0x98] sm:$0xf] }
  0xa0   : > { %802 = vmatmul.bf16.gmra.mxu0 %v1315_v37  ;;  %871 = vmatmul.bf16.gmra.mxu3 %v1367_v39  ;;  %v415_v37 = vld [vmem:[#allocation2 + $0x50] sm:$0xff] }
  0xa1   : > { %1591 = vmatpush.bf16.msra.mxu3 %v1860_v47  ;;  %851 = vmatmul.bf16.gmra.mxu1 %v1319_v38  ;;  %v1334_v47 = vld [vmem:[%s1824_s12 + $0x68] sm:$0xf] }
  0xa2   : > { %900 = vmatmul.bf16.gmra.mxu2 %v1323_v40  ;;  %v1335_v52 = vor.u32 %v1490_v48, %v1334_v47 }
  0xa5   : > { %1592 = vmatpush.bf16.msra.mxu3 %v1866_v50  ;;  %v1359_v50 = vor.u32 %v1496_v45, %v1358_v44  ;;  %v416_v45 = vld [vmem:[#allocation2 + $0x68] sm:$0xff] }
  0xa9   : > { %1593 = vmatpush.bf16.msra.mxu3 %v1872_v53  ;;  %v1338_v53 = vld [vmem:[%s1824_s12 + $0x78] sm:$0xf] }
  0xaa   : > { %v1339_v61 = vor.u32 %v1492_v54, %v1338_v53  ;;  %v417_v53 = vld [vmem:[#allocation2 + $0x8] sm:$0xff] }
  0xad   : > { %1594 = vmatpush.bf16.msra.mxu3 %v1877_v56  ;;  %v1499_v56 = vld [vmem:[%s1824_s12 + $0xb8] sm:$0xf0] }
  0xae   : > { %v1371_v62 = vor.u32 %v1499_v56, %v1370_v57 }
  0xb0   : > { %807 = vmatmul.bf16.gmra.mxu0 %v1327_v49  ;;  %915 = vmatmul.bf16.vlgmr.msra.gmra.mxu3 %v1359_v50 }
  0xb1   : > { %856 = vmatmul.bf16.gmra.mxu1 %v1331_v51 }
  0xb2   : > { %905 = vmatmul.bf16.gmra.mxu2 %v1335_v52 }
  0xc0   : > { %812 = vmatmul.bf16.gmra.mxu0 %v1339_v61  ;;  %920 = vmatmul.bf16.gmra.mxu3 %v1371_v62  ;;  %v418_v61 = vld [vmem:[#allocation2 + $0x48] sm:$0xff] }
  0xc1   : > { %861 = vmatmul.bf16.gmra.mxu1 %v1343_v63 }
  0xc2   : > { %910 = vmatmul.bf16.gmra.mxu2 %v1347_v0 }
  0xed   : > { %v788_v1 = vpop.f32.mrf.mxu0 }
  0xee   : > { %v837_v2 = vpop.f32.mrf.mxu1 }
  0xef   : > { %v838_v3 = vadd.f32 %v837_v2, %v788_v1 }
  0xf3   : > { %v1939_v4 = vpop.f32.mrf.mxu3 }
  0xf5   : > { %v886_v6 = vpop.f32.mrf.mxu2  ;;  %v790_v8 = vpop.f32.mrf.mxu0 }
  0xf6   : > { %v887_v7 = vadd.f32 %v886_v6, %v838_v3  ;;  %v839_v9 = vpop.f32.mrf.mxu1  ;;  %v423_v6 = vld [vmem:[#allocation2 + $0x60] sm:$0xff] }
  0xf7   : > { %v840_v11 = vadd.f32 %v839_v9, %v790_v8  ;;  %v419_v8 = vld [vmem:[#allocation2 + $0x40] sm:$0xff] }
  0xf8   : > { %v926_v10 = vadd.f32 %v887_v7, %v411_v5 }
  0xfa   : > { %942 = vst [vmem:[#allocation2 + $0x30] sm:$0xff] %v926_v10 }
  0xfb   : > { %v1941_v12 = vpop.f32.mrf.mxu3 }
  0xfd   : > { %v888_v14 = vpop.f32.mrf.mxu2  ;;  %v793_v16 = vpop.f32.mrf.mxu0 }
  0xfe   : > { %v889_v15 = vadd.f32 %v888_v14, %v840_v11  ;;  %v842_v17 = vpop.f32.mrf.mxu1 }
  0xff   : > { %v843_v19 = vadd.f32 %v842_v17, %v793_v16 }
 0x100   : > { %v927_v18 = vadd.f32 %v889_v15, %v412_v13 }
 0x102   : > { %943 = vst [vmem:[#allocation2] sm:$0xff] %v927_v18 }
 0x103   : > { %v1943_v20 = vpop.f32.mrf.mxu3 }
 0x105   : > { %v891_v22 = vpop.f32.mrf.mxu2  ;;  %v795_v24 = vpop.f32.mrf.mxu0 }
 0x106   : > { %v892_v23 = vadd.f32 %v891_v22, %v843_v19  ;;  %v844_v25 = vpop.f32.mrf.mxu1  ;;  %v424_v19 = vld [vmem:[#allocation2 + $0x70] sm:$0xff]  ;;  %v420_v22 = vld [vmem:[#allocation2 + $0x20] sm:$0xff] }
 0x107   : > { %v845_v27 = vadd.f32 %v844_v25, %v795_v24 }
 0x108   : > { %v928_v26 = vadd.f32 %v892_v23, %v413_v21 }
 0x10a   : > { %944 = vst [vmem:[#allocation2 + $0x58] sm:$0xff] %v928_v26 }
 0x10b   : > { %v1945_v28 = vpop.f32.mrf.mxu3 }
 0x10d   : > { %v893_v30 = vpop.f32.mrf.mxu2  ;;  %v798_v32 = vpop.f32.mrf.mxu0 }
 0x10e   : > { %v894_v31 = vadd.f32 %v893_v30, %v845_v27  ;;  %v847_v33 = vpop.f32.mrf.mxu1 }
 0x10f   : > { %v848_v35 = vadd.f32 %v847_v33, %v798_v32  ;;  %v425_v32 = vld [vmem:[#allocation2 + $0x78] sm:$0xff] }
 0x110   : > { %v929_v34 = vadd.f32 %v894_v31, %v414_v29 }
 0x112   : > { %945 = vst [vmem:[#allocation2 + $0x18] sm:$0xff] %v929_v34  ;;  %v421_v34 = vld [vmem:[#allocation2 + $0x10] sm:$0xff] }
 0x113   : > { %v867_v36 = vpop.f32.mrf.mxu3 }
 0x114   : > { %v868_v5 = vadd.f32 %v867_v36, %v1939_v4 }
 0x115   : > { %v896_v39 = vpop.f32.mrf.mxu2  ;;  %v800_v40 = vpop.f32.mrf.mxu0 }
 0x116   : > { %v897_v38 = vadd.f32 %v896_v39, %v848_v35  ;;  %v849_v41 = vpop.f32.mrf.mxu1 }
 0x117   : > { %v850_v43 = vadd.f32 %v849_v41, %v800_v40 }
 0x118   : > { %v930_v42 = vadd.f32 %v897_v38, %v415_v37 }
 0x11a   : > { %946 = vst [vmem:[#allocation2 + $0x50] sm:$0xff] %v930_v42 }
 0x11b   : > { %v869_v44 = vpop.f32.mrf.mxu3 }
 0x11c   : > { %v870_v17 = vadd.f32 %v869_v44, %v1941_v12 }
 0x11d   : > { %v898_v46 = vpop.f32.mrf.mxu2  ;;  %v803_v48 = vpop.f32.mrf.mxu0 }
 0x11e   : > { %v899_v47 = vadd.f32 %v898_v46, %v850_v43  ;;  %v852_v49 = vpop.f32.mrf.mxu1  ;;  %v426_v43 = vld [vmem:[#allocation2 + $0x28] sm:$0xff] }
 0x11f   : > { %v853_v51 = vadd.f32 %v852_v49, %v803_v48 }
 0x120   : > { %v931_v50 = vadd.f32 %v899_v47, %v416_v45  ;;  %v422_v45 = vld [vmem:[#allocation2 + $0x38] sm:$0xff] }
 0x122   : > { %947 = vst [vmem:[#allocation2 + $0x68] sm:$0xff] %v931_v50 }
 0x123   : > { %v872_v52 = vpop.f32.mrf.mxu3 }
 0x124   : > { %v873_v31 = vadd.f32 %v872_v52, %v1943_v20 }
 0x125   : > { %v901_v54 = vpop.f32.mrf.mxu2  ;;  %v805_v57 = vpop.f32.mrf.mxu0 }
 0x126   : > { %v902_v55 = vadd.f32 %v901_v54, %v853_v51  ;;  %v854_v56 = vpop.f32.mrf.mxu1 }
 0x127   : > { %v855_v59 = vadd.f32 %v854_v56, %v805_v57 }
 0x128   : > { %v932_v58 = vadd.f32 %v902_v55, %v417_v53 }
 0x12a   : > { %948 = vst [vmem:[#allocation2 + $0x8] sm:$0xff] %v932_v58 }
 0x12b   : > { %v874_v60 = vpop.f32.mrf.mxu3 }
 0x12c   : > { %v875_v41 = vadd.f32 %v874_v60, %v1945_v28 }
 0x12d   : > { %v903_v62 = vpop.f32.mrf.mxu2  ;;  %v808_v0 = vpop.f32.mrf.mxu0 }
 0x12e   : > { %v904_v63 = vadd.f32 %v903_v62, %v855_v59  ;;  %v857_v1 = vpop.f32.mrf.mxu1 }
 0x12f   : > { %v858_v3 = vadd.f32 %v857_v1, %v808_v0 }
 0x130   : > { %v933_v2 = vadd.f32 %v904_v63, %v418_v61 }
 0x132   : > { %949 = vst [vmem:[#allocation2 + $0x48] sm:$0xff] %v933_v2 }
 0x133   : > { %v916_v7 = vpop.f32.mrf.mxu3 }
 0x134   : > { %v917_v10 = vadd.f32 %v916_v7, %v868_v5 }
 0x135   : > { %v906_v9 = vpop.f32.mrf.mxu2  ;;  %v810_v13 = vpop.f32.mrf.mxu0 }
 0x136   : > { %v907_v11 = vadd.f32 %v906_v9, %v858_v3  ;;  %v938_v14 = vadd.f32 %v917_v10, %v423_v6  ;;  %v859_v15 = vpop.f32.mrf.mxu1 }
 0x137   : > { %v860_v18 = vadd.f32 %v859_v15, %v810_v13 }
 0x138   : > { %v934_v16 = vadd.f32 %v907_v11, %v419_v8  ;;  %954 = vst [vmem:[#allocation2 + $0x60] sm:$0xff] %v938_v14 }
 0x13a   : > { %950 = vst [vmem:[#allocation2 + $0x40] sm:$0xff] %v934_v16 }
 0x13b   : > { %v918_v21 = vpop.f32.mrf.mxu3 }
 0x13c   : > { %v919_v4 = vadd.f32 %v918_v21, %v870_v17 }
 0x13d   : > { %v908_v23 = vpop.f32.mrf.mxu2  ;;  %v813_v26 = vpop.f32.mrf.mxu0 }
 0x13e   : > { %v909_v24 = vadd.f32 %v908_v23, %v860_v18  ;;  %v939_v25 = vadd.f32 %v919_v4, %v424_v19  ;;  %v862_v27 = vpop.f32.mrf.mxu1 }
 0x13f   : > { %v863_v30 = vadd.f32 %v862_v27, %v813_v26 }
 0x140   : > { %v935_v29 = vadd.f32 %v909_v24, %v420_v22  ;;  %955 = vst [vmem:[#allocation2 + $0x70] sm:$0xff] %v939_v25 }
 0x142   : > { %951 = vst [vmem:[#allocation2 + $0x20] sm:$0xff] %v935_v29 }
 0x143   : > { %v921_v33 = vpop.f32.mrf.mxu3 }
 0x144   : > { %v922_v35 = vadd.f32 %v921_v33, %v873_v31 }
 0x145   : > { %v911_v12 = vpop.f32.mrf.mxu2  ;;  %v815_v38 = vpop.f32.mrf.mxu0 }
 0x146   : > { %v912_v36 = vadd.f32 %v911_v12, %v863_v30  ;;  %v940_v37 = vadd.f32 %v922_v35, %v425_v32  ;;  %v864_v40 = vpop.f32.mrf.mxu1 }
 0x147   : > { %v865_v42 = vadd.f32 %v864_v40, %v815_v38 }
 0x148   : > { %v936_v39 = vadd.f32 %v912_v36, %v421_v34  ;;  %956 = vst [vmem:[#allocation2 + $0x78] sm:$0xff] %v940_v37 }
 0x14a   : > { %952 = vst [vmem:[#allocation2 + $0x10] sm:$0xff] %v936_v39 }
 0x14b   : > { %v923_v44 = vpop.f32.mrf.mxu3 }
 0x14c   : > { %v924_v20 = vadd.f32 %v923_v44, %v875_v41 }
 0x14d   : > { %v913_v46 = vpop.f32.mrf.mxu2 }
 0x14e   : > { %v914_v47 = vadd.f32 %v913_v46, %v865_v42  ;;  %v941_v48 = vadd.f32 %v924_v20, %v426_v43  ;;  %961 = sbr.rel (%p1468_p11) target bundleno = 385 (0x181), region = 62 }
 0x150   : > { %v937_v49 = vadd.f32 %v914_v47, %v422_v45  ;;  %957 = vst [vmem:[#allocation2 + $0x28] sm:$0xff] %v941_v48 }
 0x152   : > { %953 = vst [vmem:[#allocation2 + $0x38] sm:$0xff] %v937_v49 }
 0x153   : > { %v962_v50 = vld [vmem:[#allocation2 + $0x30] sm:$0xff]  ;;  %v963_v51 = vld [vmem:[#allocation2] sm:$0xff]  ;;  %v964_v52 = vld [vmem:[#allocation2 + $0x58] sm:$0xff] }
 0x154   : > { %v1527_v53 = vpack.c.bf16 %v963_v51, %v962_v50  ;;  %v1010_v54 = vadd.f32 %v963_v51, %v962_v50  ;;  %v1032_v28 = vmul.f32 %v962_v50, %v962_v50  ;;  %v1033_v55 = vmul.f32 %v963_v51, %v963_v51  ;;  %v965_v57 = vld [vmem:[#allocation2 + $0x18] sm:$0xff]  ;;  %v966_v56 = vld [vmem:[#allocation2 + $0x50] sm:$0xff]  ;;  %v967_v58 = vld [vmem:[#allocation2 + $0x68] sm:$0xff] }
 0x155   : > { %v1532_v59 = vpack.c.bf16 %v965_v57, %v964_v52  ;;  %v1034_v60 = vmul.f32 %v964_v52, %v964_v52  ;;  %v1537_v61 = vpack.c.bf16 %v967_v58, %v966_v56  ;;  %v968_v62 = vld [vmem:[#allocation2 + $0x8] sm:$0xff]  ;;  %v1035_v1 = vmul.f32 %v965_v57, %v965_v57  ;;  %v970_v3 = vld [vmem:[#allocation2 + $0x40] sm:$0xff]  ;;  %v972_v8 = vld [vmem:[#allocation2 + $0x10] sm:$0xff] }
 0x156   : > { %1528 = vst [vmem:[%s1999_s2] sm:$0xff] %v1527_v53   ;;  %v1048_v63 = vadd.f32 %v1033_v55, %v1032_v28  ;;  %v1011_v0 = vadd.f32 %v1010_v54, %v964_v52  ;;  %v969_v2 = vld [vmem:[#allocation2 + $0x48] sm:$0xff]  ;;  %v971_v5 = vld [vmem:[#allocation2 + $0x20] sm:$0xff]  ;;  %v1036_v11 = vmul.f32 %v966_v56, %v966_v56  ;;  %v975_v15 = vld [vmem:[#allocation2 + $0x70] sm:$0xff]  ;;  %v1037_v21 = vmul.f32 %v967_v58, %v967_v58 }
 0x157   : > { %1564 = vst [vmem:[%s1999_s2 + $0x8] sm:$0xff] %v1532_v59   ;;  %v1542_v6 = vpack.c.bf16 %v969_v2, %v968_v62  ;;  %v1547_v7 = vpack.c.bf16 %v971_v5, %v970_v3  ;;  %v974_v14 = vld [vmem:[#allocation2 + $0x60] sm:$0xff]  ;;  %v976_v22 = vld [vmem:[#allocation2 + $0x78] sm:$0xff]  ;;  %v977_v23 = vld [vmem:[#allocation2 + $0x28] sm:$0xff]  ;;  %v1038_v26 = vmul.f32 %v968_v62, %v968_v62  ;;  %v1039_v30 = vmul.f32 %v969_v2, %v969_v2 }
 0x158   : > { %v1012_v9 = vadd.f32 %v1011_v0, %v965_v57  ;;  %v1049_v10 = vadd.f32 %v1048_v63, %v1034_v60  ;;  %1565 = vst [vmem:[%s1999_s2 + $0x10] sm:$0xff] %v1537_v61   ;;  %v1557_v17 = vpack.c.bf16 %v975_v15, %v974_v14  ;;  %v1562_v4 = vpack.c.bf16 %v977_v23, %v976_v22 }
 0x159   : > { %v973_v13 = vld [vmem:[#allocation2 + $0x38] sm:$0xff]  ;;  %1566 = vst [vmem:[%s1999_s2 + $0x18] sm:$0xff] %v1542_v6   ;;  %v1040_v33 = vmul.f32 %v970_v3, %v970_v3  ;;  %v1041_v35 = vmul.f32 %v971_v5, %v971_v5  ;;  %v1042_v39 = vmul.f32 %v972_v8, %v972_v8  ;;  %v1044_v44 = vmul.f32 %v974_v14, %v974_v14 }
 0x15a   : > { %v1552_v16 = vpack.c.bf16 %v973_v13, %v972_v8  ;;  %v1050_v18 = vadd.f32 %v1049_v10, %v1035_v1  ;;  %v1013_v19 = vadd.f32 %v1012_v9, %v966_v56  ;;  %1567 = vst [vmem:[%s1999_s2 + $0x20] sm:$0xff] %v1547_v7   ;;  %v1043_v41 = vmul.f32 %v973_v13, %v973_v13 }
 0x15b   : > { %1569 = vst [vmem:[%s1999_s2 + $0x30] sm:$0xff] %v1557_v17   ;;  %v1045_v20 = vmul.f32 %v975_v15, %v975_v15  ;;  %v1046_v49 = vmul.f32 %v976_v22, %v976_v22  ;;  %v1047_v52 = vmul.f32 %v977_v23, %v977_v23 }
 0x15c   : > { %1568 = vst [vmem:[%s1999_s2 + $0x28] sm:$0xff] %v1552_v16   ;;  %v1014_v24 = vadd.f32 %v1013_v19, %v967_v58  ;;  %v1051_v25 = vadd.f32 %v1050_v18, %v1036_v11 }
 0x15d   : > { %1570 = vst [vmem:[%s1999_s2 + $0x38] sm:$0xff] %v1562_v4  }
 0x15e   : > { %v1052_v27 = vadd.f32 %v1051_v25, %v1037_v21  ;;  %v1015_v29 = vadd.f32 %v1014_v24, %v968_v62 }
 0x160   : > { %v1016_v31 = vadd.f32 %v1015_v29, %v969_v2  ;;  %v1053_v32 = vadd.f32 %v1052_v27, %v1038_v26 }
 0x162   : > { %v1054_v34 = vadd.f32 %v1053_v32, %v1039_v30  ;;  %v1017_v12 = vadd.f32 %v1016_v31, %v970_v3 }
 0x164   : > { %v1018_v36 = vadd.f32 %v1017_v12, %v971_v5  ;;  %v1055_v37 = vadd.f32 %v1054_v34, %v1040_v33 }
 0x166   : > { %v1056_v38 = vadd.f32 %v1055_v37, %v1041_v35  ;;  %v1019_v40 = vadd.f32 %v1018_v36, %v972_v8 }
 0x168   : > { %v1020_v42 = vadd.f32 %v1019_v40, %v973_v13  ;;  %v1057_v43 = vadd.f32 %v1056_v38, %v1042_v39 }
 0x16a   : > { %v1058_v45 = vadd.f32 %v1057_v43, %v1043_v41  ;;  %v1021_v46 = vadd.f32 %v1020_v42, %v974_v14 }
 0x16c   : > { %v1022_v47 = vadd.f32 %v1021_v46, %v975_v15  ;;  %v1059_v48 = vadd.f32 %v1058_v45, %v1044_v44 }
 0x16e   : > { %v1060_v50 = vadd.f32 %v1059_v48, %v1045_v20  ;;  %v1023_v51 = vadd.f32 %v1022_v47, %v976_v22 }
 0x170   : > { %v1024_v53 = vadd.f32 %v1023_v51, %v977_v23  ;;  %v1061_v54 = vadd.f32 %v1060_v50, %v1046_v49 }
 0x172   : > { %v1025_v28 = vrot.slane %v1024_v53, 4  ;;  %v1062_v55 = vadd.f32 %v1061_v54, %v1047_v52 }
 0x174   : > { %v1026_v57 = vadd.f32 %v1025_v28, %v1024_v53  ;;  %v1063_v56 = vrot.slane %v1062_v55, 4 }
 0x176   : > { %v1027_v58 = vrot.slane %v1026_v57, 2  ;;  %v1064_v59 = vadd.f32 %v1063_v56, %v1062_v55 }
 0x178   : > { %v1028_v60 = vadd.f32 %v1027_v58, %v1026_v57  ;;  %v1065_v61 = vrot.slane %v1064_v59, 2 }
 0x17a   : > { %v1029_v62 = vrot.slane %v1028_v60, 1  ;;  %v1066_v63 = vadd.f32 %v1065_v61, %v1064_v59 }
 0x17c   : > { %v1030_v0 = vadd.f32 %v1029_v62, %v1028_v60  ;;  %v1067_v1 = vrot.slane %v1066_v63, 1 }
 0x17e   : > { %1031 = vst [vmem:[%s2000_s3] sm:$0x1] %v1030_v0  ;;  %v1068_v2 = vadd.f32 %v1067_v1, %v1066_v63 }
 0x180   : > { %1069 = vst [vmem:[%s2001_s4] sm:$0x1] %v1068_v2 }
 0x181 PF: > { %s15_s19 = sadd.s32 1, %s1676_s19   ;;  %s2002_s15 = smov %s1664_s16 }
 0x182   : > { %p12_p12 = scmp.ge.s32.totalorder %s15_s19, 5   ;;  %s2003_s16 = smov %s1739_s23 }
 0x183   : > { %s2004_s17 = smov %s1672_s18  ;;  %s2005_s18 = smov %s2007_s20 }
 0x184   :  { %14 = sbr.rel (!%p12_p12) target bundleno = 3 (0x3), region = 130 }

// kernel: resnet_forward.55
= control target key start
LH: loop header
LB: loop body
LE: loop exit
PB: predicated region body
PF: predicated region fallthrough
CT: control target
= control target key end

     0   :  { %s455_s0 = inlined_call_operand.vmem [shape: bf16[128,128], index: 0, kind: input, shape index: {}]   ;;  %s456_s1 = inlined_call_operand.vmem [shape: f32[1,128], index: 1, kind: input, shape index: {}]   ;;  %s457_s2 = inlined_call_operand.vmem [shape: f32[1,128], index: 2, kind: input, shape index: {}]   ;;  %s458_s3 = inlined_call_operand.vmem [shape: bf16[128,128], index: 3, kind: input, shape index: {}]   ;;  %s459_s4 = inlined_call_operand.vmem [shape: bf16[128,128], index: 4, kind: output, shape index: {}]  }
   0x1   :  { %v190_v0 = vld [vmem:[%s455_s0] sm:$0xff]   ;;  %v293_v8 = vld [vmem:[%s455_s0 + $0x8] sm:$0xff]   ;;  %v294_v10 = vld [vmem:[%s455_s0 + $0x10] sm:$0xff]  }
   0x2   :  { %v347_v1 = vld [vmem:[%s456_s1] ss:$0 sm:$0xff]  ;;  %v191_v2 = vunpack.c.l.bf16 %v190_v0  ;;  %v192_v3 = vunpack.c.h.bf16 %v190_v0  ;;  %v300_v9 = vld [vmem:[%s458_s3 + $0x8] sm:$0xff]   ;;  %v195_v13 = vunpack.c.l.bf16 %v293_v8  ;;  %v196_v14 = vunpack.c.h.bf16 %v293_v8  ;;  %v301_v15 = vld [vmem:[%s458_s3 + $0x10] sm:$0xff]  }
   0x3   :  { %v352_v4 = vld [vmem:[%s457_s2] ss:$0 sm:$0xff]  ;;  %v227_v16 = vunpack.c.l.bf16 %v300_v9  ;;  %v228_v17 = vunpack.c.h.bf16 %v300_v9  ;;  %v199_v18 = vunpack.c.l.bf16 %v294_v10  ;;  %v200_v19 = vunpack.c.h.bf16 %v294_v10  ;;  %v295_v24 = vld [vmem:[%s455_s0 + $0x18] sm:$0xff]   ;;  %v297_v56 = vld [vmem:[%s455_s0 + $0x28] sm:$0xff]  }
   0x4   :  { %v222_v5 = vld [vmem:[%s458_s3] sm:$0xff]   ;;  %v53_v11 = vmul.f32 %v347_v1, %v191_v2  ;;  %v54_v12 = vmul.f32 %v347_v1, %v192_v3  ;;  %v55_v22 = vmul.f32 %v347_v1, %v195_v13  ;;  %v56_v23 = vmul.f32 %v347_v1, %v196_v14  ;;  %v302_v37 = vld [vmem:[%s458_s3 + $0x18] sm:$0xff]   ;;  %v304_v61 = vld [vmem:[%s458_s3 + $0x28] sm:$0xff]  }
   0x5   :  { %v223_v6 = vunpack.c.l.bf16 %v222_v5  ;;  %v224_v7 = vunpack.c.h.bf16 %v222_v5  ;;  %v57_v25 = vmul.f32 %v347_v1, %v199_v18  ;;  %v58_v26 = vmul.f32 %v347_v1, %v200_v19  ;;  %v296_v46 = vld [vmem:[%s455_s0 + $0x20] sm:$0xff]   ;;  %v298_v8 = vld [vmem:[%s455_s0 + $0x30] sm:$0xff]  }
   0x6   :  { %v73_v20 = vadd.f32 %v352_v4, %v53_v11  ;;  %v74_v21 = vadd.f32 %v352_v4, %v54_v12  ;;  %v231_v27 = vunpack.c.l.bf16 %v301_v15  ;;  %v232_v28 = vunpack.c.h.bf16 %v301_v15  ;;  %v303_v51 = vld [vmem:[%s458_s3 + $0x20] sm:$0xff]   ;;  %v305_v9 = vld [vmem:[%s458_s3 + $0x30] sm:$0xff]  }
   0x7   :  { %v75_v31 = vadd.f32 %v352_v4, %v55_v22  ;;  %v76_v32 = vadd.f32 %v352_v4, %v56_v23  ;;  %v77_v33 = vadd.f32 %v352_v4, %v57_v25  ;;  %v78_v34 = vadd.f32 %v352_v4, %v58_v26  ;;  %v299_v22 = vld [vmem:[%s455_s0 + $0x38] sm:$0xff]  }
   0x8   :  { %v121_v29 = vadd.f32 %v223_v6, %v73_v20  ;;  %v122_v30 = vadd.f32 %v224_v7, %v74_v21  ;;  %v203_v35 = vunpack.c.l.bf16 %v295_v24  ;;  %v204_v36 = vunpack.c.h.bf16 %v295_v24 }
   0x9   :  { %v123_v40 = vadd.f32 %v227_v16, %v75_v31  ;;  %v124_v41 = vadd.f32 %v228_v17, %v76_v32  ;;  %v125_v42 = vadd.f32 %v231_v27, %v77_v33  ;;  %v126_v43 = vadd.f32 %v232_v28, %v78_v34  ;;  %v306_v31 = vld [vmem:[%s458_s3 + $0x38] sm:$0xff]  }
   0xa   :  { %v137_v38 = vmax.f32 %v121_v29, 0.0  ;;  %v138_v39 = vmax.f32 %v122_v30, 0.0  ;;  %v59_v44 = vmul.f32 %v347_v1, %v203_v35  ;;  %v60_v45 = vmul.f32 %v347_v1, %v204_v36 }
   0xb   :  { %v139_v48 = vmax.f32 %v123_v40, 0.0  ;;  %v140_v49 = vmax.f32 %v124_v41, 0.0  ;;  %v235_v50 = vunpack.c.l.bf16 %v302_v37  ;;  %v141_v52 = vmax.f32 %v125_v42, 0.0 }
   0xc   :  { %v256_v47 = vpack.c.bf16 %v138_v39, %v137_v38  ;;  %v142_v53 = vmax.f32 %v126_v43, 0.0  ;;  %v79_v54 = vadd.f32 %v352_v4, %v59_v44  ;;  %v80_v55 = vadd.f32 %v352_v4, %v60_v45 }
   0xd   :  { %v261_v57 = vpack.c.bf16 %v140_v49, %v139_v48  ;;  %v236_v58 = vunpack.c.h.bf16 %v302_v37  ;;  %v207_v59 = vunpack.c.l.bf16 %v296_v46  ;;  %v208_v60 = vunpack.c.h.bf16 %v296_v46 }
   0xe   :  { %257 = vst [vmem:[%s459_s4] sm:$0xff] %v256_v47   ;;  %v266_v62 = vpack.c.bf16 %v142_v53, %v141_v52  ;;  %v127_v63 = vadd.f32 %v235_v50, %v79_v54  ;;  %v239_v0 = vunpack.c.l.bf16 %v303_v51  ;;  %v240_v2 = vunpack.c.h.bf16 %v303_v51 }
   0xf   :  { %307 = vst [vmem:[%s459_s4 + $0x8] sm:$0xff] %v261_v57   ;;  %v128_v3 = vadd.f32 %v236_v58, %v80_v55  ;;  %v61_v5 = vmul.f32 %v347_v1, %v207_v59  ;;  %v62_v6 = vmul.f32 %v347_v1, %v208_v60  ;;  %v211_v7 = vunpack.c.l.bf16 %v297_v56 }
  0x10   :  { %308 = vst [vmem:[%s459_s4 + $0x10] sm:$0xff] %v266_v62   ;;  %v143_v10 = vmax.f32 %v127_v63, 0.0  ;;  %v212_v11 = vunpack.c.h.bf16 %v297_v56  ;;  %v243_v12 = vunpack.c.l.bf16 %v304_v61  ;;  %v244_v13 = vunpack.c.h.bf16 %v304_v61 }
  0x11   :  { %v144_v14 = vmax.f32 %v128_v3, 0.0  ;;  %v81_v15 = vadd.f32 %v352_v4, %v61_v5  ;;  %v82_v16 = vadd.f32 %v352_v4, %v62_v6  ;;  %v63_v17 = vmul.f32 %v347_v1, %v211_v7 }
  0x12   :  { %v64_v18 = vmul.f32 %v347_v1, %v212_v11  ;;  %v215_v19 = vunpack.c.l.bf16 %v298_v8  ;;  %v216_v20 = vunpack.c.h.bf16 %v298_v8  ;;  %v247_v21 = vunpack.c.l.bf16 %v305_v9 }
  0x13   :  { %v271_v23 = vpack.c.bf16 %v144_v14, %v143_v10  ;;  %v129_v24 = vadd.f32 %v239_v0, %v81_v15  ;;  %v130_v25 = vadd.f32 %v240_v2, %v82_v16  ;;  %v83_v26 = vadd.f32 %v352_v4, %v63_v17 }
  0x14   :  { %v84_v27 = vadd.f32 %v352_v4, %v64_v18  ;;  %v65_v28 = vmul.f32 %v347_v1, %v215_v19  ;;  %v66_v29 = vmul.f32 %v347_v1, %v216_v20  ;;  %v248_v30 = vunpack.c.h.bf16 %v305_v9 }
  0x15   :  { %309 = vst [vmem:[%s459_s4 + $0x18] sm:$0xff] %v271_v23   ;;  %v145_v32 = vmax.f32 %v129_v24, 0.0  ;;  %v146_v33 = vmax.f32 %v130_v25, 0.0  ;;  %v131_v34 = vadd.f32 %v243_v12, %v83_v26  ;;  %v219_v35 = vunpack.c.l.bf16 %v299_v22 }
  0x16   :  { %v132_v36 = vadd.f32 %v244_v13, %v84_v27  ;;  %v85_v37 = vadd.f32 %v352_v4, %v65_v28  ;;  %v86_v38 = vadd.f32 %v352_v4, %v66_v29  ;;  %v220_v39 = vunpack.c.h.bf16 %v299_v22 }
  0x17   :  { %v276_v40 = vpack.c.bf16 %v146_v33, %v145_v32  ;;  %v147_v41 = vmax.f32 %v131_v34, 0.0  ;;  %v67_v42 = vmul.f32 %v347_v1, %v219_v35  ;;  %v251_v43 = vunpack.c.l.bf16 %v306_v31 }
  0x18   :  { %v148_v44 = vmax.f32 %v132_v36, 0.0  ;;  %v133_v45 = vadd.f32 %v247_v21, %v85_v37  ;;  %v134_v46 = vadd.f32 %v248_v30, %v86_v38  ;;  %v68_v47 = vmul.f32 %v347_v1, %v220_v39 }
  0x19   :  { %310 = vst [vmem:[%s459_s4 + $0x20] sm:$0xff] %v276_v40   ;;  %v87_v48 = vadd.f32 %v352_v4, %v67_v42  ;;  %v252_v49 = vunpack.c.h.bf16 %v306_v31 }
  0x1a   :  { %v281_v50 = vpack.c.bf16 %v148_v44, %v147_v41  ;;  %v149_v51 = vmax.f32 %v133_v45, 0.0  ;;  %v150_v52 = vmax.f32 %v134_v46, 0.0  ;;  %v88_v53 = vadd.f32 %v352_v4, %v68_v47 }
  0x1b   :  { %v135_v54 = vadd.f32 %v251_v43, %v87_v48 }
  0x1c   :  { %311 = vst [vmem:[%s459_s4 + $0x28] sm:$0xff] %v281_v50   ;;  %v286_v55 = vpack.c.bf16 %v150_v52, %v149_v51  ;;  %v136_v56 = vadd.f32 %v252_v49, %v88_v53 }
  0x1d   :  { %v151_v1 = vmax.f32 %v135_v54, 0.0 }
  0x1e   :  { %312 = vst [vmem:[%s459_s4 + $0x30] sm:$0xff] %v286_v55   ;;  %v152_v57 = vmax.f32 %v136_v56, 0.0 }
  0x20   :  { %v291_v58 = vpack.c.bf16 %v152_v57, %v151_v1 }
  0x22   :  { %313 = vst [vmem:[%s459_s4 + $0x38] sm:$0xff] %v291_v58  }

// kernel: resnet_forward.59
= control target key start
LH: loop header
LB: loop body
LE: loop exit
PB: predicated region body
PF: predicated region fallthrough
CT: control target
= control target key end

     0   :  { %s976_s15 = smov 0   ;;  %s978_s16 = smov 0   ;;  %s1092_s0 = inlined_call_operand.vmem [shape: bf16[32,128], index: 0, kind: input, shape index: {}]   ;;  %s1093_s1 = inlined_call_operand.vmem [shape: bf16[128,256], index: 1, kind: input, shape index: {}]   ;;  %s1094_s2 = inlined_call_operand.vmem [shape: bf16[32,256], index: 2, kind: output, shape index: {0}]   ;;  %s1095_s3 = inlined_call_operand.vmem [shape: f32[1,1,256], index: 3, kind: output, shape index: {1}]   ;;  %s1096_s4 = inlined_call_operand.vmem [shape: f32[1,1,256], index: 4, kind: output, shape index: {2}]  }
   0x1   :  { %s980_s17 = smov 0   ;;  %s982_s18 = smov 0  }
   0x2   :  { %s984_s19 = smov 0  }
   0x3 LB: > { %s30_s20 = sadd.s32 1, %s945_s18  ;;  %s788_s21 = sadd.s32 4294967295, %s949_s19   ;;  %s949_s19 = sphi %s984_s19, %s15_s19   ;;  %s945_s18 = sphi %s982_s18, %s1101_s18   ;;  %s941_s17 = sphi %s980_s17, %s1100_s17   ;;  %s937_s16 = sphi %s978_s16, %s1099_s16   ;;  %s933_s15 = sphi %s976_s15, %s1098_s15  }
   0x4   : > { %p32_p0 = scmp.ge.s32.totalorder %s30_s20, 2  ;;  %p78_p1 = scmp.ne.s32.totalorder %s937_s16, %s933_s15 }
   0x5   : > { %p79_p2 = scmp.eq.s32.totalorder %s949_s19, 0  ;;  %p110_p4 = scmp.eq.s32.totalorder %s788_s21, 1 }
   0x6   : > { %s1103_s20 = smov (%p32_p0, %s30_s20), 0  ;;  %s71_s23 = sadd.s32 1, %s937_s16 }
   0x7   : > { %p80_p3 = por %p79_p2, %p78_p1  ;;  %s67_s22 = ssub.s32 %s945_s18, %s1103_s20 }
   0x8   : > { %p69_p5 = scmp.eq.s32.totalorder %s67_s22, 0  ;;  %p1011_p6 = por %p110_p4, %p78_p1 }
   0x9   : > { %p792_p7 = scmp.ge.s32.totalorder %s949_s19, 2 }
   0xa   : > { %s1016_s25 = scalar_select %p69_p5, %s937_s16, %s71_s23  }
   0xb   : > { %200 = sbr.rel (%p792_p7) target bundleno = 36 (0x24), region = 20 }
  0x10   : > { %203 = sbr.rel (!%p80_p3) target bundleno = 36 (0x24), region = 24  ;;  %s205_s26 = sand.u32 (%p80_p3), 1, %s937_s16  }
  0x11   : > { %s794_s27 = sshll.u32 (%p80_p3), %s945_s18, 2  ;;  %s793_s28 = sshll.u32 (%p80_p3), %s205_s26, 6 }
  0x12   : > { %s1024_s5 = scalar_lea.vmem (%p80_p3), %s1093_s1, %s794_s27  ;;  %s207_s6 = scalar_lea.vmem (%p80_p3), [#allocation3], %s793_s28 }
  0x13   : > { %v229_v0 = vld [vmem:[%s1024_s5] sm:$0xf] (%p80_p3)  ;;  %v231_v1 = vld [vmem:[%s1024_s5 + $0x8] sm:$0xf] (%p80_p3)  ;;  %v233_v2 = vld [vmem:[%s1024_s5 + $0x10] sm:$0xf] (%p80_p3) }
  0x14   : > { %230 = vst [vmem:[%s207_s6] sm:$0xf] (%p80_p3), %v229_v0  ;;  %v235_v3 = vld [vmem:[%s1024_s5 + $0x18] sm:$0xf] (%p80_p3)  ;;  %v237_v4 = vld [vmem:[%s1024_s5 + $0x20] sm:$0xf] (%p80_p3) }
  0x15   : > { %232 = vst [vmem:[%s207_s6 + $0x4] sm:$0xf] %v231_v1  ;;  %v239_v5 = vld [vmem:[%s1024_s5 + $0x28] sm:$0xf]  ;;  %v241_v6 = vld [vmem:[%s1024_s5 + $0x30] sm:$0xf] }
  0x16   : > { %234 = vst [vmem:[%s207_s6 + $0x8] sm:$0xf] %v233_v2  ;;  %v243_v7 = vld [vmem:[%s1024_s5 + $0x38] sm:$0xf]  ;;  %v245_v8 = vld [vmem:[%s1024_s5 + $0x40] sm:$0xf] }
  0x17   : > { %236 = vst [vmem:[%s207_s6 + $0xc] sm:$0xf] %v235_v3  ;;  %v247_v9 = vld [vmem:[%s1024_s5 + $0x48] sm:$0xf]  ;;  %v249_v10 = vld [vmem:[%s1024_s5 + $0x50] sm:$0xf] }
  0x18   : > { %238 = vst [vmem:[%s207_s6 + $0x10] sm:$0xf] %v237_v4  ;;  %v251_v11 = vld [vmem:[%s1024_s5 + $0x58] sm:$0xf]  ;;  %v253_v12 = vld [vmem:[%s1024_s5 + $0x60] sm:$0xf] }
  0x19   : > { %240 = vst [vmem:[%s207_s6 + $0x14] sm:$0xf] %v239_v5  ;;  %v255_v13 = vld [vmem:[%s1024_s5 + $0x68] sm:$0xf]  ;;  %v257_v14 = vld [vmem:[%s1024_s5 + $0x70] sm:$0xf] }
  0x1a   : > { %242 = vst [vmem:[%s207_s6 + $0x18] sm:$0xf] %v241_v6  ;;  %v259_v15 = vld [vmem:[%s1024_s5 + $0x78] sm:$0xf] }
  0x1b   : > { %244 = vst [vmem:[%s207_s6 + $0x1c] sm:$0xf] %v243_v7 }
  0x1c   : > { %246 = vst [vmem:[%s207_s6 + $0x20] sm:$0xf] %v245_v8 }
  0x1d   : > { %248 = vst [vmem:[%s207_s6 + $0x24] sm:$0xf] %v247_v9 }
  0x1e   : > { %250 = vst [vmem:[%s207_s6 + $0x28] sm:$0xf] %v249_v10 }
  0x1f   : > { %252 = vst [vmem:[%s207_s6 + $0x2c] sm:$0xf] %v251_v11 }
  0x20   : > { %254 = vst [vmem:[%s207_s6 + $0x30] sm:$0xf] %v253_v12 }
  0x21   : > { %256 = vst [vmem:[%s207_s6 + $0x34] sm:$0xf] %v255_v13 }
  0x22   : > { %258 = vst [vmem:[%s207_s6 + $0x38] sm:$0xf] %v257_v14 }
  0x23   : > { %260 = vst [vmem:[%s207_s6 + $0x3c] sm:$0xf] %v259_v15 }
  0x24 PF: > { %p795_p8 = scmp.ge.s32.totalorder %s949_s19, 1  ;;  %p315_p9 = scmp.lt.s32.totalorder %s949_s19, 3 }
  0x26   : > { %p316_p10 = pnand %p795_p8, %p315_p9 }
  0x27   : > { %s322_s7 = sand.u32 (!%p316_p10), 1, %s933_s15   ;;  %p381_p11 = scmp.lt.s32.totalorder (!%p316_p10), %s941_s17, 1 }
  0x28   : > { %319 = sbr.rel (%p316_p10) target bundleno = 232 (0xe8), region = 65  ;;  %s796_s8 = sshll.u32 (!%p316_p10), %s322_s7, 6 }
  0x29   : > { %s324_s9 = scalar_lea.vmem (!%p316_p10), [#allocation3], %s796_s8  ;;  %s797_s14 = sshll.u32 (!%p316_p10), %s322_s7, 4 }
  0x2a   : > { %s1055_s21 = scalar_lea.vmem (!%p316_p10), [#allocation4], %s797_s14 }
  0x2d   : > { %v851_v16 = vld [vmem:[%s324_s9 + $0x38] sm:$0xff]  ;;  %v850_v17 = vld [vmem:[%s324_s9 + $0x30] sm:$0xff]  ;;  %v849_v18 = vld [vmem:[%s324_s9 + $0x28] sm:$0xff]  ;;  %s382_s15 = scalar_select %p381_p11, %s941_s17, 1 }
  0x2e   : > { %485 = vmatpush.bf16.msra.mxu0 %v851_v16  ;;  %863 = vmatpush.bf16.msra.mxu1 %v851_v16  ;;  %v848_v19 = vld [vmem:[%s324_s9 + $0x20] sm:$0xff]  ;;  %v847_v20 = vld [vmem:[%s324_s9 + $0x18] sm:$0xff]  ;;  %v846_v21 = vld [vmem:[%s324_s9 + $0x10] sm:$0xff]  ;;  %s839_s30 = sshll.u32 (%p1011_p6), %s941_s17, 2 }
  0x2f   : > { %v845_v22 = vld [vmem:[%s324_s9 + $0x8] sm:$0xff]  ;;  %v844_v23 = vld [vmem:[%s324_s9] sm:$0xff]  ;;  %s385_s26 = scalar_lea.vmem %s1095_s3, %s382_s15  ;;  %s392_s29 = scalar_lea.vmem %s1096_s4, %s382_s15 }
  0x30   : > { %v842_v24 = vld [vmem:[%s1092_s0] sm:$0xff]  ;;  %v843_v25 = vld [vmem:[%s1092_s0 + $0x8] sm:$0xff]  ;;  %s576_s7 = scalar_lea.vmem (%p1011_p6), %s1094_s2, %s839_s30 }
  0x32   : > { %486 = vmatpush.bf16.msra.mxu0 %v850_v17  ;;  %864 = vmatpush.bf16.msra.mxu1 %v850_v17 }
  0x36   : > { %487 = vmatpush.bf16.msra.mxu0 %v849_v18  ;;  %865 = vmatpush.bf16.msra.mxu1 %v849_v18 }
  0x3a   : > { %488 = vmatpush.bf16.msra.mxu0 %v848_v19  ;;  %866 = vmatpush.bf16.msra.mxu1 %v848_v19 }
  0x3e   : > { %489 = vmatpush.bf16.msra.mxu0 %v847_v20  ;;  %867 = vmatpush.bf16.msra.mxu1 %v847_v20 }
  0x42   : > { %490 = vmatpush.bf16.msra.mxu0 %v846_v21  ;;  %868 = vmatpush.bf16.msra.mxu1 %v846_v21 }
  0x46   : > { %491 = vmatpush.bf16.msra.mxu0 %v845_v22  ;;  %869 = vmatpush.bf16.msra.mxu1 %v845_v22 }
  0x4a   : > { %492 = vmatpush.bf16.msra.mxu0 %v844_v23  ;;  %870 = vmatpush.bf16.msra.mxu1 %v844_v23 }
  0x4d   : > { %493 = vmatmul.bf16.vlgmr.msra.gmra.mxu0 %v842_v24  ;;  %498 = vmatmul.bf16.vlgmr.msra.gmra.mxu1 %v843_v25 }
  0xca   : > { %v494_v26 = vpop.f32.mrf.mxu0  ;;  %v499_v27 = vpop.f32.mrf.mxu1 }
  0xcb   : > { %v537_v28 = vmul.f32 %v494_v26, %v494_v26  ;;  %v539_v35 = vmul.f32 %v499_v27, %v499_v27 }
  0xd2   : > { %v496_v29 = vpop.f32.mrf.mxu0  ;;  %v501_v30 = vpop.f32.mrf.mxu1 }
  0xd3   : > { %v855_v31 = vpack.c.bf16 %v496_v29, %v494_v26  ;;  %v527_v32 = vadd.f32 %v496_v29, %v494_v26  ;;  %v538_v33 = vmul.f32 %v496_v29, %v496_v29  ;;  %v860_v34 = vpack.c.bf16 %v501_v30, %v499_v27 }
  0xd4   : > { %v540_v39 = vmul.f32 %v501_v30, %v501_v30 }
  0xd5   : > { %856 = vst [vmem:[%s1055_s21] sm:$0xff] %v855_v31   ;;  %v541_v36 = vadd.f32 %v538_v33, %v537_v28  ;;  %v528_v37 = vadd.f32 %v527_v32, %v499_v27 }
  0xd6   : > { %862 = vst [vmem:[%s1055_s21 + $0x8] sm:$0xff] %v860_v34  }
  0xd7   : > { %v529_v38 = vadd.f32 %v528_v37, %v501_v30  ;;  %v542_v40 = vadd.f32 %v541_v36, %v539_v35 }
  0xd9   : > { %v530_v41 = vrot.slane %v529_v38, 4  ;;  %v543_v42 = vadd.f32 %v542_v40, %v540_v39 }
  0xdb   : > { %v531_v43 = vadd.f32 %v530_v41, %v529_v38  ;;  %v544_v44 = vrot.slane %v543_v42, 4 }
  0xdc   : > { %v593_v54 = vld [vmem:[%s1055_s21] sm:$0xf] (%p1011_p6)  ;;  %v595_v55 = vld [vmem:[%s1055_s21 + $0x4] sm:$0xf] (%p1011_p6) }
  0xdd   : > { %v532_v45 = vrot.slane %v531_v43, 2  ;;  %v545_v46 = vadd.f32 %v544_v44, %v543_v42  ;;  %v597_v56 = vld [vmem:[%s1055_s21 + $0x8] sm:$0xf] (%p1011_p6)  ;;  %594 = vst [vmem:[%s576_s7] sm:$0xf] (%p1011_p6), %v593_v54  ;;  %v599_v57 = vld [vmem:[%s1055_s21 + $0xc] sm:$0xf] (%p1011_p6) }
  0xde   : > { %596 = vst [vmem:[%s576_s7 + $0x8] sm:$0xf] (%p1011_p6), %v595_v55 }
  0xdf   : > { %v533_v47 = vadd.f32 %v532_v45, %v531_v43  ;;  %v546_v48 = vrot.slane %v545_v46, 2  ;;  %598 = vst [vmem:[%s576_s7 + $0x10] sm:$0xf] (%p1011_p6), %v597_v56 }
  0xe0   : > { %600 = vst [vmem:[%s576_s7 + $0x18] sm:$0xf] (%p1011_p6), %v599_v57 }
  0xe1   : > { %v534_v49 = vrot.slane %v533_v47, 1  ;;  %v547_v50 = vadd.f32 %v546_v48, %v545_v46 }
  0xe3   : > { %v535_v51 = vadd.f32 %v534_v49, %v533_v47  ;;  %v548_v52 = vrot.slane %v547_v50, 1  ;;  %571 = sbr.rel (!%p1011_p6) target bundleno = 232 (0xe8), region = 81 }
  0xe5   : > { %536 = vst [vmem:[%s385_s26] sm:$0x1] %v535_v51  ;;  %v549_v53 = vadd.f32 %v548_v52, %v547_v50 }
  0xe7   : > { %550 = vst [vmem:[%s392_s29] sm:$0x1] %v549_v53 }
  0xe8 PF: > { %s15_s19 = sadd.s32 1, %s949_s19   ;;  %s1098_s15 = smov %s937_s16 }
  0xe9   : > { %p12_p12 = scmp.ge.s32.totalorder %s15_s19, 4   ;;  %s1099_s16 = smov %s1016_s25 }
  0xea   : > { %s1100_s17 = smov %s945_s18  ;;  %s1101_s18 = smov %s1103_s20 }
  0xeb   :  { %14 = sbr.rel (!%p12_p12) target bundleno = 3 (0x3), region = 180 }

// kernel: resnet_forward.60
= control target key start
LH: loop header
LB: loop body
LE: loop exit
PB: predicated region body
PF: predicated region fallthrough
CT: control target
= control target key end

     0   :  { %v40_v12 = vlaneseq  ;;  %s107_s0 = inlined_call_operand.vmem [shape: f32[1,1,256], index: 0, kind: input, shape index: {}]   ;;  %s108_s1 = inlined_call_operand.vmem [shape: f32[1,1,256], index: 1, kind: input, shape index: {}]   ;;  %s109_s2 = inlined_call_operand.vmem [shape: f32[1,256], index: 2, kind: input, shape index: {}]   ;;  %s110_s3 = inlined_call_operand.vmem [shape: f32[1,256], index: 3, kind: input, shape index: {}]   ;;  %s111_s4 = inlined_call_operand.vmem [shape: f32[1,256], index: 4, kind: output, shape index: {0}]   ;;  %s112_s5 = inlined_call_operand.vmem [shape: f32[1,256], index: 5, kind: output, shape index: {1}]  }
   0x1   :  { %v19_v0 = vld [vmem:[%s107_s0] sm:$0x3] }
   0x2   :  { %v21_v1 = vld [vmem:[%s108_s1] sm:$0x3]  ;;  %v23_v2 = vmul.f32 0.03125, %v19_v0  ;;  %vm42_vm3 = vcmp.lt.s32.totalorder %v40_v12, 256 }
   0x3   :  { %v24_v3 = vmul.f32 0.03125, %v21_v1  ;;  %v38_v14 = vld [vmem:[%s109_s2] sm:$0x3] }
   0x4   :  { %v25_v4 = vmul.f32 %v23_v2, %v23_v2  ;;  %v45_v17 = vld [vmem:[%s110_s3] sm:$0x3] }
   0x6   :  { %v26_v5 = vsub.f32 %v24_v3, %v25_v4 }
   0x8   :  { %v27_v6 = vadd.f32 1e-05, %v26_v5 }
   0xa   :  { %57 = vrsqrt.f32 %v27_v6  ;;  %vm34_vm0 = vweird.f32 %v27_v6 }
  0x10   :  { %v58_v7 = vpop.eup %57 }
  0x11   :  { %v29_v8 = vmul.f32 %v58_v7, %v27_v6  ;;  %vm35_vm1 = vweird.f32 %v58_v7 }
  0x12   :  { %vm36_vm2 = vmor %vm34_vm0, %vm35_vm1 }
  0x13   :  { %v30_v9 = vmul.f32 %v58_v7, %v29_v8 }
  0x15   :  { %v31_v10 = vmul.f32 0.5, %v30_v9 }
  0x17   :  { %v32_v11 = vsub.f32 1.5, %v31_v10 }
  0x19   :  { %v33_v13 = vmul.f32 %v58_v7, %v32_v11 }
  0x1b   :  { %v37_v15 = vsel %vm36_vm2, %v58_v7, %v33_v13 }
  0x1c   :  { %v39_v16 = vmul.f32 %v38_v14, %v37_v15 }
  0x1e   :  { %44 = vst.msk [vmem:[%s111_s4] sm:$0x3] %vm42_vm3, %v39_v16  ;;  %v46_v18 = vmul.f32 %v39_v16, %v23_v2 }
  0x20   :  { %v47_v19 = vsub.f32 %v45_v17, %v46_v18 }
  0x22   :  { %48 = vst.msk [vmem:[%s112_s5] sm:$0x3] %vm42_vm3, %v47_v19 }

// kernel: resnet_forward.61
= control target key start
LH: loop header
LB: loop body
LE: loop exit
PB: predicated region body
PF: predicated region fallthrough
CT: control target
= control target key end

     0   :  { %s116_s0 = inlined_call_operand.vmem [shape: bf16[32,256], index: 0, kind: input, shape index: {}]   ;;  %s117_s1 = inlined_call_operand.vmem [shape: f32[1,256], index: 1, kind: input, shape index: {}]   ;;  %s118_s2 = inlined_call_operand.vmem [shape: f32[1,256], index: 2, kind: input, shape index: {}]   ;;  %s119_s3 = inlined_call_operand.vmem [shape: bf16[32,256], index: 3, kind: output, shape index: {}]  }
   0x1   :  { %v14_v0 = vld [vmem:[%s116_s0] sm:$0xff]  ;;  %v15_v7 = vld [vmem:[%s116_s0 + $0x8] sm:$0xff]  ;;  %v16_v8 = vld [vmem:[%s116_s0 + $0x10] sm:$0xff] }
   0x2   :  { %v26_v1 = vld [vmem:[%s117_s1] sm:$0x3]  ;;  %v18_v3 = vunpack.c.l.bf16 %v14_v0  ;;  %v19_v4 = vunpack.c.h.bf16 %v14_v0  ;;  %v17_v9 = vld [vmem:[%s116_s0 + $0x18] sm:$0xff]  ;;  %v20_v12 = vunpack.c.l.bf16 %v15_v7  ;;  %v21_v13 = vunpack.c.h.bf16 %v15_v7 }
   0x3   :  { %v40_v2 = vld [vmem:[%s118_s2] sm:$0x3]  ;;  %v28_v5 = vperm.slane %v26_v1, 0  ;;  %v29_v6 = vperm.slane %v26_v1, 1  ;;  %v22_v16 = vunpack.c.l.bf16 %v16_v8  ;;  %v23_v17 = vunpack.c.h.bf16 %v16_v8 }
   0x4   :  { %v42_v10 = vperm.slane %v40_v2, 0  ;;  %v43_v11 = vperm.slane %v40_v2, 1  ;;  %v24_v20 = vunpack.c.l.bf16 %v17_v9  ;;  %v25_v21 = vunpack.c.h.bf16 %v17_v9 }
   0x5   :  { %v32_v14 = vmul.f32 %v28_v5, %v18_v3  ;;  %v33_v15 = vmul.f32 %v29_v6, %v19_v4  ;;  %v34_v18 = vmul.f32 %v28_v5, %v20_v12  ;;  %v35_v19 = vmul.f32 %v29_v6, %v21_v13 }
   0x6   :  { %v36_v24 = vmul.f32 %v28_v5, %v22_v16  ;;  %v37_v25 = vmul.f32 %v29_v6, %v23_v17  ;;  %v38_v28 = vmul.f32 %v28_v5, %v24_v20  ;;  %v39_v29 = vmul.f32 %v29_v6, %v25_v21 }
   0x7   :  { %v46_v22 = vadd.f32 %v42_v10, %v32_v14  ;;  %v47_v23 = vadd.f32 %v43_v11, %v33_v15  ;;  %v48_v26 = vadd.f32 %v42_v10, %v34_v18  ;;  %v49_v27 = vadd.f32 %v43_v11, %v35_v19 }
   0x8   :  { %v50_v31 = vadd.f32 %v42_v10, %v36_v24  ;;  %v51_v32 = vadd.f32 %v43_v11, %v37_v25  ;;  %v52_v34 = vadd.f32 %v42_v10, %v38_v28  ;;  %v53_v35 = vadd.f32 %v43_v11, %v39_v29 }
   0x9   :  { %v54_v30 = vpack.c.bf16 %v47_v23, %v46_v22  ;;  %v55_v33 = vpack.c.bf16 %v49_v27, %v48_v26 }
   0xa   :  { %v56_v36 = vpack.c.bf16 %v51_v32, %v50_v31  ;;  %v57_v37 = vpack.c.bf16 %v53_v35, %v52_v34 }
   0xb   :  { %58 = vst [vmem:[%s119_s3] sm:$0xff] %v54_v30 }
   0xc   :  { %59 = vst [vmem:[%s119_s3 + $0x8] sm:$0xff] %v55_v33 }
   0xd   :  { %60 = vst [vmem:[%s119_s3 + $0x10] sm:$0xff] %v56_v36 }
   0xe   :  { %61 = vst [vmem:[%s119_s3 + $0x18] sm:$0xff] %v57_v37 }

// kernel: resnet_forward.58
= control target key start
LH: loop header
LB: loop body
LE: loop exit
PB: predicated region body
PF: predicated region fallthrough
CT: control target
= control target key end

     0   :  { %s124_s0 = inlined_call_operand.vmem [shape: bf16[32,256], index: 0, kind: input, shape index: {}]   ;;  %s125_s1 = inlined_call_operand.vmem [shape: f32[1,256], index: 1, kind: input, shape index: {}]   ;;  %s126_s2 = inlined_call_operand.vmem [shape: f32[1,256], index: 2, kind: input, shape index: {}]   ;;  %s127_s3 = inlined_call_operand.vmem [shape: bf16[32,256], index: 3, kind: output, shape index: {}]  }
   0x1   :  { %v14_v0 = vld [vmem:[%s124_s0] sm:$0xff]  ;;  %v15_v7 = vld [vmem:[%s124_s0 + $0x8] sm:$0xff]  ;;  %v16_v8 = vld [vmem:[%s124_s0 + $0x10] sm:$0xff] }
   0x2   :  { %v26_v1 = vld [vmem:[%s125_s1] sm:$0x3]  ;;  %v18_v3 = vunpack.c.l.bf16 %v14_v0  ;;  %v19_v4 = vunpack.c.h.bf16 %v14_v0  ;;  %v17_v9 = vld [vmem:[%s124_s0 + $0x18] sm:$0xff]  ;;  %v20_v12 = vunpack.c.l.bf16 %v15_v7  ;;  %v21_v13 = vunpack.c.h.bf16 %v15_v7 }
   0x3   :  { %v40_v2 = vld [vmem:[%s126_s2] sm:$0x3]  ;;  %v28_v5 = vperm.slane %v26_v1, 0  ;;  %v29_v6 = vperm.slane %v26_v1, 1  ;;  %v22_v16 = vunpack.c.l.bf16 %v16_v8  ;;  %v23_v17 = vunpack.c.h.bf16 %v16_v8 }
   0x4   :  { %v42_v10 = vperm.slane %v40_v2, 0  ;;  %v43_v11 = vperm.slane %v40_v2, 1  ;;  %v24_v20 = vunpack.c.l.bf16 %v17_v9  ;;  %v25_v21 = vunpack.c.h.bf16 %v17_v9 }
   0x5   :  { %v32_v14 = vmul.f32 %v28_v5, %v18_v3  ;;  %v33_v15 = vmul.f32 %v29_v6, %v19_v4  ;;  %v34_v18 = vmul.f32 %v28_v5, %v20_v12  ;;  %v35_v19 = vmul.f32 %v29_v6, %v21_v13 }
   0x6   :  { %v36_v24 = vmul.f32 %v28_v5, %v22_v16  ;;  %v37_v25 = vmul.f32 %v29_v6, %v23_v17  ;;  %v38_v28 = vmul.f32 %v28_v5, %v24_v20  ;;  %v39_v29 = vmul.f32 %v29_v6, %v25_v21 }
   0x7   :  { %v46_v22 = vadd.f32 %v42_v10, %v32_v14  ;;  %v47_v23 = vadd.f32 %v43_v11, %v33_v15  ;;  %v48_v26 = vadd.f32 %v42_v10, %v34_v18  ;;  %v49_v27 = vadd.f32 %v43_v11, %v35_v19 }
   0x8   :  { %v50_v32 = vadd.f32 %v42_v10, %v36_v24  ;;  %v51_v33 = vadd.f32 %v43_v11, %v37_v25  ;;  %v52_v36 = vadd.f32 %v42_v10, %v38_v28  ;;  %v53_v37 = vadd.f32 %v43_v11, %v39_v29 }
   0x9   :  { %v54_v30 = vmax.f32 %v46_v22, 0.0  ;;  %v55_v31 = vmax.f32 %v47_v23, 0.0  ;;  %v56_v34 = vmax.f32 %v48_v26, 0.0  ;;  %v57_v35 = vmax.f32 %v49_v27, 0.0 }
   0xa   :  { %v58_v39 = vmax.f32 %v50_v32, 0.0  ;;  %v59_v40 = vmax.f32 %v51_v33, 0.0  ;;  %v60_v42 = vmax.f32 %v52_v36, 0.0  ;;  %v61_v43 = vmax.f32 %v53_v37, 0.0 }
   0xb   :  { %v62_v38 = vpack.c.bf16 %v55_v31, %v54_v30  ;;  %v63_v41 = vpack.c.bf16 %v57_v35, %v56_v34 }
   0xc   :  { %v64_v44 = vpack.c.bf16 %v59_v40, %v58_v39  ;;  %v65_v45 = vpack.c.bf16 %v61_v43, %v60_v42 }
   0xd   :  { %66 = vst [vmem:[%s127_s3] sm:$0xff] %v62_v38 }
   0xe   :  { %67 = vst [vmem:[%s127_s3 + $0x8] sm:$0xff] %v63_v41 }
   0xf   :  { %68 = vst [vmem:[%s127_s3 + $0x10] sm:$0xff] %v64_v44 }
  0x10   :  { %69 = vst [vmem:[%s127_s3 + $0x18] sm:$0xff] %v65_v45 }

// kernel: resnet_forward.56
= control target key start
LH: loop header
LB: loop body
LE: loop exit
PB: predicated region body
PF: predicated region fallthrough
CT: control target
= control target key end

     0   :  { %s1886_s0 = inlined_call_operand.vmem [shape: bf16[32,1152], index: 0, kind: input, shape index: {}]   ;;  %s1887_s1 = inlined_call_operand.vmem [shape: bf16[1152,256], index: 1, kind: input, shape index: {}]   ;;  %s1888_s2 = inlined_call_operand.vmem [shape: bf16[32,256], index: 2, kind: output, shape index: {0}]   ;;  %s1889_s3 = inlined_call_operand.vmem [shape: f32[1,1,256], index: 3, kind: output, shape index: {1}]   ;;  %s1890_s4 = inlined_call_operand.vmem [shape: f32[1,1,256], index: 4, kind: output, shape index: {2}]  }
   0x1   :  { %1894 = sst [smem:[#allocation9_spill]] %s1886_s0 }
   0x2   :  { %1895 = sst [smem:[#allocation10_spill]] %s1887_s1 }
   0x3   :  { %s1556_s15 = smov 0   ;;  %s1558_s16 = smov 0  }
   0x4   :  { %s1560_s17 = smov 0   ;;  %s1562_s18 = smov 0  }
   0x5   :  { %s1564_s19 = smov 0   ;;  %s1566_s20 = smov 0  }
   0x6   :  { %s1568_s21 = smov 0   ;;  %s1570_s22 = smov 0  }
   0x7   :  { %s1572_s23 = smov 0   ;;  %s1574_s24 = smov 0  }
   0x8   :  { %s1576_s25 = smov 0  }
   0x9 LB: > { %1896 = sst [smem:[#allocation6_spill]] %s1524_s24  ;;  %s1155_s26 = sadd.s32 4294967295, %s1528_s25   ;;  %s1528_s25 = sphi %s1576_s25, %s15_s25   ;;  %s1524_s24 = sphi %s1574_s24, %s1906_s24   ;;  %s1520_s23 = sphi %s1572_s23, %s1914_s23   ;;  %s1516_s22 = sphi %s1570_s22, %s1904_s22   ;;  %s1512_s21 = sphi %s1568_s21, %s1913_s21   ;;  %s1508_s20 = sphi %s1566_s20, %s1912_s20   ;;  %s1504_s19 = sphi %s1564_s19, %s1911_s19   ;;  %s1500_s18 = sphi %s1562_s18, %s1910_s18   ;;  %s1496_s17 = sphi %s1560_s17, %s1909_s17   ;;  %s1492_s16 = sphi %s1558_s16, %s1908_s16   ;;  %s1488_s15 = sphi %s1556_s15, %s1907_s15  }
   0xa   : > { %s27_s27 = sadd.s32 1, %s1520_s23  ;;  %s30_s28 = sadd.s32 1, %s1524_s24 }
   0xb   : > { %p28_p0 = scmp.ge.s32.totalorder %s27_s27, 3  ;;  %s43_s29 = sadd.s32 1, %s1508_s20 }
   0xc   : > { %p50_p1 = scmp.ne.s32.totalorder %s1508_s20, %s1504_s19  ;;  %p51_p2 = scmp.eq.s32.totalorder %s1528_s25, 0 }
   0xd   : > { %s1916_s27 = smov (%p28_p0, %s27_s27), 0  ;;  %s1918_s28 = smov (!%p28_p0, %s30_s28), %s1524_s24 }
   0xe   : > { %1897 = sst [smem:[#allocation7_spill]] %s1916_s27  ;;  %s39_s30 = ssub.s32 %s1520_s23, %s1916_s27 }
   0xf   : > { %p32_p3 = scmp.ge.s32.totalorder %s1918_s28, 2  ;;  %p41_p4 = scmp.eq.s32.totalorder %s39_s30, 0 }
  0x10   : > { %p1623_p5 = por %p51_p2, %p50_p1  ;;  %s71_s6 = sadd.s32 1, %s1500_s18 }
  0x11   : > { %s1920_s28 = smov (%p32_p3, %s1918_s28), 0  ;;  %p78_p6 = scmp.ne.s32.totalorder %s1500_s18, %s1496_s17 }
  0x12   : > { %1899 = sst [smem:[#allocation8_spill]] %s1920_s28  ;;  %s67_s8 = ssub.s32 %s1524_s24, %s1920_s28 }
  0x13   : > { %s1631_s7 = scalar_select %p41_p4, %s1508_s20, %s43_s29  }
  0x14   : > { %s68_s9 = sor.u32 %s67_s8, %s39_s30  ;;  %p97_p7 = scmp.eq.s32.totalorder %s67_s8, 0 }
  0x15   : > { %p69_p8 = scmp.eq.s32.totalorder %s68_s9, 0  ;;  %p1637_p9 = por %p78_p6, %p51_p2 }
  0x16   : > { %s99_s11 = sadd.s32 1, %s1492_s16  ;;  %p109_p10 = scmp.ne.s32.totalorder %s1492_s16, %s1488_s15 }
  0x17   : > { %s1645_s12 = scalar_select %p69_p8, %s1500_s18, %s71_s6  }
  0x18   : > { %s1648_s13 = scalar_select %p97_p7, %s1492_s16, %s99_s11  }
  0x19   : > { %p110_p11 = scmp.eq.s32.totalorder %s1155_s26, 5  ;;  %p1158_p13 = scmp.ge.s32.totalorder %s1528_s25, 6 }
  0x1b   : > { %p1650_p12 = por %p110_p11, %p109_p10  ;;  %188 = sbr.rel (%p1158_p13) target bundleno = 106 (0x6a), region = 16 }
  0x20   : > { %191 = sbr.rel (!%p1623_p5) target bundleno = 49 (0x31), region = 20  ;;  %s193_s29 = sand.u32 (%p1623_p5), 1, %s1508_s20  }
  0x21   : > { %s1298_s30 = smul.u32 (%p1623_p5), 12, %s1520_s23  ;;  %s1902_s0 = sld [smem:[#allocation9_spill]] (%p1623_p5) }
  0x22   : > { %s1349_s8 = smul.u32 (%p1623_p5), 48, %s193_s29 }
  0x24   : > { %s195_s26 = scalar_lea.vmem (%p1623_p5), [#allocation3], %s1349_s8 }
  0x27   : > { %s201_s11 = scalar_lea.vmem %s1902_s0, %s1298_s30 }
  0x28   : > { %v216_v0 = vld [vmem:[%s201_s11] sm:$0xff]  ;;  %v220_v2 = vld [vmem:[%s201_s11 + $0x48] sm:$0xff]  ;;  %v1164_v6 = vld [vmem:[%s201_s11 + $0x50] sm:$0xf] }
  0x29   : > { %v218_v1 = vld [vmem:[%s201_s11 + $0x24] sm:$0xff]  ;;  %217 = vst [vmem:[%s195_s26] sm:$0xff] %v216_v0  ;;  %v222_v3 = vld [vmem:[%s201_s11 + $0x6c] sm:$0xff]  ;;  %v1166_v7 = vld [vmem:[%s201_s11 + $0x74] sm:$0xf] }
  0x2a   : > { %219 = vst [vmem:[%s195_s26 + $0xc] sm:$0xff] %v218_v1  ;;  %v1160_v4 = vld [vmem:[%s201_s11 + $0x8] sm:$0xf]  ;;  %v1162_v5 = vld [vmem:[%s201_s11 + $0x2c] sm:$0xf] }
  0x2b   : > { %221 = vst [vmem:[%s195_s26 + $0x18] sm:$0xff] %v220_v2 }
  0x2c   : > { %223 = vst [vmem:[%s195_s26 + $0x24] sm:$0xff] %v222_v3 }
  0x2d   : > { %1161 = vst [vmem:[%s195_s26 + $0x8] sm:$0xf] %v1160_v4 }
  0x2e   : > { %1163 = vst [vmem:[%s195_s26 + $0x14] sm:$0xf] %v1162_v5 }
  0x2f   : > { %1165 = vst [vmem:[%s195_s26 + $0x20] sm:$0xf] %v1164_v6 }
  0x30   : > { %1167 = vst [vmem:[%s195_s26 + $0x2c] sm:$0xf] %v1166_v7 }
  0x31 PF: > { %245 = sbr.rel (!%p1637_p9) target bundleno = 106 (0x6a), region = 46  ;;  %s247_s5 = sand.u32 (%p1637_p9), 1, %s1500_s18  }
  0x32   : > { %s1299_s29 = smul.u32 (%p1637_p9), 96, %s1520_s23  ;;  %s1903_s1 = sld [smem:[#allocation10_spill]] (%p1637_p9) }
  0x33   : > { %s1350_s30 = smul.u32 (%p1637_p9), 192, %s247_s5 }
  0x34   : > { %s252_s8 = sadd.s32 (%p1637_p9), %s1524_s24, %s1299_s29 }
  0x35   : > { %s1169_s6 = sshll.u32 (%p1637_p9), %s252_s8, 2  ;;  %s1675_s10 = scalar_lea.vmem (%p1637_p9), [#allocation4], %s1350_s30 }
  0x38   : > { %s1670_s28 = scalar_lea.vmem %s1903_s1, %s1169_s6 }
  0x39   : > { %v271_v8 = vld [vmem:[%s1670_s28] sm:$0xf]  ;;  %v273_v9 = vld [vmem:[%s1670_s28 + $0x8] sm:$0xf]  ;;  %v275_v10 = vld [vmem:[%s1670_s28 + $0x10] sm:$0xf] }
  0x3a   : > { %272 = vst [vmem:[%s1675_s10] sm:$0xf] %v271_v8  ;;  %v277_v11 = vld [vmem:[%s1670_s28 + $0x18] sm:$0xf]  ;;  %v279_v12 = vld [vmem:[%s1670_s28 + $0x20] sm:$0xf] }
  0x3b   : > { %274 = vst [vmem:[%s1675_s10 + $0x4] sm:$0xf] %v273_v9  ;;  %v281_v13 = vld [vmem:[%s1670_s28 + $0x28] sm:$0xf]  ;;  %v283_v14 = vld [vmem:[%s1670_s28 + $0x30] sm:$0xf] }
  0x3c   : > { %276 = vst [vmem:[%s1675_s10 + $0x8] sm:$0xf] %v275_v10  ;;  %v285_v15 = vld [vmem:[%s1670_s28 + $0x38] sm:$0xf]  ;;  %v287_v16 = vld [vmem:[%s1670_s28 + $0x40] sm:$0xf] }
  0x3d   : > { %278 = vst [vmem:[%s1675_s10 + $0xc] sm:$0xf] %v277_v11  ;;  %v289_v17 = vld [vmem:[%s1670_s28 + $0x48] sm:$0xf]  ;;  %v291_v18 = vld [vmem:[%s1670_s28 + $0x50] sm:$0xf] }
  0x3e   : > { %280 = vst [vmem:[%s1675_s10 + $0x10] sm:$0xf] %v279_v12  ;;  %v293_v19 = vld [vmem:[%s1670_s28 + $0x58] sm:$0xf]  ;;  %v295_v20 = vld [vmem:[%s1670_s28 + $0x60] sm:$0xf] }
  0x3f   : > { %282 = vst [vmem:[%s1675_s10 + $0x14] sm:$0xf] %v281_v13  ;;  %v297_v21 = vld [vmem:[%s1670_s28 + $0x68] sm:$0xf]  ;;  %v299_v22 = vld [vmem:[%s1670_s28 + $0x70] sm:$0xf] }
  0x40   : > { %284 = vst [vmem:[%s1675_s10 + $0x18] sm:$0xf] %v283_v14  ;;  %v301_v23 = vld [vmem:[%s1670_s28 + $0x78] sm:$0xf]  ;;  %v303_v24 = vld [vmem:[%s1670_s28 + $0x80] sm:$0xf] }
  0x41   : > { %286 = vst [vmem:[%s1675_s10 + $0x1c] sm:$0xf] %v285_v15  ;;  %v305_v25 = vld [vmem:[%s1670_s28 + $0x88] sm:$0xf]  ;;  %v307_v26 = vld [vmem:[%s1670_s28 + $0x90] sm:$0xf] }
  0x42   : > { %288 = vst [vmem:[%s1675_s10 + $0x20] sm:$0xf] %v287_v16  ;;  %v309_v27 = vld [vmem:[%s1670_s28 + $0x98] sm:$0xf]  ;;  %v311_v28 = vld [vmem:[%s1670_s28 + $0xa0] sm:$0xf] }
  0x43   : > { %290 = vst [vmem:[%s1675_s10 + $0x24] sm:$0xf] %v289_v17  ;;  %v313_v29 = vld [vmem:[%s1670_s28 + $0xa8] sm:$0xf]  ;;  %v315_v30 = vld [vmem:[%s1670_s28 + $0xb0] sm:$0xf] }
  0x44   : > { %292 = vst [vmem:[%s1675_s10 + $0x28] sm:$0xf] %v291_v18  ;;  %v317_v31 = vld [vmem:[%s1670_s28 + $0xb8] sm:$0xf]  ;;  %v319_v32 = vld [vmem:[%s1670_s28 + $0xc0] sm:$0xf] }
  0x45   : > { %294 = vst [vmem:[%s1675_s10 + $0x2c] sm:$0xf] %v293_v19  ;;  %v321_v33 = vld [vmem:[%s1670_s28 + $0xc8] sm:$0xf]  ;;  %v323_v34 = vld [vmem:[%s1670_s28 + $0xd0] sm:$0xf] }
  0x46   : > { %296 = vst [vmem:[%s1675_s10 + $0x30] sm:$0xf] %v295_v20  ;;  %v325_v35 = vld [vmem:[%s1670_s28 + $0xd8] sm:$0xf]  ;;  %v327_v36 = vld [vmem:[%s1670_s28 + $0xe0] sm:$0xf] }
  0x47   : > { %298 = vst [vmem:[%s1675_s10 + $0x34] sm:$0xf] %v297_v21  ;;  %v329_v37 = vld [vmem:[%s1670_s28 + $0xe8] sm:$0xf]  ;;  %v331_v38 = vld [vmem:[%s1670_s28 + $0xf0] sm:$0xf] }
  0x48   : > { %300 = vst [vmem:[%s1675_s10 + $0x38] sm:$0xf] %v299_v22  ;;  %v333_v39 = vld [vmem:[%s1670_s28 + $0xf8] sm:$0xf]  ;;  %v335_v40 = vld [vmem:[%s1670_s28 + $0x100] sm:$0xf] }
  0x49   : > { %302 = vst [vmem:[%s1675_s10 + $0x3c] sm:$0xf] %v301_v23  ;;  %v337_v41 = vld [vmem:[%s1670_s28 + $0x108] sm:$0xf]  ;;  %v339_v42 = vld [vmem:[%s1670_s28 + $0x110] sm:$0xf] }
  0x4a   : > { %304 = vst [vmem:[%s1675_s10 + $0x40] sm:$0xf] %v303_v24  ;;  %v341_v43 = vld [vmem:[%s1670_s28 + $0x118] sm:$0xf]  ;;  %v343_v44 = vld [vmem:[%s1670_s28 + $0x120] sm:$0xf] }
  0x4b   : > { %306 = vst [vmem:[%s1675_s10 + $0x44] sm:$0xf] %v305_v25  ;;  %v345_v45 = vld [vmem:[%s1670_s28 + $0x128] sm:$0xf]  ;;  %v347_v46 = vld [vmem:[%s1670_s28 + $0x130] sm:$0xf] }
  0x4c   : > { %308 = vst [vmem:[%s1675_s10 + $0x48] sm:$0xf] %v307_v26  ;;  %v349_v47 = vld [vmem:[%s1670_s28 + $0x138] sm:$0xf]  ;;  %v351_v48 = vld [vmem:[%s1670_s28 + $0x140] sm:$0xf] }
  0x4d   : > { %310 = vst [vmem:[%s1675_s10 + $0x4c] sm:$0xf] %v309_v27  ;;  %v353_v49 = vld [vmem:[%s1670_s28 + $0x148] sm:$0xf]  ;;  %v355_v50 = vld [vmem:[%s1670_s28 + $0x150] sm:$0xf] }
  0x4e   : > { %312 = vst [vmem:[%s1675_s10 + $0x50] sm:$0xf] %v311_v28  ;;  %v357_v51 = vld [vmem:[%s1670_s28 + $0x158] sm:$0xf]  ;;  %v359_v52 = vld [vmem:[%s1670_s28 + $0x160] sm:$0xf] }
  0x4f   : > { %314 = vst [vmem:[%s1675_s10 + $0x54] sm:$0xf] %v313_v29  ;;  %v361_v53 = vld [vmem:[%s1670_s28 + $0x168] sm:$0xf]  ;;  %v363_v54 = vld [vmem:[%s1670_s28 + $0x170] sm:$0xf] }
  0x50   : > { %316 = vst [vmem:[%s1675_s10 + $0x58] sm:$0xf] %v315_v30  ;;  %v365_v55 = vld [vmem:[%s1670_s28 + $0x178] sm:$0xf] }
  0x51   : > { %318 = vst [vmem:[%s1675_s10 + $0x5c] sm:$0xf] %v317_v31 }
  0x52   : > { %320 = vst [vmem:[%s1675_s10 + $0x60] sm:$0xf] %v319_v32 }
  0x53   : > { %322 = vst [vmem:[%s1675_s10 + $0x64] sm:$0xf] %v321_v33 }
  0x54   : > { %324 = vst [vmem:[%s1675_s10 + $0x68] sm:$0xf] %v323_v34 }
  0x55   : > { %326 = vst [vmem:[%s1675_s10 + $0x6c] sm:$0xf] %v325_v35 }
  0x56   : > { %328 = vst [vmem:[%s1675_s10 + $0x70] sm:$0xf] %v327_v36 }
  0x57   : > { %330 = vst [vmem:[%s1675_s10 + $0x74] sm:$0xf] %v329_v37 }
  0x58   : > { %332 = vst [vmem:[%s1675_s10 + $0x78] sm:$0xf] %v331_v38 }
  0x59   : > { %334 = vst [vmem:[%s1675_s10 + $0x7c] sm:$0xf] %v333_v39 }
  0x5a   : > { %336 = vst [vmem:[%s1675_s10 + $0x80] sm:$0xf] %v335_v40 }
  0x5b   : > { %338 = vst [vmem:[%s1675_s10 + $0x84] sm:$0xf] %v337_v41 }
  0x5c   : > { %340 = vst [vmem:[%s1675_s10 + $0x88] sm:$0xf] %v339_v42 }
  0x5d   : > { %342 = vst [vmem:[%s1675_s10 + $0x8c] sm:$0xf] %v341_v43 }
  0x5e   : > { %344 = vst [vmem:[%s1675_s10 + $0x90] sm:$0xf] %v343_v44 }
  0x5f   : > { %346 = vst [vmem:[%s1675_s10 + $0x94] sm:$0xf] %v345_v45 }
  0x60   : > { %348 = vst [vmem:[%s1675_s10 + $0x98] sm:$0xf] %v347_v46 }
  0x61   : > { %350 = vst [vmem:[%s1675_s10 + $0x9c] sm:$0xf] %v349_v47 }
  0x62   : > { %352 = vst [vmem:[%s1675_s10 + $0xa0] sm:$0xf] %v351_v48 }
  0x63   : > { %354 = vst [vmem:[%s1675_s10 + $0xa4] sm:$0xf] %v353_v49 }
  0x64   : > { %356 = vst [vmem:[%s1675_s10 + $0xa8] sm:$0xf] %v355_v50 }
  0x65   : > { %358 = vst [vmem:[%s1675_s10 + $0xac] sm:$0xf] %v357_v51 }
  0x66   : > { %360 = vst [vmem:[%s1675_s10 + $0xb0] sm:$0xf] %v359_v52 }
  0x67   : > { %362 = vst [vmem:[%s1675_s10 + $0xb4] sm:$0xf] %v361_v53 }
  0x68   : > { %364 = vst [vmem:[%s1675_s10 + $0xb8] sm:$0xf] %v363_v54 }
  0x69   : > { %366 = vst [vmem:[%s1675_s10 + $0xbc] sm:$0xf] %v365_v55 }
  0x6a PF: > { %p1170_p0 = scmp.ge.s32.totalorder %s1528_s25, 1  ;;  %p485_p1 = scmp.lt.s32.totalorder %s1528_s25, 7 }
  0x6c   : > { %p486_p2 = pnand %p1170_p0, %p485_p1 }
  0x6d   : > { %s492_s0 = sand.u32 (!%p486_p2), 1, %s1504_s19   ;;  %s499_s11 = sand.u32 (!%p486_p2), 1, %s1496_s17  }
  0x6e   : > { %489 = sbr.rel (%p486_p2) target bundleno = 351 (0x15f), region = 87  ;;  %s520_s28 = sand.u32 (!%p486_p2), 1, %s1488_s15  }
  0x6f   : > { %s1351_s26 = smul.u32 (!%p486_p2), 48, %s492_s0  ;;  %s1171_s29 = sshll.u32 (!%p486_p2), %s520_s28, 4 }
  0x70   : > { %s1352_s5 = smul.u32 (!%p486_p2), 192, %s499_s11  ;;  %p547_p3 = scmp.lt.s32.totalorder (!%p486_p2), %s1516_s22, 1 }
  0x71   : > { %s1787_s24 = scalar_lea.vmem (!%p486_p2), [#allocation3], %s1351_s26  ;;  %s1791_s15 = scalar_lea.vmem (!%p486_p2), [#allocation5], %s1171_s29 }
  0x72   : > { %s1789_s17 = scalar_lea.vmem (!%p486_p2), [#allocation4], %s1352_s5  ;;  %p1172_p4 = scmp.ne.s32.totalorder (!%p486_p2), %s1512_s21, 0 }
  0x73   : > { %s1777_s30 = scalar_select %p547_p3, %s1516_s22, 1 }
  0x74   : > { %562 = sbr.rel (%p1172_p4) target bundleno = 126 (0x7e), region = 99 }
  0x75   : > { %s551_s9 = scalar_lea.vmem %s1889_s3, %s1777_s30  ;;  %s558_s27 = scalar_lea.vmem %s1890_s4, %s1777_s30 }
  0x79   : > { %v1530_v56 = vmov 0.0  }
  0x7a   : > { %563 = vst [vmem:[#allocation2 + $0x10] sm:$0xff] %v1530_v56 }
  0x7b   : > { %564 = vst [vmem:[#allocation2] sm:$0xff] %v1530_v56 }
  0x7c   : > { %565 = vst [vmem:[#allocation2 + $0x18] sm:$0xff] %v1530_v56 }
  0x7d   : > { %566 = vst [vmem:[#allocation2 + $0x8] sm:$0xff] %v1530_v56 }
  0x7e PF: > { %v1313_v57 = vld [vmem:[%s1789_s17 + $0x38] sm:$0xff]  ;;  %v1312_v60 = vld [vmem:[%s1789_s17 + $0x30] sm:$0xff]  ;;  %v1311_v63 = vld [vmem:[%s1789_s17 + $0x28] sm:$0xff]  ;;  %p1293_p5 = scmp.ne.s32.totalorder %s1512_s21, 2 }
  0x7f   : > { %v1321_v58 = vld [vmem:[%s1789_s17 + $0x78] sm:$0xff]  ;;  %803 = vmatpush.bf16.msra.mxu0 %v1313_v57  ;;  %v1320_v61 = vld [vmem:[%s1789_s17 + $0x70] sm:$0xff]  ;;  %1341 = vmatpush.bf16.msra.mxu3 %v1313_v57  ;;  %v1319_v0 = vld [vmem:[%s1789_s17 + $0x68] sm:$0xff] }
  0x80   : > { %v1329_v59 = vld [vmem:[%s1789_s17 + $0xb8] sm:$0xff]  ;;  %822 = vmatpush.bf16.msra.mxu1 %v1321_v58  ;;  %v1328_v62 = vld [vmem:[%s1789_s17 + $0xb0] sm:$0xff]  ;;  %v1327_v1 = vld [vmem:[%s1789_s17 + $0xa8] sm:$0xff] }
  0x81   : > { %841 = vmatpush.bf16.msra.mxu2 %v1329_v59  ;;  %v1310_v2 = vld [vmem:[%s1789_s17 + $0x20] sm:$0xff]  ;;  %v1309_v5 = vld [vmem:[%s1789_s17 + $0x18] sm:$0xff]  ;;  %v1308_v8 = vld [vmem:[%s1789_s17 + $0x10] sm:$0xff] }
  0x82   : > { %v1318_v3 = vld [vmem:[%s1789_s17 + $0x60] sm:$0xff]  ;;  %v1317_v6 = vld [vmem:[%s1789_s17 + $0x58] sm:$0xff]  ;;  %v1316_v9 = vld [vmem:[%s1789_s17 + $0x50] sm:$0xff] }
  0x83   : > { %804 = vmatpush.bf16.msra.mxu0 %v1312_v60  ;;  %1342 = vmatpush.bf16.msra.mxu3 %v1312_v60  ;;  %v1326_v4 = vld [vmem:[%s1789_s17 + $0xa0] sm:$0xff]  ;;  %v1325_v7 = vld [vmem:[%s1789_s17 + $0x98] sm:$0xff]  ;;  %v1324_v10 = vld [vmem:[%s1789_s17 + $0x90] sm:$0xff] }
  0x84   : > { %823 = vmatpush.bf16.msra.mxu1 %v1320_v61  ;;  %v1307_v11 = vld [vmem:[%s1789_s17 + $0x8] sm:$0xff]  ;;  %v1306_v14 = vld [vmem:[%s1789_s17] sm:$0xff]  ;;  %v567_v38 = vld [vmem:[#allocation2 + $0x10] sm:$0xff] }
  0x85   : > { %842 = vmatpush.bf16.msra.mxu2 %v1328_v62  ;;  %v1315_v12 = vld [vmem:[%s1789_s17 + $0x48] sm:$0xff]  ;;  %v1314_v15 = vld [vmem:[%s1789_s17 + $0x40] sm:$0xff]  ;;  %v569_v52 = vld [vmem:[#allocation2 + $0x18] sm:$0xff] }
  0x86   : > { %v1323_v13 = vld [vmem:[%s1789_s17 + $0x88] sm:$0xff]  ;;  %v1322_v16 = vld [vmem:[%s1789_s17 + $0x80] sm:$0xff] }
  0x87   : > { %805 = vmatpush.bf16.msra.mxu0 %v1311_v63  ;;  %1343 = vmatpush.bf16.msra.mxu3 %v1311_v63  ;;  %v1175_v17 = vld [vmem:[%s1787_s24] sm:$0xf]  ;;  %v1301_v18 = vld [vmem:[%s1787_s24 + $0x8] sm:$0xf0]  ;;  %v1300_v19 = vld [vmem:[%s1787_s24 + $0x4] sm:$0xf] }
  0x88   : > { %824 = vmatpush.bf16.msra.mxu1 %v1319_v0  ;;  %v1177_v20 = vld [vmem:[%s1787_s24 + $0xc] sm:$0xf0]  ;;  %v1183_v21 = vld [vmem:[%s1787_s24 + $0x8] sm:$0xf]  ;;  %v1302_v22 = vld [vmem:[%s1787_s24 + $0x10] sm:$0xf0]  ;;  %v1176_v25 = vor.u32 %v1301_v18, %v1175_v17 }
  0x89   : > { %843 = vmatpush.bf16.msra.mxu2 %v1327_v1  ;;  %v1187_v23 = vld [vmem:[%s1787_s24 + $0x18] sm:$0xf]  ;;  %v1304_v24 = vld [vmem:[%s1787_s24 + $0x20] sm:$0xf0]  ;;  %v1180_v26 = vor.u32 %v1300_v19, %v1177_v20  ;;  %v1184_v27 = vor.u32 %v1302_v22, %v1183_v21  ;;  %v1303_v29 = vld [vmem:[%s1787_s24 + $0x1c] sm:$0xf] }
  0x8a   : > { %v1188_v28 = vor.u32 %v1304_v24, %v1187_v23  ;;  %v1189_v30 = vld [vmem:[%s1787_s24 + $0x24] sm:$0xf0]  ;;  %v1195_v31 = vld [vmem:[%s1787_s24 + $0x20] sm:$0xf]  ;;  %v1305_v32 = vld [vmem:[%s1787_s24 + $0x28] sm:$0xf0] }
  0x8b   : > { %806 = vmatpush.bf16.msra.mxu0 %v1310_v2  ;;  %1344 = vmatpush.bf16.msra.mxu3 %v1310_v2  ;;  %v1192_v33 = vor.u32 %v1303_v29, %v1189_v30  ;;  %v1196_v34 = vor.u32 %v1305_v32, %v1195_v31  ;;  %v568_v45 = vld [vmem:[#allocation2] sm:$0xff]  ;;  %v570_v59 = vld [vmem:[#allocation2 + $0x8] sm:$0xff] }
  0x8c   : > { %825 = vmatpush.bf16.msra.mxu1 %v1318_v3 }
  0x8d   : > { %844 = vmatpush.bf16.msra.mxu2 %v1326_v4 }
  0x8f   : > { %807 = vmatpush.bf16.msra.mxu0 %v1309_v5  ;;  %1345 = vmatpush.bf16.msra.mxu3 %v1309_v5 }
  0x90   : > { %826 = vmatpush.bf16.msra.mxu1 %v1317_v6 }
  0x91   : > { %845 = vmatpush.bf16.msra.mxu2 %v1325_v7 }
  0x93   : > { %808 = vmatpush.bf16.msra.mxu0 %v1308_v8  ;;  %1346 = vmatpush.bf16.msra.mxu3 %v1308_v8 }
  0x94   : > { %827 = vmatpush.bf16.msra.mxu1 %v1316_v9 }
  0x95   : > { %846 = vmatpush.bf16.msra.mxu2 %v1324_v10 }
  0x97   : > { %809 = vmatpush.bf16.msra.mxu0 %v1307_v11  ;;  %1347 = vmatpush.bf16.msra.mxu3 %v1307_v11 }
  0x98   : > { %828 = vmatpush.bf16.msra.mxu1 %v1315_v12 }
  0x99   : > { %847 = vmatpush.bf16.msra.mxu2 %v1323_v13 }
  0x9b   : > { %810 = vmatpush.bf16.msra.mxu0 %v1306_v14  ;;  %1348 = vmatpush.bf16.msra.mxu3 %v1306_v14 }
  0x9c   : > { %829 = vmatpush.bf16.msra.mxu1 %v1314_v15 }
  0x9d   : > { %848 = vmatpush.bf16.msra.mxu2 %v1322_v16 }
  0x9e   : > { %811 = vmatmul.bf16.vlgmr.msra.gmra.mxu0 %v1176_v25  ;;  %816 = vmatmul.bf16.vlgmr.msra.gmra.mxu3 %v1188_v28 }
  0x9f   : > { %830 = vmatmul.bf16.vlgmr.msra.gmra.mxu1 %v1180_v26 }
  0xa0   : > { %849 = vmatmul.bf16.vlgmr.msra.gmra.mxu2 %v1184_v27 }
  0xaf   : > { %835 = vmatmul.bf16.gmra.mxu1 %v1192_v33 }
  0xb0   : > { %854 = vmatmul.bf16.gmra.mxu2 %v1196_v34 }
 0x11b   : > { %v812_v36 = vpop.f32.mrf.mxu0 }
 0x11c   : > { %v831_v35 = vpop.f32.mrf.mxu1 }
 0x11d   : > { %v832_v37 = vadd.f32 %v831_v35, %v812_v36 }
 0x121   : > { %v817_v50 = vpop.f32.mrf.mxu3 }
 0x123   : > { %v850_v39 = vpop.f32.mrf.mxu2  ;;  %v814_v43 = vpop.f32.mrf.mxu0 }
 0x124   : > { %v851_v40 = vadd.f32 %v850_v39, %v832_v37  ;;  %v833_v41 = vpop.f32.mrf.mxu1 }
 0x125   : > { %v834_v44 = vadd.f32 %v833_v41, %v814_v43 }
 0x126   : > { %v860_v42 = vadd.f32 %v851_v40, %v567_v38 }
 0x128   : > { %864 = vst [vmem:[#allocation2 + $0x10] sm:$0xff] %v860_v42 }
 0x129   : > { %v819_v57 = vpop.f32.mrf.mxu3 }
 0x12b   : > { %v852_v46 = vpop.f32.mrf.mxu2 }
 0x12c   : > { %v853_v47 = vadd.f32 %v852_v46, %v834_v44  ;;  %v836_v48 = vpop.f32.mrf.mxu1 }
 0x12d   : > { %v837_v51 = vadd.f32 %v836_v48, %v817_v50 }
 0x12e   : > { %v861_v49 = vadd.f32 %v853_v47, %v568_v45 }
 0x130   : > { %865 = vst [vmem:[#allocation2] sm:$0xff] %v861_v49 }
 0x133   : > { %v855_v53 = vpop.f32.mrf.mxu2 }
 0x134   : > { %v856_v54 = vadd.f32 %v855_v53, %v837_v51  ;;  %v838_v56 = vpop.f32.mrf.mxu1 }
 0x135   : > { %v839_v58 = vadd.f32 %v838_v56, %v819_v57 }
 0x136   : > { %v862_v55 = vadd.f32 %v856_v54, %v569_v52 }
 0x138   : > { %866 = vst [vmem:[#allocation2 + $0x18] sm:$0xff] %v862_v55 }
 0x13b   : > { %v857_v60 = vpop.f32.mrf.mxu2 }
 0x13c   : > { %v858_v61 = vadd.f32 %v857_v60, %v839_v58  ;;  %871 = sbr.rel (%p1293_p5) target bundleno = 345 (0x159), region = 103 }
 0x13e   : > { %v863_v62 = vadd.f32 %v858_v61, %v570_v59 }
 0x140   : > { %867 = vst [vmem:[#allocation2 + $0x8] sm:$0xff] %v863_v62 }
 0x141   : > { %v872_v63 = vld [vmem:[#allocation2 + $0x10] sm:$0xff]  ;;  %v873_v0 = vld [vmem:[#allocation2] sm:$0xff]  ;;  %v874_v1 = vld [vmem:[#allocation2 + $0x18] sm:$0xff] }
 0x142   : > { %v1333_v2 = vpack.c.bf16 %v873_v0, %v872_v63  ;;  %v884_v3 = vadd.f32 %v873_v0, %v872_v63  ;;  %v894_v4 = vmul.f32 %v872_v63, %v872_v63  ;;  %v895_v5 = vmul.f32 %v873_v0, %v873_v0 }
 0x143   : > { %v896_v8 = vmul.f32 %v874_v1, %v874_v1 }
 0x144   : > { %1334 = vst [vmem:[%s1791_s15] sm:$0xff] %v1333_v2   ;;  %v898_v9 = vadd.f32 %v895_v5, %v894_v4  ;;  %v885_v10 = vadd.f32 %v884_v3, %v874_v1 }
 0x146   : > { %v899_v13 = vadd.f32 %v898_v9, %v896_v8 }
 0x147   : > { %v875_v6 = vld [vmem:[#allocation2 + $0x8] sm:$0xff] }
 0x148   : > { %v1338_v7 = vpack.c.bf16 %v875_v6, %v874_v1  ;;  %v897_v11 = vmul.f32 %v875_v6, %v875_v6  ;;  %v886_v12 = vadd.f32 %v885_v10, %v875_v6 }
 0x14a   : > { %1340 = vst [vmem:[%s1791_s15 + $0x8] sm:$0xff] %v1338_v7   ;;  %v887_v14 = vrot.slane %v886_v12, 4  ;;  %v900_v15 = vadd.f32 %v899_v13, %v897_v11 }
 0x14c   : > { %v888_v16 = vadd.f32 %v887_v14, %v886_v12  ;;  %v901_v17 = vrot.slane %v900_v15, 4 }
 0x14e   : > { %v889_v18 = vrot.slane %v888_v16, 2  ;;  %v902_v19 = vadd.f32 %v901_v17, %v900_v15 }
 0x150   : > { %v890_v20 = vadd.f32 %v889_v18, %v888_v16  ;;  %v903_v21 = vrot.slane %v902_v19, 2 }
 0x152   : > { %v891_v22 = vrot.slane %v890_v20, 1  ;;  %v904_v23 = vadd.f32 %v903_v21, %v902_v19 }
 0x154   : > { %v892_v24 = vadd.f32 %v891_v22, %v890_v20  ;;  %v905_v25 = vrot.slane %v904_v23, 1 }
 0x156   : > { %893 = vst [vmem:[%s551_s9] sm:$0x1] %v892_v24  ;;  %v906_v26 = vadd.f32 %v905_v25, %v904_v23 }
 0x158   : > { %907 = vst [vmem:[%s558_s27] sm:$0x1] %v906_v26 }
 0x159 PF: > { %928 = sbr.rel (!%p1650_p12) target bundleno = 351 (0x15f), region = 107  ;;  %s1295_s0 = sshll.u32 (%p1650_p12), %s1516_s22, 2  ;;  %v950_v27 = vld [vmem:[%s1791_s15] sm:$0xf] (%p1650_p12)  ;;  %v952_v28 = vld [vmem:[%s1791_s15 + $0x4] sm:$0xf] (%p1650_p12) }
 0x15a   : > { %s933_s28 = scalar_lea.vmem (%p1650_p12), %s1888_s2, %s1295_s0  ;;  %v954_v29 = vld [vmem:[%s1791_s15 + $0x8] sm:$0xf] (%p1650_p12)  ;;  %v956_v30 = vld [vmem:[%s1791_s15 + $0xc] sm:$0xf] (%p1650_p12) }
 0x15b   : > { %951 = vst [vmem:[%s933_s28] sm:$0xf] (%p1650_p12), %v950_v27 }
 0x15c   : > { %953 = vst [vmem:[%s933_s28 + $0x8] sm:$0xf] (%p1650_p12), %v952_v28 }
 0x15d   : > { %955 = vst [vmem:[%s933_s28 + $0x10] sm:$0xf] (%p1650_p12), %v954_v29 }
 0x15e   : > { %957 = vst [vmem:[%s933_s28 + $0x18] sm:$0xf] %v956_v30 }
 0x15f PF: > { %s15_s25 = sadd.s32 1, %s1528_s25   ;;  %s1904_s22 = sld [smem:[#allocation6_spill]] }
 0x160   : > { %p12_p6 = scmp.ge.s32.totalorder %s15_s25, 8   ;;  %s1905_s27 = sld [smem:[#allocation7_spill]] }
 0x161   : > { %s1906_s24 = sld [smem:[#allocation8_spill]]  ;;  %s1907_s15 = smov %s1492_s16 }
 0x162   : > { %s1908_s16 = smov %s1648_s13  ;;  %s1909_s17 = smov %s1500_s18 }
 0x163   : > { %s1910_s18 = smov %s1645_s12  ;;  %s1911_s19 = smov %s1508_s20 }
 0x164   : > { %s1912_s20 = smov %s1631_s7  ;;  %s1913_s21 = smov %s1520_s23 }
 0x165   :  { %14 = sbr.rel (!%p12_p6) target bundleno = 9 (0x9), region = 217 }
 0x166   : > { %s1914_s23 = smov %s1905_s27 }

// kernel: resnet_forward.64
= control target key start
LH: loop header
LB: loop body
LE: loop exit
PB: predicated region body
PF: predicated region fallthrough
CT: control target
= control target key end

     0   :  { %s164_s0 = inlined_call_operand.vmem [shape: bf16[32,256], index: 0, kind: input, shape index: {}]   ;;  %s165_s1 = inlined_call_operand.vmem [shape: f32[1,256], index: 1, kind: input, shape index: {}]   ;;  %s166_s2 = inlined_call_operand.vmem [shape: f32[1,256], index: 2, kind: input, shape index: {}]   ;;  %s167_s3 = inlined_call_operand.vmem [shape: bf16[32,256], index: 3, kind: input, shape index: {}]   ;;  %s168_s4 = inlined_call_operand.vmem [shape: bf16[32,256], index: 4, kind: output, shape index: {}]  }
   0x1   :  { %v17_v0 = vld [vmem:[%s164_s0] sm:$0xff]  ;;  %v18_v8 = vld [vmem:[%s164_s0 + $0x8] sm:$0xff]  ;;  %v19_v14 = vld [vmem:[%s164_s0 + $0x10] sm:$0xff] }
   0x2   :  { %v29_v1 = vld [vmem:[%s165_s1] sm:$0x3]  ;;  %v21_v3 = vunpack.c.l.bf16 %v17_v0  ;;  %v22_v4 = vunpack.c.h.bf16 %v17_v0  ;;  %v58_v9 = vld [vmem:[%s167_s3 + $0x8] sm:$0xff]  ;;  %v23_v17 = vunpack.c.l.bf16 %v18_v8  ;;  %v24_v18 = vunpack.c.h.bf16 %v18_v8  ;;  %v59_v19 = vld [vmem:[%s167_s3 + $0x10] sm:$0xff] }
   0x3   :  { %v43_v2 = vld [vmem:[%s166_s2] sm:$0x3]  ;;  %v31_v5 = vperm.slane %v29_v1, 0  ;;  %v32_v6 = vperm.slane %v29_v1, 1  ;;  %v63_v20 = vunpack.c.l.bf16 %v58_v9  ;;  %v64_v21 = vunpack.c.h.bf16 %v58_v9  ;;  %v20_v28 = vld [vmem:[%s164_s0 + $0x18] sm:$0xff] }
   0x4   :  { %v57_v7 = vld [vmem:[%s167_s3] sm:$0xff]  ;;  %v45_v10 = vperm.slane %v43_v2, 0  ;;  %v46_v11 = vperm.slane %v43_v2, 1  ;;  %v25_v22 = vunpack.c.l.bf16 %v19_v14  ;;  %v26_v23 = vunpack.c.h.bf16 %v19_v14  ;;  %v60_v41 = vld [vmem:[%s167_s3 + $0x18] sm:$0xff] }
   0x5   :  { %v61_v12 = vunpack.c.l.bf16 %v57_v7  ;;  %v62_v13 = vunpack.c.h.bf16 %v57_v7  ;;  %v35_v15 = vmul.f32 %v31_v5, %v21_v3  ;;  %v36_v16 = vmul.f32 %v32_v6, %v22_v4 }
   0x6   :  { %v37_v26 = vmul.f32 %v31_v5, %v23_v17  ;;  %v38_v27 = vmul.f32 %v32_v6, %v24_v18  ;;  %v39_v29 = vmul.f32 %v31_v5, %v25_v22  ;;  %v40_v30 = vmul.f32 %v32_v6, %v26_v23 }
   0x7   :  { %v49_v24 = vadd.f32 %v45_v10, %v35_v15  ;;  %v50_v25 = vadd.f32 %v46_v11, %v36_v16  ;;  %v65_v31 = vunpack.c.l.bf16 %v59_v19  ;;  %v66_v32 = vunpack.c.h.bf16 %v59_v19 }
   0x8   :  { %v51_v35 = vadd.f32 %v45_v10, %v37_v26  ;;  %v52_v36 = vadd.f32 %v46_v11, %v38_v27  ;;  %v53_v37 = vadd.f32 %v45_v10, %v39_v29  ;;  %v54_v38 = vadd.f32 %v46_v11, %v40_v30 }
   0x9   :  { %v69_v33 = vadd.f32 %v61_v12, %v49_v24  ;;  %v70_v34 = vadd.f32 %v62_v13, %v50_v25  ;;  %v27_v39 = vunpack.c.l.bf16 %v20_v28  ;;  %v28_v40 = vunpack.c.h.bf16 %v20_v28 }
   0xa   :  { %v71_v44 = vadd.f32 %v63_v20, %v51_v35  ;;  %v72_v45 = vadd.f32 %v64_v21, %v52_v36  ;;  %v73_v46 = vadd.f32 %v65_v31, %v53_v37  ;;  %v74_v47 = vadd.f32 %v66_v32, %v54_v38 }
   0xb   :  { %v77_v42 = vmax.f32 %v69_v33, 0.0  ;;  %v78_v43 = vmax.f32 %v70_v34, 0.0  ;;  %v41_v48 = vmul.f32 %v31_v5, %v27_v39  ;;  %v42_v49 = vmul.f32 %v32_v6, %v28_v40 }
   0xc   :  { %v79_v51 = vmax.f32 %v71_v44, 0.0  ;;  %v80_v52 = vmax.f32 %v72_v45, 0.0  ;;  %v67_v53 = vunpack.c.l.bf16 %v60_v41  ;;  %v81_v54 = vmax.f32 %v73_v46, 0.0 }
   0xd   :  { %v85_v50 = vpack.c.bf16 %v78_v43, %v77_v42  ;;  %v82_v55 = vmax.f32 %v74_v47, 0.0  ;;  %v55_v56 = vadd.f32 %v45_v10, %v41_v48  ;;  %v56_v57 = vadd.f32 %v46_v11, %v42_v49 }
   0xe   :  { %v86_v58 = vpack.c.bf16 %v80_v52, %v79_v51  ;;  %v68_v59 = vunpack.c.h.bf16 %v60_v41 }
   0xf   :  { %89 = vst [vmem:[%s168_s4] sm:$0xff] %v85_v50  ;;  %v87_v60 = vpack.c.bf16 %v82_v55, %v81_v54  ;;  %v75_v61 = vadd.f32 %v67_v53, %v55_v56 }
  0x10   :  { %90 = vst [vmem:[%s168_s4 + $0x8] sm:$0xff] %v86_v58  ;;  %v76_v62 = vadd.f32 %v68_v59, %v56_v57 }
  0x11   :  { %91 = vst [vmem:[%s168_s4 + $0x10] sm:$0xff] %v87_v60  ;;  %v83_v63 = vmax.f32 %v75_v61, 0.0 }
  0x12   :  { %v84_v0 = vmax.f32 %v76_v62, 0.0 }
  0x14   :  { %v88_v1 = vpack.c.bf16 %v84_v0, %v83_v63 }
  0x16   :  { %92 = vst [vmem:[%s168_s4 + $0x18] sm:$0xff] %v88_v1 }

// kernel: resnet_forward.69
= control target key start
LH: loop header
LB: loop body
LE: loop exit
PB: predicated region body
PF: predicated region fallthrough
CT: control target
= control target key end

     0   :  { %v40_v12 = vlaneseq  ;;  %s107_s0 = inlined_call_operand.vmem [shape: f32[1,1,512], index: 0, kind: input, shape index: {}]   ;;  %s108_s1 = inlined_call_operand.vmem [shape: f32[1,1,512], index: 1, kind: input, shape index: {}]   ;;  %s109_s2 = inlined_call_operand.vmem [shape: f32[1,512], index: 2, kind: input, shape index: {}]   ;;  %s110_s3 = inlined_call_operand.vmem [shape: f32[1,512], index: 3, kind: input, shape index: {}]   ;;  %s111_s4 = inlined_call_operand.vmem [shape: f32[1,512], index: 4, kind: output, shape index: {0}]   ;;  %s112_s5 = inlined_call_operand.vmem [shape: f32[1,512], index: 5, kind: output, shape index: {1}]  }
   0x1   :  { %v19_v0 = vld [vmem:[%s107_s0] sm:$0xf] }
   0x2   :  { %v21_v1 = vld [vmem:[%s108_s1] sm:$0xf]  ;;  %v23_v2 = vmul.f32 0.125, %v19_v0  ;;  %vm42_vm3 = vcmp.lt.s32.totalorder %v40_v12, 512 }
   0x3   :  { %v24_v3 = vmul.f32 0.125, %v21_v1  ;;  %v38_v14 = vld [vmem:[%s109_s2] sm:$0xf] }
   0x4   :  { %v25_v4 = vmul.f32 %v23_v2, %v23_v2  ;;  %v45_v17 = vld [vmem:[%s110_s3] sm:$0xf] }
   0x6   :  { %v26_v5 = vsub.f32 %v24_v3, %v25_v4 }
   0x8   :  { %v27_v6 = vadd.f32 1e-05, %v26_v5 }
   0xa   :  { %57 = vrsqrt.f32 %v27_v6  ;;  %vm34_vm0 = vweird.f32 %v27_v6 }
  0x10   :  { %v58_v7 = vpop.eup %57 }
  0x11   :  { %v29_v8 = vmul.f32 %v58_v7, %v27_v6  ;;  %vm35_vm1 = vweird.f32 %v58_v7 }
  0x12   :  { %vm36_vm2 = vmor %vm34_vm0, %vm35_vm1 }
  0x13   :  { %v30_v9 = vmul.f32 %v58_v7, %v29_v8 }
  0x15   :  { %v31_v10 = vmul.f32 0.5, %v30_v9 }
  0x17   :  { %v32_v11 = vsub.f32 1.5, %v31_v10 }
  0x19   :  { %v33_v13 = vmul.f32 %v58_v7, %v32_v11 }
  0x1b   :  { %v37_v15 = vsel %vm36_vm2, %v58_v7, %v33_v13 }
  0x1c   :  { %v39_v16 = vmul.f32 %v38_v14, %v37_v15 }
  0x1e   :  { %44 = vst.msk [vmem:[%s111_s4] sm:$0xf] %vm42_vm3, %v39_v16  ;;  %v46_v18 = vmul.f32 %v39_v16, %v23_v2 }
  0x20   :  { %v47_v19 = vsub.f32 %v45_v17, %v46_v18 }
  0x22   :  { %48 = vst.msk [vmem:[%s112_s5] sm:$0xf] %vm42_vm3, %v47_v19 }

// kernel: resnet_forward.70
= control target key start
LH: loop header
LB: loop body
LE: loop exit
PB: predicated region body
PF: predicated region fallthrough
CT: control target
= control target key end

     0   :  { %s94_s0 = inlined_call_operand.vmem [shape: bf16[8,512], index: 0, kind: input, shape index: {}]   ;;  %s95_s1 = inlined_call_operand.vmem [shape: f32[1,512], index: 1, kind: input, shape index: {}]   ;;  %s96_s2 = inlined_call_operand.vmem [shape: f32[1,512], index: 2, kind: input, shape index: {}]   ;;  %s97_s3 = inlined_call_operand.vmem [shape: bf16[8,512], index: 3, kind: output, shape index: {}]  }
   0x1   :  { %v14_v0 = vld [vmem:[%s94_s0] sm:$0xff]  ;;  %v15_v7 = vld [vmem:[%s94_s0 + $0x8] sm:$0xff] }
   0x2   :  { %v20_v1 = vld [vmem:[%s95_s1] sm:$0xf]  ;;  %v16_v3 = vunpack.c.l.bf16 %v14_v0  ;;  %v17_v4 = vunpack.c.h.bf16 %v14_v0  ;;  %v18_v10 = vunpack.c.l.bf16 %v15_v7  ;;  %v19_v11 = vunpack.c.h.bf16 %v15_v7 }
   0x3   :  { %v34_v2 = vld [vmem:[%s96_s2] sm:$0xf]  ;;  %v22_v5 = vperm.slane %v20_v1, 0  ;;  %v23_v6 = vperm.slane %v20_v1, 1  ;;  %v24_v14 = vperm.slane %v20_v1, 2  ;;  %v25_v15 = vperm.slane %v20_v1, 3 }
   0x4   :  { %v36_v8 = vperm.slane %v34_v2, 0  ;;  %v37_v9 = vperm.slane %v34_v2, 1  ;;  %v38_v16 = vperm.slane %v34_v2, 2  ;;  %v39_v17 = vperm.slane %v34_v2, 3 }
   0x5   :  { %v30_v12 = vmul.f32 %v22_v5, %v16_v3  ;;  %v31_v13 = vmul.f32 %v23_v6, %v17_v4  ;;  %v32_v20 = vmul.f32 %v24_v14, %v18_v10  ;;  %v33_v21 = vmul.f32 %v25_v15, %v19_v11 }
   0x7   :  { %v44_v18 = vadd.f32 %v36_v8, %v30_v12  ;;  %v45_v19 = vadd.f32 %v37_v9, %v31_v13  ;;  %v46_v23 = vadd.f32 %v38_v16, %v32_v20  ;;  %v47_v24 = vadd.f32 %v39_v17, %v33_v21 }
   0x9   :  { %v48_v22 = vpack.c.bf16 %v45_v19, %v44_v18  ;;  %v49_v25 = vpack.c.bf16 %v47_v24, %v46_v23 }
   0xb   :  { %50 = vst [vmem:[%s97_s3] sm:$0xff] %v48_v22 }
   0xc   :  { %51 = vst [vmem:[%s97_s3 + $0x8] sm:$0xff] %v49_v25 }

// kernel: resnet_forward.62
= control target key start
LH: loop header
LB: loop body
LE: loop exit
PB: predicated region body
PF: predicated region fallthrough
CT: control target
= control target key end

     0   :  { %s1886_s0 = inlined_call_operand.vmem [shape: bf16[32,2304], index: 0, kind: input, shape index: {}]   ;;  %s1887_s1 = inlined_call_operand.vmem [shape: bf16[2304,256], index: 1, kind: input, shape index: {}]   ;;  %s1888_s2 = inlined_call_operand.vmem [shape: bf16[32,256], index: 2, kind: output, shape index: {0}]   ;;  %s1889_s3 = inlined_call_operand.vmem [shape: f32[1,1,256], index: 3, kind: output, shape index: {1}]   ;;  %s1890_s4 = inlined_call_operand.vmem [shape: f32[1,1,256], index: 4, kind: output, shape index: {2}]  }
   0x1   :  { %1894 = sst [smem:[#allocation9_spill]] %s1886_s0 }
   0x2   :  { %1895 = sst [smem:[#allocation10_spill]] %s1887_s1 }
   0x3   :  { %s1556_s15 = smov 0   ;;  %s1558_s16 = smov 0  }
   0x4   :  { %s1560_s17 = smov 0   ;;  %s1562_s18 = smov 0  }
   0x5   :  { %s1564_s19 = smov 0   ;;  %s1566_s20 = smov 0  }
   0x6   :  { %s1568_s21 = smov 0   ;;  %s1570_s22 = smov 0  }
   0x7   :  { %s1572_s23 = smov 0   ;;  %s1574_s24 = smov 0  }
   0x8   :  { %s1576_s25 = smov 0  }
   0x9 LB: > { %1896 = sst [smem:[#allocation6_spill]] %s1524_s24  ;;  %s1155_s26 = sadd.s32 4294967295, %s1528_s25   ;;  %s1528_s25 = sphi %s1576_s25, %s15_s25   ;;  %s1524_s24 = sphi %s1574_s24, %s1906_s24   ;;  %s1520_s23 = sphi %s1572_s23, %s1914_s23   ;;  %s1516_s22 = sphi %s1570_s22, %s1904_s22   ;;  %s1512_s21 = sphi %s1568_s21, %s1913_s21   ;;  %s1508_s20 = sphi %s1566_s20, %s1912_s20   ;;  %s1504_s19 = sphi %s1564_s19, %s1911_s19   ;;  %s1500_s18 = sphi %s1562_s18, %s1910_s18   ;;  %s1496_s17 = sphi %s1560_s17, %s1909_s17   ;;  %s1492_s16 = sphi %s1558_s16, %s1908_s16   ;;  %s1488_s15 = sphi %s1556_s15, %s1907_s15  }
   0xa   : > { %s27_s27 = sadd.s32 1, %s1520_s23  ;;  %s30_s28 = sadd.s32 1, %s1524_s24 }
   0xb   : > { %p28_p0 = scmp.ge.s32.totalorder %s27_s27, 6  ;;  %s43_s29 = sadd.s32 1, %s1508_s20 }
   0xc   : > { %p50_p1 = scmp.ne.s32.totalorder %s1508_s20, %s1504_s19  ;;  %p51_p2 = scmp.eq.s32.totalorder %s1528_s25, 0 }
   0xd   : > { %s1916_s27 = smov (%p28_p0, %s27_s27), 0  ;;  %s1918_s28 = smov (!%p28_p0, %s30_s28), %s1524_s24 }
   0xe   : > { %1897 = sst [smem:[#allocation7_spill]] %s1916_s27  ;;  %s39_s30 = ssub.s32 %s1520_s23, %s1916_s27 }
   0xf   : > { %p32_p3 = scmp.ge.s32.totalorder %s1918_s28, 2  ;;  %p41_p4 = scmp.eq.s32.totalorder %s39_s30, 0 }
  0x10   : > { %p1623_p5 = por %p51_p2, %p50_p1  ;;  %s71_s6 = sadd.s32 1, %s1500_s18 }
  0x11   : > { %s1920_s28 = smov (%p32_p3, %s1918_s28), 0  ;;  %p78_p6 = scmp.ne.s32.totalorder %s1500_s18, %s1496_s17 }
  0x12   : > { %1899 = sst [smem:[#allocation8_spill]] %s1920_s28  ;;  %s67_s8 = ssub.s32 %s1524_s24, %s1920_s28 }
  0x13   : > { %s1631_s7 = scalar_select %p41_p4, %s1508_s20, %s43_s29  }
  0x14   : > { %s68_s9 = sor.u32 %s67_s8, %s39_s30  ;;  %p97_p7 = scmp.eq.s32.totalorder %s67_s8, 0 }
  0x15   : > { %p69_p8 = scmp.eq.s32.totalorder %s68_s9, 0  ;;  %p1637_p9 = por %p78_p6, %p51_p2 }
  0x16   : > { %s99_s11 = sadd.s32 1, %s1492_s16  ;;  %p109_p10 = scmp.ne.s32.totalorder %s1492_s16, %s1488_s15 }
  0x17   : > { %s1645_s12 = scalar_select %p69_p8, %s1500_s18, %s71_s6  }
  0x18   : > { %s1648_s13 = scalar_select %p97_p7, %s1492_s16, %s99_s11  }
  0x19   : > { %p110_p11 = scmp.eq.s32.totalorder %s1155_s26, 11  ;;  %p1158_p13 = scmp.ge.s32.totalorder %s1528_s25, 12 }
  0x1b   : > { %p1650_p12 = por %p110_p11, %p109_p10  ;;  %188 = sbr.rel (%p1158_p13) target bundleno = 106 (0x6a), region = 16 }
  0x20   : > { %191 = sbr.rel (!%p1623_p5) target bundleno = 49 (0x31), region = 20  ;;  %s193_s29 = sand.u32 (%p1623_p5), 1, %s1508_s20  }
  0x21   : > { %s1298_s30 = smul.u32 (%p1623_p5), 12, %s1520_s23  ;;  %s1902_s0 = sld [smem:[#allocation9_spill]] (%p1623_p5) }
  0x22   : > { %s1349_s8 = smul.u32 (%p1623_p5), 48, %s193_s29 }
  0x24   : > { %s195_s26 = scalar_lea.vmem (%p1623_p5), [#allocation3], %s1349_s8 }
  0x27   : > { %s201_s11 = scalar_lea.vmem %s1902_s0, %s1298_s30 }
  0x28   : > { %v216_v0 = vld [vmem:[%s201_s11] sm:$0xff]  ;;  %v218_v1 = vld [vmem:[%s201_s11 + $0x48] sm:$0xff]  ;;  %v220_v2 = vld [vmem:[%s201_s11 + $0x90] sm:$0xff] }
  0x29   : > { %217 = vst [vmem:[%s195_s26] sm:$0xff] %v216_v0  ;;  %v222_v3 = vld [vmem:[%s201_s11 + $0xd8] sm:$0xff]  ;;  %v1160_v4 = vld [vmem:[%s201_s11 + $0x8] sm:$0xf]  ;;  %v1162_v5 = vld [vmem:[%s201_s11 + $0x50] sm:$0xf] }
  0x2a   : > { %219 = vst [vmem:[%s195_s26 + $0xc] sm:$0xff] %v218_v1  ;;  %v1164_v6 = vld [vmem:[%s201_s11 + $0x98] sm:$0xf]  ;;  %v1166_v7 = vld [vmem:[%s201_s11 + $0xe0] sm:$0xf] }
  0x2b   : > { %221 = vst [vmem:[%s195_s26 + $0x18] sm:$0xff] %v220_v2 }
  0x2c   : > { %223 = vst [vmem:[%s195_s26 + $0x24] sm:$0xff] %v222_v3 }
  0x2d   : > { %1161 = vst [vmem:[%s195_s26 + $0x8] sm:$0xf] %v1160_v4 }
  0x2e   : > { %1163 = vst [vmem:[%s195_s26 + $0x14] sm:$0xf] %v1162_v5 }
  0x2f   : > { %1165 = vst [vmem:[%s195_s26 + $0x20] sm:$0xf] %v1164_v6 }
  0x30   : > { %1167 = vst [vmem:[%s195_s26 + $0x2c] sm:$0xf] %v1166_v7 }
  0x31 PF: > { %245 = sbr.rel (!%p1637_p9) target bundleno = 106 (0x6a), region = 46  ;;  %s247_s5 = sand.u32 (%p1637_p9), 1, %s1500_s18  }
  0x32   : > { %s1299_s29 = smul.u32 (%p1637_p9), 96, %s1520_s23  ;;  %s1903_s1 = sld [smem:[#allocation10_spill]] (%p1637_p9) }
  0x33   : > { %s1350_s30 = smul.u32 (%p1637_p9), 192, %s247_s5 }
  0x34   : > { %s252_s8 = sadd.s32 (%p1637_p9), %s1524_s24, %s1299_s29 }
  0x35   : > { %s1169_s6 = sshll.u32 (%p1637_p9), %s252_s8, 2  ;;  %s1675_s10 = scalar_lea.vmem (%p1637_p9), [#allocation4], %s1350_s30 }
  0x38   : > { %s1670_s28 = scalar_lea.vmem %s1903_s1, %s1169_s6 }
  0x39   : > { %v271_v8 = vld [vmem:[%s1670_s28] sm:$0xf]  ;;  %v273_v9 = vld [vmem:[%s1670_s28 + $0x8] sm:$0xf]  ;;  %v275_v10 = vld [vmem:[%s1670_s28 + $0x10] sm:$0xf] }
  0x3a   : > { %272 = vst [vmem:[%s1675_s10] sm:$0xf] %v271_v8  ;;  %v277_v11 = vld [vmem:[%s1670_s28 + $0x18] sm:$0xf]  ;;  %v279_v12 = vld [vmem:[%s1670_s28 + $0x20] sm:$0xf] }
  0x3b   : > { %274 = vst [vmem:[%s1675_s10 + $0x4] sm:$0xf] %v273_v9  ;;  %v281_v13 = vld [vmem:[%s1670_s28 + $0x28] sm:$0xf]  ;;  %v283_v14 = vld [vmem:[%s1670_s28 + $0x30] sm:$0xf] }
  0x3c   : > { %276 = vst [vmem:[%s1675_s10 + $0x8] sm:$0xf] %v275_v10  ;;  %v285_v15 = vld [vmem:[%s1670_s28 + $0x38] sm:$0xf]  ;;  %v287_v16 = vld [vmem:[%s1670_s28 + $0x40] sm:$0xf] }
  0x3d   : > { %278 = vst [vmem:[%s1675_s10 + $0xc] sm:$0xf] %v277_v11  ;;  %v289_v17 = vld [vmem:[%s1670_s28 + $0x48] sm:$0xf]  ;;  %v291_v18 = vld [vmem:[%s1670_s28 + $0x50] sm:$0xf] }
  0x3e   : > { %280 = vst [vmem:[%s1675_s10 + $0x10] sm:$0xf] %v279_v12  ;;  %v293_v19 = vld [vmem:[%s1670_s28 + $0x58] sm:$0xf]  ;;  %v295_v20 = vld [vmem:[%s1670_s28 + $0x60] sm:$0xf] }
  0x3f   : > { %282 = vst [vmem:[%s1675_s10 + $0x14] sm:$0xf] %v281_v13  ;;  %v297_v21 = vld [vmem:[%s1670_s28 + $0x68] sm:$0xf]  ;;  %v299_v22 = vld [vmem:[%s1670_s28 + $0x70] sm:$0xf] }
  0x40   : > { %284 = vst [vmem:[%s1675_s10 + $0x18] sm:$0xf] %v283_v14  ;;  %v301_v23 = vld [vmem:[%s1670_s28 + $0x78] sm:$0xf]  ;;  %v303_v24 = vld [vmem:[%s1670_s28 + $0x80] sm:$0xf] }
  0x41   : > { %286 = vst [vmem:[%s1675_s10 + $0x1c] sm:$0xf] %v285_v15  ;;  %v305_v25 = vld [vmem:[%s1670_s28 + $0x88] sm:$0xf]  ;;  %v307_v26 = vld [vmem:[%s1670_s28 + $0x90] sm:$0xf] }
  0x42   : > { %288 = vst [vmem:[%s1675_s10 + $0x20] sm:$0xf] %v287_v16  ;;  %v309_v27 = vld [vmem:[%s1670_s28 + $0x98] sm:$0xf]  ;;  %v311_v28 = vld [vmem:[%s1670_s28 + $0xa0] sm:$0xf] }
  0x43   : > { %290 = vst [vmem:[%s1675_s10 + $0x24] sm:$0xf] %v289_v17  ;;  %v313_v29 = vld [vmem:[%s1670_s28 + $0xa8] sm:$0xf]  ;;  %v315_v30 = vld [vmem:[%s1670_s28 + $0xb0] sm:$0xf] }
  0x44   : > { %292 = vst [vmem:[%s1675_s10 + $0x28] sm:$0xf] %v291_v18  ;;  %v317_v31 = vld [vmem:[%s1670_s28 + $0xb8] sm:$0xf]  ;;  %v319_v32 = vld [vmem:[%s1670_s28 + $0xc0] sm:$0xf] }
  0x45   : > { %294 = vst [vmem:[%s1675_s10 + $0x2c] sm:$0xf] %v293_v19  ;;  %v321_v33 = vld [vmem:[%s1670_s28 + $0xc8] sm:$0xf]  ;;  %v323_v34 = vld [vmem:[%s1670_s28 + $0xd0] sm:$0xf] }
  0x46   : > { %296 = vst [vmem:[%s1675_s10 + $0x30] sm:$0xf] %v295_v20  ;;  %v325_v35 = vld [vmem:[%s1670_s28 + $0xd8] sm:$0xf]  ;;  %v327_v36 = vld [vmem:[%s1670_s28 + $0xe0] sm:$0xf] }
  0x47   : > { %298 = vst [vmem:[%s1675_s10 + $0x34] sm:$0xf] %v297_v21  ;;  %v329_v37 = vld [vmem:[%s1670_s28 + $0xe8] sm:$0xf]  ;;  %v331_v38 = vld [vmem:[%s1670_s28 + $0xf0] sm:$0xf] }
  0x48   : > { %300 = vst [vmem:[%s1675_s10 + $0x38] sm:$0xf] %v299_v22  ;;  %v333_v39 = vld [vmem:[%s1670_s28 + $0xf8] sm:$0xf]  ;;  %v335_v40 = vld [vmem:[%s1670_s28 + $0x100] sm:$0xf] }
  0x49   : > { %302 = vst [vmem:[%s1675_s10 + $0x3c] sm:$0xf] %v301_v23  ;;  %v337_v41 = vld [vmem:[%s1670_s28 + $0x108] sm:$0xf]  ;;  %v339_v42 = vld [vmem:[%s1670_s28 + $0x110] sm:$0xf] }
  0x4a   : > { %304 = vst [vmem:[%s1675_s10 + $0x40] sm:$0xf] %v303_v24  ;;  %v341_v43 = vld [vmem:[%s1670_s28 + $0x118] sm:$0xf]  ;;  %v343_v44 = vld [vmem:[%s1670_s28 + $0x120] sm:$0xf] }
  0x4b   : > { %306 = vst [vmem:[%s1675_s10 + $0x44] sm:$0xf] %v305_v25  ;;  %v345_v45 = vld [vmem:[%s1670_s28 + $0x128] sm:$0xf]  ;;  %v347_v46 = vld [vmem:[%s1670_s28 + $0x130] sm:$0xf] }
  0x4c   : > { %308 = vst [vmem:[%s1675_s10 + $0x48] sm:$0xf] %v307_v26  ;;  %v349_v47 = vld [vmem:[%s1670_s28 + $0x138] sm:$0xf]  ;;  %v351_v48 = vld [vmem:[%s1670_s28 + $0x140] sm:$0xf] }
  0x4d   : > { %310 = vst [vmem:[%s1675_s10 + $0x4c] sm:$0xf] %v309_v27  ;;  %v353_v49 = vld [vmem:[%s1670_s28 + $0x148] sm:$0xf]  ;;  %v355_v50 = vld [vmem:[%s1670_s28 + $0x150] sm:$0xf] }
  0x4e   : > { %312 = vst [vmem:[%s1675_s10 + $0x50] sm:$0xf] %v311_v28  ;;  %v357_v51 = vld [vmem:[%s1670_s28 + $0x158] sm:$0xf]  ;;  %v359_v52 = vld [vmem:[%s1670_s28 + $0x160] sm:$0xf] }
  0x4f   : > { %314 = vst [vmem:[%s1675_s10 + $0x54] sm:$0xf] %v313_v29  ;;  %v361_v53 = vld [vmem:[%s1670_s28 + $0x168] sm:$0xf]  ;;  %v363_v54 = vld [vmem:[%s1670_s28 + $0x170] sm:$0xf] }
  0x50   : > { %316 = vst [vmem:[%s1675_s10 + $0x58] sm:$0xf] %v315_v30  ;;  %v365_v55 = vld [vmem:[%s1670_s28 + $0x178] sm:$0xf] }
  0x51   : > { %318 = vst [vmem:[%s1675_s10 + $0x5c] sm:$0xf] %v317_v31 }
  0x52   : > { %320 = vst [vmem:[%s1675_s10 + $0x60] sm:$0xf] %v319_v32 }
  0x53   : > { %322 = vst [vmem:[%s1675_s10 + $0x64] sm:$0xf] %v321_v33 }
  0x54   : > { %324 = vst [vmem:[%s1675_s10 + $0x68] sm:$0xf] %v323_v34 }
  0x55   : > { %326 = vst [vmem:[%s1675_s10 + $0x6c] sm:$0xf] %v325_v35 }
  0x56   : > { %328 = vst [vmem:[%s1675_s10 + $0x70] sm:$0xf] %v327_v36 }
  0x57   : > { %330 = vst [vmem:[%s1675_s10 + $0x74] sm:$0xf] %v329_v37 }
  0x58   : > { %332 = vst [vmem:[%s1675_s10 + $0x78] sm:$0xf] %v331_v38 }
  0x59   : > { %334 = vst [vmem:[%s1675_s10 + $0x7c] sm:$0xf] %v333_v39 }
  0x5a   : > { %336 = vst [vmem:[%s1675_s10 + $0x80] sm:$0xf] %v335_v40 }
  0x5b   : > { %338 = vst [vmem:[%s1675_s10 + $0x84] sm:$0xf] %v337_v41 }
  0x5c   : > { %340 = vst [vmem:[%s1675_s10 + $0x88] sm:$0xf] %v339_v42 }
  0x5d   : > { %342 = vst [vmem:[%s1675_s10 + $0x8c] sm:$0xf] %v341_v43 }
  0x5e   : > { %344 = vst [vmem:[%s1675_s10 + $0x90] sm:$0xf] %v343_v44 }
  0x5f   : > { %346 = vst [vmem:[%s1675_s10 + $0x94] sm:$0xf] %v345_v45 }
  0x60   : > { %348 = vst [vmem:[%s1675_s10 + $0x98] sm:$0xf] %v347_v46 }
  0x61   : > { %350 = vst [vmem:[%s1675_s10 + $0x9c] sm:$0xf] %v349_v47 }
  0x62   : > { %352 = vst [vmem:[%s1675_s10 + $0xa0] sm:$0xf] %v351_v48 }
  0x63   : > { %354 = vst [vmem:[%s1675_s10 + $0xa4] sm:$0xf] %v353_v49 }
  0x64   : > { %356 = vst [vmem:[%s1675_s10 + $0xa8] sm:$0xf] %v355_v50 }
  0x65   : > { %358 = vst [vmem:[%s1675_s10 + $0xac] sm:$0xf] %v357_v51 }
  0x66   : > { %360 = vst [vmem:[%s1675_s10 + $0xb0] sm:$0xf] %v359_v52 }
  0x67   : > { %362 = vst [vmem:[%s1675_s10 + $0xb4] sm:$0xf] %v361_v53 }
  0x68   : > { %364 = vst [vmem:[%s1675_s10 + $0xb8] sm:$0xf] %v363_v54 }
  0x69   : > { %366 = vst [vmem:[%s1675_s10 + $0xbc] sm:$0xf] %v365_v55 }
  0x6a PF: > { %p1170_p0 = scmp.ge.s32.totalorder %s1528_s25, 1  ;;  %p485_p1 = scmp.lt.s32.totalorder %s1528_s25, 13 }
  0x6c   : > { %p486_p2 = pnand %p1170_p0, %p485_p1 }
  0x6d   : > { %s492_s0 = sand.u32 (!%p486_p2), 1, %s1504_s19   ;;  %s499_s11 = sand.u32 (!%p486_p2), 1, %s1496_s17  }
  0x6e   : > { %489 = sbr.rel (%p486_p2) target bundleno = 351 (0x15f), region = 87  ;;  %s520_s28 = sand.u32 (!%p486_p2), 1, %s1488_s15  }
  0x6f   : > { %s1351_s26 = smul.u32 (!%p486_p2), 48, %s492_s0  ;;  %s1171_s29 = sshll.u32 (!%p486_p2), %s520_s28, 4 }
  0x70   : > { %s1352_s5 = smul.u32 (!%p486_p2), 192, %s499_s11  ;;  %p547_p3 = scmp.lt.s32.totalorder (!%p486_p2), %s1516_s22, 1 }
  0x71   : > { %s1787_s24 = scalar_lea.vmem (!%p486_p2), [#allocation3], %s1351_s26  ;;  %s1791_s15 = scalar_lea.vmem (!%p486_p2), [#allocation5], %s1171_s29 }
  0x72   : > { %s1789_s17 = scalar_lea.vmem (!%p486_p2), [#allocation4], %s1352_s5  ;;  %p1172_p4 = scmp.ne.s32.totalorder (!%p486_p2), %s1512_s21, 0 }
  0x73   : > { %s1777_s30 = scalar_select %p547_p3, %s1516_s22, 1 }
  0x74   : > { %562 = sbr.rel (%p1172_p4) target bundleno = 126 (0x7e), region = 99 }
  0x75   : > { %s551_s9 = scalar_lea.vmem %s1889_s3, %s1777_s30  ;;  %s558_s27 = scalar_lea.vmem %s1890_s4, %s1777_s30 }
  0x79   : > { %v1530_v56 = vmov 0.0  }
  0x7a   : > { %563 = vst [vmem:[#allocation2 + $0x10] sm:$0xff] %v1530_v56 }
  0x7b   : > { %564 = vst [vmem:[#allocation2] sm:$0xff] %v1530_v56 }
  0x7c   : > { %565 = vst [vmem:[#allocation2 + $0x18] sm:$0xff] %v1530_v56 }
  0x7d   : > { %566 = vst [vmem:[#allocation2 + $0x8] sm:$0xff] %v1530_v56 }
  0x7e PF: > { %v1313_v57 = vld [vmem:[%s1789_s17 + $0x38] sm:$0xff]  ;;  %v1312_v60 = vld [vmem:[%s1789_s17 + $0x30] sm:$0xff]  ;;  %v1311_v63 = vld [vmem:[%s1789_s17 + $0x28] sm:$0xff]  ;;  %p1293_p5 = scmp.ne.s32.totalorder %s1512_s21, 5 }
  0x7f   : > { %v1321_v58 = vld [vmem:[%s1789_s17 + $0x78] sm:$0xff]  ;;  %803 = vmatpush.bf16.msra.mxu0 %v1313_v57  ;;  %v1320_v61 = vld [vmem:[%s1789_s17 + $0x70] sm:$0xff]  ;;  %1341 = vmatpush.bf16.msra.mxu3 %v1313_v57  ;;  %v1319_v0 = vld [vmem:[%s1789_s17 + $0x68] sm:$0xff] }
  0x80   : > { %v1329_v59 = vld [vmem:[%s1789_s17 + $0xb8] sm:$0xff]  ;;  %822 = vmatpush.bf16.msra.mxu1 %v1321_v58  ;;  %v1328_v62 = vld [vmem:[%s1789_s17 + $0xb0] sm:$0xff]  ;;  %v1327_v1 = vld [vmem:[%s1789_s17 + $0xa8] sm:$0xff] }
  0x81   : > { %841 = vmatpush.bf16.msra.mxu2 %v1329_v59  ;;  %v1310_v2 = vld [vmem:[%s1789_s17 + $0x20] sm:$0xff]  ;;  %v1309_v5 = vld [vmem:[%s1789_s17 + $0x18] sm:$0xff]  ;;  %v1308_v8 = vld [vmem:[%s1789_s17 + $0x10] sm:$0xff] }
  0x82   : > { %v1318_v3 = vld [vmem:[%s1789_s17 + $0x60] sm:$0xff]  ;;  %v1317_v6 = vld [vmem:[%s1789_s17 + $0x58] sm:$0xff]  ;;  %v1316_v9 = vld [vmem:[%s1789_s17 + $0x50] sm:$0xff] }
  0x83   : > { %804 = vmatpush.bf16.msra.mxu0 %v1312_v60  ;;  %1342 = vmatpush.bf16.msra.mxu3 %v1312_v60  ;;  %v1326_v4 = vld [vmem:[%s1789_s17 + $0xa0] sm:$0xff]  ;;  %v1325_v7 = vld [vmem:[%s1789_s17 + $0x98] sm:$0xff]  ;;  %v1324_v10 = vld [vmem:[%s1789_s17 + $0x90] sm:$0xff] }
  0x84   : > { %823 = vmatpush.bf16.msra.mxu1 %v1320_v61  ;;  %v1307_v11 = vld [vmem:[%s1789_s17 + $0x8] sm:$0xff]  ;;  %v1306_v14 = vld [vmem:[%s1789_s17] sm:$0xff]  ;;  %v567_v38 = vld [vmem:[#allocation2 + $0x10] sm:$0xff] }
  0x85   : > { %842 = vmatpush.bf16.msra.mxu2 %v1328_v62  ;;  %v1315_v12 = vld [vmem:[%s1789_s17 + $0x48] sm:$0xff]  ;;  %v1314_v15 = vld [vmem:[%s1789_s17 + $0x40] sm:$0xff]  ;;  %v569_v52 = vld [vmem:[#allocation2 + $0x18] sm:$0xff] }
  0x86   : > { %v1323_v13 = vld [vmem:[%s1789_s17 + $0x88] sm:$0xff]  ;;  %v1322_v16 = vld [vmem:[%s1789_s17 + $0x80] sm:$0xff] }
  0x87   : > { %805 = vmatpush.bf16.msra.mxu0 %v1311_v63  ;;  %1343 = vmatpush.bf16.msra.mxu3 %v1311_v63  ;;  %v1175_v17 = vld [vmem:[%s1787_s24] sm:$0xf]  ;;  %v1301_v18 = vld [vmem:[%s1787_s24 + $0x8] sm:$0xf0]  ;;  %v1300_v19 = vld [vmem:[%s1787_s24 + $0x4] sm:$0xf] }
  0x88   : > { %824 = vmatpush.bf16.msra.mxu1 %v1319_v0  ;;  %v1177_v20 = vld [vmem:[%s1787_s24 + $0xc] sm:$0xf0]  ;;  %v1183_v21 = vld [vmem:[%s1787_s24 + $0x8] sm:$0xf]  ;;  %v1302_v22 = vld [vmem:[%s1787_s24 + $0x10] sm:$0xf0]  ;;  %v1176_v25 = vor.u32 %v1301_v18, %v1175_v17 }
  0x89   : > { %843 = vmatpush.bf16.msra.mxu2 %v1327_v1  ;;  %v1187_v23 = vld [vmem:[%s1787_s24 + $0x18] sm:$0xf]  ;;  %v1304_v24 = vld [vmem:[%s1787_s24 + $0x20] sm:$0xf0]  ;;  %v1180_v26 = vor.u32 %v1300_v19, %v1177_v20  ;;  %v1184_v27 = vor.u32 %v1302_v22, %v1183_v21  ;;  %v1303_v29 = vld [vmem:[%s1787_s24 + $0x1c] sm:$0xf] }
  0x8a   : > { %v1188_v28 = vor.u32 %v1304_v24, %v1187_v23  ;;  %v1189_v30 = vld [vmem:[%s1787_s24 + $0x24] sm:$0xf0]  ;;  %v1195_v31 = vld [vmem:[%s1787_s24 + $0x20] sm:$0xf]  ;;  %v1305_v32 = vld [vmem:[%s1787_s24 + $0x28] sm:$0xf0] }
  0x8b   : > { %806 = vmatpush.bf16.msra.mxu0 %v1310_v2  ;;  %1344 = vmatpush.bf16.msra.mxu3 %v1310_v2  ;;  %v1192_v33 = vor.u32 %v1303_v29, %v1189_v30  ;;  %v1196_v34 = vor.u32 %v1305_v32, %v1195_v31  ;;  %v568_v45 = vld [vmem:[#allocation2] sm:$0xff]  ;;  %v570_v59 = vld [vmem:[#allocation2 + $0x8] sm:$0xff] }
  0x8c   : > { %825 = vmatpush.bf16.msra.mxu1 %v1318_v3 }
  0x8d   : > { %844 = vmatpush.bf16.msra.mxu2 %v1326_v4 }
  0x8f   : > { %807 = vmatpush.bf16.msra.mxu0 %v1309_v5  ;;  %1345 = vmatpush.bf16.msra.mxu3 %v1309_v5 }
  0x90   : > { %826 = vmatpush.bf16.msra.mxu1 %v1317_v6 }
  0x91   : > { %845 = vmatpush.bf16.msra.mxu2 %v1325_v7 }
  0x93   : > { %808 = vmatpush.bf16.msra.mxu0 %v1308_v8  ;;  %1346 = vmatpush.bf16.msra.mxu3 %v1308_v8 }
  0x94   : > { %827 = vmatpush.bf16.msra.mxu1 %v1316_v9 }
  0x95   : > { %846 = vmatpush.bf16.msra.mxu2 %v1324_v10 }
  0x97   : > { %809 = vmatpush.bf16.msra.mxu0 %v1307_v11  ;;  %1347 = vmatpush.bf16.msra.mxu3 %v1307_v11 }
  0x98   : > { %828 = vmatpush.bf16.msra.mxu1 %v1315_v12 }
  0x99   : > { %847 = vmatpush.bf16.msra.mxu2 %v1323_v13 }
  0x9b   : > { %810 = vmatpush.bf16.msra.mxu0 %v1306_v14  ;;  %1348 = vmatpush.bf16.msra.mxu3 %v1306_v14 }
  0x9c   : > { %829 = vmatpush.bf16.msra.mxu1 %v1314_v15 }
  0x9d   : > { %848 = vmatpush.bf16.msra.mxu2 %v1322_v16 }
  0x9e   : > { %811 = vmatmul.bf16.vlgmr.msra.gmra.mxu0 %v1176_v25  ;;  %816 = vmatmul.bf16.vlgmr.msra.gmra.mxu3 %v1188_v28 }
  0x9f   : > { %830 = vmatmul.bf16.vlgmr.msra.gmra.mxu1 %v1180_v26 }
  0xa0   : > { %849 = vmatmul.bf16.vlgmr.msra.gmra.mxu2 %v1184_v27 }
  0xaf   : > { %835 = vmatmul.bf16.gmra.mxu1 %v1192_v33 }
  0xb0   : > { %854 = vmatmul.bf16.gmra.mxu2 %v1196_v34 }
 0x11b   : > { %v812_v36 = vpop.f32.mrf.mxu0 }
 0x11c   : > { %v831_v35 = vpop.f32.mrf.mxu1 }
 0x11d   : > { %v832_v37 = vadd.f32 %v831_v35, %v812_v36 }
 0x121   : > { %v817_v50 = vpop.f32.mrf.mxu3 }
 0x123   : > { %v850_v39 = vpop.f32.mrf.mxu2  ;;  %v814_v43 = vpop.f32.mrf.mxu0 }
 0x124   : > { %v851_v40 = vadd.f32 %v850_v39, %v832_v37  ;;  %v833_v41 = vpop.f32.mrf.mxu1 }
 0x125   : > { %v834_v44 = vadd.f32 %v833_v41, %v814_v43 }
 0x126   : > { %v860_v42 = vadd.f32 %v851_v40, %v567_v38 }
 0x128   : > { %864 = vst [vmem:[#allocation2 + $0x10] sm:$0xff] %v860_v42 }
 0x129   : > { %v819_v57 = vpop.f32.mrf.mxu3 }
 0x12b   : > { %v852_v46 = vpop.f32.mrf.mxu2 }
 0x12c   : > { %v853_v47 = vadd.f32 %v852_v46, %v834_v44  ;;  %v836_v48 = vpop.f32.mrf.mxu1 }
 0x12d   : > { %v837_v51 = vadd.f32 %v836_v48, %v817_v50 }
 0x12e   : > { %v861_v49 = vadd.f32 %v853_v47, %v568_v45 }
 0x130   : > { %865 = vst [vmem:[#allocation2] sm:$0xff] %v861_v49 }
 0x133   : > { %v855_v53 = vpop.f32.mrf.mxu2 }
 0x134   : > { %v856_v54 = vadd.f32 %v855_v53, %v837_v51  ;;  %v838_v56 = vpop.f32.mrf.mxu1 }
 0x135   : > { %v839_v58 = vadd.f32 %v838_v56, %v819_v57 }
 0x136   : > { %v862_v55 = vadd.f32 %v856_v54, %v569_v52 }
 0x138   : > { %866 = vst [vmem:[#allocation2 + $0x18] sm:$0xff] %v862_v55 }
 0x13b   : > { %v857_v60 = vpop.f32.mrf.mxu2 }
 0x13c   : > { %v858_v61 = vadd.f32 %v857_v60, %v839_v58  ;;  %871 = sbr.rel (%p1293_p5) target bundleno = 345 (0x159), region = 103 }
 0x13e   : > { %v863_v62 = vadd.f32 %v858_v61, %v570_v59 }
 0x140   : > { %867 = vst [vmem:[#allocation2 + $0x8] sm:$0xff] %v863_v62 }
 0x141   : > { %v872_v63 = vld [vmem:[#allocation2 + $0x10] sm:$0xff]  ;;  %v873_v0 = vld [vmem:[#allocation2] sm:$0xff]  ;;  %v874_v1 = vld [vmem:[#allocation2 + $0x18] sm:$0xff] }
 0x142   : > { %v1333_v2 = vpack.c.bf16 %v873_v0, %v872_v63  ;;  %v884_v3 = vadd.f32 %v873_v0, %v872_v63  ;;  %v894_v4 = vmul.f32 %v872_v63, %v872_v63  ;;  %v895_v5 = vmul.f32 %v873_v0, %v873_v0 }
 0x143   : > { %v896_v8 = vmul.f32 %v874_v1, %v874_v1 }
 0x144   : > { %1334 = vst [vmem:[%s1791_s15] sm:$0xff] %v1333_v2   ;;  %v898_v9 = vadd.f32 %v895_v5, %v894_v4  ;;  %v885_v10 = vadd.f32 %v884_v3, %v874_v1 }
 0x146   : > { %v899_v13 = vadd.f32 %v898_v9, %v896_v8 }
 0x147   : > { %v875_v6 = vld [vmem:[#allocation2 + $0x8] sm:$0xff] }
 0x148   : > { %v1338_v7 = vpack.c.bf16 %v875_v6, %v874_v1  ;;  %v897_v11 = vmul.f32 %v875_v6, %v875_v6  ;;  %v886_v12 = vadd.f32 %v885_v10, %v875_v6 }
 0x14a   : > { %1340 = vst [vmem:[%s1791_s15 + $0x8] sm:$0xff] %v1338_v7   ;;  %v887_v14 = vrot.slane %v886_v12, 4  ;;  %v900_v15 = vadd.f32 %v899_v13, %v897_v11 }
 0x14c   : > { %v888_v16 = vadd.f32 %v887_v14, %v886_v12  ;;  %v901_v17 = vrot.slane %v900_v15, 4 }
 0x14e   : > { %v889_v18 = vrot.slane %v888_v16, 2  ;;  %v902_v19 = vadd.f32 %v901_v17, %v900_v15 }
 0x150   : > { %v890_v20 = vadd.f32 %v889_v18, %v888_v16  ;;  %v903_v21 = vrot.slane %v902_v19, 2 }
 0x152   : > { %v891_v22 = vrot.slane %v890_v20, 1  ;;  %v904_v23 = vadd.f32 %v903_v21, %v902_v19 }
 0x154   : > { %v892_v24 = vadd.f32 %v891_v22, %v890_v20  ;;  %v905_v25 = vrot.slane %v904_v23, 1 }
 0x156   : > { %893 = vst [vmem:[%s551_s9] sm:$0x1] %v892_v24  ;;  %v906_v26 = vadd.f32 %v905_v25, %v904_v23 }
 0x158   : > { %907 = vst [vmem:[%s558_s27] sm:$0x1] %v906_v26 }
 0x159 PF: > { %928 = sbr.rel (!%p1650_p12) target bundleno = 351 (0x15f), region = 107  ;;  %s1295_s0 = sshll.u32 (%p1650_p12), %s1516_s22, 2  ;;  %v950_v27 = vld [vmem:[%s1791_s15] sm:$0xf] (%p1650_p12)  ;;  %v952_v28 = vld [vmem:[%s1791_s15 + $0x4] sm:$0xf] (%p1650_p12) }
 0x15a   : > { %s933_s28 = scalar_lea.vmem (%p1650_p12), %s1888_s2, %s1295_s0  ;;  %v954_v29 = vld [vmem:[%s1791_s15 + $0x8] sm:$0xf] (%p1650_p12)  ;;  %v956_v30 = vld [vmem:[%s1791_s15 + $0xc] sm:$0xf] (%p1650_p12) }
 0x15b   : > { %951 = vst [vmem:[%s933_s28] sm:$0xf] (%p1650_p12), %v950_v27 }
 0x15c   : > { %953 = vst [vmem:[%s933_s28 + $0x8] sm:$0xf] (%p1650_p12), %v952_v28 }
 0x15d   : > { %955 = vst [vmem:[%s933_s28 + $0x10] sm:$0xf] (%p1650_p12), %v954_v29 }
 0x15e   : > { %957 = vst [vmem:[%s933_s28 + $0x18] sm:$0xf] %v956_v30 }
 0x15f PF: > { %s15_s25 = sadd.s32 1, %s1528_s25   ;;  %s1904_s22 = sld [smem:[#allocation6_spill]] }
 0x160   : > { %p12_p6 = scmp.ge.s32.totalorder %s15_s25, 14   ;;  %s1905_s27 = sld [smem:[#allocation7_spill]] }
 0x161   : > { %s1906_s24 = sld [smem:[#allocation8_spill]]  ;;  %s1907_s15 = smov %s1492_s16 }
 0x162   : > { %s1908_s16 = smov %s1648_s13  ;;  %s1909_s17 = smov %s1500_s18 }
 0x163   : > { %s1910_s18 = smov %s1645_s12  ;;  %s1911_s19 = smov %s1508_s20 }
 0x164   : > { %s1912_s20 = smov %s1631_s7  ;;  %s1913_s21 = smov %s1520_s23 }
 0x165   :  { %14 = sbr.rel (!%p12_p6) target bundleno = 9 (0x9), region = 217 }
 0x166   : > { %s1914_s23 = smov %s1905_s27 }

// kernel: resnet_forward.68
= control target key start
LH: loop header
LB: loop body
LE: loop exit
PB: predicated region body
PF: predicated region fallthrough
CT: control target
= control target key end

     0   :  { %s1051_s15 = smov 0   ;;  %s1053_s16 = smov 0   ;;  %s1212_s0 = inlined_call_operand.vmem [shape: bf16[8,256], index: 0, kind: input, shape index: {}]   ;;  %s1213_s1 = inlined_call_operand.vmem [shape: bf16[256,512], index: 1, kind: input, shape index: {}]   ;;  %s1214_s2 = inlined_call_operand.vmem [shape: bf16[8,512], index: 2, kind: output, shape index: {0}]   ;;  %s1215_s3 = inlined_call_operand.vmem [shape: f32[1,1,512], index: 3, kind: output, shape index: {1}]   ;;  %s1216_s4 = inlined_call_operand.vmem [shape: f32[1,1,512], index: 4, kind: output, shape index: {2}]  }
   0x1   :  { %s1055_s17 = smov 0   ;;  %s1057_s18 = smov 0  }
   0x2   :  { %s1059_s19 = smov 0  }
   0x3 LB: > { %s30_s20 = sadd.s32 1, %s1020_s18  ;;  %p78_p1 = scmp.ne.s32.totalorder %s1012_s16, %s1008_s15  ;;  %s1024_s19 = sphi %s1059_s19, %s15_s19   ;;  %s1020_s18 = sphi %s1057_s18, %s1220_s18   ;;  %s1016_s17 = sphi %s1055_s17, %s1219_s17   ;;  %s1012_s16 = sphi %s1053_s16, %s1218_s16   ;;  %s1008_s15 = sphi %s1051_s15, %s1217_s15  }
   0x4   : > { %p32_p0 = scmp.ge.s32.totalorder %s30_s20, 4  ;;  %p79_p2 = scmp.eq.s32.totalorder %s1024_s19, 0 }
   0x5   : > { %s71_s22 = sadd.s32 1, %s1012_s16  ;;  %p858_p5 = scmp.ge.s32.totalorder %s1024_s19, 4 }
   0x6   : > { %s1222_s20 = smov (%p32_p0, %s30_s20), 0  ;;  %p80_p3 = por %p79_p2, %p78_p1 }
   0x7   : > { %s67_s21 = ssub.s32 %s1020_s18, %s1222_s20  ;;  %201 = sbr.rel (%p858_p5) target bundleno = 48 (0x30), region = 20 }
   0x8   : > { %p69_p4 = scmp.eq.s32.totalorder %s67_s21, 0 }
   0xa   : > { %s1086_s23 = scalar_select %p69_p4, %s1012_s16, %s71_s22  }
   0xc   : > { %204 = sbr.rel (!%p80_p3) target bundleno = 48 (0x30), region = 24  ;;  %s206_s24 = sand.u32 (%p80_p3), 1, %s1012_s16  }
   0xd   : > { %s860_s25 = sshll.u32 (%p80_p3), %s1020_s18, 2  ;;  %s859_s26 = sshll.u32 (%p80_p3), %s206_s24, 7 }
   0xe   : > { %s1094_s29 = scalar_lea.vmem (%p80_p3), %s1213_s1, %s860_s25  ;;  %s1098_s30 = scalar_lea.vmem (%p80_p3), [#allocation3], %s859_s26 }
   0xf   : > { %v230_v0 = vld [vmem:[%s1094_s29] sm:$0xf] (%p80_p3)  ;;  %v232_v1 = vld [vmem:[%s1094_s29 + $0x10] sm:$0xf] (%p80_p3) }
  0x10   : > { %231 = vst [vmem:[%s1098_s30] sm:$0xf] (%p80_p3), %v230_v0  ;;  %v234_v2 = vld [vmem:[%s1094_s29 + $0x20] sm:$0xf] (%p80_p3)  ;;  %v236_v3 = vld [vmem:[%s1094_s29 + $0x30] sm:$0xf] (%p80_p3) }
  0x11   : > { %233 = vst [vmem:[%s1098_s30 + $0x4] sm:$0xf] %v232_v1  ;;  %v238_v4 = vld [vmem:[%s1094_s29 + $0x40] sm:$0xf]  ;;  %v240_v5 = vld [vmem:[%s1094_s29 + $0x50] sm:$0xf] }
  0x12   : > { %235 = vst [vmem:[%s1098_s30 + $0x8] sm:$0xf] %v234_v2  ;;  %v242_v6 = vld [vmem:[%s1094_s29 + $0x60] sm:$0xf]  ;;  %v244_v7 = vld [vmem:[%s1094_s29 + $0x70] sm:$0xf] }
  0x13   : > { %237 = vst [vmem:[%s1098_s30 + $0xc] sm:$0xf] %v236_v3  ;;  %v246_v8 = vld [vmem:[%s1094_s29 + $0x80] sm:$0xf]  ;;  %v248_v9 = vld [vmem:[%s1094_s29 + $0x90] sm:$0xf] }
  0x14   : > { %239 = vst [vmem:[%s1098_s30 + $0x10] sm:$0xf] %v238_v4  ;;  %v250_v10 = vld [vmem:[%s1094_s29 + $0xa0] sm:$0xf]  ;;  %v252_v11 = vld [vmem:[%s1094_s29 + $0xb0] sm:$0xf] }
  0x15   : > { %241 = vst [vmem:[%s1098_s30 + $0x14] sm:$0xf] %v240_v5  ;;  %v254_v12 = vld [vmem:[%s1094_s29 + $0xc0] sm:$0xf]  ;;  %v256_v13 = vld [vmem:[%s1094_s29 + $0xd0] sm:$0xf] }
  0x16   : > { %243 = vst [vmem:[%s1098_s30 + $0x18] sm:$0xf] %v242_v6  ;;  %v258_v14 = vld [vmem:[%s1094_s29 + $0xe0] sm:$0xf]  ;;  %v260_v15 = vld [vmem:[%s1094_s29 + $0xf0] sm:$0xf] }
  0x17   : > { %245 = vst [vmem:[%s1098_s30 + $0x1c] sm:$0xf] %v244_v7  ;;  %v262_v16 = vld [vmem:[%s1094_s29 + $0x100] sm:$0xf]  ;;  %v264_v17 = vld [vmem:[%s1094_s29 + $0x110] sm:$0xf] }
  0x18   : > { %247 = vst [vmem:[%s1098_s30 + $0x20] sm:$0xf] %v246_v8  ;;  %v266_v18 = vld [vmem:[%s1094_s29 + $0x120] sm:$0xf]  ;;  %v268_v19 = vld [vmem:[%s1094_s29 + $0x130] sm:$0xf] }
  0x19   : > { %249 = vst [vmem:[%s1098_s30 + $0x24] sm:$0xf] %v248_v9  ;;  %v270_v20 = vld [vmem:[%s1094_s29 + $0x140] sm:$0xf]  ;;  %v272_v21 = vld [vmem:[%s1094_s29 + $0x150] sm:$0xf] }
  0x1a   : > { %251 = vst [vmem:[%s1098_s30 + $0x28] sm:$0xf] %v250_v10  ;;  %v274_v22 = vld [vmem:[%s1094_s29 + $0x160] sm:$0xf]  ;;  %v276_v23 = vld [vmem:[%s1094_s29 + $0x170] sm:$0xf] }
  0x1b   : > { %253 = vst [vmem:[%s1098_s30 + $0x2c] sm:$0xf] %v252_v11  ;;  %v278_v24 = vld [vmem:[%s1094_s29 + $0x180] sm:$0xf]  ;;  %v280_v25 = vld [vmem:[%s1094_s29 + $0x190] sm:$0xf] }
  0x1c   : > { %255 = vst [vmem:[%s1098_s30 + $0x30] sm:$0xf] %v254_v12  ;;  %v282_v26 = vld [vmem:[%s1094_s29 + $0x1a0] sm:$0xf]  ;;  %v284_v27 = vld [vmem:[%s1094_s29 + $0x1b0] sm:$0xf] }
  0x1d   : > { %257 = vst [vmem:[%s1098_s30 + $0x34] sm:$0xf] %v256_v13  ;;  %v286_v28 = vld [vmem:[%s1094_s29 + $0x1c0] sm:$0xf]  ;;  %v288_v29 = vld [vmem:[%s1094_s29 + $0x1d0] sm:$0xf] }
  0x1e   : > { %259 = vst [vmem:[%s1098_s30 + $0x38] sm:$0xf] %v258_v14  ;;  %v290_v30 = vld [vmem:[%s1094_s29 + $0x1e0] sm:$0xf]  ;;  %v292_v31 = vld [vmem:[%s1094_s29 + $0x1f0] sm:$0xf] }
  0x1f   : > { %261 = vst [vmem:[%s1098_s30 + $0x3c] sm:$0xf] %v260_v15 }
  0x20   : > { %263 = vst [vmem:[%s1098_s30 + $0x40] sm:$0xf] %v262_v16 }
  0x21   : > { %265 = vst [vmem:[%s1098_s30 + $0x44] sm:$0xf] %v264_v17 }
  0x22   : > { %267 = vst [vmem:[%s1098_s30 + $0x48] sm:$0xf] %v266_v18 }
  0x23   : > { %269 = vst [vmem:[%s1098_s30 + $0x4c] sm:$0xf] %v268_v19 }
  0x24   : > { %271 = vst [vmem:[%s1098_s30 + $0x50] sm:$0xf] %v270_v20 }
  0x25   : > { %273 = vst [vmem:[%s1098_s30 + $0x54] sm:$0xf] %v272_v21 }
  0x26   : > { %275 = vst [vmem:[%s1098_s30 + $0x58] sm:$0xf] %v274_v22 }
  0x27   : > { %277 = vst [vmem:[%s1098_s30 + $0x5c] sm:$0xf] %v276_v23 }
  0x28   : > { %279 = vst [vmem:[%s1098_s30 + $0x60] sm:$0xf] %v278_v24 }
  0x29   : > { %281 = vst [vmem:[%s1098_s30 + $0x64] sm:$0xf] %v280_v25 }
  0x2a   : > { %283 = vst [vmem:[%s1098_s30 + $0x68] sm:$0xf] %v282_v26 }
  0x2b   : > { %285 = vst [vmem:[%s1098_s30 + $0x6c] sm:$0xf] %v284_v27 }
  0x2c   : > { %287 = vst [vmem:[%s1098_s30 + $0x70] sm:$0xf] %v286_v28 }
  0x2d   : > { %289 = vst [vmem:[%s1098_s30 + $0x74] sm:$0xf] %v288_v29 }
  0x2e   : > { %291 = vst [vmem:[%s1098_s30 + $0x78] sm:$0xf] %v290_v30 }
  0x2f   : > { %293 = vst [vmem:[%s1098_s30 + $0x7c] sm:$0xf] %v292_v31 }
  0x30 PF: > { %p861_p6 = scmp.ge.s32.totalorder %s1024_s19, 1  ;;  %p380_p7 = scmp.lt.s32.totalorder %s1024_s19, 5 }
  0x32   : > { %p381_p8 = pnand %p861_p6, %p380_p7 }
  0x33   : > { %s387_s5 = sand.u32 (!%p381_p8), 1, %s1008_s15   ;;  %p451_p9 = scmp.lt.s32.totalorder (!%p381_p8), %s1016_s17, 3 }
  0x34   : > { %384 = sbr.rel (%p381_p8) target bundleno = 233 (0xe9), region = 65  ;;  %s862_s6 = sshll.u32 (!%p381_p8), %s387_s5, 7 }
  0x35   : > { %s1165_s7 = scalar_lea.vmem (!%p381_p8), [#allocation3], %s862_s6 }
  0x39   : > { %v937_v32 = vld [vmem:[%s1165_s7 + $0x38] sm:$0xff]  ;;  %v936_v34 = vld [vmem:[%s1165_s7 + $0x30] sm:$0xff]  ;;  %v935_v36 = vld [vmem:[%s1165_s7 + $0x28] sm:$0xff]  ;;  %s1224_s17 = smov (!%p451_p9, %s1016_s17), 3 }
  0x3a   : > { %v945_v33 = vld [vmem:[%s1165_s7 + $0x78] sm:$0xff]  ;;  %613 = vmatpush.bf16.msra.mxu0 %v937_v32  ;;  %v944_v35 = vld [vmem:[%s1165_s7 + $0x70] sm:$0xff]  ;;  %v943_v37 = vld [vmem:[%s1165_s7 + $0x68] sm:$0xff]  ;;  %s863_s10 = sshll.u32 %s1224_s17, 2  ;;  %s463_s21 = scalar_lea.vmem %s1215_s3, %s1224_s17 }
  0x3b   : > { %626 = vmatpush.bf16.msra.mxu1 %v945_v33  ;;  %v934_v38 = vld [vmem:[%s1165_s7 + $0x20] sm:$0xff]  ;;  %v933_v40 = vld [vmem:[%s1165_s7 + $0x18] sm:$0xff]  ;;  %v932_v42 = vld [vmem:[%s1165_s7 + $0x10] sm:$0xff]  ;;  %s456_s13 = scalar_lea.vmem %s1214_s2, %s863_s10  ;;  %s470_s25 = scalar_lea.vmem %s1216_s4, %s1224_s17 }
  0x3c   : > { %v942_v39 = vld [vmem:[%s1165_s7 + $0x60] sm:$0xff]  ;;  %v941_v41 = vld [vmem:[%s1165_s7 + $0x58] sm:$0xff]  ;;  %v940_v43 = vld [vmem:[%s1165_s7 + $0x50] sm:$0xff] }
  0x3d   : > { %v931_v44 = vld [vmem:[%s1165_s7 + $0x8] sm:$0xff]  ;;  %v477_v46 = vld [vmem:[%s1212_s0] sm:$0xff] }
  0x3e   : > { %614 = vmatpush.bf16.msra.mxu0 %v936_v34  ;;  %v939_v45 = vld [vmem:[%s1165_s7 + $0x48] sm:$0xff]  ;;  %v511_v47 = vunpack.c.l.b16 %v477_v46  ;;  %v512_v48 = vunpack.c.h.b16 %v477_v46  ;;  %v930_v49 = vld [vmem:[%s1165_s7] sm:$0xff] }
  0x3f   : > { %627 = vmatpush.bf16.msra.mxu1 %v944_v35  ;;  %v938_v50 = vld [vmem:[%s1165_s7 + $0x40] sm:$0xff] }
  0x40   : > { %v513_v51 = vpack.c.b16 %v511_v47, %v511_v47  ;;  %v514_v52 = vpack.c.b16 %v512_v48, %v512_v48 }
  0x42   : > { %615 = vmatpush.bf16.msra.mxu0 %v935_v36 }
  0x43   : > { %628 = vmatpush.bf16.msra.mxu1 %v943_v37 }
  0x46   : > { %616 = vmatpush.bf16.msra.mxu0 %v934_v38 }
  0x47   : > { %629 = vmatpush.bf16.msra.mxu1 %v942_v39 }
  0x4a   : > { %617 = vmatpush.bf16.msra.mxu0 %v933_v40 }
  0x4b   : > { %630 = vmatpush.bf16.msra.mxu1 %v941_v41 }
  0x4e   : > { %618 = vmatpush.bf16.msra.mxu0 %v932_v42 }
  0x4f   : > { %631 = vmatpush.bf16.msra.mxu1 %v940_v43 }
  0x52   : > { %619 = vmatpush.bf16.msra.mxu0 %v931_v44 }
  0x53   : > { %632 = vmatpush.bf16.msra.mxu1 %v939_v45 }
  0x56   : > { %620 = vmatpush.bf16.msra.mxu0 %v930_v49 }
  0x57   : > { %633 = vmatpush.bf16.msra.mxu1 %v938_v50 }
  0x59   : > { %621 = vmatmul.bf16.vlgmr.msra.gmra.mxu0 %v513_v51 }
  0x5a   : > { %634 = vmatmul.bf16.vlgmr.msra.gmra.mxu1 %v514_v52 }
  0xd6   : > { %v622_v53 = vpop.f32.mrf.mxu0 }
  0xd7   : > { %v635_v54 = vpop.f32.mrf.mxu1 }
  0xd8   : > { %v636_v55 = vadd.f32 %v635_v54, %v622_v53 }
  0xda   : > { %v645_v56 = vpack.c.bf16 %v636_v55, %v636_v55  ;;  %v647_v57 = vrot.slane %v636_v55, 4  ;;  %v654_v58 = vmul.f32 %v636_v55, %v636_v55 }
  0xdc   : > { %646 = vst [vmem:[%s456_s13] sm:$0xf] %v645_v56  ;;  %v648_v59 = vadd.f32 %v647_v57, %v636_v55  ;;  %v655_v60 = vrot.slane %v654_v58, 4 }
  0xde   : > { %v649_v61 = vrot.slane %v648_v59, 2  ;;  %v656_v62 = vadd.f32 %v655_v60, %v654_v58  ;;  %v624_v63 = vpop.f32.mrf.mxu0 }
  0xdf   : > { %v637_v0 = vpop.f32.mrf.mxu1 }
  0xe0   : > { %v650_v1 = vadd.f32 %v649_v61, %v648_v59  ;;  %v657_v2 = vrot.slane %v656_v62, 2 }
  0xe2   : > { %v651_v3 = vrot.slane %v650_v1, 1  ;;  %v658_v4 = vadd.f32 %v657_v2, %v656_v62 }
  0xe4   : > { %v652_v5 = vadd.f32 %v651_v3, %v650_v1  ;;  %v659_v6 = vrot.slane %v658_v4, 1 }
  0xe6   : > { %653 = vst [vmem:[%s463_s21] sm:$0x1] %v652_v5  ;;  %v660_v7 = vadd.f32 %v659_v6, %v658_v4 }
  0xe8   : > { %661 = vst [vmem:[%s470_s25] sm:$0x1] %v660_v7 }
  0xe9 PF: > { %s15_s19 = sadd.s32 1, %s1024_s19   ;;  %s1217_s15 = smov %s1012_s16 }
  0xea   : > { %p12_p10 = scmp.ge.s32.totalorder %s15_s19, 6   ;;  %s1218_s16 = smov %s1086_s23 }
  0xeb   : > { %s1219_s17 = smov %s1020_s18  ;;  %s1220_s18 = smov %s1222_s20 }
  0xec   :  { %14 = sbr.rel (!%p12_p10) target bundleno = 3 (0x3), region = 139 }

// kernel: resnet_forward.67
= control target key start
LH: loop header
LB: loop body
LE: loop exit
PB: predicated region body
PF: predicated region fallthrough
CT: control target
= control target key end

     0   :  { %s98_s0 = inlined_call_operand.vmem [shape: bf16[8,512], index: 0, kind: input, shape index: {}]   ;;  %s99_s1 = inlined_call_operand.vmem [shape: f32[1,512], index: 1, kind: input, shape index: {}]   ;;  %s100_s2 = inlined_call_operand.vmem [shape: f32[1,512], index: 2, kind: input, shape index: {}]   ;;  %s101_s3 = inlined_call_operand.vmem [shape: bf16[8,512], index: 3, kind: output, shape index: {}]  }
   0x1   :  { %v14_v0 = vld [vmem:[%s98_s0] sm:$0xff]  ;;  %v15_v7 = vld [vmem:[%s98_s0 + $0x8] sm:$0xff] }
   0x2   :  { %v20_v1 = vld [vmem:[%s99_s1] sm:$0xf]  ;;  %v16_v3 = vunpack.c.l.bf16 %v14_v0  ;;  %v17_v4 = vunpack.c.h.bf16 %v14_v0  ;;  %v18_v10 = vunpack.c.l.bf16 %v15_v7  ;;  %v19_v11 = vunpack.c.h.bf16 %v15_v7 }
   0x3   :  { %v34_v2 = vld [vmem:[%s100_s2] sm:$0xf]  ;;  %v22_v5 = vperm.slane %v20_v1, 0  ;;  %v23_v6 = vperm.slane %v20_v1, 1  ;;  %v24_v14 = vperm.slane %v20_v1, 2  ;;  %v25_v15 = vperm.slane %v20_v1, 3 }
   0x4   :  { %v36_v8 = vperm.slane %v34_v2, 0  ;;  %v37_v9 = vperm.slane %v34_v2, 1  ;;  %v38_v16 = vperm.slane %v34_v2, 2  ;;  %v39_v17 = vperm.slane %v34_v2, 3 }
   0x5   :  { %v30_v12 = vmul.f32 %v22_v5, %v16_v3  ;;  %v31_v13 = vmul.f32 %v23_v6, %v17_v4  ;;  %v32_v20 = vmul.f32 %v24_v14, %v18_v10  ;;  %v33_v21 = vmul.f32 %v25_v15, %v19_v11 }
   0x7   :  { %v44_v18 = vadd.f32 %v36_v8, %v30_v12  ;;  %v45_v19 = vadd.f32 %v37_v9, %v31_v13  ;;  %v46_v24 = vadd.f32 %v38_v16, %v32_v20  ;;  %v47_v25 = vadd.f32 %v39_v17, %v33_v21 }
   0x9   :  { %v48_v22 = vmax.f32 %v44_v18, 0.0  ;;  %v49_v23 = vmax.f32 %v45_v19, 0.0  ;;  %v50_v27 = vmax.f32 %v46_v24, 0.0  ;;  %v51_v28 = vmax.f32 %v47_v25, 0.0 }
   0xb   :  { %v52_v26 = vpack.c.bf16 %v49_v23, %v48_v22  ;;  %v53_v29 = vpack.c.bf16 %v51_v28, %v50_v27 }
   0xd   :  { %54 = vst [vmem:[%s101_s3] sm:$0xff] %v52_v26 }
   0xe   :  { %55 = vst [vmem:[%s101_s3 + $0x8] sm:$0xff] %v53_v29 }

// kernel: resnet_forward.65
= control target key start
LH: loop header
LB: loop body
LE: loop exit
PB: predicated region body
PF: predicated region fallthrough
CT: control target
= control target key end

     0   :  { %s1275_s15 = smov 0   ;;  %s1277_s16 = smov 0   ;;  %s1524_s0 = inlined_call_operand.vmem [shape: bf16[8,2304], index: 0, kind: input, shape index: {}]   ;;  %s1525_s1 = inlined_call_operand.vmem [shape: bf16[2304,512], index: 1, kind: input, shape index: {}]   ;;  %s1526_s2 = inlined_call_operand.vmem [shape: bf16[8,512], index: 2, kind: output, shape index: {0}]   ;;  %s1527_s3 = inlined_call_operand.vmem [shape: f32[1,1,512], index: 3, kind: output, shape index: {1}]   ;;  %s1528_s4 = inlined_call_operand.vmem [shape: f32[1,1,512], index: 4, kind: output, shape index: {2}]  }
   0x1   :  { %s1279_s17 = smov 0   ;;  %s1281_s18 = smov 0  }
   0x2   :  { %s1283_s19 = smov 0   ;;  %s1285_s20 = smov 0  }
   0x3   :  { %s1287_s21 = smov 0  }
   0x4 LB: > { %s27_s22 = sadd.s32 1, %s1239_s19  ;;  %s30_s23 = sadd.s32 1, %s1243_s20  ;;  %s1247_s21 = sphi %s1287_s21, %s15_s21   ;;  %s1243_s20 = sphi %s1285_s20, %s1534_s20   ;;  %s1239_s19 = sphi %s1283_s19, %s1533_s19   ;;  %s1235_s18 = sphi %s1281_s18, %s1532_s18   ;;  %s1231_s17 = sphi %s1279_s17, %s1531_s17   ;;  %s1227_s16 = sphi %s1277_s16, %s1530_s16   ;;  %s1223_s15 = sphi %s1275_s15, %s1529_s15  }
   0x5   : > { %p28_p0 = scmp.ge.s32.totalorder %s27_s22, 6  ;;  %p78_p1 = scmp.ne.s32.totalorder %s1227_s16, %s1223_s15 }
   0x6   : > { %p79_p2 = scmp.eq.s32.totalorder %s1247_s21, 0  ;;  %s71_s27 = sadd.s32 1, %s1227_s16 }
   0x7   : > { %s1536_s22 = smov (%p28_p0, %s27_s22), 0  ;;  %s1538_s23 = smov (!%p28_p0, %s30_s23), %s1243_s20 }
   0x8   : > { %p80_p3 = por %p79_p2, %p78_p1  ;;  %p32_p4 = scmp.ge.s32.totalorder %s1538_s23, 4 }
   0x9   : > { %s66_s24 = ssub.s32 %s1239_s19, %s1536_s22  ;;  %p1003_p6 = scmp.ge.s32.totalorder %s1247_s21, 24 }
   0xa   : > { %s1540_s23 = smov (%p32_p4, %s1538_s23), 0 }
   0xb   : > { %s67_s25 = ssub.s32 %s1243_s20, %s1540_s23  ;;  %188 = sbr.rel (%p1003_p6) target bundleno = 71 (0x47), region = 16 }
   0xc   : > { %s68_s26 = sor.u32 %s67_s25, %s66_s24 }
   0xd   : > { %p69_p5 = scmp.eq.s32.totalorder %s68_s26, 0 }
   0xf   : > { %s1326_s28 = scalar_select %p69_p5, %s1227_s16, %s71_s27  }
  0x10   : > { %204 = sbr.rel (!%p80_p3) target bundleno = 71 (0x47), region = 24  ;;  %s206_s29 = sand.u32 (%p80_p3), 1, %s1227_s16  }
  0x11   : > { %s1109_s30 = smul.u32 (%p80_p3), 192, %s1239_s19 }
  0x12   : > { %s1134_s5 = smul.u32 (%p80_p3), 192, %s206_s29 }
  0x13   : > { %s211_s6 = sadd.s32 (%p80_p3), %s1243_s20, %s1109_s30 }
  0x14   : > { %s1005_s7 = sshll.u32 (%p80_p3), %s211_s6, 2  ;;  %s1340_s11 = scalar_lea.vmem (%p80_p3), [#allocation3], %s1134_s5 }
  0x15   : > { %s1335_s10 = scalar_lea.vmem %s1525_s1, %s1005_s7 }
  0x16   : > { %v230_v0 = vld [vmem:[%s1335_s10] sm:$0xf]  ;;  %v232_v1 = vld [vmem:[%s1335_s10 + $0x10] sm:$0xf] }
  0x17   : > { %v234_v2 = vld [vmem:[%s1335_s10 + $0x20] sm:$0xf]  ;;  %231 = vst [vmem:[%s1340_s11] sm:$0xf] %v230_v0  ;;  %v236_v3 = vld [vmem:[%s1335_s10 + $0x30] sm:$0xf] }
  0x18   : > { %233 = vst [vmem:[%s1340_s11 + $0x4] sm:$0xf] %v232_v1  ;;  %v238_v4 = vld [vmem:[%s1335_s10 + $0x40] sm:$0xf]  ;;  %v240_v5 = vld [vmem:[%s1335_s10 + $0x50] sm:$0xf] }
  0x19   : > { %235 = vst [vmem:[%s1340_s11 + $0x8] sm:$0xf] %v234_v2  ;;  %v242_v6 = vld [vmem:[%s1335_s10 + $0x60] sm:$0xf]  ;;  %v244_v7 = vld [vmem:[%s1335_s10 + $0x70] sm:$0xf] }
  0x1a   : > { %237 = vst [vmem:[%s1340_s11 + $0xc] sm:$0xf] %v236_v3  ;;  %v246_v8 = vld [vmem:[%s1335_s10 + $0x80] sm:$0xf]  ;;  %v248_v9 = vld [vmem:[%s1335_s10 + $0x90] sm:$0xf] }
  0x1b   : > { %239 = vst [vmem:[%s1340_s11 + $0x10] sm:$0xf] %v238_v4  ;;  %v250_v10 = vld [vmem:[%s1335_s10 + $0xa0] sm:$0xf]  ;;  %v252_v11 = vld [vmem:[%s1335_s10 + $0xb0] sm:$0xf] }
  0x1c   : > { %241 = vst [vmem:[%s1340_s11 + $0x14] sm:$0xf] %v240_v5  ;;  %v254_v12 = vld [vmem:[%s1335_s10 + $0xc0] sm:$0xf]  ;;  %v256_v13 = vld [vmem:[%s1335_s10 + $0xd0] sm:$0xf] }
  0x1d   : > { %243 = vst [vmem:[%s1340_s11 + $0x18] sm:$0xf] %v242_v6  ;;  %v258_v14 = vld [vmem:[%s1335_s10 + $0xe0] sm:$0xf]  ;;  %v260_v15 = vld [vmem:[%s1335_s10 + $0xf0] sm:$0xf] }
  0x1e   : > { %245 = vst [vmem:[%s1340_s11 + $0x1c] sm:$0xf] %v244_v7  ;;  %v262_v16 = vld [vmem:[%s1335_s10 + $0x100] sm:$0xf]  ;;  %v264_v17 = vld [vmem:[%s1335_s10 + $0x110] sm:$0xf] }
  0x1f   : > { %247 = vst [vmem:[%s1340_s11 + $0x20] sm:$0xf] %v246_v8  ;;  %v266_v18 = vld [vmem:[%s1335_s10 + $0x120] sm:$0xf]  ;;  %v268_v19 = vld [vmem:[%s1335_s10 + $0x130] sm:$0xf] }
  0x20   : > { %249 = vst [vmem:[%s1340_s11 + $0x24] sm:$0xf] %v248_v9  ;;  %v270_v20 = vld [vmem:[%s1335_s10 + $0x140] sm:$0xf]  ;;  %v272_v21 = vld [vmem:[%s1335_s10 + $0x150] sm:$0xf] }
  0x21   : > { %251 = vst [vmem:[%s1340_s11 + $0x28] sm:$0xf] %v250_v10  ;;  %v274_v22 = vld [vmem:[%s1335_s10 + $0x160] sm:$0xf]  ;;  %v276_v23 = vld [vmem:[%s1335_s10 + $0x170] sm:$0xf] }
  0x22   : > { %253 = vst [vmem:[%s1340_s11 + $0x2c] sm:$0xf] %v252_v11  ;;  %v278_v24 = vld [vmem:[%s1335_s10 + $0x180] sm:$0xf]  ;;  %v280_v25 = vld [vmem:[%s1335_s10 + $0x190] sm:$0xf] }
  0x23   : > { %255 = vst [vmem:[%s1340_s11 + $0x30] sm:$0xf] %v254_v12  ;;  %v282_v26 = vld [vmem:[%s1335_s10 + $0x1a0] sm:$0xf]  ;;  %v284_v27 = vld [vmem:[%s1335_s10 + $0x1b0] sm:$0xf] }
  0x24   : > { %257 = vst [vmem:[%s1340_s11 + $0x34] sm:$0xf] %v256_v13  ;;  %v286_v28 = vld [vmem:[%s1335_s10 + $0x1c0] sm:$0xf]  ;;  %v288_v29 = vld [vmem:[%s1335_s10 + $0x1d0] sm:$0xf] }
  0x25   : > { %259 = vst [vmem:[%s1340_s11 + $0x38] sm:$0xf] %v258_v14  ;;  %v290_v30 = vld [vmem:[%s1335_s10 + $0x1e0] sm:$0xf]  ;;  %v292_v31 = vld [vmem:[%s1335_s10 + $0x1f0] sm:$0xf] }
  0x26   : > { %261 = vst [vmem:[%s1340_s11 + $0x3c] sm:$0xf] %v260_v15  ;;  %v294_v32 = vld [vmem:[%s1335_s10 + $0x200] sm:$0xf]  ;;  %v296_v33 = vld [vmem:[%s1335_s10 + $0x210] sm:$0xf] }
  0x27   : > { %263 = vst [vmem:[%s1340_s11 + $0x40] sm:$0xf] %v262_v16  ;;  %v298_v34 = vld [vmem:[%s1335_s10 + $0x220] sm:$0xf]  ;;  %v300_v35 = vld [vmem:[%s1335_s10 + $0x230] sm:$0xf] }
  0x28   : > { %265 = vst [vmem:[%s1340_s11 + $0x44] sm:$0xf] %v264_v17  ;;  %v302_v36 = vld [vmem:[%s1335_s10 + $0x240] sm:$0xf]  ;;  %v304_v37 = vld [vmem:[%s1335_s10 + $0x250] sm:$0xf] }
  0x29   : > { %267 = vst [vmem:[%s1340_s11 + $0x48] sm:$0xf] %v266_v18  ;;  %v306_v38 = vld [vmem:[%s1335_s10 + $0x260] sm:$0xf]  ;;  %v308_v39 = vld [vmem:[%s1335_s10 + $0x270] sm:$0xf] }
  0x2a   : > { %269 = vst [vmem:[%s1340_s11 + $0x4c] sm:$0xf] %v268_v19  ;;  %v310_v40 = vld [vmem:[%s1335_s10 + $0x280] sm:$0xf]  ;;  %v312_v41 = vld [vmem:[%s1335_s10 + $0x290] sm:$0xf] }
  0x2b   : > { %271 = vst [vmem:[%s1340_s11 + $0x50] sm:$0xf] %v270_v20  ;;  %v314_v42 = vld [vmem:[%s1335_s10 + $0x2a0] sm:$0xf]  ;;  %v316_v43 = vld [vmem:[%s1335_s10 + $0x2b0] sm:$0xf] }
  0x2c   : > { %273 = vst [vmem:[%s1340_s11 + $0x54] sm:$0xf] %v272_v21  ;;  %v318_v44 = vld [vmem:[%s1335_s10 + $0x2c0] sm:$0xf]  ;;  %v320_v45 = vld [vmem:[%s1335_s10 + $0x2d0] sm:$0xf] }
  0x2d   : > { %275 = vst [vmem:[%s1340_s11 + $0x58] sm:$0xf] %v274_v22  ;;  %v322_v46 = vld [vmem:[%s1335_s10 + $0x2e0] sm:$0xf]  ;;  %v324_v47 = vld [vmem:[%s1335_s10 + $0x2f0] sm:$0xf] }
  0x2e   : > { %277 = vst [vmem:[%s1340_s11 + $0x5c] sm:$0xf] %v276_v23 }
  0x2f   : > { %279 = vst [vmem:[%s1340_s11 + $0x60] sm:$0xf] %v278_v24 }
  0x30   : > { %281 = vst [vmem:[%s1340_s11 + $0x64] sm:$0xf] %v280_v25 }
  0x31   : > { %283 = vst [vmem:[%s1340_s11 + $0x68] sm:$0xf] %v282_v26 }
  0x32   : > { %285 = vst [vmem:[%s1340_s11 + $0x6c] sm:$0xf] %v284_v27 }
  0x33   : > { %287 = vst [vmem:[%s1340_s11 + $0x70] sm:$0xf] %v286_v28 }
  0x34   : > { %289 = vst [vmem:[%s1340_s11 + $0x74] sm:$0xf] %v288_v29 }
  0x35   : > { %291 = vst [vmem:[%s1340_s11 + $0x78] sm:$0xf] %v290_v30 }
  0x36   : > { %293 = vst [vmem:[%s1340_s11 + $0x7c] sm:$0xf] %v292_v31 }
  0x37   : > { %295 = vst [vmem:[%s1340_s11 + $0x80] sm:$0xf] %v294_v32 }
  0x38   : > { %297 = vst [vmem:[%s1340_s11 + $0x84] sm:$0xf] %v296_v33 }
  0x39   : > { %299 = vst [vmem:[%s1340_s11 + $0x88] sm:$0xf] %v298_v34 }
  0x3a   : > { %301 = vst [vmem:[%s1340_s11 + $0x8c] sm:$0xf] %v300_v35 }
  0x3b   : > { %303 = vst [vmem:[%s1340_s11 + $0x90] sm:$0xf] %v302_v36 }
  0x3c   : > { %305 = vst [vmem:[%s1340_s11 + $0x94] sm:$0xf] %v304_v37 }
  0x3d   : > { %307 = vst [vmem:[%s1340_s11 + $0x98] sm:$0xf] %v306_v38 }
  0x3e   : > { %309 = vst [vmem:[%s1340_s11 + $0x9c] sm:$0xf] %v308_v39 }
  0x3f   : > { %311 = vst [vmem:[%s1340_s11 + $0xa0] sm:$0xf] %v310_v40 }
  0x40   : > { %313 = vst [vmem:[%s1340_s11 + $0xa4] sm:$0xf] %v312_v41 }
  0x41   : > { %315 = vst [vmem:[%s1340_s11 + $0xa8] sm:$0xf] %v314_v42 }
  0x42   : > { %317 = vst [vmem:[%s1340_s11 + $0xac] sm:$0xf] %v316_v43 }
  0x43   : > { %319 = vst [vmem:[%s1340_s11 + $0xb0] sm:$0xf] %v318_v44 }
  0x44   : > { %321 = vst [vmem:[%s1340_s11 + $0xb4] sm:$0xf] %v320_v45 }
  0x45   : > { %323 = vst [vmem:[%s1340_s11 + $0xb8] sm:$0xf] %v322_v46 }
  0x46   : > { %325 = vst [vmem:[%s1340_s11 + $0xbc] sm:$0xf] %v324_v47 }
  0x47 PF: > { %p1006_p7 = scmp.ge.s32.totalorder %s1247_s21, 1  ;;  %p444_p8 = scmp.lt.s32.totalorder %s1247_s21, 25 }
  0x49   : > { %p445_p9 = pnand %p1006_p7, %p444_p8 }
  0x4a   : > { %s451_s12 = sand.u32 (!%p445_p9), 1, %s1223_s15   ;;  %s502_s13 = smul.u32 (!%p445_p9), 3, %s1231_s17 }
  0x4b   : > { %448 = sbr.rel (%p445_p9) target bundleno = 284 (0x11c), region = 65  ;;  %p515_p10 = scmp.lt.s32.totalorder (!%p445_p9), %s1235_s18, 3 }
  0x4c   : > { %s1135_s14 = smul.u32 (!%p445_p9), 192, %s451_s12  ;;  %p505_p11 = scmp.lt.s32.totalorder (!%p445_p9), %s502_s13, 17 }
  0x4d   : > { %p1009_p12 = scmp.ne.s32.totalorder (!%p445_p9), %s1231_s17, 0 }
  0x4e   : > { %s1462_s12 = scalar_lea.vmem (!%p445_p9), [#allocation3], %s1135_s14 }
  0x50   : > { %s1542_s13 = smov (!%p505_p11, %s502_s13), 17  ;;  %s1544_s18 = smov (!%p515_p10, %s1235_s18), 3 }
  0x51   : > { %s1007_s24 = sshll.u32 %s1542_s13, 2  ;;  %s1008_s29 = sshll.u32 %s1544_s18, 2 }
  0x52   : > { %s1446_s27 = scalar_lea.vmem %s1524_s0, %s1007_s24  ;;  %s1452_s15 = scalar_lea.vmem %s1526_s2, %s1008_s29 }
  0x53   : > { %s527_s8 = scalar_lea.vmem %s1527_s3, %s1544_s18  ;;  %s534_s11 = scalar_lea.vmem %s1528_s4, %s1544_s18 }
  0x54   : > { %538 = sbr.rel (%p1009_p12) target bundleno = 91 (0x5b), region = 73 }
  0x59   : > { %v1249_v48 = vmov 0.0  }
  0x5a   : > { %539 = vst [vmem:[#allocation2] sm:$0xff] %v1249_v48 }
  0x5b PF: > { %v1117_v49 = vld [vmem:[%s1462_s12 + $0x38] sm:$0xff]  ;;  %v1116_v52 = vld [vmem:[%s1462_s12 + $0x30] sm:$0xff]  ;;  %v1115_v55 = vld [vmem:[%s1462_s12 + $0x28] sm:$0xff]  ;;  %p1106_p13 = scmp.ne.s32.totalorder %s1231_s17, 5 }
  0x5c   : > { %v1125_v50 = vld [vmem:[%s1462_s12 + $0x78] sm:$0xff]  ;;  %746 = vmatpush.bf16.msra.mxu0 %v1117_v49  ;;  %v1124_v53 = vld [vmem:[%s1462_s12 + $0x70] sm:$0xff]  ;;  %v1123_v56 = vld [vmem:[%s1462_s12 + $0x68] sm:$0xff] }
  0x5d   : > { %v1133_v51 = vld [vmem:[%s1462_s12 + $0xb8] sm:$0xff]  ;;  %759 = vmatpush.bf16.msra.mxu1 %v1125_v50  ;;  %v1132_v54 = vld [vmem:[%s1462_s12 + $0xb0] sm:$0xff]  ;;  %v1131_v57 = vld [vmem:[%s1462_s12 + $0xa8] sm:$0xff] }
  0x5e   : > { %772 = vmatpush.bf16.msra.mxu2 %v1133_v51  ;;  %v1114_v58 = vld [vmem:[%s1462_s12 + $0x20] sm:$0xff]  ;;  %v1113_v61 = vld [vmem:[%s1462_s12 + $0x18] sm:$0xff]  ;;  %v1112_v0 = vld [vmem:[%s1462_s12 + $0x10] sm:$0xff] }
  0x5f   : > { %v1122_v59 = vld [vmem:[%s1462_s12 + $0x60] sm:$0xff]  ;;  %v1121_v62 = vld [vmem:[%s1462_s12 + $0x58] sm:$0xff]  ;;  %v1120_v1 = vld [vmem:[%s1462_s12 + $0x50] sm:$0xff] }
  0x60   : > { %747 = vmatpush.bf16.msra.mxu0 %v1116_v52  ;;  %v1130_v60 = vld [vmem:[%s1462_s12 + $0xa0] sm:$0xff]  ;;  %v1129_v63 = vld [vmem:[%s1462_s12 + $0x98] sm:$0xff]  ;;  %v1128_v2 = vld [vmem:[%s1462_s12 + $0x90] sm:$0xff] }
  0x61   : > { %760 = vmatpush.bf16.msra.mxu1 %v1124_v53  ;;  %v1111_v3 = vld [vmem:[%s1462_s12 + $0x8] sm:$0xff]  ;;  %v541_v5 = vld [vmem:[%s1446_s27] sm:$0xff]  ;;  %v542_v7 = vld [vmem:[%s1446_s27 + $0x8] sm:$0xf] }
  0x62   : > { %773 = vmatpush.bf16.msra.mxu2 %v1132_v54  ;;  %v1119_v4 = vld [vmem:[%s1462_s12 + $0x48] sm:$0xff]  ;;  %v593_v8 = vunpack.c.l.b16 %v541_v5  ;;  %v594_v9 = vunpack.c.h.b16 %v541_v5  ;;  %v1110_v10 = vld [vmem:[%s1462_s12] sm:$0xff]  ;;  %v595_v12 = vunpack.c.l.b16 %v542_v7  ;;  %v540_v20 = vld [vmem:[#allocation2] sm:$0xff] }
  0x63   : > { %v1127_v6 = vld [vmem:[%s1462_s12 + $0x88] sm:$0xff]  ;;  %v1118_v11 = vld [vmem:[%s1462_s12 + $0x40] sm:$0xff] }
  0x64   : > { %748 = vmatpush.bf16.msra.mxu0 %v1115_v55  ;;  %v1126_v13 = vld [vmem:[%s1462_s12 + $0x80] sm:$0xff]  ;;  %v596_v14 = vpack.c.b16 %v593_v8, %v593_v8  ;;  %v597_v15 = vpack.c.b16 %v594_v9, %v594_v9  ;;  %v598_v16 = vpack.c.b16 %v595_v12, %v595_v12 }
  0x65   : > { %761 = vmatpush.bf16.msra.mxu1 %v1123_v56 }
  0x66   : > { %774 = vmatpush.bf16.msra.mxu2 %v1131_v57 }
  0x68   : > { %749 = vmatpush.bf16.msra.mxu0 %v1114_v58 }
  0x69   : > { %762 = vmatpush.bf16.msra.mxu1 %v1122_v59 }
  0x6a   : > { %775 = vmatpush.bf16.msra.mxu2 %v1130_v60 }
  0x6c   : > { %750 = vmatpush.bf16.msra.mxu0 %v1113_v61 }
  0x6d   : > { %763 = vmatpush.bf16.msra.mxu1 %v1121_v62 }
  0x6e   : > { %776 = vmatpush.bf16.msra.mxu2 %v1129_v63 }
  0x70   : > { %751 = vmatpush.bf16.msra.mxu0 %v1112_v0 }
  0x71   : > { %764 = vmatpush.bf16.msra.mxu1 %v1120_v1 }
  0x72   : > { %777 = vmatpush.bf16.msra.mxu2 %v1128_v2 }
  0x74   : > { %752 = vmatpush.bf16.msra.mxu0 %v1111_v3 }
  0x75   : > { %765 = vmatpush.bf16.msra.mxu1 %v1119_v4 }
  0x76   : > { %778 = vmatpush.bf16.msra.mxu2 %v1127_v6 }
  0x78   : > { %753 = vmatpush.bf16.msra.mxu0 %v1110_v10 }
  0x79   : > { %766 = vmatpush.bf16.msra.mxu1 %v1118_v11 }
  0x7a   : > { %779 = vmatpush.bf16.msra.mxu2 %v1126_v13 }
  0x7b   : > { %754 = vmatmul.bf16.vlgmr.msra.gmra.mxu0 %v596_v14 }
  0x7c   : > { %767 = vmatmul.bf16.vlgmr.msra.gmra.mxu1 %v597_v15 }
  0x7d   : > { %780 = vmatmul.bf16.vlgmr.msra.gmra.mxu2 %v598_v16 }
  0xf8   : > { %v755_v17 = vpop.f32.mrf.mxu0 }
  0xf9   : > { %v768_v18 = vpop.f32.mrf.mxu1 }
  0xfa   : > { %v769_v19 = vadd.f32 %v768_v18, %v755_v17 }
 0x100   : > { %v781_v21 = vpop.f32.mrf.mxu2  ;;  %v757_v23 = vpop.f32.mrf.mxu0 }
 0x101   : > { %v782_v22 = vadd.f32 %v781_v21, %v769_v19  ;;  %v770_v24 = vpop.f32.mrf.mxu1 }
 0x103   : > { %v785_v25 = vadd.f32 %v782_v22, %v540_v20 }
 0x104   : > { %790 = sbr.rel (%p1106_p13) target bundleno = 284 (0x11c), region = 77 }
 0x105   : > { %786 = vst [vmem:[#allocation2] sm:$0xff] %v785_v25 }
 0x108   : > { %v783_v26 = vpop.f32.mrf.mxu2 }
 0x10c   : > { %v791_v27 = vld [vmem:[#allocation2] sm:$0xff] }
 0x10d   : > { %v792_v28 = vpack.c.bf16 %v791_v27, %v791_v27  ;;  %v794_v29 = vrot.slane %v791_v27, 4  ;;  %v801_v30 = vmul.f32 %v791_v27, %v791_v27 }
 0x10f   : > { %793 = vst [vmem:[%s1452_s15] sm:$0xf] %v792_v28  ;;  %v795_v31 = vadd.f32 %v794_v29, %v791_v27  ;;  %v802_v32 = vrot.slane %v801_v30, 4 }
 0x111   : > { %v796_v33 = vrot.slane %v795_v31, 2  ;;  %v803_v34 = vadd.f32 %v802_v32, %v801_v30 }
 0x113   : > { %v797_v35 = vadd.f32 %v796_v33, %v795_v31  ;;  %v804_v36 = vrot.slane %v803_v34, 2 }
 0x115   : > { %v798_v37 = vrot.slane %v797_v35, 1  ;;  %v805_v38 = vadd.f32 %v804_v36, %v803_v34 }
 0x117   : > { %v799_v39 = vadd.f32 %v798_v37, %v797_v35  ;;  %v806_v40 = vrot.slane %v805_v38, 1 }
 0x119   : > { %800 = vst [vmem:[%s527_s8] sm:$0x1] %v799_v39  ;;  %v807_v41 = vadd.f32 %v806_v40, %v805_v38 }
 0x11b   : > { %808 = vst [vmem:[%s534_s11] sm:$0x1] %v807_v41 }
 0x11c PF: > { %s15_s21 = sadd.s32 1, %s1247_s21   ;;  %s1529_s15 = smov %s1227_s16 }
 0x11d   : > { %p12_p0 = scmp.ge.s32.totalorder %s15_s21, 26   ;;  %s1530_s16 = smov %s1326_s28 }
 0x11e   : > { %s1531_s17 = smov %s1239_s19  ;;  %s1532_s18 = smov %s1243_s20 }
 0x11f   : > { %s1533_s19 = smov %s1536_s22  ;;  %s1534_s20 = smov %s1540_s23 }
 0x120   :  { %14 = sbr.rel (!%p12_p0) target bundleno = 4 (0x4), region = 139 }

// kernel: resnet_forward.73
= control target key start
LH: loop header
LB: loop body
LE: loop exit
PB: predicated region body
PF: predicated region fallthrough
CT: control target
= control target key end

     0   :  { %s122_s0 = inlined_call_operand.vmem [shape: bf16[8,512], index: 0, kind: input, shape index: {}]   ;;  %s123_s1 = inlined_call_operand.vmem [shape: f32[1,512], index: 1, kind: input, shape index: {}]   ;;  %s124_s2 = inlined_call_operand.vmem [shape: f32[1,512], index: 2, kind: input, shape index: {}]   ;;  %s125_s3 = inlined_call_operand.vmem [shape: bf16[8,512], index: 3, kind: input, shape index: {}]   ;;  %s126_s4 = inlined_call_operand.vmem [shape: bf16[8,512], index: 4, kind: output, shape index: {}]  }
   0x1   :  { %v17_v0 = vld [vmem:[%s122_s0] sm:$0xff]  ;;  %v18_v8 = vld [vmem:[%s122_s0 + $0x8] sm:$0xff] }
   0x2   :  { %v23_v1 = vld [vmem:[%s123_s1] sm:$0xf]  ;;  %v19_v3 = vunpack.c.l.bf16 %v17_v0  ;;  %v20_v4 = vunpack.c.h.bf16 %v17_v0  ;;  %v21_v15 = vunpack.c.l.bf16 %v18_v8  ;;  %v22_v16 = vunpack.c.h.bf16 %v18_v8  ;;  %v52_v17 = vld [vmem:[%s125_s3 + $0x8] sm:$0xff] }
   0x3   :  { %v37_v2 = vld [vmem:[%s124_s2] sm:$0xf]  ;;  %v25_v5 = vperm.slane %v23_v1, 0  ;;  %v26_v6 = vperm.slane %v23_v1, 1  ;;  %v27_v18 = vperm.slane %v23_v1, 2  ;;  %v28_v19 = vperm.slane %v23_v1, 3 }
   0x4   :  { %v51_v7 = vld [vmem:[%s125_s3] sm:$0xff]  ;;  %v39_v9 = vperm.slane %v37_v2, 0  ;;  %v40_v10 = vperm.slane %v37_v2, 1  ;;  %v41_v20 = vperm.slane %v37_v2, 2  ;;  %v42_v21 = vperm.slane %v37_v2, 3 }
   0x5   :  { %v53_v11 = vunpack.c.l.bf16 %v51_v7  ;;  %v54_v12 = vunpack.c.h.bf16 %v51_v7  ;;  %v33_v13 = vmul.f32 %v25_v5, %v19_v3  ;;  %v34_v14 = vmul.f32 %v26_v6, %v20_v4 }
   0x6   :  { %v35_v24 = vmul.f32 %v27_v18, %v21_v15  ;;  %v36_v25 = vmul.f32 %v28_v19, %v22_v16  ;;  %v55_v26 = vunpack.c.l.bf16 %v52_v17  ;;  %v56_v27 = vunpack.c.h.bf16 %v52_v17 }
   0x7   :  { %v47_v22 = vadd.f32 %v39_v9, %v33_v13  ;;  %v48_v23 = vadd.f32 %v40_v10, %v34_v14 }
   0x8   :  { %v49_v30 = vadd.f32 %v41_v20, %v35_v24  ;;  %v50_v31 = vadd.f32 %v42_v21, %v36_v25 }
   0x9   :  { %v57_v28 = vadd.f32 %v53_v11, %v47_v22  ;;  %v58_v29 = vadd.f32 %v54_v12, %v48_v23 }
   0xa   :  { %v59_v34 = vadd.f32 %v55_v26, %v49_v30  ;;  %v60_v35 = vadd.f32 %v56_v27, %v50_v31 }
   0xb   :  { %v61_v32 = vmax.f32 %v57_v28, 0.0  ;;  %v62_v33 = vmax.f32 %v58_v29, 0.0 }
   0xc   :  { %v63_v37 = vmax.f32 %v59_v34, 0.0  ;;  %v64_v38 = vmax.f32 %v60_v35, 0.0 }
   0xd   :  { %v65_v36 = vpack.c.bf16 %v62_v33, %v61_v32 }
   0xe   :  { %v66_v39 = vpack.c.bf16 %v64_v38, %v63_v37 }
   0xf   :  { %67 = vst [vmem:[%s126_s4] sm:$0xff] %v65_v36 }
  0x10   :  { %68 = vst [vmem:[%s126_s4 + $0x8] sm:$0xff] %v66_v39 }

// kernel: resnet_forward.74
= control target key start
LH: loop header
LB: loop body
LE: loop exit
PB: predicated region body
PF: predicated region fallthrough
CT: control target
= control target key end

     0   :  { %vm47_vm0 = vcmask 1043456   ;;  %vm118_vm1 = vcmask 1041408   ;;  %vm120_vm2 = vcmask 1045508   ;;  %vm131_vm3 = vcmask 1041409   ;;  %s181_s0 = inlined_call_operand.vmem [shape: bf16[2,4,512], index: 0, kind: input, shape index: {}]   ;;  %s182_s1 = inlined_call_operand.vmem [shape: f32[2,512], index: 1, kind: output, shape index: {}]  }
   0x1   :  { %v14_v0 = vld [vmem:[%s181_s0] sm:$0xff]  ;;  %v15_v1 = vld [vmem:[%s181_s0 + $0x8] sm:$0xff]  ;;  %vm133_vm4 = vcmask 1043459   ;;  %vm135_vm5 = vcmask 1045509   ;;  %vm137_vm6 = vcmask 1047559  }
   0x2   :  { %v16_v2 = vunpack.c.l.bf16 %v14_v0  ;;  %v17_v3 = vunpack.c.h.bf16 %v14_v0  ;;  %v18_v4 = vunpack.c.l.bf16 %v15_v1  ;;  %v19_v5 = vunpack.c.h.bf16 %v15_v1 }
   0x4   :  { %24 = vst [vmem:[#allocation1] ss:$2 sm:$0xff] %v16_v2 }
   0x5   :  { %26 = vst [vmem:[#allocation1 + $0x10] ss:$2 sm:$0xff] %v17_v3 }
   0x6   :  { %32 = vst [vmem:[#allocation1 + $0x20] ss:$2 sm:$0xff] %v18_v4 }
   0x7   :  { %34 = vst [vmem:[#allocation1 + $0x30] ss:$2 sm:$0xff] %v19_v5 }
   0xb   :  { %v27_v6 = vld.sshfl [vmem:[#allocation1] sm:$0xff pattern:$0x75316420]  ;;  %v28_v7 = vld.sshfl [vmem:[#allocation1 + $0x8] sm:$0xff pattern:$0x75316420] }
   0xc   :  { %v29_v8 = vld.sshfl [vmem:[#allocation1 + $0x10] sm:$0xff pattern:$0x75316420]  ;;  %v30_v9 = vld.sshfl [vmem:[#allocation1 + $0x18] sm:$0xff pattern:$0x75316420] }
   0xd   :  { %v35_v10 = vld.sshfl [vmem:[#allocation1 + $0x20] sm:$0xff pattern:$0x75316420]  ;;  %v36_v11 = vld.sshfl [vmem:[#allocation1 + $0x28] sm:$0xff pattern:$0x75316420] }
   0xe   :  { %v37_v12 = vld.sshfl [vmem:[#allocation1 + $0x30] sm:$0xff pattern:$0x75316420]  ;;  %v38_v13 = vld.sshfl [vmem:[#allocation1 + $0x38] sm:$0xff pattern:$0x75316420] }
   0xf   :  { %v48_v14 = vsel %vm47_vm0, %v27_v6, 0.0  ;;  %v55_v15 = vsel %vm47_vm0, %v28_v7, 0.0  ;;  %v62_v16 = vsel %vm47_vm0, %v29_v8, 0.0  ;;  %v69_v17 = vsel %vm47_vm0, %v30_v9, 0.0 }
  0x10   :  { %v49_v18 = vrot.slane %v48_v14, 4  ;;  %v56_v19 = vrot.slane %v55_v15, 4  ;;  %v63_v20 = vrot.slane %v62_v16, 4  ;;  %v70_v21 = vrot.slane %v69_v17, 4 }
  0x11   :  { %v76_v22 = vsel %vm47_vm0, %v35_v10, 0.0  ;;  %v83_v23 = vsel %vm47_vm0, %v36_v11, 0.0  ;;  %v90_v24 = vsel %vm47_vm0, %v37_v12, 0.0  ;;  %v97_v25 = vsel %vm47_vm0, %v38_v13, 0.0 }
  0x12   :  { %v50_v26 = vadd.f32 %v49_v18, %v48_v14  ;;  %v57_v27 = vadd.f32 %v56_v19, %v55_v15  ;;  %v64_v28 = vadd.f32 %v63_v20, %v62_v16  ;;  %v71_v29 = vadd.f32 %v70_v21, %v69_v17 }
  0x13   :  { %v77_v30 = vrot.slane %v76_v22, 4  ;;  %v84_v31 = vrot.slane %v83_v23, 4  ;;  %v91_v32 = vrot.slane %v90_v24, 4  ;;  %v98_v33 = vrot.slane %v97_v25, 4 }
  0x14   :  { %v51_v34 = vrot.slane %v50_v26, 2  ;;  %v58_v35 = vrot.slane %v57_v27, 2  ;;  %v65_v36 = vrot.slane %v64_v28, 2  ;;  %v72_v37 = vrot.slane %v71_v29, 2 }
  0x15   :  { %v78_v38 = vadd.f32 %v77_v30, %v76_v22  ;;  %v85_v39 = vadd.f32 %v84_v31, %v83_v23  ;;  %v92_v40 = vadd.f32 %v91_v32, %v90_v24  ;;  %v99_v41 = vadd.f32 %v98_v33, %v97_v25 }
  0x16   :  { %v52_v42 = vadd.f32 %v51_v34, %v50_v26  ;;  %v59_v43 = vadd.f32 %v58_v35, %v57_v27  ;;  %v66_v44 = vadd.f32 %v65_v36, %v64_v28  ;;  %v73_v45 = vadd.f32 %v72_v37, %v71_v29 }
  0x17   :  { %v79_v46 = vrot.slane %v78_v38, 2  ;;  %v86_v47 = vrot.slane %v85_v39, 2  ;;  %v93_v48 = vrot.slane %v92_v40, 2  ;;  %v100_v49 = vrot.slane %v99_v41, 2 }
  0x18   :  { %v60_v50 = vrot.slane %v59_v43, 1  ;;  %v67_v51 = vrot.slane %v66_v44, 1  ;;  %v74_v52 = vrot.slane %v73_v45, 1  ;;  %v53_v57 = vrot.slane %v52_v42, 1 }
  0x19   :  { %v80_v53 = vadd.f32 %v79_v46, %v78_v38  ;;  %v87_v54 = vadd.f32 %v86_v47, %v85_v39  ;;  %v94_v55 = vadd.f32 %v93_v48, %v92_v40  ;;  %v101_v56 = vadd.f32 %v100_v49, %v99_v41 }
  0x1a   :  { %v61_v58 = vadd.f32 %v60_v50, %v59_v43  ;;  %v68_v59 = vadd.f32 %v67_v51, %v66_v44  ;;  %v75_v60 = vadd.f32 %v74_v52, %v73_v45  ;;  %v54_v7 = vadd.f32 %v53_v57, %v52_v42 }
  0x1b   :  { %v81_v61 = vrot.slane %v80_v53, 1  ;;  %v88_v62 = vrot.slane %v87_v54, 1  ;;  %v95_v63 = vrot.slane %v94_v55, 1  ;;  %v102_v0 = vrot.slane %v101_v56, 1 }
  0x1c   :  { %v112_v1 = vrot.slane %v61_v58, 6  ;;  %v113_v2 = vrot.slane %v68_v59, 4  ;;  %v114_v6 = vrot.slane %v75_v60, 2 }
  0x1d   :  { %v89_v3 = vadd.f32 %v88_v62, %v87_v54  ;;  %v96_v4 = vadd.f32 %v95_v63, %v94_v55  ;;  %v103_v5 = vadd.f32 %v102_v0, %v101_v56  ;;  %v82_v8 = vadd.f32 %v81_v61, %v80_v53 }
  0x1e   :  { %v119_v12 = vsel %vm118_vm1, %v54_v7, %v112_v1  ;;  %v121_v13 = vsel %vm120_vm2, %v113_v2, %v114_v6 }
  0x1f   :  { %v115_v9 = vrot.slane %v89_v3, 6  ;;  %v116_v10 = vrot.slane %v96_v4, 4  ;;  %v117_v11 = vrot.slane %v103_v5, 2  ;;  %v122_v18 = vsel %vm47_vm0, %v119_v12, %v121_v13 }
  0x21   :  { %v123_v14 = vsel %vm118_vm1, %v82_v8, %v115_v9  ;;  %v124_v15 = vsel %vm120_vm2, %v116_v10, %v117_v11 }
  0x22   :  { %v125_v16 = vsel %vm47_vm0, %v123_v14, %v124_v15 }
  0x23   :  { %v130_v17 = vrot.slane %v125_v16, 7 }
  0x25   :  { %v132_v19 = vsel %vm131_vm3, %v130_v17, %v122_v18 }
  0x26   :  { %v134_v20 = vsel %vm133_vm4, %v130_v17, %v132_v19 }
  0x27   :  { %v136_v21 = vsel %vm135_vm5, %v130_v17, %v134_v20 }
  0x28   :  { %v138_v22 = vsel %vm137_vm6, %v130_v17, %v136_v21 }
  0x29   :  { %v146_v23 = vmul.f32 0.25, %v138_v22 }
  0x2b   :  { %147 = vst [vmem:[%s182_s1] sm:$0xff] %v146_v23 }

// kernel: resnet_forward.71
= control target key start
LH: loop header
LB: loop body
LE: loop exit
PB: predicated region body
PF: predicated region fallthrough
CT: control target
= control target key end

     0   :  { %s1461_s15 = smov 0   ;;  %s1463_s16 = smov 0   ;;  %s1750_s0 = inlined_call_operand.vmem [shape: bf16[8,4608], index: 0, kind: input, shape index: {}]   ;;  %s1751_s1 = inlined_call_operand.vmem [shape: bf16[4608,512], index: 1, kind: input, shape index: {}]   ;;  %s1752_s2 = inlined_call_operand.vmem [shape: bf16[8,512], index: 2, kind: output, shape index: {0}]   ;;  %s1753_s3 = inlined_call_operand.vmem [shape: f32[1,1,512], index: 3, kind: output, shape index: {1}]   ;;  %s1754_s4 = inlined_call_operand.vmem [shape: f32[1,1,512], index: 4, kind: output, shape index: {2}]  }
   0x1   :  { %s1465_s17 = smov 0   ;;  %s1467_s18 = smov 0  }
   0x2   :  { %s1469_s19 = smov 0   ;;  %s1471_s20 = smov 0  }
   0x3   :  { %s1473_s21 = smov 0  }
   0x4 LB: > { %s27_s22 = sadd.s32 1, %s1425_s19  ;;  %s30_s23 = sadd.s32 1, %s1429_s20  ;;  %s1433_s21 = sphi %s1473_s21, %s15_s21   ;;  %s1429_s20 = sphi %s1471_s20, %s1760_s20   ;;  %s1425_s19 = sphi %s1469_s19, %s1759_s19   ;;  %s1421_s18 = sphi %s1467_s18, %s1758_s18   ;;  %s1417_s17 = sphi %s1465_s17, %s1757_s17   ;;  %s1413_s16 = sphi %s1463_s16, %s1756_s16   ;;  %s1409_s15 = sphi %s1461_s15, %s1755_s15  }
   0x5   : > { %p28_p0 = scmp.ge.s32.totalorder %s27_s22, 9  ;;  %p78_p1 = scmp.ne.s32.totalorder %s1413_s16, %s1409_s15 }
   0x6   : > { %p79_p2 = scmp.eq.s32.totalorder %s1433_s21, 0  ;;  %s71_s27 = sadd.s32 1, %s1413_s16 }
   0x7   : > { %s1762_s22 = smov (%p28_p0, %s27_s22), 0  ;;  %s1764_s23 = smov (!%p28_p0, %s30_s23), %s1429_s20 }
   0x8   : > { %p80_p3 = por %p79_p2, %p78_p1  ;;  %p32_p4 = scmp.ge.s32.totalorder %s1764_s23, 4 }
   0x9   : > { %s66_s24 = ssub.s32 %s1425_s19, %s1762_s22  ;;  %p1147_p6 = scmp.ge.s32.totalorder %s1433_s21, 36 }
   0xa   : > { %s1766_s23 = smov (%p32_p4, %s1764_s23), 0 }
   0xb   : > { %s67_s25 = ssub.s32 %s1429_s20, %s1766_s23  ;;  %188 = sbr.rel (%p1147_p6) target bundleno = 86 (0x56), region = 16 }
   0xc   : > { %s68_s26 = sor.u32 %s67_s25, %s66_s24 }
   0xd   : > { %p69_p5 = scmp.eq.s32.totalorder %s68_s26, 0 }
   0xf   : > { %s1512_s28 = scalar_select %p69_p5, %s1413_s16, %s71_s27  }
  0x10   : > { %204 = sbr.rel (!%p80_p3) target bundleno = 86 (0x56), region = 24  ;;  %s206_s29 = sand.u32 (%p80_p3), 1, %s1413_s16  }
  0x11   : > { %s1289_s30 = sshll.u32 (%p80_p3), %s1425_s19, 8  ;;  %s1148_s5 = sshll.u32 (%p80_p3), %s206_s29, 8 }
  0x12   : > { %s211_s6 = sadd.s32 (%p80_p3), %s1429_s20, %s1289_s30  ;;  %s1526_s11 = scalar_lea.vmem (%p80_p3), [#allocation3], %s1148_s5 }
  0x13   : > { %s1151_s7 = sshll.u32 (%p80_p3), %s211_s6, 2 }
  0x14   : > { %s1521_s10 = scalar_lea.vmem (%p80_p3), %s1751_s1, %s1151_s7 }
  0x15   : > { %v230_v0 = vld [vmem:[%s1521_s10] sm:$0xf]  ;;  %v232_v1 = vld [vmem:[%s1521_s10 + $0x10] sm:$0xf] }
  0x16   : > { %v234_v2 = vld [vmem:[%s1521_s10 + $0x20] sm:$0xf]  ;;  %231 = vst [vmem:[%s1526_s11] sm:$0xf] %v230_v0  ;;  %v236_v3 = vld [vmem:[%s1521_s10 + $0x30] sm:$0xf] }
  0x17   : > { %233 = vst [vmem:[%s1526_s11 + $0x4] sm:$0xf] %v232_v1  ;;  %v238_v4 = vld [vmem:[%s1521_s10 + $0x40] sm:$0xf]  ;;  %v240_v5 = vld [vmem:[%s1521_s10 + $0x50] sm:$0xf] }
  0x18   : > { %235 = vst [vmem:[%s1526_s11 + $0x8] sm:$0xf] %v234_v2  ;;  %v242_v6 = vld [vmem:[%s1521_s10 + $0x60] sm:$0xf]  ;;  %v244_v7 = vld [vmem:[%s1521_s10 + $0x70] sm:$0xf] }
  0x19   : > { %237 = vst [vmem:[%s1526_s11 + $0xc] sm:$0xf] %v236_v3  ;;  %v246_v8 = vld [vmem:[%s1521_s10 + $0x80] sm:$0xf]  ;;  %v248_v9 = vld [vmem:[%s1521_s10 + $0x90] sm:$0xf] }
  0x1a   : > { %239 = vst [vmem:[%s1526_s11 + $0x10] sm:$0xf] %v238_v4  ;;  %v250_v10 = vld [vmem:[%s1521_s10 + $0xa0] sm:$0xf]  ;;  %v252_v11 = vld [vmem:[%s1521_s10 + $0xb0] sm:$0xf] }
  0x1b   : > { %241 = vst [vmem:[%s1526_s11 + $0x14] sm:$0xf] %v240_v5  ;;  %v254_v12 = vld [vmem:[%s1521_s10 + $0xc0] sm:$0xf]  ;;  %v256_v13 = vld [vmem:[%s1521_s10 + $0xd0] sm:$0xf] }
  0x1c   : > { %243 = vst [vmem:[%s1526_s11 + $0x18] sm:$0xf] %v242_v6  ;;  %v258_v14 = vld [vmem:[%s1521_s10 + $0xe0] sm:$0xf]  ;;  %v260_v15 = vld [vmem:[%s1521_s10 + $0xf0] sm:$0xf] }
  0x1d   : > { %245 = vst [vmem:[%s1526_s11 + $0x1c] sm:$0xf] %v244_v7  ;;  %v262_v16 = vld [vmem:[%s1521_s10 + $0x100] sm:$0xf]  ;;  %v264_v17 = vld [vmem:[%s1521_s10 + $0x110] sm:$0xf] }
  0x1e   : > { %247 = vst [vmem:[%s1526_s11 + $0x20] sm:$0xf] %v246_v8  ;;  %v266_v18 = vld [vmem:[%s1521_s10 + $0x120] sm:$0xf]  ;;  %v268_v19 = vld [vmem:[%s1521_s10 + $0x130] sm:$0xf] }
  0x1f   : > { %249 = vst [vmem:[%s1526_s11 + $0x24] sm:$0xf] %v248_v9  ;;  %v270_v20 = vld [vmem:[%s1521_s10 + $0x140] sm:$0xf]  ;;  %v272_v21 = vld [vmem:[%s1521_s10 + $0x150] sm:$0xf] }
  0x20   : > { %251 = vst [vmem:[%s1526_s11 + $0x28] sm:$0xf] %v250_v10  ;;  %v274_v22 = vld [vmem:[%s1521_s10 + $0x160] sm:$0xf]  ;;  %v276_v23 = vld [vmem:[%s1521_s10 + $0x170] sm:$0xf] }
  0x21   : > { %253 = vst [vmem:[%s1526_s11 + $0x2c] sm:$0xf] %v252_v11  ;;  %v278_v24 = vld [vmem:[%s1521_s10 + $0x180] sm:$0xf]  ;;  %v280_v25 = vld [vmem:[%s1521_s10 + $0x190] sm:$0xf] }
  0x22   : > { %255 = vst [vmem:[%s1526_s11 + $0x30] sm:$0xf] %v254_v12  ;;  %v282_v26 = vld [vmem:[%s1521_s10 + $0x1a0] sm:$0xf]  ;;  %v284_v27 = vld [vmem:[%s1521_s10 + $0x1b0] sm:$0xf] }
  0x23   : > { %257 = vst [vmem:[%s1526_s11 + $0x34] sm:$0xf] %v256_v13  ;;  %v286_v28 = vld [vmem:[%s1521_s10 + $0x1c0] sm:$0xf]  ;;  %v288_v29 = vld [vmem:[%s1521_s10 + $0x1d0] sm:$0xf] }
  0x24   : > { %259 = vst [vmem:[%s1526_s11 + $0x38] sm:$0xf] %v258_v14  ;;  %v290_v30 = vld [vmem:[%s1521_s10 + $0x1e0] sm:$0xf]  ;;  %v292_v31 = vld [vmem:[%s1521_s10 + $0x1f0] sm:$0xf] }
  0x25   : > { %261 = vst [vmem:[%s1526_s11 + $0x3c] sm:$0xf] %v260_v15  ;;  %v294_v32 = vld [vmem:[%s1521_s10 + $0x200] sm:$0xf]  ;;  %v296_v33 = vld [vmem:[%s1521_s10 + $0x210] sm:$0xf] }
  0x26   : > { %263 = vst [vmem:[%s1526_s11 + $0x40] sm:$0xf] %v262_v16  ;;  %v298_v34 = vld [vmem:[%s1521_s10 + $0x220] sm:$0xf]  ;;  %v300_v35 = vld [vmem:[%s1521_s10 + $0x230] sm:$0xf] }
  0x27   : > { %265 = vst [vmem:[%s1526_s11 + $0x44] sm:$0xf] %v264_v17  ;;  %v302_v36 = vld [vmem:[%s1521_s10 + $0x240] sm:$0xf]  ;;  %v304_v37 = vld [vmem:[%s1521_s10 + $0x250] sm:$0xf] }
  0x28   : > { %267 = vst [vmem:[%s1526_s11 + $0x48] sm:$0xf] %v266_v18  ;;  %v306_v38 = vld [vmem:[%s1521_s10 + $0x260] sm:$0xf]  ;;  %v308_v39 = vld [vmem:[%s1521_s10 + $0x270] sm:$0xf] }
  0x29   : > { %269 = vst [vmem:[%s1526_s11 + $0x4c] sm:$0xf] %v268_v19  ;;  %v310_v40 = vld [vmem:[%s1521_s10 + $0x280] sm:$0xf]  ;;  %v312_v41 = vld [vmem:[%s1521_s10 + $0x290] sm:$0xf] }
  0x2a   : > { %271 = vst [vmem:[%s1526_s11 + $0x50] sm:$0xf] %v270_v20  ;;  %v314_v42 = vld [vmem:[%s1521_s10 + $0x2a0] sm:$0xf]  ;;  %v316_v43 = vld [vmem:[%s1521_s10 + $0x2b0] sm:$0xf] }
  0x2b   : > { %273 = vst [vmem:[%s1526_s11 + $0x54] sm:$0xf] %v272_v21  ;;  %v318_v44 = vld [vmem:[%s1521_s10 + $0x2c0] sm:$0xf]  ;;  %v320_v45 = vld [vmem:[%s1521_s10 + $0x2d0] sm:$0xf] }
  0x2c   : > { %275 = vst [vmem:[%s1526_s11 + $0x58] sm:$0xf] %v274_v22  ;;  %v322_v46 = vld [vmem:[%s1521_s10 + $0x2e0] sm:$0xf]  ;;  %v324_v47 = vld [vmem:[%s1521_s10 + $0x2f0] sm:$0xf] }
  0x2d   : > { %277 = vst [vmem:[%s1526_s11 + $0x5c] sm:$0xf] %v276_v23  ;;  %v326_v48 = vld [vmem:[%s1521_s10 + $0x300] sm:$0xf]  ;;  %v328_v49 = vld [vmem:[%s1521_s10 + $0x310] sm:$0xf] }
  0x2e   : > { %279 = vst [vmem:[%s1526_s11 + $0x60] sm:$0xf] %v278_v24  ;;  %v330_v50 = vld [vmem:[%s1521_s10 + $0x320] sm:$0xf]  ;;  %v332_v51 = vld [vmem:[%s1521_s10 + $0x330] sm:$0xf] }
  0x2f   : > { %281 = vst [vmem:[%s1526_s11 + $0x64] sm:$0xf] %v280_v25  ;;  %v334_v52 = vld [vmem:[%s1521_s10 + $0x340] sm:$0xf]  ;;  %v336_v53 = vld [vmem:[%s1521_s10 + $0x350] sm:$0xf] }
  0x30   : > { %283 = vst [vmem:[%s1526_s11 + $0x68] sm:$0xf] %v282_v26  ;;  %v338_v54 = vld [vmem:[%s1521_s10 + $0x360] sm:$0xf]  ;;  %v340_v55 = vld [vmem:[%s1521_s10 + $0x370] sm:$0xf] }
  0x31   : > { %285 = vst [vmem:[%s1526_s11 + $0x6c] sm:$0xf] %v284_v27  ;;  %v342_v56 = vld [vmem:[%s1521_s10 + $0x380] sm:$0xf]  ;;  %v344_v57 = vld [vmem:[%s1521_s10 + $0x390] sm:$0xf] }
  0x32   : > { %287 = vst [vmem:[%s1526_s11 + $0x70] sm:$0xf] %v286_v28  ;;  %v346_v58 = vld [vmem:[%s1521_s10 + $0x3a0] sm:$0xf]  ;;  %v348_v59 = vld [vmem:[%s1521_s10 + $0x3b0] sm:$0xf] }
  0x33   : > { %289 = vst [vmem:[%s1526_s11 + $0x74] sm:$0xf] %v288_v29  ;;  %v350_v60 = vld [vmem:[%s1521_s10 + $0x3c0] sm:$0xf]  ;;  %v352_v61 = vld [vmem:[%s1521_s10 + $0x3d0] sm:$0xf] }
  0x34   : > { %291 = vst [vmem:[%s1526_s11 + $0x78] sm:$0xf] %v290_v30  ;;  %v354_v62 = vld [vmem:[%s1521_s10 + $0x3e0] sm:$0xf]  ;;  %v356_v63 = vld [vmem:[%s1521_s10 + $0x3f0] sm:$0xf] }
  0x35   : > { %293 = vst [vmem:[%s1526_s11 + $0x7c] sm:$0xf] %v292_v31 }
  0x36   : > { %295 = vst [vmem:[%s1526_s11 + $0x80] sm:$0xf] %v294_v32 }
  0x37   : > { %297 = vst [vmem:[%s1526_s11 + $0x84] sm:$0xf] %v296_v33 }
  0x38   : > { %299 = vst [vmem:[%s1526_s11 + $0x88] sm:$0xf] %v298_v34 }
  0x39   : > { %301 = vst [vmem:[%s1526_s11 + $0x8c] sm:$0xf] %v300_v35 }
  0x3a   : > { %303 = vst [vmem:[%s1526_s11 + $0x90] sm:$0xf] %v302_v36 }
  0x3b   : > { %305 = vst [vmem:[%s1526_s11 + $0x94] sm:$0xf] %v304_v37 }
  0x3c   : > { %307 = vst [vmem:[%s1526_s11 + $0x98] sm:$0xf] %v306_v38 }
  0x3d   : > { %309 = vst [vmem:[%s1526_s11 + $0x9c] sm:$0xf] %v308_v39 }
  0x3e   : > { %311 = vst [vmem:[%s1526_s11 + $0xa0] sm:$0xf] %v310_v40 }
  0x3f   : > { %313 = vst [vmem:[%s1526_s11 + $0xa4] sm:$0xf] %v312_v41 }
  0x40   : > { %315 = vst [vmem:[%s1526_s11 + $0xa8] sm:$0xf] %v314_v42 }
  0x41   : > { %317 = vst [vmem:[%s1526_s11 + $0xac] sm:$0xf] %v316_v43 }
  0x42   : > { %319 = vst [vmem:[%s1526_s11 + $0xb0] sm:$0xf] %v318_v44 }
  0x43   : > { %321 = vst [vmem:[%s1526_s11 + $0xb4] sm:$0xf] %v320_v45 }
  0x44   : > { %323 = vst [vmem:[%s1526_s11 + $0xb8] sm:$0xf] %v322_v46 }
  0x45   : > { %325 = vst [vmem:[%s1526_s11 + $0xbc] sm:$0xf] %v324_v47 }
  0x46   : > { %327 = vst [vmem:[%s1526_s11 + $0xc0] sm:$0xf] %v326_v48 }
  0x47   : > { %329 = vst [vmem:[%s1526_s11 + $0xc4] sm:$0xf] %v328_v49 }
  0x48   : > { %331 = vst [vmem:[%s1526_s11 + $0xc8] sm:$0xf] %v330_v50 }
  0x49   : > { %333 = vst [vmem:[%s1526_s11 + $0xcc] sm:$0xf] %v332_v51 }
  0x4a   : > { %335 = vst [vmem:[%s1526_s11 + $0xd0] sm:$0xf] %v334_v52 }
  0x4b   : > { %337 = vst [vmem:[%s1526_s11 + $0xd4] sm:$0xf] %v336_v53 }
  0x4c   : > { %339 = vst [vmem:[%s1526_s11 + $0xd8] sm:$0xf] %v338_v54 }
  0x4d   : > { %341 = vst [vmem:[%s1526_s11 + $0xdc] sm:$0xf] %v340_v55 }
  0x4e   : > { %343 = vst [vmem:[%s1526_s11 + $0xe0] sm:$0xf] %v342_v56 }
  0x4f   : > { %345 = vst [vmem:[%s1526_s11 + $0xe4] sm:$0xf] %v344_v57 }
  0x50   : > { %347 = vst [vmem:[%s1526_s11 + $0xe8] sm:$0xf] %v346_v58 }
  0x51   : > { %349 = vst [vmem:[%s1526_s11 + $0xec] sm:$0xf] %v348_v59 }
  0x52   : > { %351 = vst [vmem:[%s1526_s11 + $0xf0] sm:$0xf] %v350_v60 }
  0x53   : > { %353 = vst [vmem:[%s1526_s11 + $0xf4] sm:$0xf] %v352_v61 }
  0x54   : > { %355 = vst [vmem:[%s1526_s11 + $0xf8] sm:$0xf] %v354_v62 }
  0x55   : > { %357 = vst [vmem:[%s1526_s11 + $0xfc] sm:$0xf] %v356_v63 }
  0x56 PF: > { %p1152_p7 = scmp.ge.s32.totalorder %s1433_s21, 1  ;;  %p508_p8 = scmp.lt.s32.totalorder %s1433_s21, 37 }
  0x58   : > { %p509_p9 = pnand %p1152_p7, %p508_p8 }
  0x59   : > { %s515_s12 = sand.u32 (!%p509_p9), 1, %s1409_s15   ;;  %s1154_s13 = sshll.u32 (!%p509_p9), %s1417_s17, 2 }
  0x5a   : > { %512 = sbr.rel (%p509_p9) target bundleno = 301 (0x12d), region = 65  ;;  %s1153_s14 = sshll.u32 (!%p509_p9), %s515_s12, 8 }
  0x5b   : > { %p569_p10 = scmp.lt.s32.totalorder (!%p509_p9), %s1154_s13, 35  ;;  %p579_p11 = scmp.lt.s32.totalorder (!%p509_p9), %s1421_s18, 3 }
  0x5c   : > { %s1680_s12 = scalar_lea.vmem (!%p509_p9), [#allocation3], %s1153_s14  ;;  %p1157_p12 = scmp.ne.s32.totalorder (!%p509_p9), %s1417_s17, 0 }
  0x5f   : > { %s1768_s13 = smov (!%p569_p10, %s1154_s13), 35  ;;  %s1770_s18 = smov (!%p579_p11, %s1421_s18), 3 }
  0x60   : > { %s1155_s24 = sshll.u32 %s1768_s13, 2  ;;  %s1156_s29 = sshll.u32 %s1770_s18, 2 }
  0x61   : > { %s1664_s27 = scalar_lea.vmem %s1750_s0, %s1155_s24  ;;  %s1670_s15 = scalar_lea.vmem %s1752_s2, %s1156_s29 }
  0x62   : > { %s591_s8 = scalar_lea.vmem %s1753_s3, %s1770_s18  ;;  %s598_s11 = scalar_lea.vmem %s1754_s4, %s1770_s18 }
  0x63   : > { %602 = sbr.rel (%p1157_p12) target bundleno = 106 (0x6a), region = 73 }
  0x68   : > { %v1435_v0 = vmov 0.0  }
  0x69   : > { %603 = vst [vmem:[#allocation2] sm:$0xff] %v1435_v0 }
  0x6a PF: > { %v1297_v1 = vld [vmem:[%s1680_s12 + $0x38] sm:$0xff]  ;;  %v1296_v5 = vld [vmem:[%s1680_s12 + $0x30] sm:$0xff]  ;;  %v1295_v9 = vld [vmem:[%s1680_s12 + $0x28] sm:$0xff]  ;;  %p1286_p13 = scmp.ne.s32.totalorder %s1417_s17, 8 }
  0x6b   : > { %v1305_v2 = vld [vmem:[%s1680_s12 + $0x78] sm:$0xff]  ;;  %877 = vmatpush.bf16.msra.mxu0 %v1297_v1  ;;  %v1304_v6 = vld [vmem:[%s1680_s12 + $0x70] sm:$0xff]  ;;  %v1303_v10 = vld [vmem:[%s1680_s12 + $0x68] sm:$0xff] }
  0x6c   : > { %v1313_v3 = vld [vmem:[%s1680_s12 + $0xb8] sm:$0xff]  ;;  %890 = vmatpush.bf16.msra.mxu1 %v1305_v2  ;;  %v1312_v7 = vld [vmem:[%s1680_s12 + $0xb0] sm:$0xff]  ;;  %v1311_v11 = vld [vmem:[%s1680_s12 + $0xa8] sm:$0xff] }
  0x6d   : > { %v1321_v4 = vld [vmem:[%s1680_s12 + $0xf8] sm:$0xff]  ;;  %903 = vmatpush.bf16.msra.mxu2 %v1313_v3  ;;  %v1320_v8 = vld [vmem:[%s1680_s12 + $0xf0] sm:$0xff]  ;;  %v1319_v12 = vld [vmem:[%s1680_s12 + $0xe8] sm:$0xff] }
  0x6e   : > { %916 = vmatpush.bf16.msra.mxu3 %v1321_v4  ;;  %v1294_v13 = vld [vmem:[%s1680_s12 + $0x20] sm:$0xff]  ;;  %v1293_v17 = vld [vmem:[%s1680_s12 + $0x18] sm:$0xff]  ;;  %v1292_v21 = vld [vmem:[%s1680_s12 + $0x10] sm:$0xff] }
  0x6f   : > { %878 = vmatpush.bf16.msra.mxu0 %v1296_v5  ;;  %v1302_v14 = vld [vmem:[%s1680_s12 + $0x60] sm:$0xff]  ;;  %v1301_v18 = vld [vmem:[%s1680_s12 + $0x58] sm:$0xff]  ;;  %v1300_v22 = vld [vmem:[%s1680_s12 + $0x50] sm:$0xff] }
  0x70   : > { %891 = vmatpush.bf16.msra.mxu1 %v1304_v6  ;;  %v1310_v15 = vld [vmem:[%s1680_s12 + $0xa0] sm:$0xff]  ;;  %v1309_v19 = vld [vmem:[%s1680_s12 + $0x98] sm:$0xff]  ;;  %v1308_v23 = vld [vmem:[%s1680_s12 + $0x90] sm:$0xff] }
  0x71   : > { %904 = vmatpush.bf16.msra.mxu2 %v1312_v7  ;;  %v1318_v16 = vld [vmem:[%s1680_s12 + $0xe0] sm:$0xff]  ;;  %v1317_v20 = vld [vmem:[%s1680_s12 + $0xd8] sm:$0xff]  ;;  %v1316_v24 = vld [vmem:[%s1680_s12 + $0xd0] sm:$0xff] }
  0x72   : > { %917 = vmatpush.bf16.msra.mxu3 %v1320_v8  ;;  %v1291_v25 = vld [vmem:[%s1680_s12 + $0x8] sm:$0xff]  ;;  %v605_v27 = vld [vmem:[%s1664_s27] sm:$0xff]  ;;  %v606_v30 = vld [vmem:[%s1664_s27 + $0x8] sm:$0xff] }
  0x73   : > { %879 = vmatpush.bf16.msra.mxu0 %v1295_v9  ;;  %v1299_v26 = vld [vmem:[%s1680_s12 + $0x48] sm:$0xff]  ;;  %v673_v31 = vunpack.c.l.b16 %v605_v27  ;;  %v674_v32 = vunpack.c.h.b16 %v605_v27  ;;  %v1290_v33 = vld [vmem:[%s1680_s12] sm:$0xff]  ;;  %v675_v35 = vunpack.c.l.b16 %v606_v30  ;;  %v676_v36 = vunpack.c.h.b16 %v606_v30  ;;  %v604_v51 = vld [vmem:[#allocation2] sm:$0xff] }
  0x74   : > { %892 = vmatpush.bf16.msra.mxu1 %v1303_v10  ;;  %v1307_v28 = vld [vmem:[%s1680_s12 + $0x88] sm:$0xff]  ;;  %v1298_v34 = vld [vmem:[%s1680_s12 + $0x40] sm:$0xff] }
  0x75   : > { %905 = vmatpush.bf16.msra.mxu2 %v1311_v11  ;;  %v1315_v29 = vld [vmem:[%s1680_s12 + $0xc8] sm:$0xff]  ;;  %v1306_v37 = vld [vmem:[%s1680_s12 + $0x80] sm:$0xff]  ;;  %v677_v39 = vpack.c.b16 %v673_v31, %v673_v31  ;;  %v678_v40 = vpack.c.b16 %v674_v32, %v674_v32  ;;  %v679_v41 = vpack.c.b16 %v675_v35, %v675_v35  ;;  %v680_v42 = vpack.c.b16 %v676_v36, %v676_v36 }
  0x76   : > { %918 = vmatpush.bf16.msra.mxu3 %v1319_v12  ;;  %v1314_v38 = vld [vmem:[%s1680_s12 + $0xc0] sm:$0xff] }
  0x77   : > { %880 = vmatpush.bf16.msra.mxu0 %v1294_v13 }
  0x78   : > { %893 = vmatpush.bf16.msra.mxu1 %v1302_v14 }
  0x79   : > { %906 = vmatpush.bf16.msra.mxu2 %v1310_v15 }
  0x7a   : > { %919 = vmatpush.bf16.msra.mxu3 %v1318_v16 }
  0x7b   : > { %881 = vmatpush.bf16.msra.mxu0 %v1293_v17 }
  0x7c   : > { %894 = vmatpush.bf16.msra.mxu1 %v1301_v18 }
  0x7d   : > { %907 = vmatpush.bf16.msra.mxu2 %v1309_v19 }
  0x7e   : > { %920 = vmatpush.bf16.msra.mxu3 %v1317_v20 }
  0x7f   : > { %882 = vmatpush.bf16.msra.mxu0 %v1292_v21 }
  0x80   : > { %895 = vmatpush.bf16.msra.mxu1 %v1300_v22 }
  0x81   : > { %908 = vmatpush.bf16.msra.mxu2 %v1308_v23 }
  0x82   : > { %921 = vmatpush.bf16.msra.mxu3 %v1316_v24 }
  0x83   : > { %883 = vmatpush.bf16.msra.mxu0 %v1291_v25 }
  0x84   : > { %896 = vmatpush.bf16.msra.mxu1 %v1299_v26 }
  0x85   : > { %909 = vmatpush.bf16.msra.mxu2 %v1307_v28 }
  0x86   : > { %922 = vmatpush.bf16.msra.mxu3 %v1315_v29 }
  0x87   : > { %884 = vmatpush.bf16.msra.mxu0 %v1290_v33 }
  0x88   : > { %897 = vmatpush.bf16.msra.mxu1 %v1298_v34 }
  0x89   : > { %910 = vmatpush.bf16.msra.mxu2 %v1306_v37 }
  0x8a   : > { %923 = vmatpush.bf16.msra.mxu3 %v1314_v38  ;;  %885 = vmatmul.bf16.vlgmr.msra.gmra.mxu0 %v677_v39 }
  0x8b   : > { %898 = vmatmul.bf16.vlgmr.msra.gmra.mxu1 %v678_v40 }
  0x8c   : > { %911 = vmatmul.bf16.vlgmr.msra.gmra.mxu2 %v679_v41 }
  0x8d   : > { %924 = vmatmul.bf16.vlgmr.msra.gmra.mxu3 %v680_v42 }
 0x107   : > { %v886_v43 = vpop.f32.mrf.mxu0 }
 0x108   : > { %v899_v44 = vpop.f32.mrf.mxu1 }
 0x109   : > { %v900_v45 = vadd.f32 %v899_v44, %v886_v43 }
 0x10f   : > { %v912_v46 = vpop.f32.mrf.mxu2  ;;  %v888_v49 = vpop.f32.mrf.mxu0 }
 0x110   : > { %v925_v47 = vpop.f32.mrf.mxu3  ;;  %v913_v48 = vadd.f32 %v912_v46, %v900_v45  ;;  %v901_v50 = vpop.f32.mrf.mxu1 }
 0x112   : > { %v926_v52 = vadd.f32 %v925_v47, %v913_v48 }
 0x114   : > { %v929_v53 = vadd.f32 %v926_v52, %v604_v51  ;;  %934 = sbr.rel (%p1286_p13) target bundleno = 301 (0x12d), region = 77 }
 0x116   : > { %930 = vst [vmem:[#allocation2] sm:$0xff] %v929_v53 }
 0x117   : > { %v914_v54 = vpop.f32.mrf.mxu2 }
 0x118   : > { %v927_v55 = vpop.f32.mrf.mxu3 }
 0x11d   : > { %v935_v56 = vld [vmem:[#allocation2] sm:$0xff] }
 0x11e   : > { %v936_v57 = vpack.c.bf16 %v935_v56, %v935_v56  ;;  %v938_v58 = vrot.slane %v935_v56, 4  ;;  %v945_v59 = vmul.f32 %v935_v56, %v935_v56 }
 0x120   : > { %937 = vst [vmem:[%s1670_s15] sm:$0xf] %v936_v57  ;;  %v939_v60 = vadd.f32 %v938_v58, %v935_v56  ;;  %v946_v61 = vrot.slane %v945_v59, 4 }
 0x122   : > { %v940_v62 = vrot.slane %v939_v60, 2  ;;  %v947_v63 = vadd.f32 %v946_v61, %v945_v59 }
 0x124   : > { %v941_v0 = vadd.f32 %v940_v62, %v939_v60  ;;  %v948_v1 = vrot.slane %v947_v63, 2 }
 0x126   : > { %v942_v2 = vrot.slane %v941_v0, 1  ;;  %v949_v3 = vadd.f32 %v948_v1, %v947_v63 }
 0x128   : > { %v943_v4 = vadd.f32 %v942_v2, %v941_v0  ;;  %v950_v5 = vrot.slane %v949_v3, 1 }
 0x12a   : > { %944 = vst [vmem:[%s591_s8] sm:$0x1] %v943_v4  ;;  %v951_v6 = vadd.f32 %v950_v5, %v949_v3 }
 0x12c   : > { %952 = vst [vmem:[%s598_s11] sm:$0x1] %v951_v6 }
 0x12d PF: > { %s15_s21 = sadd.s32 1, %s1433_s21   ;;  %s1755_s15 = smov %s1413_s16 }
 0x12e   : > { %p12_p0 = scmp.ge.s32.totalorder %s15_s21, 38   ;;  %s1756_s16 = smov %s1512_s28 }
 0x12f   : > { %s1757_s17 = smov %s1425_s19  ;;  %s1758_s18 = smov %s1429_s20 }
 0x130   : > { %s1759_s19 = smov %s1762_s22  ;;  %s1760_s20 = smov %s1766_s23 }
 0x131   :  { %14 = sbr.rel (!%p12_p0) target bundleno = 4 (0x4), region = 139 }

// kernel: resnet_forward.75
= control target key start
LH: loop header
LB: loop body
LE: loop exit
PB: predicated region body
PF: predicated region fallthrough
CT: control target
= control target key end

     0   :  { %s649_s1 = inlined_call_operand.vmem [shape: bf16[512,128], index: 1, kind: input, shape index: {}]   ;;  %s650_s0 = inlined_call_operand.vmem [shape: bf16[8,512], index: 0, kind: input, shape index: {}]   ;;  %s651_s2 = inlined_call_operand.vmem [shape: f32[1,128], index: 2, kind: input, shape index: {}]   ;;  %s652_s3 = inlined_call_operand.vmem [shape: f32[8,128], index: 3, kind: output, shape index: {}]  }
   0x1   :  { %v495_v0 = vld [vmem:[%s649_s1 + $0x38] sm:$0xff]  ;;  %v494_v4 = vld [vmem:[%s649_s1 + $0x30] sm:$0xff]  ;;  %v493_v8 = vld [vmem:[%s649_s1 + $0x28] sm:$0xff] }
   0x2   :  { %v503_v1 = vld [vmem:[%s649_s1 + $0x78] sm:$0xff]  ;;  %292 = vmatpush.bf16.msra.mxu0 %v495_v0  ;;  %v502_v5 = vld [vmem:[%s649_s1 + $0x70] sm:$0xff]  ;;  %v501_v9 = vld [vmem:[%s649_s1 + $0x68] sm:$0xff] }
   0x3   :  { %v511_v2 = vld [vmem:[%s649_s1 + $0xb8] sm:$0xff]  ;;  %305 = vmatpush.bf16.msra.mxu1 %v503_v1  ;;  %v510_v6 = vld [vmem:[%s649_s1 + $0xb0] sm:$0xff]  ;;  %v509_v10 = vld [vmem:[%s649_s1 + $0xa8] sm:$0xff] }
   0x4   :  { %v519_v3 = vld [vmem:[%s649_s1 + $0xf8] sm:$0xff]  ;;  %318 = vmatpush.bf16.msra.mxu2 %v511_v2  ;;  %v518_v7 = vld [vmem:[%s649_s1 + $0xf0] sm:$0xff]  ;;  %v517_v11 = vld [vmem:[%s649_s1 + $0xe8] sm:$0xff] }
   0x5   :  { %331 = vmatpush.bf16.msra.mxu3 %v519_v3  ;;  %v492_v12 = vld [vmem:[%s649_s1 + $0x20] sm:$0xff]  ;;  %v491_v16 = vld [vmem:[%s649_s1 + $0x18] sm:$0xff]  ;;  %v490_v20 = vld [vmem:[%s649_s1 + $0x10] sm:$0xff] }
   0x6   :  { %293 = vmatpush.bf16.msra.mxu0 %v494_v4  ;;  %v500_v13 = vld [vmem:[%s649_s1 + $0x60] sm:$0xff]  ;;  %v499_v17 = vld [vmem:[%s649_s1 + $0x58] sm:$0xff]  ;;  %v498_v21 = vld [vmem:[%s649_s1 + $0x50] sm:$0xff] }
   0x7   :  { %306 = vmatpush.bf16.msra.mxu1 %v502_v5  ;;  %v508_v14 = vld [vmem:[%s649_s1 + $0xa0] sm:$0xff]  ;;  %v507_v18 = vld [vmem:[%s649_s1 + $0x98] sm:$0xff]  ;;  %v506_v22 = vld [vmem:[%s649_s1 + $0x90] sm:$0xff] }
   0x8   :  { %319 = vmatpush.bf16.msra.mxu2 %v510_v6  ;;  %v516_v15 = vld [vmem:[%s649_s1 + $0xe0] sm:$0xff]  ;;  %v515_v19 = vld [vmem:[%s649_s1 + $0xd8] sm:$0xff]  ;;  %v514_v23 = vld [vmem:[%s649_s1 + $0xd0] sm:$0xff] }
   0x9   :  { %332 = vmatpush.bf16.msra.mxu3 %v518_v7  ;;  %v489_v24 = vld [vmem:[%s649_s1 + $0x8] sm:$0xff]  ;;  %v20_v26 = vld [vmem:[%s650_s0] sm:$0xff] }
   0xa   :  { %294 = vmatpush.bf16.msra.mxu0 %v493_v8  ;;  %v497_v25 = vld [vmem:[%s649_s1 + $0x48] sm:$0xff]  ;;  %v88_v30 = vunpack.c.l.b16 %v20_v26  ;;  %v89_v31 = vunpack.c.h.b16 %v20_v26  ;;  %v488_v32 = vld [vmem:[%s649_s1] sm:$0xff] }
   0xb   :  { %307 = vmatpush.bf16.msra.mxu1 %v501_v9  ;;  %v505_v27 = vld [vmem:[%s649_s1 + $0x88] sm:$0xff]  ;;  %v496_v33 = vld [vmem:[%s649_s1 + $0x40] sm:$0xff] }
   0xc   :  { %320 = vmatpush.bf16.msra.mxu2 %v509_v10  ;;  %v513_v28 = vld [vmem:[%s649_s1 + $0xc8] sm:$0xff]  ;;  %v504_v36 = vld [vmem:[%s649_s1 + $0x80] sm:$0xff]  ;;  %v92_v38 = vpack.c.b16 %v88_v30, %v88_v30  ;;  %v93_v39 = vpack.c.b16 %v89_v31, %v89_v31 }
   0xd   :  { %333 = vmatpush.bf16.msra.mxu3 %v517_v11  ;;  %v21_v29 = vld [vmem:[%s650_s0 + $0x8] sm:$0xff]  ;;  %v512_v37 = vld [vmem:[%s649_s1 + $0xc0] sm:$0xff] }
   0xe   :  { %295 = vmatpush.bf16.msra.mxu0 %v492_v12  ;;  %v90_v34 = vunpack.c.l.b16 %v21_v29  ;;  %v91_v35 = vunpack.c.h.b16 %v21_v29  ;;  %v520_v48 = vld [vmem:[%s651_s2] ss:$0 sm:$0xff] }
   0xf   :  { %308 = vmatpush.bf16.msra.mxu1 %v500_v13 }
  0x10   :  { %321 = vmatpush.bf16.msra.mxu2 %v508_v14  ;;  %v94_v40 = vpack.c.b16 %v90_v34, %v90_v34  ;;  %v95_v41 = vpack.c.b16 %v91_v35, %v91_v35 }
  0x11   :  { %334 = vmatpush.bf16.msra.mxu3 %v516_v15 }
  0x12   :  { %296 = vmatpush.bf16.msra.mxu0 %v491_v16 }
  0x13   :  { %309 = vmatpush.bf16.msra.mxu1 %v499_v17 }
  0x14   :  { %322 = vmatpush.bf16.msra.mxu2 %v507_v18 }
  0x15   :  { %335 = vmatpush.bf16.msra.mxu3 %v515_v19 }
  0x16   :  { %297 = vmatpush.bf16.msra.mxu0 %v490_v20 }
  0x17   :  { %310 = vmatpush.bf16.msra.mxu1 %v498_v21 }
  0x18   :  { %323 = vmatpush.bf16.msra.mxu2 %v506_v22 }
  0x19   :  { %336 = vmatpush.bf16.msra.mxu3 %v514_v23 }
  0x1a   :  { %298 = vmatpush.bf16.msra.mxu0 %v489_v24 }
  0x1b   :  { %311 = vmatpush.bf16.msra.mxu1 %v497_v25 }
  0x1c   :  { %324 = vmatpush.bf16.msra.mxu2 %v505_v27 }
  0x1d   :  { %337 = vmatpush.bf16.msra.mxu3 %v513_v28 }
  0x1e   :  { %299 = vmatpush.bf16.msra.mxu0 %v488_v32 }
  0x1f   :  { %312 = vmatpush.bf16.msra.mxu1 %v496_v33 }
  0x20   :  { %325 = vmatpush.bf16.msra.mxu2 %v504_v36 }
  0x21   :  { %338 = vmatpush.bf16.msra.mxu3 %v512_v37  ;;  %300 = vmatmul.bf16.vlgmr.msra.gmra.mxu0 %v92_v38 }
  0x22   :  { %313 = vmatmul.bf16.vlgmr.msra.gmra.mxu1 %v93_v39 }
  0x23   :  { %326 = vmatmul.bf16.vlgmr.msra.gmra.mxu2 %v94_v40 }
  0x24   :  { %339 = vmatmul.bf16.vlgmr.msra.gmra.mxu3 %v95_v41 }
  0x9e   :  { %v301_v42 = vpop.f32.mrf.mxu0 }
  0x9f   :  { %v314_v43 = vpop.f32.mrf.mxu1 }
  0xa0   :  { %v315_v44 = vadd.f32 %v314_v43, %v301_v42 }
  0xa6   :  { %v327_v45 = vpop.f32.mrf.mxu2  ;;  %v303_v49 = vpop.f32.mrf.mxu0 }
  0xa7   :  { %v340_v46 = vpop.f32.mrf.mxu3  ;;  %v328_v47 = vadd.f32 %v327_v45, %v315_v44  ;;  %v316_v50 = vpop.f32.mrf.mxu1 }
  0xa9   :  { %v341_v51 = vadd.f32 %v340_v46, %v328_v47 }
  0xab   :  { %v354_v52 = vadd.f32 %v520_v48, %v341_v51 }
  0xad   :  { %355 = vst [vmem:[%s652_s3] sm:$0xff] %v354_v52 }
  0xae   :  { %v329_v53 = vpop.f32.mrf.mxu2 }
  0xaf   :  { %v342_v54 = vpop.f32.mrf.mxu3 }

</bundles_post_ra>
